<compile_context>
chip_gen: v6e
topology: v6e:2x2x1
jax: 0.10.0
libtpu: 0.0.40
codegen_flags: <defaults>
</compile_context>

<pallas_src>
import jax
import jax.numpy as jnp
from jax.experimental import pallas as pl
from jax.experimental.pallas import tpu as pltpu


NUM_ATTR = 85


# ----------------------------------------------------------------------------
# Helpers
# ----------------------------------------------------------------------------
def _ru(x, m):
    return ((x + m - 1) // m) * m


def _pick(v, cands):
    """Largest candidate tile that divides v (fallback: full extent)."""
    for c in cands:
        if v % c == 0:
            return c
    return v


# ----------------------------------------------------------------------------
# Pallas matmul + per-tile batch statistics (for every conv-as-matmul).
#   a: (Mp, Kp) bf16, b: (Kp, N) bf16  ->  y: (Mp, N) f32,
#   stats: (Mp//tm, 8, N) f32 with sublane 0 = partial sum, sublane 1 = sumsq.
# ----------------------------------------------------------------------------
def _mm_stats_kernel(a_ref, b_ref, o_ref, st_ref):
    @pl.when(pl.program_id(2) == 0)
    def _():
        o_ref[...] = jnp.zeros_like(o_ref)

    o_ref[...] += jnp.dot(a_ref[...], b_ref[...],
                          preferred_element_type=jnp.float32)

    @pl.when(pl.program_id(2) == pl.num_programs(2) - 1)
    def _():
        acc = o_ref[...]                                   # (tm, tn) f32
        s = jnp.sum(acc, axis=0, keepdims=True)            # (1, tn)
        sq = jnp.sum(acc * acc, axis=0, keepdims=True)     # (1, tn)
        row = jax.lax.broadcasted_iota(jnp.int32, (8, acc.shape[1]), 0)
        st = jnp.where(row == 0, s, jnp.where(row == 1, sq, 0.0))
        st_ref[...] = st[None]                             # (1, 8, tn)


def pallas_matmul_stats(a, b):
    mp, kp = a.shape
    kp2, n = b.shape
    assert kp == kp2
    tm = _pick(mp, (256, 128, 64, 32, 16))
    tk = _pick(kp, (512, 256, 128))
    tn = _pick(n, (256, 128)) if n % 128 == 0 else n
    gm, gn, gk = mp // tm, n // tn, kp // tk
    out, stats = pl.pallas_call(
        _mm_stats_kernel,
        out_shape=(jax.ShapeDtypeStruct((mp, n), jnp.float32),
                   jax.ShapeDtypeStruct((gm, 8, n), jnp.float32)),
        grid_spec=pltpu.PrefetchScalarGridSpec(
            num_scalar_prefetch=0,
            grid=(gm, gn, gk),
            in_specs=[pl.BlockSpec((tm, tk), lambda i, j, k: (i, k)),
                      pl.BlockSpec((tk, tn), lambda i, j, k: (k, j))],
            out_specs=(pl.BlockSpec((tm, tn), lambda i, j, k: (i, j)),
                       pl.BlockSpec((1, 8, tn), lambda i, j, k: (i, 0, j)))),
        compiler_params=pltpu.CompilerParams(
            dimension_semantics=("parallel", "parallel", "arbitrary")),
    )(a, b)
    return out, stats


# ----------------------------------------------------------------------------
# Pallas matmul with fused bias epilogue (final FC layer).
# ----------------------------------------------------------------------------
def _mm_bias_kernel(a_ref, b_ref, bias_ref, o_ref):
    @pl.when(pl.program_id(2) == 0)
    def _():
        o_ref[...] = jnp.zeros_like(o_ref)

    o_ref[...] += jnp.dot(a_ref[...], b_ref[...],
                          preferred_element_type=jnp.float32)

    @pl.when(pl.program_id(2) == pl.num_programs(2) - 1)
    def _():
        o_ref[...] += bias_ref[...]


def pallas_fc_bias(x, wmat, bias, n_out):
    """x: (B, K) f32; wmat: (K, Np) bf16 (lane-padded); bias: (1, Np) f32."""
    bsz, k = x.shape
    np_ = wmat.shape[1]
    mp = _ru(bsz, 16)
    a = x.astype(jnp.bfloat16)
    if mp > bsz:
        a = jnp.pad(a, ((0, mp - bsz), (0, 0)))
    tm = _pick(mp, (256, 128, 64, 32, 16))
    tk = _pick(k, (512, 256, 128))
    tn = _pick(np_, (256, 128)) if np_ % 128 == 0 else np_
    out = pl.pallas_call(
        _mm_bias_kernel,
        out_shape=jax.ShapeDtypeStruct((mp, np_), jnp.float32),
        grid_spec=pltpu.PrefetchScalarGridSpec(
            num_scalar_prefetch=0,
            grid=(mp // tm, np_ // tn, k // tk),
            in_specs=[pl.BlockSpec((tm, tk), lambda i, j, kk: (i, kk)),
                      pl.BlockSpec((tk, tn), lambda i, j, kk: (kk, j)),
                      pl.BlockSpec((1, tn), lambda i, j, kk: (0, j))],
            out_specs=pl.BlockSpec((tm, tn), lambda i, j, kk: (i, j))),
        compiler_params=pltpu.CompilerParams(
            dimension_semantics=("parallel", "parallel", "arbitrary")),
    )(a, wmat, bias)
    return out[:bsz, :n_out]


# ----------------------------------------------------------------------------
# Fused BN affine (+ optional residual) (+ optional ReLU) on (rows, channels).
# x is the f32 matmul output; the result is stored bf16 (next conv's input).
# ----------------------------------------------------------------------------
def _affine_kernel(x_ref, s_ref, b_ref, o_ref):
    y = x_ref[...] * s_ref[...] + b_ref[...]
    o_ref[...] = y.astype(o_ref.dtype)


def _affine_relu_kernel(x_ref, s_ref, b_ref, o_ref):
    y = x_ref[...] * s_ref[...] + b_ref[...]
    o_ref[...] = jnp.maximum(y, 0.0).astype(o_ref.dtype)


def _affine_add_relu_kernel(x_ref, s_ref, b_ref, r_ref, o_ref):
    y = x_ref[...] * s_ref[...] + b_ref[...] + r_ref[...].astype(jnp.float32)
    o_ref[...] = jnp.maximum(y, 0.0).astype(o_ref.dtype)


def pallas_affine(x, scale, shift, residual=None, relu=True,
                  out_dtype=jnp.bfloat16):
    m, c = x.shape                      # m is already a multiple of 16
    tm = _pick(m, (512, 256, 128, 64, 32, 16))
    s2 = scale.reshape(1, c).astype(jnp.float32)
    b2 = shift.reshape(1, c).astype(jnp.float32)

    row_spec = pl.BlockSpec((tm, c), lambda i: (i, 0))
    vec_spec = pl.BlockSpec((1, c), lambda i: (0, 0))
    ins = [x, s2, b2]
    specs = [row_spec, vec_spec, vec_spec]
    if residual is not None:
        ins.append(residual)
        specs.append(pl.BlockSpec((tm, c), lambda i: (i, 0)))
        kern = _affine_add_relu_kernel      # ResNet residual path always ReLUs
    else:
        kern = _affine_relu_kernel if relu else _affine_kernel

    return pl.pallas_call(
        kern,
        out_shape=jax.ShapeDtypeStruct((m, c), out_dtype),
        grid_spec=pltpu.PrefetchScalarGridSpec(
            num_scalar_prefetch=0,
            grid=(m // tm,),
            in_specs=specs,
            out_specs=row_spec),
        compiler_params=pltpu.CompilerParams(
            dimension_semantics=("parallel",)),
    )(*ins)


# ----------------------------------------------------------------------------
# Convolution as NHWC im2col (bf16) + Pallas matmul-with-stats.
# ----------------------------------------------------------------------------
def _im2col_nhwc(x, kh, kw, stride, pad, k_pad_to):
    # TODO(synk): patches are materialized in HBM by XLA; a fully fused version
    # would stream the kh*kw row-slices per k-tile from HBM inside the kernel.
    n, h, w, c = x.shape
    xp = jnp.pad(x, ((0, 0), (pad, pad), (pad, pad), (0, 0))) if pad else x
    oh = (h + 2 * pad - kh) // stride + 1
    ow = (w + 2 * pad - kw) // stride + 1
    chunks = []
    for i in range(kh):
        for j in range(kw):
            chunks.append(xp[:, i:i + stride * oh:stride,
                             j:j + stride * ow:stride, :])
    k = kh * kw * c
    assert k_pad_to >= k
    if k_pad_to > k:
        chunks.append(jnp.zeros((n, oh, ow, k_pad_to - k), x.dtype))
    patches = jnp.concatenate(chunks, axis=-1).reshape(n * oh * ow, k_pad_to)
    return patches, (n, oh, ow)


def conv_rows(x_nhwc, wmat, kh, kw, stride, pad):
    """x: NHWC bf16, wmat: (Kp, OC) bf16.  Returns padded rows + stats."""
    patches, (n, oh, ow) = _im2col_nhwc(x_nhwc, kh, kw, stride, pad,
                                        wmat.shape[0])
    m = n * oh * ow
    mp = _ru(m, 16)
    if mp > m:
        patches = jnp.pad(patches, ((0, mp - m), (0, 0)))
    y, stats = pallas_matmul_stats(patches, wmat)
    return y, stats, (n, oh, ow, m)


def bn_scale_shift(stats, m_true, gamma, beta, eps=1e-5):
    # Training-mode BatchNorm (module default state): batch statistics,
    # biased variance.  Zero-padded rows contribute zero to both sums, so
    # dividing by the true row count is exact.
    s = jnp.sum(stats[:, 0, :], axis=0)
    sq = jnp.sum(stats[:, 1, :], axis=0)
    mean = s / m_true
    var = jnp.maximum(sq / m_true - mean * mean, 0.0)
    scale = gamma * jax.lax.rsqrt(var + eps)
    shift = beta - mean * scale
    return scale, shift


# ----------------------------------------------------------------------------
# ResNet-18 backbone + fc(512 -> 85)
# ----------------------------------------------------------------------------
_LAYER_CFG = [(64, 64, 1), (64, 128, 2), (128, 256, 2), (256, 512, 2)]


def init_params(key):
    """PyTorch-layout f32 parameters (converted once by prepare_params)."""
    cnt = [0]

    def nrm(shape, s=0.05):
        k = jax.random.fold_in(key, cnt[0])
        cnt[0] += 1
        return s * jax.random.normal(k, shape, jnp.float32)

    p = {}
    p["conv1_w"] = nrm((64, 3, 7, 7))
    p["bn1_g"] = jnp.ones((64,), jnp.float32)
    p["bn1_b"] = jnp.zeros((64,), jnp.float32)
    for li, (cin, cout, stride) in enumerate(_LAYER_CFG, start=1):
        for bi in range(2):
            pre = f"l{li}b{bi}_"
            in_c = cin if bi == 0 else cout
            st = stride if bi == 0 else 1
            p[pre + "conv1_w"] = nrm((cout, in_c, 3, 3))
            p[pre + "bn1_g"] = jnp.ones((cout,), jnp.float32)
            p[pre + "bn1_b"] = jnp.zeros((cout,), jnp.float32)
            p[pre + "conv2_w"] = nrm((cout, cout, 3, 3))
            p[pre + "bn2_g"] = jnp.ones((cout,), jnp.float32)
            p[pre + "bn2_b"] = jnp.zeros((cout,), jnp.float32)
            if bi == 0 and (st != 1 or in_c != cout):
                p[pre + "ds_w"] = nrm((cout, in_c, 1, 1))
                p[pre + "ds_g"] = jnp.ones((cout,), jnp.float32)
                p[pre + "ds_b"] = jnp.zeros((cout,), jnp.float32)
    p["fc_w"] = nrm((NUM_ATTR, 512))
    p["fc_b"] = jnp.zeros((NUM_ATTR,), jnp.float32)
    return p


def prepare_params(p):
    """One-time conversion to kernel layout: conv weights -> (KH*KW*IC padded
    to 128, OC) bf16 matmul operands (matching NHWC im2col order), FC weight /
    bias lane-padded to 128.  Call once, outside the jitted forward."""
    def conv_w(w):
        oc, ic, kh, kw = w.shape
        wm = jnp.transpose(w, (2, 3, 1, 0)).reshape(kh * kw * ic, oc)
        kp = _ru(wm.shape[0], 128)
        if kp > wm.shape[0]:
            wm = jnp.pad(wm, ((0, kp - wm.shape[0]), (0, 0)))
        return wm.astype(jnp.bfloat16)

    q = {}
    for k, v in p.items():
        if k.endswith(("conv1_w", "conv2_w", "ds_w")):
            q[k] = conv_w(v)
        elif k == "fc_w":
            wm = v.T                                              # (512, 85)
            np_ = _ru(wm.shape[1], 128)
            wm = jnp.pad(wm, ((0, 0), (0, np_ - wm.shape[1])))
            q[k] = wm.astype(jnp.bfloat16)
        elif k == "fc_b":
            np_ = _ru(v.shape[0], 128)
            q[k] = jnp.pad(v, (0, np_ - v.shape[0])).reshape(1, np_)
        else:
            q[k] = v
    return q


def basic_block(x, p, pre, stride, has_ds):
    y1, st1, (n, oh, ow, m) = conv_rows(x, p[pre + "conv1_w"], 3, 3, stride, 1)
    cout = y1.shape[1]
    s1, b1 = bn_scale_shift(st1, m, p[pre + "bn1_g"], p[pre + "bn1_b"])
    h1 = pallas_affine(y1, s1, b1, relu=True)               # (Mp, cout) bf16
    h1 = h1[:m].reshape(n, oh, ow, cout)

    y2, st2, _ = conv_rows(h1, p[pre + "conv2_w"], 3, 3, 1, 1)
    s2, b2 = bn_scale_shift(st2, m, p[pre + "bn2_g"], p[pre + "bn2_b"])

    if has_ds:
        yd, std_, _ = conv_rows(x, p[pre + "ds_w"], 1, 1, stride, 0)
        sd, bd = bn_scale_shift(std_, m, p[pre + "ds_g"], p[pre + "ds_b"])
        id_rows = pallas_affine(yd, sd, bd, relu=False)      # no ReLU on ds
    else:
        id_rows = x.reshape(m, cout)
        mp = y2.shape[0]
        if mp > m:
            id_rows = jnp.pad(id_rows, ((0, mp - m), (0, 0)))

    out = pallas_affine(y2, s2, b2, residual=id_rows, relu=True)
    return out[:m].reshape(n, oh, ow, cout)


def attribute_cnn_forward(p, x_nchw):
    # Input is NCHW (PyTorch convention); convert to lane-dense NHWC bf16 once.
    x = jnp.transpose(x_nchw, (0, 2, 3, 1)).astype(jnp.bfloat16)

    # stem: conv7x7 s2 p3 -> bn -> relu -> maxpool 3x3 s2 p1
    y, stats, (n, oh, ow, m) = conv_rows(x, p["conv1_w"], 7, 7, 2, 3)
    s, b = bn_scale_shift(stats, m, p["bn1_g"], p["bn1_b"])
    h = pallas_affine(y, s, b, relu=True)
    x = h[:m].reshape(n, oh, ow, y.shape[1])
    # TODO(synk): maxpool / adaptive-avgpool remain plain-JAX layout glue
    # (reduce_window / mean) rather than Pallas kernels.
    x = jax.lax.reduce_window(
        x, jnp.array(-jnp.inf, x.dtype), jax.lax.max,
        (1, 3, 3, 1), (1, 2, 2, 1), [(0, 0), (1, 1), (1, 1), (0, 0)])

    for li, (cin, cout, strd) in enumerate(_LAYER_CFG, start=1):
        for bi in range(2):
            pre = f"l{li}b{bi}_"
            x = basic_block(x, p, pre, strd if bi == 0 else 1,
                            (pre + "ds_w") in p)

    feat = jnp.mean(x.astype(jnp.float32), axis=(1, 2))       # (N, 512)
    logits = pallas_fc_bias(feat, p["fc_w"], p["fc_b"], NUM_ATTR)
    return logits


if __name__ == "__main__":
    key = jax.random.PRNGKey(0)
    x = jax.random.normal(key, (2, 3, 32, 32), jnp.float32)   # NCHW, like PyTorch
    params = prepare_params(init_params(jax.random.PRNGKey(42)))

    fwd = jax.jit(attribute_cnn_forward)
    out = jax.block_until_ready(fwd(params, x))
    assert out.shape == (2, NUM_ATTR) and out.dtype == jnp.float32
    assert bool(jnp.all(jnp.isfinite(out)))
    print("KERNEL_OK")
</pallas_src>

<mosaic_0001>
module attributes {stable_mosaic.version = 11 : i64} {
  func.func @_mm_stats_kernel(%arg0: i32, %arg1: i32, %arg2: i32, %arg3: memref<256x256xbf16, #tpu.memory_space<vmem>>, %arg4: memref<256x64xbf16, #tpu.memory_space<vmem>>, %arg5: memref<256x64xf32, #tpu.memory_space<vmem>>, %arg6: memref<1x8x64xf32, #tpu.memory_space<vmem>>) attributes {dimension_semantics = [#tpu.dimension_semantics<parallel>, #tpu.dimension_semantics<parallel>, #tpu.dimension_semantics<arbitrary>], iteration_bounds = array<i64: 2, 1, 1>, scalar_prefetch = 0 : i64, scratch_operands = 0 : i64, tpu.core_type = #tpu.core_type<tc>, window_params = [{transform_indices = @transform_0, window_bounds = array<i64: 256, 256>}, {transform_indices = @transform_1, window_bounds = array<i64: 256, 64>}, {transform_indices = @transform_2, window_bounds = array<i64: 256, 64>}, {transform_indices = @transform_3, window_bounds = array<i64: 1, 8, 64>}]} {
    %c0_i32 = arith.constant 0 : i32
    %0 = arith.cmpi eq, %arg2, %c0_i32 : i32
    %1 = arith.extui %0 : i1 to i32
    %c0_i32_0 = arith.constant 0 : i32
    %2 = arith.cmpi ne, %1, %c0_i32_0 : i32
    scf.if %2 {
      %cst_10 = arith.constant 0.000000e+00 : f32
      %12 = vector.broadcast %cst_10 : f32 to vector<256x64xf32>
      %c0_11 = arith.constant 0 : index
      %c0_12 = arith.constant 0 : index
      %13 = vector.load %arg5[%c0_11, %c0_12] : memref<256x64xf32, #tpu.memory_space<vmem>>, vector<256x64xf32>
      tpu.vector_store %arg5[%c0_11, %c0_12], %12 {strides = array<i32>} : memref<256x64xf32, #tpu.memory_space<vmem>>, vector<256x64xf32>,
    } else {
    }
    %c0 = arith.constant 0 : index
    %c0_1 = arith.constant 0 : index
    %3 = vector.load %arg5[%c0, %c0_1] : memref<256x64xf32, #tpu.memory_space<vmem>>, vector<256x64xf32>
    %c0_2 = arith.constant 0 : index
    %c0_3 = arith.constant 0 : index
    %4 = vector.load %arg3[%c0_2, %c0_3] : memref<256x256xbf16, #tpu.memory_space<vmem>>, vector<256x256xbf16>
    %c0_4 = arith.constant 0 : index
    %c0_5 = arith.constant 0 : index
    %5 = vector.load %arg4[%c0_4, %c0_5] : memref<256x64xbf16, #tpu.memory_space<vmem>>, vector<256x64xbf16>
    %cst = arith.constant dense<0.000000e+00> : vector<256x64xf32>
    %6 = tpu.matmul %4, %5, %cst {dimension_numbers = #tpu.dot_dimension_numbers<[1], [0], [0], [1], [0, 0, 1, 1], [], []>} : vector<256x256xbf16>, vector<256x64xbf16>, vector<256x64xf32> -> vector<256x64xf32>
    %7 = arith.addf %3, %6 : vector<256x64xf32>
    %c0_6 = arith.constant 0 : index
    %c0_7 = arith.constant 0 : index
    %8 = vector.load %arg5[%c0_6, %c0_7] : memref<256x64xf32, #tpu.memory_space<vmem>>, vector<256x64xf32>
    tpu.vector_store %arg5[%c0_6, %c0_7], %7 {strides = array<i32>} : memref<256x64xf32, #tpu.memory_space<vmem>>, vector<256x64xf32>,
    %c0_i32_8 = arith.constant 0 : i32
    %9 = arith.cmpi eq, %arg2, %c0_i32_8 : i32
    %10 = arith.extui %9 : i1 to i32
    %c0_i32_9 = arith.constant 0 : i32
    %11 = arith.cmpi ne, %10, %c0_i32_9 : i32
    scf.if %11 {
      %c0_10 = arith.constant 0 : index
      %c0_11 = arith.constant 0 : index
      %12 = vector.load %arg5[%c0_10, %c0_11] : memref<256x64xf32, #tpu.memory_space<vmem>>, vector<256x64xf32>
      %cst_12 = arith.constant dense<0.000000e+00> : vector<64xf32>
      %13 = vector.multi_reduction <add>, %12, %cst_12 [0] : vector<256x64xf32> to vector<64xf32>
      %14 = vector.shape_cast %13 : vector<64xf32> to vector<1x64xf32>
      %15 = arith.mulf %12, %12 : vector<256x64xf32>
      %cst_13 = arith.constant dense<0.000000e+00> : vector<64xf32>
      %16 = vector.multi_reduction <add>, %15, %cst_13 [0] : vector<256x64xf32> to vector<64xf32>
      %17 = vector.shape_cast %16 : vector<64xf32> to vector<1x64xf32>
      %18 = tpu.iota {dimensions = array<i32: 0>} : vector<8x64xi32>
      %c0_i32_14 = arith.constant 0 : i32
      %19 = vector.broadcast %c0_i32_14 : i32 to vector<8x64xi32>
      %20 = arith.cmpi eq, %18, %19 : vector<8x64xi32>
      %c1_i32 = arith.constant 1 : i32
      %21 = vector.broadcast %c1_i32 : i32 to vector<8x64xi32>
      %22 = arith.cmpi eq, %18, %21 : vector<8x64xi32>
      %cst_15 = arith.constant 0.000000e+00 : f32
      %23 = vector.shape_cast %17 : vector<1x64xf32> to vector<1x64xf32>
      %24 = vector.broadcast %23 : vector<1x64xf32> to vector<8x64xf32>
      %25 = vector.broadcast %cst_15 : f32 to vector<8x64xf32>
      %26 = arith.select %22, %24, %25 : vector<8x64xi1>, vector<8x64xf32>
      %27 = vector.shape_cast %14 : vector<1x64xf32> to vector<1x64xf32>
      %28 = vector.broadcast %27 : vector<1x64xf32> to vector<8x64xf32>
      %29 = arith.select %20, %28, %26 : vector<8x64xi1>, vector<8x64xf32>
      %30 = vector.shape_cast %29 : vector<8x64xf32> to vector<1x8x64xf32>
      %c0_16 = arith.constant 0 : index
      %c0_17 = arith.constant 0 : index
      %c0_18 = arith.constant 0 : index
      %31 = vector.load %arg6[%c0_16, %c0_17, %c0_18] : memref<1x8x64xf32, #tpu.memory_space<vmem>>, vector<1x8x64xf32>
      tpu.vector_store %arg6[%c0_16, %c0_17, %c0_18], %30 {strides = array<i32>} : memref<1x8x64xf32, #tpu.memory_space<vmem>>, vector<1x8x64xf32>,
    } else {
    }
    return
  }
  func.func @transform_0(%arg0: i32, %arg1: i32, %arg2: i32) -> (i32, i32) {
    %c0_i32 = arith.constant 0 : i32
    return %arg0, %arg2 : i32, i32
  }
  func.func @transform_1(%arg0: i32, %arg1: i32, %arg2: i32) -> (i32, i32) {
    %c0_i32 = arith.constant 0 : i32
    return %arg2, %arg1 : i32, i32
  }
  func.func @transform_2(%arg0: i32, %arg1: i32, %arg2: i32) -> (i32, i32) {
    %c0_i32 = arith.constant 0 : i32
    return %arg0, %arg1 : i32, i32
  }
  func.func @transform_3(%arg0: i32, %arg1: i32, %arg2: i32) -> (i32, i32, i32) {
    %c0_i32 = arith.constant 0 : i32
    %c0_i32_0 = arith.constant 0 : i32
    return %arg0, %c0_i32, %arg1 : i32, i32, i32
  }
}

module attributes {stable_mosaic.version = 11 : i64} {
  func.func @_affine_relu_kernel(%arg0: i32, %arg1: memref<512x64xf32, #tpu.memory_space<vmem>>, %arg2: memref<1x64xf32, #tpu.memory_space<vmem>>, %arg3: memref<1x64xf32, #tpu.memory_space<vmem>>, %arg4: memref<512x64xbf16, #tpu.memory_space<vmem>>) attributes {dimension_semantics = [#tpu.dimension_semantics<parallel>], iteration_bounds = array<i64: 1>, scalar_prefetch = 0 : i64, scratch_operands = 0 : i64, tpu.core_type = #tpu.core_type<tc>, window_params = [{transform_indices = @transform_0, window_bounds = array<i64: 512, 64>}, {pipeline_mode = #tpu.pipeline_mode<synchronous>, transform_indices = @transform_1, window_bounds = array<i64: 1, 64>}, {pipeline_mode = #tpu.pipeline_mode<synchronous>, transform_indices = @transform_2, window_bounds = array<i64: 1, 64>}, {transform_indices = @transform_3, window_bounds = array<i64: 512, 64>}]} {
    %c0 = arith.constant 0 : index
    %c0_0 = arith.constant 0 : index
    %0 = vector.load %arg1[%c0, %c0_0] : memref<512x64xf32, #tpu.memory_space<vmem>>, vector<512x64xf32>
    %c0_1 = arith.constant 0 : index
    %c0_2 = arith.constant 0 : index
    %1 = vector.load %arg2[%c0_1, %c0_2] : memref<1x64xf32, #tpu.memory_space<vmem>>, vector<1x64xf32>
    %2 = vector.broadcast %1 : vector<1x64xf32> to vector<512x64xf32>
    %3 = arith.mulf %0, %2 : vector<512x64xf32>
    %c0_3 = arith.constant 0 : index
    %c0_4 = arith.constant 0 : index
    %4 = vector.load %arg3[%c0_3, %c0_4] : memref<1x64xf32, #tpu.memory_space<vmem>>, vector<1x64xf32>
    %5 = vector.broadcast %4 : vector<1x64xf32> to vector<512x64xf32>
    %6 = arith.addf %3, %5 : vector<512x64xf32>
    %cst = arith.constant 0.000000e+00 : f32
    %7 = vector.broadcast %cst : f32 to vector<512x64xf32>
    %8 = arith.maximumf %6, %7 : vector<512x64xf32>
    %9 = arith.truncf %8 : vector<512x64xf32> to vector<512x64xbf16>
    %c0_5 = arith.constant 0 : index
    %c0_6 = arith.constant 0 : index
    %10 = vector.load %arg4[%c0_5, %c0_6] : memref<512x64xbf16, #tpu.memory_space<vmem>>, vector<512x64xbf16>
    tpu.vector_store %arg4[%c0_5, %c0_6], %9 {strides = array<i32>} : memref<512x64xbf16, #tpu.memory_space<vmem>>, vector<512x64xbf16>,
    return
  }
  func.func @transform_0(%arg0: i32) -> (i32, i32) {
    %c0_i32 = arith.constant 0 : i32
    %c0_i32_0 = arith.constant 0 : i32
    return %arg0, %c0_i32 : i32, i32
  }
  func.func @transform_1(%arg0: i32) -> (i32, i32) {
    %c0_i32 = arith.constant 0 : i32
    %c0_i32_0 = arith.constant 0 : i32
    %c0_i32_1 = arith.constant 0 : i32
    return %c0_i32, %c0_i32_0 : i32, i32
  }
  func.func @transform_2(%arg0: i32) -> (i32, i32) {
    %c0_i32 = arith.constant 0 : i32
    %c0_i32_0 = arith.constant 0 : i32
    %c0_i32_1 = arith.constant 0 : i32
    return %c0_i32, %c0_i32_0 : i32, i32
  }
  func.func @transform_3(%arg0: i32) -> (i32, i32) {
    %c0_i32 = arith.constant 0 : i32
    %c0_i32_0 = arith.constant 0 : i32
    return %arg0, %c0_i32 : i32, i32
  }
}

module attributes {stable_mosaic.version = 11 : i64} {
  func.func @_mm_stats_kernel(%arg0: i32, %arg1: i32, %arg2: i32, %arg3: memref<128x128xbf16, #tpu.memory_space<vmem>>, %arg4: memref<128x64xbf16, #tpu.memory_space<vmem>>, %arg5: memref<128x64xf32, #tpu.memory_space<vmem>>, %arg6: memref<1x8x64xf32, #tpu.memory_space<vmem>>) attributes {dimension_semantics = [#tpu.dimension_semantics<parallel>, #tpu.dimension_semantics<parallel>, #tpu.dimension_semantics<arbitrary>], iteration_bounds = array<i64: 1, 1, 5>, scalar_prefetch = 0 : i64, scratch_operands = 0 : i64, tpu.core_type = #tpu.core_type<tc>, window_params = [{transform_indices = @transform_0, window_bounds = array<i64: 128, 128>}, {transform_indices = @transform_1, window_bounds = array<i64: 128, 64>}, {transform_indices = @transform_2, window_bounds = array<i64: 128, 64>}, {transform_indices = @transform_3, window_bounds = array<i64: 1, 8, 64>}]} {
    %c0_i32 = arith.constant 0 : i32
    %0 = arith.cmpi eq, %arg2, %c0_i32 : i32
    %1 = arith.extui %0 : i1 to i32
    %c0_i32_0 = arith.constant 0 : i32
    %2 = arith.cmpi ne, %1, %c0_i32_0 : i32
    scf.if %2 {
      %cst_9 = arith.constant 0.000000e+00 : f32
      %12 = vector.broadcast %cst_9 : f32 to vector<128x64xf32>
      %c0_10 = arith.constant 0 : index
      %c0_11 = arith.constant 0 : index
      %13 = vector.load %arg5[%c0_10, %c0_11] : memref<128x64xf32, #tpu.memory_space<vmem>>, vector<128x64xf32>
      tpu.vector_store %arg5[%c0_10, %c0_11], %12 {strides = array<i32>} : memref<128x64xf32, #tpu.memory_space<vmem>>, vector<128x64xf32>,
    } else {
    }
    %c0 = arith.constant 0 : index
    %c0_1 = arith.constant 0 : index
    %3 = vector.load %arg5[%c0, %c0_1] : memref<128x64xf32, #tpu.memory_space<vmem>>, vector<128x64xf32>
    %c0_2 = arith.constant 0 : index
    %c0_3 = arith.constant 0 : index
    %4 = vector.load %arg3[%c0_2, %c0_3] : memref<128x128xbf16, #tpu.memory_space<vmem>>, vector<128x128xbf16>
    %c0_4 = arith.constant 0 : index
    %c0_5 = arith.constant 0 : index
    %5 = vector.load %arg4[%c0_4, %c0_5] : memref<128x64xbf16, #tpu.memory_space<vmem>>, vector<128x64xbf16>
    %cst = arith.constant dense<0.000000e+00> : vector<128x64xf32>
    %6 = tpu.matmul %4, %5, %cst {dimension_numbers = #tpu.dot_dimension_numbers<[1], [0], [0], [1], [0, 0, 1, 1], [], []>} : vector<128x128xbf16>, vector<128x64xbf16>, vector<128x64xf32> -> vector<128x64xf32>
    %7 = arith.addf %3, %6 : vector<128x64xf32>
    %c0_6 = arith.constant 0 : index
    %c0_7 = arith.constant 0 : index
    %8 = vector.load %arg5[%c0_6, %c0_7] : memref<128x64xf32, #tpu.memory_space<vmem>>, vector<128x64xf32>
    tpu.vector_store %arg5[%c0_6, %c0_7], %7 {strides = array<i32>} : memref<128x64xf32, #tpu.memory_space<vmem>>, vector<128x64xf32>,
    %c4_i32 = arith.constant 4 : i32
    %9 = arith.cmpi eq, %arg2, %c4_i32 : i32
    %10 = arith.extui %9 : i1 to i32
    %c0_i32_8 = arith.constant 0 : i32
    %11 = arith.cmpi ne, %10, %c0_i32_8 : i32
    scf.if %11 {
      %c0_9 = arith.constant 0 : index
      %c0_10 = arith.constant 0 : index
      %12 = vector.load %arg5[%c0_9, %c0_10] : memref<128x64xf32, #tpu.memory_space<vmem>>, vector<128x64xf32>
      %cst_11 = arith.constant dense<0.000000e+00> : vector<64xf32>
      %13 = vector.multi_reduction <add>, %12, %cst_11 [0] : vector<128x64xf32> to vector<64xf32>
      %14 = vector.shape_cast %13 : vector<64xf32> to vector<1x64xf32>
      %15 = arith.mulf %12, %12 : vector<128x64xf32>
      %cst_12 = arith.constant dense<0.000000e+00> : vector<64xf32>
      %16 = vector.multi_reduction <add>, %15, %cst_12 [0] : vector<128x64xf32> to vector<64xf32>
      %17 = vector.shape_cast %16 : vector<64xf32> to vector<1x64xf32>
      %18 = tpu.iota {dimensions = array<i32: 0>} : vector<8x64xi32>
      %c0_i32_13 = arith.constant 0 : i32
      %19 = vector.broadcast %c0_i32_13 : i32 to vector<8x64xi32>
      %20 = arith.cmpi eq, %18, %19 : vector<8x64xi32>
      %c1_i32 = arith.constant 1 : i32
      %21 = vector.broadcast %c1_i32 : i32 to vector<8x64xi32>
      %22 = arith.cmpi eq, %18, %21 : vector<8x64xi32>
      %cst_14 = arith.constant 0.000000e+00 : f32
      %23 = vector.shape_cast %17 : vector<1x64xf32> to vector<1x64xf32>
      %24 = vector.broadcast %23 : vector<1x64xf32> to vector<8x64xf32>
      %25 = vector.broadcast %cst_14 : f32 to vector<8x64xf32>
      %26 = arith.select %22, %24, %25 : vector<8x64xi1>, vector<8x64xf32>
      %27 = vector.shape_cast %14 : vector<1x64xf32> to vector<1x64xf32>
      %28 = vector.broadcast %27 : vector<1x64xf32> to vector<8x64xf32>
      %29 = arith.select %20, %28, %26 : vector<8x64xi1>, vector<8x64xf32>
      %30 = vector.shape_cast %29 : vector<8x64xf32> to vector<1x8x64xf32>
      %c0_15 = arith.constant 0 : index
      %c0_16 = arith.constant 0 : index
      %c0_17 = arith.constant 0 : index
      %31 = vector.load %arg6[%c0_15, %c0_16, %c0_17] : memref<1x8x64xf32, #tpu.memory_space<vmem>>, vector<1x8x64xf32>
      tpu.vector_store %arg6[%c0_15, %c0_16, %c0_17], %30 {strides = array<i32>} : memref<1x8x64xf32, #tpu.memory_space<vmem>>, vector<1x8x64xf32>,
    } else {
    }
    return
  }
  func.func @transform_0(%arg0: i32, %arg1: i32, %arg2: i32) -> (i32, i32) {
    %c0_i32 = arith.constant 0 : i32
    return %arg0, %arg2 : i32, i32
  }
  func.func @transform_1(%arg0: i32, %arg1: i32, %arg2: i32) -> (i32, i32) {
    %c0_i32 = arith.constant 0 : i32
    return %arg2, %arg1 : i32, i32
  }
  func.func @transform_2(%arg0: i32, %arg1: i32, %arg2: i32) -> (i32, i32) {
    %c0_i32 = arith.constant 0 : i32
    return %arg0, %arg1 : i32, i32
  }
  func.func @transform_3(%arg0: i32, %arg1: i32, %arg2: i32) -> (i32, i32, i32) {
    %c0_i32 = arith.constant 0 : i32
    %c0_i32_0 = arith.constant 0 : i32
    return %arg0, %c0_i32, %arg1 : i32, i32, i32
  }
}

module attributes {stable_mosaic.version = 11 : i64} {
  func.func @_affine_relu_kernel(%arg0: i32, %arg1: memref<128x64xf32, #tpu.memory_space<vmem>>, %arg2: memref<1x64xf32, #tpu.memory_space<vmem>>, %arg3: memref<1x64xf32, #tpu.memory_space<vmem>>, %arg4: memref<128x64xbf16, #tpu.memory_space<vmem>>) attributes {dimension_semantics = [#tpu.dimension_semantics<parallel>], iteration_bounds = array<i64: 1>, scalar_prefetch = 0 : i64, scratch_operands = 0 : i64, tpu.core_type = #tpu.core_type<tc>, window_params = [{transform_indices = @transform_0, window_bounds = array<i64: 128, 64>}, {pipeline_mode = #tpu.pipeline_mode<synchronous>, transform_indices = @transform_1, window_bounds = array<i64: 1, 64>}, {pipeline_mode = #tpu.pipeline_mode<synchronous>, transform_indices = @transform_2, window_bounds = array<i64: 1, 64>}, {transform_indices = @transform_3, window_bounds = array<i64: 128, 64>}]} {
    %c0 = arith.constant 0 : index
    %c0_0 = arith.constant 0 : index
    %0 = vector.load %arg1[%c0, %c0_0] : memref<128x64xf32, #tpu.memory_space<vmem>>, vector<128x64xf32>
    %c0_1 = arith.constant 0 : index
    %c0_2 = arith.constant 0 : index
    %1 = vector.load %arg2[%c0_1, %c0_2] : memref<1x64xf32, #tpu.memory_space<vmem>>, vector<1x64xf32>
    %2 = vector.broadcast %1 : vector<1x64xf32> to vector<128x64xf32>
    %3 = arith.mulf %0, %2 : vector<128x64xf32>
    %c0_3 = arith.constant 0 : index
    %c0_4 = arith.constant 0 : index
    %4 = vector.load %arg3[%c0_3, %c0_4] : memref<1x64xf32, #tpu.memory_space<vmem>>, vector<1x64xf32>
    %5 = vector.broadcast %4 : vector<1x64xf32> to vector<128x64xf32>
    %6 = arith.addf %3, %5 : vector<128x64xf32>
    %cst = arith.constant 0.000000e+00 : f32
    %7 = vector.broadcast %cst : f32 to vector<128x64xf32>
    %8 = arith.maximumf %6, %7 : vector<128x64xf32>
    %9 = arith.truncf %8 : vector<128x64xf32> to vector<128x64xbf16>
    %c0_5 = arith.constant 0 : index
    %c0_6 = arith.constant 0 : index
    %10 = vector.load %arg4[%c0_5, %c0_6] : memref<128x64xbf16, #tpu.memory_space<vmem>>, vector<128x64xbf16>
    tpu.vector_store %arg4[%c0_5, %c0_6], %9 {strides = array<i32>} : memref<128x64xbf16, #tpu.memory_space<vmem>>, vector<128x64xbf16>,
    return
  }
  func.func @transform_0(%arg0: i32) -> (i32, i32) {
    %c0_i32 = arith.constant 0 : i32
    %c0_i32_0 = arith.constant 0 : i32
    return %arg0, %c0_i32 : i32, i32
  }
  func.func @transform_1(%arg0: i32) -> (i32, i32) {
    %c0_i32 = arith.constant 0 : i32
    %c0_i32_0 = arith.constant 0 : i32
    %c0_i32_1 = arith.constant 0 : i32
    return %c0_i32, %c0_i32_0 : i32, i32
  }
  func.func @transform_2(%arg0: i32) -> (i32, i32) {
    %c0_i32 = arith.constant 0 : i32
    %c0_i32_0 = arith.constant 0 : i32
    %c0_i32_1 = arith.constant 0 : i32
    return %c0_i32, %c0_i32_0 : i32, i32
  }
  func.func @transform_3(%arg0: i32) -> (i32, i32) {
    %c0_i32 = arith.constant 0 : i32
    %c0_i32_0 = arith.constant 0 : i32
    return %arg0, %c0_i32 : i32, i32
  }
}

module attributes {stable_mosaic.version = 11 : i64} {
  func.func @_affine_add_relu_kernel(%arg0: i32, %arg1: memref<128x64xf32, #tpu.memory_space<vmem>>, %arg2: memref<1x64xf32, #tpu.memory_space<vmem>>, %arg3: memref<1x64xf32, #tpu.memory_space<vmem>>, %arg4: memref<128x64xbf16, #tpu.memory_space<vmem>>, %arg5: memref<128x64xbf16, #tpu.memory_space<vmem>>) attributes {dimension_semantics = [#tpu.dimension_semantics<parallel>], iteration_bounds = array<i64: 1>, scalar_prefetch = 0 : i64, scratch_operands = 0 : i64, tpu.core_type = #tpu.core_type<tc>, window_params = [{transform_indices = @transform_0, window_bounds = array<i64: 128, 64>}, {pipeline_mode = #tpu.pipeline_mode<synchronous>, transform_indices = @transform_1, window_bounds = array<i64: 1, 64>}, {pipeline_mode = #tpu.pipeline_mode<synchronous>, transform_indices = @transform_2, window_bounds = array<i64: 1, 64>}, {transform_indices = @transform_3, window_bounds = array<i64: 128, 64>}, {transform_indices = @transform_4, window_bounds = array<i64: 128, 64>}]} {
    %c0 = arith.constant 0 : index
    %c0_0 = arith.constant 0 : index
    %0 = vector.load %arg1[%c0, %c0_0] : memref<128x64xf32, #tpu.memory_space<vmem>>, vector<128x64xf32>
    %c0_1 = arith.constant 0 : index
    %c0_2 = arith.constant 0 : index
    %1 = vector.load %arg2[%c0_1, %c0_2] : memref<1x64xf32, #tpu.memory_space<vmem>>, vector<1x64xf32>
    %2 = vector.broadcast %1 : vector<1x64xf32> to vector<128x64xf32>
    %3 = arith.mulf %0, %2 : vector<128x64xf32>
    %c0_3 = arith.constant 0 : index
    %c0_4 = arith.constant 0 : index
    %4 = vector.load %arg3[%c0_3, %c0_4] : memref<1x64xf32, #tpu.memory_space<vmem>>, vector<1x64xf32>
    %5 = vector.broadcast %4 : vector<1x64xf32> to vector<128x64xf32>
    %6 = arith.addf %3, %5 : vector<128x64xf32>
    %c0_5 = arith.constant 0 : index
    %c0_6 = arith.constant 0 : index
    %7 = vector.load %arg4[%c0_5, %c0_6] : memref<128x64xbf16, #tpu.memory_space<vmem>>, vector<128x64xbf16>
    %8 = arith.extf %7 : vector<128x64xbf16> to vector<128x64xf32>
    %9 = arith.addf %6, %8 : vector<128x64xf32>
    %cst = arith.constant 0.000000e+00 : f32
    %10 = vector.broadcast %cst : f32 to vector<128x64xf32>
    %11 = arith.maximumf %9, %10 : vector<128x64xf32>
    %12 = arith.truncf %11 : vector<128x64xf32> to vector<128x64xbf16>
    %c0_7 = arith.constant 0 : index
    %c0_8 = arith.constant 0 : index
    %13 = vector.load %arg5[%c0_7, %c0_8] : memref<128x64xbf16, #tpu.memory_space<vmem>>, vector<128x64xbf16>
    tpu.vector_store %arg5[%c0_7, %c0_8], %12 {strides = array<i32>} : memref<128x64xbf16, #tpu.memory_space<vmem>>, vector<128x64xbf16>,
    return
  }
  func.func @transform_0(%arg0: i32) -> (i32, i32) {
    %c0_i32 = arith.constant 0 : i32
    %c0_i32_0 = arith.constant 0 : i32
    return %arg0, %c0_i32 : i32, i32
  }
  func.func @transform_1(%arg0: i32) -> (i32, i32) {
    %c0_i32 = arith.constant 0 : i32
    %c0_i32_0 = arith.constant 0 : i32
    %c0_i32_1 = arith.constant 0 : i32
    return %c0_i32, %c0_i32_0 : i32, i32
  }
  func.func @transform_2(%arg0: i32) -> (i32, i32) {
    %c0_i32 = arith.constant 0 : i32
    %c0_i32_0 = arith.constant 0 : i32
    %c0_i32_1 = arith.constant 0 : i32
    return %c0_i32, %c0_i32_0 : i32, i32
  }
  func.func @transform_3(%arg0: i32) -> (i32, i32) {
    %c0_i32 = arith.constant 0 : i32
    %c0_i32_0 = arith.constant 0 : i32
    return %arg0, %c0_i32 : i32, i32
  }
  func.func @transform_4(%arg0: i32) -> (i32, i32) {
    %c0_i32 = arith.constant 0 : i32
    %c0_i32_0 = arith.constant 0 : i32
    return %arg0, %c0_i32 : i32, i32
  }
}

module attributes {stable_mosaic.version = 11 : i64} {
  func.func @_mm_stats_kernel(%arg0: i32, %arg1: i32, %arg2: i32, %arg3: memref<32x128xbf16, #tpu.memory_space<vmem>>, %arg4: memref<128x128xbf16, #tpu.memory_space<vmem>>, %arg5: memref<32x128xf32, #tpu.memory_space<vmem>>, %arg6: memref<1x8x128xf32, #tpu.memory_space<vmem>>) attributes {dimension_semantics = [#tpu.dimension_semantics<parallel>, #tpu.dimension_semantics<parallel>, #tpu.dimension_semantics<arbitrary>], iteration_bounds = array<i64: 1, 1, 1>, scalar_prefetch = 0 : i64, scratch_operands = 0 : i64, tpu.core_type = #tpu.core_type<tc>, window_params = [{transform_indices = @transform_0, window_bounds = array<i64: 32, 128>}, {transform_indices = @transform_1, window_bounds = array<i64: 128, 128>}, {transform_indices = @transform_2, window_bounds = array<i64: 32, 128>}, {transform_indices = @transform_3, window_bounds = array<i64: 1, 8, 128>}]} {
    %c0_i32 = arith.constant 0 : i32
    %0 = arith.cmpi eq, %arg2, %c0_i32 : i32
    %1 = arith.extui %0 : i1 to i32
    %c0_i32_0 = arith.constant 0 : i32
    %2 = arith.cmpi ne, %1, %c0_i32_0 : i32
    scf.if %2 {
      %cst_10 = arith.constant 0.000000e+00 : f32
      %12 = vector.broadcast %cst_10 : f32 to vector<32x128xf32>
      %c0_11 = arith.constant 0 : index
      %c0_12 = arith.constant 0 : index
      %13 = vector.load %arg5[%c0_11, %c0_12] : memref<32x128xf32, #tpu.memory_space<vmem>>, vector<32x128xf32>
      tpu.vector_store %arg5[%c0_11, %c0_12], %12 {strides = array<i32>} : memref<32x128xf32, #tpu.memory_space<vmem>>, vector<32x128xf32>,
    } else {
    }
    %c0 = arith.constant 0 : index
    %c0_1 = arith.constant 0 : index
    %3 = vector.load %arg5[%c0, %c0_1] : memref<32x128xf32, #tpu.memory_space<vmem>>, vector<32x128xf32>
    %c0_2 = arith.constant 0 : index
    %c0_3 = arith.constant 0 : index
    %4 = vector.load %arg3[%c0_2, %c0_3] : memref<32x128xbf16, #tpu.memory_space<vmem>>, vector<32x128xbf16>
    %c0_4 = arith.constant 0 : index
    %c0_5 = arith.constant 0 : index
    %5 = vector.load %arg4[%c0_4, %c0_5] : memref<128x128xbf16, #tpu.memory_space<vmem>>, vector<128x128xbf16>
    %cst = arith.constant dense<0.000000e+00> : vector<32x128xf32>
    %6 = tpu.matmul %4, %5, %cst {dimension_numbers = #tpu.dot_dimension_numbers<[1], [0], [0], [1], [0, 0, 1, 1], [], []>} : vector<32x128xbf16>, vector<128x128xbf16>, vector<32x128xf32> -> vector<32x128xf32>
    %7 = arith.addf %3, %6 : vector<32x128xf32>
    %c0_6 = arith.constant 0 : index
    %c0_7 = arith.constant 0 : index
    %8 = vector.load %arg5[%c0_6, %c0_7] : memref<32x128xf32, #tpu.memory_space<vmem>>, vector<32x128xf32>
    tpu.vector_store %arg5[%c0_6, %c0_7], %7 {strides = array<i32>} : memref<32x128xf32, #tpu.memory_space<vmem>>, vector<32x128xf32>,
    %c0_i32_8 = arith.constant 0 : i32
    %9 = arith.cmpi eq, %arg2, %c0_i32_8 : i32
    %10 = arith.extui %9 : i1 to i32
    %c0_i32_9 = arith.constant 0 : i32
    %11 = arith.cmpi ne, %10, %c0_i32_9 : i32
    scf.if %11 {
      %c0_10 = arith.constant 0 : index
      %c0_11 = arith.constant 0 : index
      %12 = vector.load %arg5[%c0_10, %c0_11] : memref<32x128xf32, #tpu.memory_space<vmem>>, vector<32x128xf32>
      %cst_12 = arith.constant dense<0.000000e+00> : vector<128xf32>
      %13 = vector.multi_reduction <add>, %12, %cst_12 [0] : vector<32x128xf32> to vector<128xf32>
      %14 = vector.shape_cast %13 : vector<128xf32> to vector<1x128xf32>
      %15 = arith.mulf %12, %12 : vector<32x128xf32>
      %cst_13 = arith.constant dense<0.000000e+00> : vector<128xf32>
      %16 = vector.multi_reduction <add>, %15, %cst_13 [0] : vector<32x128xf32> to vector<128xf32>
      %17 = vector.shape_cast %16 : vector<128xf32> to vector<1x128xf32>
      %18 = tpu.iota {dimensions = array<i32: 0>} : vector<8x128xi32>
      %c0_i32_14 = arith.constant 0 : i32
      %19 = vector.broadcast %c0_i32_14 : i32 to vector<8x128xi32>
      %20 = arith.cmpi eq, %18, %19 : vector<8x128xi32>
      %c1_i32 = arith.constant 1 : i32
      %21 = vector.broadcast %c1_i32 : i32 to vector<8x128xi32>
      %22 = arith.cmpi eq, %18, %21 : vector<8x128xi32>
      %cst_15 = arith.constant 0.000000e+00 : f32
      %23 = vector.shape_cast %17 : vector<1x128xf32> to vector<1x128xf32>
      %24 = vector.broadcast %23 : vector<1x128xf32> to vector<8x128xf32>
      %25 = vector.broadcast %cst_15 : f32 to vector<8x128xf32>
      %26 = arith.select %22, %24, %25 : vector<8x128xi1>, vector<8x128xf32>
      %27 = vector.shape_cast %14 : vector<1x128xf32> to vector<1x128xf32>
      %28 = vector.broadcast %27 : vector<1x128xf32> to vector<8x128xf32>
      %29 = arith.select %20, %28, %26 : vector<8x128xi1>, vector<8x128xf32>
      %30 = vector.shape_cast %29 : vector<8x128xf32> to vector<1x8x128xf32>
      %c0_16 = arith.constant 0 : index
      %c0_17 = arith.constant 0 : index
      %c0_18 = arith.constant 0 : index
      %31 = vector.load %arg6[%c0_16, %c0_17, %c0_18] : memref<1x8x128xf32, #tpu.memory_space<vmem>>, vector<1x8x128xf32>
      tpu.vector_store %arg6[%c0_16, %c0_17, %c0_18], %30 {strides = array<i32>} : memref<1x8x128xf32, #tpu.memory_space<vmem>>, vector<1x8x128xf32>,
    } else {
    }
    return
  }
  func.func @transform_0(%arg0: i32, %arg1: i32, %arg2: i32) -> (i32, i32) {
    %c0_i32 = arith.constant 0 : i32
    return %arg0, %arg2 : i32, i32
  }
  func.func @transform_1(%arg0: i32, %arg1: i32, %arg2: i32) -> (i32, i32) {
    %c0_i32 = arith.constant 0 : i32
    return %arg2, %arg1 : i32, i32
  }
  func.func @transform_2(%arg0: i32, %arg1: i32, %arg2: i32) -> (i32, i32) {
    %c0_i32 = arith.constant 0 : i32
    return %arg0, %arg1 : i32, i32
  }
  func.func @transform_3(%arg0: i32, %arg1: i32, %arg2: i32) -> (i32, i32, i32) {
    %c0_i32 = arith.constant 0 : i32
    %c0_i32_0 = arith.constant 0 : i32
    return %arg0, %c0_i32, %arg1 : i32, i32, i32
  }
}

module attributes {stable_mosaic.version = 11 : i64} {
  func.func @_affine_kernel(%arg0: i32, %arg1: memref<32x128xf32, #tpu.memory_space<vmem>>, %arg2: memref<1x128xf32, #tpu.memory_space<vmem>>, %arg3: memref<1x128xf32, #tpu.memory_space<vmem>>, %arg4: memref<32x128xbf16, #tpu.memory_space<vmem>>) attributes {dimension_semantics = [#tpu.dimension_semantics<parallel>], iteration_bounds = array<i64: 1>, scalar_prefetch = 0 : i64, scratch_operands = 0 : i64, tpu.core_type = #tpu.core_type<tc>, window_params = [{transform_indices = @transform_0, window_bounds = array<i64: 32, 128>}, {pipeline_mode = #tpu.pipeline_mode<synchronous>, transform_indices = @transform_1, window_bounds = array<i64: 1, 128>}, {pipeline_mode = #tpu.pipeline_mode<synchronous>, transform_indices = @transform_2, window_bounds = array<i64: 1, 128>}, {transform_indices = @transform_3, window_bounds = array<i64: 32, 128>}]} {
    %c0 = arith.constant 0 : index
    %c0_0 = arith.constant 0 : index
    %0 = vector.load %arg1[%c0, %c0_0] : memref<32x128xf32, #tpu.memory_space<vmem>>, vector<32x128xf32>
    %c0_1 = arith.constant 0 : index
    %c0_2 = arith.constant 0 : index
    %1 = vector.load %arg2[%c0_1, %c0_2] : memref<1x128xf32, #tpu.memory_space<vmem>>, vector<1x128xf32>
    %2 = vector.broadcast %1 : vector<1x128xf32> to vector<32x128xf32>
    %3 = arith.mulf %0, %2 : vector<32x128xf32>
    %c0_3 = arith.constant 0 : index
    %c0_4 = arith.constant 0 : index
    %4 = vector.load %arg3[%c0_3, %c0_4] : memref<1x128xf32, #tpu.memory_space<vmem>>, vector<1x128xf32>
    %5 = vector.broadcast %4 : vector<1x128xf32> to vector<32x128xf32>
    %6 = arith.addf %3, %5 : vector<32x128xf32>
    %7 = arith.truncf %6 : vector<32x128xf32> to vector<32x128xbf16>
    %c0_5 = arith.constant 0 : index
    %c0_6 = arith.constant 0 : index
    %8 = vector.load %arg4[%c0_5, %c0_6] : memref<32x128xbf16, #tpu.memory_space<vmem>>, vector<32x128xbf16>
    tpu.vector_store %arg4[%c0_5, %c0_6], %7 {strides = array<i32>} : memref<32x128xbf16, #tpu.memory_space<vmem>>, vector<32x128xbf16>,
    return
  }
  func.func @transform_0(%arg0: i32) -> (i32, i32) {
    %c0_i32 = arith.constant 0 : i32
    %c0_i32_0 = arith.constant 0 : i32
    return %arg0, %c0_i32 : i32, i32
  }
  func.func @transform_1(%arg0: i32) -> (i32, i32) {
    %c0_i32 = arith.constant 0 : i32
    %c0_i32_0 = arith.constant 0 : i32
    %c0_i32_1 = arith.constant 0 : i32
    return %c0_i32, %c0_i32_0 : i32, i32
  }
  func.func @transform_2(%arg0: i32) -> (i32, i32) {
    %c0_i32 = arith.constant 0 : i32
    %c0_i32_0 = arith.constant 0 : i32
    %c0_i32_1 = arith.constant 0 : i32
    return %c0_i32, %c0_i32_0 : i32, i32
  }
  func.func @transform_3(%arg0: i32) -> (i32, i32) {
    %c0_i32 = arith.constant 0 : i32
    %c0_i32_0 = arith.constant 0 : i32
    return %arg0, %c0_i32 : i32, i32
  }
}

module attributes {stable_mosaic.version = 11 : i64} {
  func.func @_affine_relu_kernel(%arg0: i32, %arg1: memref<32x128xf32, #tpu.memory_space<vmem>>, %arg2: memref<1x128xf32, #tpu.memory_space<vmem>>, %arg3: memref<1x128xf32, #tpu.memory_space<vmem>>, %arg4: memref<32x128xbf16, #tpu.memory_space<vmem>>) attributes {dimension_semantics = [#tpu.dimension_semantics<parallel>], iteration_bounds = array<i64: 1>, scalar_prefetch = 0 : i64, scratch_operands = 0 : i64, tpu.core_type = #tpu.core_type<tc>, window_params = [{transform_indices = @transform_0, window_bounds = array<i64: 32, 128>}, {pipeline_mode = #tpu.pipeline_mode<synchronous>, transform_indices = @transform_1, window_bounds = array<i64: 1, 128>}, {pipeline_mode = #tpu.pipeline_mode<synchronous>, transform_indices = @transform_2, window_bounds = array<i64: 1, 128>}, {transform_indices = @transform_3, window_bounds = array<i64: 32, 128>}]} {
    %c0 = arith.constant 0 : index
    %c0_0 = arith.constant 0 : index
    %0 = vector.load %arg1[%c0, %c0_0] : memref<32x128xf32, #tpu.memory_space<vmem>>, vector<32x128xf32>
    %c0_1 = arith.constant 0 : index
    %c0_2 = arith.constant 0 : index
    %1 = vector.load %arg2[%c0_1, %c0_2] : memref<1x128xf32, #tpu.memory_space<vmem>>, vector<1x128xf32>
    %2 = vector.broadcast %1 : vector<1x128xf32> to vector<32x128xf32>
    %3 = arith.mulf %0, %2 : vector<32x128xf32>
    %c0_3 = arith.constant 0 : index
    %c0_4 = arith.constant 0 : index
    %4 = vector.load %arg3[%c0_3, %c0_4] : memref<1x128xf32, #tpu.memory_space<vmem>>, vector<1x128xf32>
    %5 = vector.broadcast %4 : vector<1x128xf32> to vector<32x128xf32>
    %6 = arith.addf %3, %5 : vector<32x128xf32>
    %cst = arith.constant 0.000000e+00 : f32
    %7 = vector.broadcast %cst : f32 to vector<32x128xf32>
    %8 = arith.maximumf %6, %7 : vector<32x128xf32>
    %9 = arith.truncf %8 : vector<32x128xf32> to vector<32x128xbf16>
    %c0_5 = arith.constant 0 : index
    %c0_6 = arith.constant 0 : index
    %10 = vector.load %arg4[%c0_5, %c0_6] : memref<32x128xbf16, #tpu.memory_space<vmem>>, vector<32x128xbf16>
    tpu.vector_store %arg4[%c0_5, %c0_6], %9 {strides = array<i32>} : memref<32x128xbf16, #tpu.memory_space<vmem>>, vector<32x128xbf16>,
    return
  }
  func.func @transform_0(%arg0: i32) -> (i32, i32) {
    %c0_i32 = arith.constant 0 : i32
    %c0_i32_0 = arith.constant 0 : i32
    return %arg0, %c0_i32 : i32, i32
  }
  func.func @transform_1(%arg0: i32) -> (i32, i32) {
    %c0_i32 = arith.constant 0 : i32
    %c0_i32_0 = arith.constant 0 : i32
    %c0_i32_1 = arith.constant 0 : i32
    return %c0_i32, %c0_i32_0 : i32, i32
  }
  func.func @transform_2(%arg0: i32) -> (i32, i32) {
    %c0_i32 = arith.constant 0 : i32
    %c0_i32_0 = arith.constant 0 : i32
    %c0_i32_1 = arith.constant 0 : i32
    return %c0_i32, %c0_i32_0 : i32, i32
  }
  func.func @transform_3(%arg0: i32) -> (i32, i32) {
    %c0_i32 = arith.constant 0 : i32
    %c0_i32_0 = arith.constant 0 : i32
    return %arg0, %c0_i32 : i32, i32
  }
}

module attributes {stable_mosaic.version = 11 : i64} {
  func.func @_mm_stats_kernel(%arg0: i32, %arg1: i32, %arg2: i32, %arg3: memref<32x128xbf16, #tpu.memory_space<vmem>>, %arg4: memref<128x128xbf16, #tpu.memory_space<vmem>>, %arg5: memref<32x128xf32, #tpu.memory_space<vmem>>, %arg6: memref<1x8x128xf32, #tpu.memory_space<vmem>>) attributes {dimension_semantics = [#tpu.dimension_semantics<parallel>, #tpu.dimension_semantics<parallel>, #tpu.dimension_semantics<arbitrary>], iteration_bounds = array<i64: 1, 1, 5>, scalar_prefetch = 0 : i64, scratch_operands = 0 : i64, tpu.core_type = #tpu.core_type<tc>, window_params = [{transform_indices = @transform_0, window_bounds = array<i64: 32, 128>}, {transform_indices = @transform_1, window_bounds = array<i64: 128, 128>}, {transform_indices = @transform_2, window_bounds = array<i64: 32, 128>}, {transform_indices = @transform_3, window_bounds = array<i64: 1, 8, 128>}]} {
    %c0_i32 = arith.constant 0 : i32
    %0 = arith.cmpi eq, %arg2, %c0_i32 : i32
    %1 = arith.extui %0 : i1 to i32
    %c0_i32_0 = arith.constant 0 : i32
    %2 = arith.cmpi ne, %1, %c0_i32_0 : i32
    scf.if %2 {
      %cst_9 = arith.constant 0.000000e+00 : f32
      %12 = vector.broadcast %cst_9 : f32 to vector<32x128xf32>
      %c0_10 = arith.constant 0 : index
      %c0_11 = arith.constant 0 : index
      %13 = vector.load %arg5[%c0_10, %c0_11] : memref<32x128xf32, #tpu.memory_space<vmem>>, vector<32x128xf32>
      tpu.vector_store %arg5[%c0_10, %c0_11], %12 {strides = array<i32>} : memref<32x128xf32, #tpu.memory_space<vmem>>, vector<32x128xf32>,
    } else {
    }
    %c0 = arith.constant 0 : index
    %c0_1 = arith.constant 0 : index
    %3 = vector.load %arg5[%c0, %c0_1] : memref<32x128xf32, #tpu.memory_space<vmem>>, vector<32x128xf32>
    %c0_2 = arith.constant 0 : index
    %c0_3 = arith.constant 0 : index
    %4 = vector.load %arg3[%c0_2, %c0_3] : memref<32x128xbf16, #tpu.memory_space<vmem>>, vector<32x128xbf16>
    %c0_4 = arith.constant 0 : index
    %c0_5 = arith.constant 0 : index
    %5 = vector.load %arg4[%c0_4, %c0_5] : memref<128x128xbf16, #tpu.memory_space<vmem>>, vector<128x128xbf16>
    %cst = arith.constant dense<0.000000e+00> : vector<32x128xf32>
    %6 = tpu.matmul %4, %5, %cst {dimension_numbers = #tpu.dot_dimension_numbers<[1], [0], [0], [1], [0, 0, 1, 1], [], []>} : vector<32x128xbf16>, vector<128x128xbf16>, vector<32x128xf32> -> vector<32x128xf32>
    %7 = arith.addf %3, %6 : vector<32x128xf32>
    %c0_6 = arith.constant 0 : index
    %c0_7 = arith.constant 0 : index
    %8 = vector.load %arg5[%c0_6, %c0_7] : memref<32x128xf32, #tpu.memory_space<vmem>>, vector<32x128xf32>
    tpu.vector_store %arg5[%c0_6, %c0_7], %7 {strides = array<i32>} : memref<32x128xf32, #tpu.memory_space<vmem>>, vector<32x128xf32>,
    %c4_i32 = arith.constant 4 : i32
    %9 = arith.cmpi eq, %arg2, %c4_i32 : i32
    %10 = arith.extui %9 : i1 to i32
    %c0_i32_8 = arith.constant 0 : i32
    %11 = arith.cmpi ne, %10, %c0_i32_8 : i32
    scf.if %11 {
      %c0_9 = arith.constant 0 : index
      %c0_10 = arith.constant 0 : index
      %12 = vector.load %arg5[%c0_9, %c0_10] : memref<32x128xf32, #tpu.memory_space<vmem>>, vector<32x128xf32>
      %cst_11 = arith.constant dense<0.000000e+00> : vector<128xf32>
      %13 = vector.multi_reduction <add>, %12, %cst_11 [0] : vector<32x128xf32> to vector<128xf32>
      %14 = vector.shape_cast %13 : vector<128xf32> to vector<1x128xf32>
      %15 = arith.mulf %12, %12 : vector<32x128xf32>
      %cst_12 = arith.constant dense<0.000000e+00> : vector<128xf32>
      %16 = vector.multi_reduction <add>, %15, %cst_12 [0] : vector<32x128xf32> to vector<128xf32>
      %17 = vector.shape_cast %16 : vector<128xf32> to vector<1x128xf32>
      %18 = tpu.iota {dimensions = array<i32: 0>} : vector<8x128xi32>
      %c0_i32_13 = arith.constant 0 : i32
      %19 = vector.broadcast %c0_i32_13 : i32 to vector<8x128xi32>
      %20 = arith.cmpi eq, %18, %19 : vector<8x128xi32>
      %c1_i32 = arith.constant 1 : i32
      %21 = vector.broadcast %c1_i32 : i32 to vector<8x128xi32>
      %22 = arith.cmpi eq, %18, %21 : vector<8x128xi32>
      %cst_14 = arith.constant 0.000000e+00 : f32
      %23 = vector.shape_cast %17 : vector<1x128xf32> to vector<1x128xf32>
      %24 = vector.broadcast %23 : vector<1x128xf32> to vector<8x128xf32>
      %25 = vector.broadcast %cst_14 : f32 to vector<8x128xf32>
      %26 = arith.select %22, %24, %25 : vector<8x128xi1>, vector<8x128xf32>
      %27 = vector.shape_cast %14 : vector<1x128xf32> to vector<1x128xf32>
      %28 = vector.broadcast %27 : vector<1x128xf32> to vector<8x128xf32>
      %29 = arith.select %20, %28, %26 : vector<8x128xi1>, vector<8x128xf32>
      %30 = vector.shape_cast %29 : vector<8x128xf32> to vector<1x8x128xf32>
      %c0_15 = arith.constant 0 : index
      %c0_16 = arith.constant 0 : index
      %c0_17 = arith.constant 0 : index
      %31 = vector.load %arg6[%c0_15, %c0_16, %c0_17] : memref<1x8x128xf32, #tpu.memory_space<vmem>>, vector<1x8x128xf32>
      tpu.vector_store %arg6[%c0_15, %c0_16, %c0_17], %30 {strides = array<i32>} : memref<1x8x128xf32, #tpu.memory_space<vmem>>, vector<1x8x128xf32>,
    } else {
    }
    return
  }
  func.func @transform_0(%arg0: i32, %arg1: i32, %arg2: i32) -> (i32, i32) {
    %c0_i32 = arith.constant 0 : i32
    return %arg0, %arg2 : i32, i32
  }
  func.func @transform_1(%arg0: i32, %arg1: i32, %arg2: i32) -> (i32, i32) {
    %c0_i32 = arith.constant 0 : i32
    return %arg2, %arg1 : i32, i32
  }
  func.func @transform_2(%arg0: i32, %arg1: i32, %arg2: i32) -> (i32, i32) {
    %c0_i32 = arith.constant 0 : i32
    return %arg0, %arg1 : i32, i32
  }
  func.func @transform_3(%arg0: i32, %arg1: i32, %arg2: i32) -> (i32, i32, i32) {
    %c0_i32 = arith.constant 0 : i32
    %c0_i32_0 = arith.constant 0 : i32
    return %arg0, %c0_i32, %arg1 : i32, i32, i32
  }
}

module attributes {stable_mosaic.version = 11 : i64} {
  func.func @_mm_stats_kernel(%arg0: i32, %arg1: i32, %arg2: i32, %arg3: memref<32x128xbf16, #tpu.memory_space<vmem>>, %arg4: memref<128x128xbf16, #tpu.memory_space<vmem>>, %arg5: memref<32x128xf32, #tpu.memory_space<vmem>>, %arg6: memref<1x8x128xf32, #tpu.memory_space<vmem>>) attributes {dimension_semantics = [#tpu.dimension_semantics<parallel>, #tpu.dimension_semantics<parallel>, #tpu.dimension_semantics<arbitrary>], iteration_bounds = array<i64: 1, 1, 9>, scalar_prefetch = 0 : i64, scratch_operands = 0 : i64, tpu.core_type = #tpu.core_type<tc>, window_params = [{transform_indices = @transform_0, window_bounds = array<i64: 32, 128>}, {transform_indices = @transform_1, window_bounds = array<i64: 128, 128>}, {transform_indices = @transform_2, window_bounds = array<i64: 32, 128>}, {transform_indices = @transform_3, window_bounds = array<i64: 1, 8, 128>}]} {
    %c0_i32 = arith.constant 0 : i32
    %0 = arith.cmpi eq, %arg2, %c0_i32 : i32
    %1 = arith.extui %0 : i1 to i32
    %c0_i32_0 = arith.constant 0 : i32
    %2 = arith.cmpi ne, %1, %c0_i32_0 : i32
    scf.if %2 {
      %cst_9 = arith.constant 0.000000e+00 : f32
      %12 = vector.broadcast %cst_9 : f32 to vector<32x128xf32>
      %c0_10 = arith.constant 0 : index
      %c0_11 = arith.constant 0 : index
      %13 = vector.load %arg5[%c0_10, %c0_11] : memref<32x128xf32, #tpu.memory_space<vmem>>, vector<32x128xf32>
      tpu.vector_store %arg5[%c0_10, %c0_11], %12 {strides = array<i32>} : memref<32x128xf32, #tpu.memory_space<vmem>>, vector<32x128xf32>,
    } else {
    }
    %c0 = arith.constant 0 : index
    %c0_1 = arith.constant 0 : index
    %3 = vector.load %arg5[%c0, %c0_1] : memref<32x128xf32, #tpu.memory_space<vmem>>, vector<32x128xf32>
    %c0_2 = arith.constant 0 : index
    %c0_3 = arith.constant 0 : index
    %4 = vector.load %arg3[%c0_2, %c0_3] : memref<32x128xbf16, #tpu.memory_space<vmem>>, vector<32x128xbf16>
    %c0_4 = arith.constant 0 : index
    %c0_5 = arith.constant 0 : index
    %5 = vector.load %arg4[%c0_4, %c0_5] : memref<128x128xbf16, #tpu.memory_space<vmem>>, vector<128x128xbf16>
    %cst = arith.constant dense<0.000000e+00> : vector<32x128xf32>
    %6 = tpu.matmul %4, %5, %cst {dimension_numbers = #tpu.dot_dimension_numbers<[1], [0], [0], [1], [0, 0, 1, 1], [], []>} : vector<32x128xbf16>, vector<128x128xbf16>, vector<32x128xf32> -> vector<32x128xf32>
    %7 = arith.addf %3, %6 : vector<32x128xf32>
    %c0_6 = arith.constant 0 : index
    %c0_7 = arith.constant 0 : index
    %8 = vector.load %arg5[%c0_6, %c0_7] : memref<32x128xf32, #tpu.memory_space<vmem>>, vector<32x128xf32>
    tpu.vector_store %arg5[%c0_6, %c0_7], %7 {strides = array<i32>} : memref<32x128xf32, #tpu.memory_space<vmem>>, vector<32x128xf32>,
    %c8_i32 = arith.constant 8 : i32
    %9 = arith.cmpi eq, %arg2, %c8_i32 : i32
    %10 = arith.extui %9 : i1 to i32
    %c0_i32_8 = arith.constant 0 : i32
    %11 = arith.cmpi ne, %10, %c0_i32_8 : i32
    scf.if %11 {
      %c0_9 = arith.constant 0 : index
      %c0_10 = arith.constant 0 : index
      %12 = vector.load %arg5[%c0_9, %c0_10] : memref<32x128xf32, #tpu.memory_space<vmem>>, vector<32x128xf32>
      %cst_11 = arith.constant dense<0.000000e+00> : vector<128xf32>
      %13 = vector.multi_reduction <add>, %12, %cst_11 [0] : vector<32x128xf32> to vector<128xf32>
      %14 = vector.shape_cast %13 : vector<128xf32> to vector<1x128xf32>
      %15 = arith.mulf %12, %12 : vector<32x128xf32>
      %cst_12 = arith.constant dense<0.000000e+00> : vector<128xf32>
      %16 = vector.multi_reduction <add>, %15, %cst_12 [0] : vector<32x128xf32> to vector<128xf32>
      %17 = vector.shape_cast %16 : vector<128xf32> to vector<1x128xf32>
      %18 = tpu.iota {dimensions = array<i32: 0>} : vector<8x128xi32>
      %c0_i32_13 = arith.constant 0 : i32
      %19 = vector.broadcast %c0_i32_13 : i32 to vector<8x128xi32>
      %20 = arith.cmpi eq, %18, %19 : vector<8x128xi32>
      %c1_i32 = arith.constant 1 : i32
      %21 = vector.broadcast %c1_i32 : i32 to vector<8x128xi32>
      %22 = arith.cmpi eq, %18, %21 : vector<8x128xi32>
      %cst_14 = arith.constant 0.000000e+00 : f32
      %23 = vector.shape_cast %17 : vector<1x128xf32> to vector<1x128xf32>
      %24 = vector.broadcast %23 : vector<1x128xf32> to vector<8x128xf32>
      %25 = vector.broadcast %cst_14 : f32 to vector<8x128xf32>
      %26 = arith.select %22, %24, %25 : vector<8x128xi1>, vector<8x128xf32>
      %27 = vector.shape_cast %14 : vector<1x128xf32> to vector<1x128xf32>
      %28 = vector.broadcast %27 : vector<1x128xf32> to vector<8x128xf32>
      %29 = arith.select %20, %28, %26 : vector<8x128xi1>, vector<8x128xf32>
      %30 = vector.shape_cast %29 : vector<8x128xf32> to vector<1x8x128xf32>
      %c0_15 = arith.constant 0 : index
      %c0_16 = arith.constant 0 : index
      %c0_17 = arith.constant 0 : index
      %31 = vector.load %arg6[%c0_15, %c0_16, %c0_17] : memref<1x8x128xf32, #tpu.memory_space<vmem>>, vector<1x8x128xf32>
      tpu.vector_store %arg6[%c0_15, %c0_16, %c0_17], %30 {strides = array<i32>} : memref<1x8x128xf32, #tpu.memory_space<vmem>>, vector<1x8x128xf32>,
    } else {
    }
    return
  }
  func.func @transform_0(%arg0: i32, %arg1: i32, %arg2: i32) -> (i32, i32) {
    %c0_i32 = arith.constant 0 : i32
    return %arg0, %arg2 : i32, i32
  }
  func.func @transform_1(%arg0: i32, %arg1: i32, %arg2: i32) -> (i32, i32) {
    %c0_i32 = arith.constant 0 : i32
    return %arg2, %arg1 : i32, i32
  }
  func.func @transform_2(%arg0: i32, %arg1: i32, %arg2: i32) -> (i32, i32) {
    %c0_i32 = arith.constant 0 : i32
    return %arg0, %arg1 : i32, i32
  }
  func.func @transform_3(%arg0: i32, %arg1: i32, %arg2: i32) -> (i32, i32, i32) {
    %c0_i32 = arith.constant 0 : i32
    %c0_i32_0 = arith.constant 0 : i32
    return %arg0, %c0_i32, %arg1 : i32, i32, i32
  }
}

module attributes {stable_mosaic.version = 11 : i64} {
  func.func @_affine_add_relu_kernel(%arg0: i32, %arg1: memref<32x128xf32, #tpu.memory_space<vmem>>, %arg2: memref<1x128xf32, #tpu.memory_space<vmem>>, %arg3: memref<1x128xf32, #tpu.memory_space<vmem>>, %arg4: memref<32x128xbf16, #tpu.memory_space<vmem>>, %arg5: memref<32x128xbf16, #tpu.memory_space<vmem>>) attributes {dimension_semantics = [#tpu.dimension_semantics<parallel>], iteration_bounds = array<i64: 1>, scalar_prefetch = 0 : i64, scratch_operands = 0 : i64, tpu.core_type = #tpu.core_type<tc>, window_params = [{transform_indices = @transform_0, window_bounds = array<i64: 32, 128>}, {pipeline_mode = #tpu.pipeline_mode<synchronous>, transform_indices = @transform_1, window_bounds = array<i64: 1, 128>}, {pipeline_mode = #tpu.pipeline_mode<synchronous>, transform_indices = @transform_2, window_bounds = array<i64: 1, 128>}, {transform_indices = @transform_3, window_bounds = array<i64: 32, 128>}, {transform_indices = @transform_4, window_bounds = array<i64: 32, 128>}]} {
    %c0 = arith.constant 0 : index
    %c0_0 = arith.constant 0 : index
    %0 = vector.load %arg1[%c0, %c0_0] : memref<32x128xf32, #tpu.memory_space<vmem>>, vector<32x128xf32>
    %c0_1 = arith.constant 0 : index
    %c0_2 = arith.constant 0 : index
    %1 = vector.load %arg2[%c0_1, %c0_2] : memref<1x128xf32, #tpu.memory_space<vmem>>, vector<1x128xf32>
    %2 = vector.broadcast %1 : vector<1x128xf32> to vector<32x128xf32>
    %3 = arith.mulf %0, %2 : vector<32x128xf32>
    %c0_3 = arith.constant 0 : index
    %c0_4 = arith.constant 0 : index
    %4 = vector.load %arg3[%c0_3, %c0_4] : memref<1x128xf32, #tpu.memory_space<vmem>>, vector<1x128xf32>
    %5 = vector.broadcast %4 : vector<1x128xf32> to vector<32x128xf32>
    %6 = arith.addf %3, %5 : vector<32x128xf32>
    %c0_5 = arith.constant 0 : index
    %c0_6 = arith.constant 0 : index
    %7 = vector.load %arg4[%c0_5, %c0_6] : memref<32x128xbf16, #tpu.memory_space<vmem>>, vector<32x128xbf16>
    %8 = arith.extf %7 : vector<32x128xbf16> to vector<32x128xf32>
    %9 = arith.addf %6, %8 : vector<32x128xf32>
    %cst = arith.constant 0.000000e+00 : f32
    %10 = vector.broadcast %cst : f32 to vector<32x128xf32>
    %11 = arith.maximumf %9, %10 : vector<32x128xf32>
    %12 = arith.truncf %11 : vector<32x128xf32> to vector<32x128xbf16>
    %c0_7 = arith.constant 0 : index
    %c0_8 = arith.constant 0 : index
    %13 = vector.load %arg5[%c0_7, %c0_8] : memref<32x128xbf16, #tpu.memory_space<vmem>>, vector<32x128xbf16>
    tpu.vector_store %arg5[%c0_7, %c0_8], %12 {strides = array<i32>} : memref<32x128xbf16, #tpu.memory_space<vmem>>, vector<32x128xbf16>,
    return
  }
  func.func @transform_0(%arg0: i32) -> (i32, i32) {
    %c0_i32 = arith.constant 0 : i32
    %c0_i32_0 = arith.constant 0 : i32
    return %arg0, %c0_i32 : i32, i32
  }
  func.func @transform_1(%arg0: i32) -> (i32, i32) {
    %c0_i32 = arith.constant 0 : i32
    %c0_i32_0 = arith.constant 0 : i32
    %c0_i32_1 = arith.constant 0 : i32
    return %c0_i32, %c0_i32_0 : i32, i32
  }
  func.func @transform_2(%arg0: i32) -> (i32, i32) {
    %c0_i32 = arith.constant 0 : i32
    %c0_i32_0 = arith.constant 0 : i32
    %c0_i32_1 = arith.constant 0 : i32
    return %c0_i32, %c0_i32_0 : i32, i32
  }
  func.func @transform_3(%arg0: i32) -> (i32, i32) {
    %c0_i32 = arith.constant 0 : i32
    %c0_i32_0 = arith.constant 0 : i32
    return %arg0, %c0_i32 : i32, i32
  }
  func.func @transform_4(%arg0: i32) -> (i32, i32) {
    %c0_i32 = arith.constant 0 : i32
    %c0_i32_0 = arith.constant 0 : i32
    return %arg0, %c0_i32 : i32, i32
  }
}

module attributes {stable_mosaic.version = 11 : i64} {
  func.func @_affine_kernel(%arg0: i32, %arg1: memref<16x256xf32, #tpu.memory_space<vmem>>, %arg2: memref<1x256xf32, #tpu.memory_space<vmem>>, %arg3: memref<1x256xf32, #tpu.memory_space<vmem>>, %arg4: memref<16x256xbf16, #tpu.memory_space<vmem>>) attributes {dimension_semantics = [#tpu.dimension_semantics<parallel>], iteration_bounds = array<i64: 1>, scalar_prefetch = 0 : i64, scratch_operands = 0 : i64, tpu.core_type = #tpu.core_type<tc>, window_params = [{transform_indices = @transform_0, window_bounds = array<i64: 16, 256>}, {pipeline_mode = #tpu.pipeline_mode<synchronous>, transform_indices = @transform_1, window_bounds = array<i64: 1, 256>}, {pipeline_mode = #tpu.pipeline_mode<synchronous>, transform_indices = @transform_2, window_bounds = array<i64: 1, 256>}, {transform_indices = @transform_3, window_bounds = array<i64: 16, 256>}]} {
    %c0 = arith.constant 0 : index
    %c0_0 = arith.constant 0 : index
    %0 = vector.load %arg1[%c0, %c0_0] : memref<16x256xf32, #tpu.memory_space<vmem>>, vector<16x256xf32>
    %c0_1 = arith.constant 0 : index
    %c0_2 = arith.constant 0 : index
    %1 = vector.load %arg2[%c0_1, %c0_2] : memref<1x256xf32, #tpu.memory_space<vmem>>, vector<1x256xf32>
    %2 = vector.broadcast %1 : vector<1x256xf32> to vector<16x256xf32>
    %3 = arith.mulf %0, %2 : vector<16x256xf32>
    %c0_3 = arith.constant 0 : index
    %c0_4 = arith.constant 0 : index
    %4 = vector.load %arg3[%c0_3, %c0_4] : memref<1x256xf32, #tpu.memory_space<vmem>>, vector<1x256xf32>
    %5 = vector.broadcast %4 : vector<1x256xf32> to vector<16x256xf32>
    %6 = arith.addf %3, %5 : vector<16x256xf32>
    %7 = arith.truncf %6 : vector<16x256xf32> to vector<16x256xbf16>
    %c0_5 = arith.constant 0 : index
    %c0_6 = arith.constant 0 : index
    %8 = vector.load %arg4[%c0_5, %c0_6] : memref<16x256xbf16, #tpu.memory_space<vmem>>, vector<16x256xbf16>
    tpu.vector_store %arg4[%c0_5, %c0_6], %7 {strides = array<i32>} : memref<16x256xbf16, #tpu.memory_space<vmem>>, vector<16x256xbf16>,
    return
  }
  func.func @transform_0(%arg0: i32) -> (i32, i32) {
    %c0_i32 = arith.constant 0 : i32
    %c0_i32_0 = arith.constant 0 : i32
    return %arg0, %c0_i32 : i32, i32
  }
  func.func @transform_1(%arg0: i32) -> (i32, i32) {
    %c0_i32 = arith.constant 0 : i32
    %c0_i32_0 = arith.constant 0 : i32
    %c0_i32_1 = arith.constant 0 : i32
    return %c0_i32, %c0_i32_0 : i32, i32
  }
  func.func @transform_2(%arg0: i32) -> (i32, i32) {
    %c0_i32 = arith.constant 0 : i32
    %c0_i32_0 = arith.constant 0 : i32
    %c0_i32_1 = arith.constant 0 : i32
    return %c0_i32, %c0_i32_0 : i32, i32
  }
  func.func @transform_3(%arg0: i32) -> (i32, i32) {
    %c0_i32 = arith.constant 0 : i32
    %c0_i32_0 = arith.constant 0 : i32
    return %arg0, %c0_i32 : i32, i32
  }
}

module attributes {stable_mosaic.version = 11 : i64} {
  func.func @_mm_stats_kernel(%arg0: i32, %arg1: i32, %arg2: i32, %arg3: memref<16x128xbf16, #tpu.memory_space<vmem>>, %arg4: memref<128x256xbf16, #tpu.memory_space<vmem>>, %arg5: memref<16x256xf32, #tpu.memory_space<vmem>>, %arg6: memref<1x8x256xf32, #tpu.memory_space<vmem>>) attributes {dimension_semantics = [#tpu.dimension_semantics<parallel>, #tpu.dimension_semantics<parallel>, #tpu.dimension_semantics<arbitrary>], iteration_bounds = array<i64: 1, 1, 1>, scalar_prefetch = 0 : i64, scratch_operands = 0 : i64, tpu.core_type = #tpu.core_type<tc>, window_params = [{transform_indices = @transform_0, window_bounds = array<i64: 16, 128>}, {transform_indices = @transform_1, window_bounds = array<i64: 128, 256>}, {transform_indices = @transform_2, window_bounds = array<i64: 16, 256>}, {transform_indices = @transform_3, window_bounds = array<i64: 1, 8, 256>}]} {
    %c0_i32 = arith.constant 0 : i32
    %0 = arith.cmpi eq, %arg2, %c0_i32 : i32
    %1 = arith.extui %0 : i1 to i32
    %c0_i32_0 = arith.constant 0 : i32
    %2 = arith.cmpi ne, %1, %c0_i32_0 : i32
    scf.if %2 {
      %cst_10 = arith.constant 0.000000e+00 : f32
      %12 = vector.broadcast %cst_10 : f32 to vector<16x256xf32>
      %c0_11 = arith.constant 0 : index
      %c0_12 = arith.constant 0 : index
      %13 = vector.load %arg5[%c0_11, %c0_12] : memref<16x256xf32, #tpu.memory_space<vmem>>, vector<16x256xf32>
      tpu.vector_store %arg5[%c0_11, %c0_12], %12 {strides = array<i32>} : memref<16x256xf32, #tpu.memory_space<vmem>>, vector<16x256xf32>,
    } else {
    }
    %c0 = arith.constant 0 : index
    %c0_1 = arith.constant 0 : index
    %3 = vector.load %arg5[%c0, %c0_1] : memref<16x256xf32, #tpu.memory_space<vmem>>, vector<16x256xf32>
    %c0_2 = arith.constant 0 : index
    %c0_3 = arith.constant 0 : index
    %4 = vector.load %arg3[%c0_2, %c0_3] : memref<16x128xbf16, #tpu.memory_space<vmem>>, vector<16x128xbf16>
    %c0_4 = arith.constant 0 : index
    %c0_5 = arith.constant 0 : index
    %5 = vector.load %arg4[%c0_4, %c0_5] : memref<128x256xbf16, #tpu.memory_space<vmem>>, vector<128x256xbf16>
    %cst = arith.constant dense<0.000000e+00> : vector<16x256xf32>
    %6 = tpu.matmul %4, %5, %cst {dimension_numbers = #tpu.dot_dimension_numbers<[1], [0], [0], [1], [0, 0, 1, 1], [], []>} : vector<16x128xbf16>, vector<128x256xbf16>, vector<16x256xf32> -> vector<16x256xf32>
    %7 = arith.addf %3, %6 : vector<16x256xf32>
    %c0_6 = arith.constant 0 : index
    %c0_7 = arith.constant 0 : index
    %8 = vector.load %arg5[%c0_6, %c0_7] : memref<16x256xf32, #tpu.memory_space<vmem>>, vector<16x256xf32>
    tpu.vector_store %arg5[%c0_6, %c0_7], %7 {strides = array<i32>} : memref<16x256xf32, #tpu.memory_space<vmem>>, vector<16x256xf32>,
    %c0_i32_8 = arith.constant 0 : i32
    %9 = arith.cmpi eq, %arg2, %c0_i32_8 : i32
    %10 = arith.extui %9 : i1 to i32
    %c0_i32_9 = arith.constant 0 : i32
    %11 = arith.cmpi ne, %10, %c0_i32_9 : i32
    scf.if %11 {
      %c0_10 = arith.constant 0 : index
      %c0_11 = arith.constant 0 : index
      %12 = vector.load %arg5[%c0_10, %c0_11] : memref<16x256xf32, #tpu.memory_space<vmem>>, vector<16x256xf32>
      %cst_12 = arith.constant dense<0.000000e+00> : vector<256xf32>
      %13 = vector.multi_reduction <add>, %12, %cst_12 [0] : vector<16x256xf32> to vector<256xf32>
      %14 = vector.shape_cast %13 : vector<256xf32> to vector<1x256xf32>
      %15 = arith.mulf %12, %12 : vector<16x256xf32>
      %cst_13 = arith.constant dense<0.000000e+00> : vector<256xf32>
      %16 = vector.multi_reduction <add>, %15, %cst_13 [0] : vector<16x256xf32> to vector<256xf32>
      %17 = vector.shape_cast %16 : vector<256xf32> to vector<1x256xf32>
      %18 = tpu.iota {dimensions = array<i32: 0>} : vector<8x256xi32>
      %c0_i32_14 = arith.constant 0 : i32
      %19 = vector.broadcast %c0_i32_14 : i32 to vector<8x256xi32>
      %20 = arith.cmpi eq, %18, %19 : vector<8x256xi32>
      %c1_i32 = arith.constant 1 : i32
      %21 = vector.broadcast %c1_i32 : i32 to vector<8x256xi32>
      %22 = arith.cmpi eq, %18, %21 : vector<8x256xi32>
      %cst_15 = arith.constant 0.000000e+00 : f32
      %23 = vector.shape_cast %17 : vector<1x256xf32> to vector<1x256xf32>
      %24 = vector.broadcast %23 : vector<1x256xf32> to vector<8x256xf32>
      %25 = vector.broadcast %cst_15 : f32 to vector<8x256xf32>
      %26 = arith.select %22, %24, %25 : vector<8x256xi1>, vector<8x256xf32>
      %27 = vector.shape_cast %14 : vector<1x256xf32> to vector<1x256xf32>
      %28 = vector.broadcast %27 : vector<1x256xf32> to vector<8x256xf32>
      %29 = arith.select %20, %28, %26 : vector<8x256xi1>, vector<8x256xf32>
      %30 = vector.shape_cast %29 : vector<8x256xf32> to vector<1x8x256xf32>
      %c0_16 = arith.constant 0 : index
      %c0_17 = arith.constant 0 : index
      %c0_18 = arith.constant 0 : index
      %31 = vector.load %arg6[%c0_16, %c0_17, %c0_18] : memref<1x8x256xf32, #tpu.memory_space<vmem>>, vector<1x8x256xf32>
      tpu.vector_store %arg6[%c0_16, %c0_17, %c0_18], %30 {strides = array<i32>} : memref<1x8x256xf32, #tpu.memory_space<vmem>>, vector<1x8x256xf32>,
    } else {
    }
    return
  }
  func.func @transform_0(%arg0: i32, %arg1: i32, %arg2: i32) -> (i32, i32) {
    %c0_i32 = arith.constant 0 : i32
    return %arg0, %arg2 : i32, i32
  }
  func.func @transform_1(%arg0: i32, %arg1: i32, %arg2: i32) -> (i32, i32) {
    %c0_i32 = arith.constant 0 : i32
    return %arg2, %arg1 : i32, i32
  }
  func.func @transform_2(%arg0: i32, %arg1: i32, %arg2: i32) -> (i32, i32) {
    %c0_i32 = arith.constant 0 : i32
    return %arg0, %arg1 : i32, i32
  }
  func.func @transform_3(%arg0: i32, %arg1: i32, %arg2: i32) -> (i32, i32, i32) {
    %c0_i32 = arith.constant 0 : i32
    %c0_i32_0 = arith.constant 0 : i32
    return %arg0, %c0_i32, %arg1 : i32, i32, i32
  }
}

module attributes {stable_mosaic.version = 11 : i64} {
  func.func @_affine_relu_kernel(%arg0: i32, %arg1: memref<16x256xf32, #tpu.memory_space<vmem>>, %arg2: memref<1x256xf32, #tpu.memory_space<vmem>>, %arg3: memref<1x256xf32, #tpu.memory_space<vmem>>, %arg4: memref<16x256xbf16, #tpu.memory_space<vmem>>) attributes {dimension_semantics = [#tpu.dimension_semantics<parallel>], iteration_bounds = array<i64: 1>, scalar_prefetch = 0 : i64, scratch_operands = 0 : i64, tpu.core_type = #tpu.core_type<tc>, window_params = [{transform_indices = @transform_0, window_bounds = array<i64: 16, 256>}, {pipeline_mode = #tpu.pipeline_mode<synchronous>, transform_indices = @transform_1, window_bounds = array<i64: 1, 256>}, {pipeline_mode = #tpu.pipeline_mode<synchronous>, transform_indices = @transform_2, window_bounds = array<i64: 1, 256>}, {transform_indices = @transform_3, window_bounds = array<i64: 16, 256>}]} {
    %c0 = arith.constant 0 : index
    %c0_0 = arith.constant 0 : index
    %0 = vector.load %arg1[%c0, %c0_0] : memref<16x256xf32, #tpu.memory_space<vmem>>, vector<16x256xf32>
    %c0_1 = arith.constant 0 : index
    %c0_2 = arith.constant 0 : index
    %1 = vector.load %arg2[%c0_1, %c0_2] : memref<1x256xf32, #tpu.memory_space<vmem>>, vector<1x256xf32>
    %2 = vector.broadcast %1 : vector<1x256xf32> to vector<16x256xf32>
    %3 = arith.mulf %0, %2 : vector<16x256xf32>
    %c0_3 = arith.constant 0 : index
    %c0_4 = arith.constant 0 : index
    %4 = vector.load %arg3[%c0_3, %c0_4] : memref<1x256xf32, #tpu.memory_space<vmem>>, vector<1x256xf32>
    %5 = vector.broadcast %4 : vector<1x256xf32> to vector<16x256xf32>
    %6 = arith.addf %3, %5 : vector<16x256xf32>
    %cst = arith.constant 0.000000e+00 : f32
    %7 = vector.broadcast %cst : f32 to vector<16x256xf32>
    %8 = arith.maximumf %6, %7 : vector<16x256xf32>
    %9 = arith.truncf %8 : vector<16x256xf32> to vector<16x256xbf16>
    %c0_5 = arith.constant 0 : index
    %c0_6 = arith.constant 0 : index
    %10 = vector.load %arg4[%c0_5, %c0_6] : memref<16x256xbf16, #tpu.memory_space<vmem>>, vector<16x256xbf16>
    tpu.vector_store %arg4[%c0_5, %c0_6], %9 {strides = array<i32>} : memref<16x256xbf16, #tpu.memory_space<vmem>>, vector<16x256xbf16>,
    return
  }
  func.func @transform_0(%arg0: i32) -> (i32, i32) {
    %c0_i32 = arith.constant 0 : i32
    %c0_i32_0 = arith.constant 0 : i32
    return %arg0, %c0_i32 : i32, i32
  }
  func.func @transform_1(%arg0: i32) -> (i32, i32) {
    %c0_i32 = arith.constant 0 : i32
    %c0_i32_0 = arith.constant 0 : i32
    %c0_i32_1 = arith.constant 0 : i32
    return %c0_i32, %c0_i32_0 : i32, i32
  }
  func.func @transform_2(%arg0: i32) -> (i32, i32) {
    %c0_i32 = arith.constant 0 : i32
    %c0_i32_0 = arith.constant 0 : i32
    %c0_i32_1 = arith.constant 0 : i32
    return %c0_i32, %c0_i32_0 : i32, i32
  }
  func.func @transform_3(%arg0: i32) -> (i32, i32) {
    %c0_i32 = arith.constant 0 : i32
    %c0_i32_0 = arith.constant 0 : i32
    return %arg0, %c0_i32 : i32, i32
  }
}

module attributes {stable_mosaic.version = 11 : i64} {
  func.func @_mm_stats_kernel(%arg0: i32, %arg1: i32, %arg2: i32, %arg3: memref<16x128xbf16, #tpu.memory_space<vmem>>, %arg4: memref<128x256xbf16, #tpu.memory_space<vmem>>, %arg5: memref<16x256xf32, #tpu.memory_space<vmem>>, %arg6: memref<1x8x256xf32, #tpu.memory_space<vmem>>) attributes {dimension_semantics = [#tpu.dimension_semantics<parallel>, #tpu.dimension_semantics<parallel>, #tpu.dimension_semantics<arbitrary>], iteration_bounds = array<i64: 1, 1, 9>, scalar_prefetch = 0 : i64, scratch_operands = 0 : i64, tpu.core_type = #tpu.core_type<tc>, window_params = [{transform_indices = @transform_0, window_bounds = array<i64: 16, 128>}, {transform_indices = @transform_1, window_bounds = array<i64: 128, 256>}, {transform_indices = @transform_2, window_bounds = array<i64: 16, 256>}, {transform_indices = @transform_3, window_bounds = array<i64: 1, 8, 256>}]} {
    %c0_i32 = arith.constant 0 : i32
    %0 = arith.cmpi eq, %arg2, %c0_i32 : i32
    %1 = arith.extui %0 : i1 to i32
    %c0_i32_0 = arith.constant 0 : i32
    %2 = arith.cmpi ne, %1, %c0_i32_0 : i32
    scf.if %2 {
      %cst_9 = arith.constant 0.000000e+00 : f32
      %12 = vector.broadcast %cst_9 : f32 to vector<16x256xf32>
      %c0_10 = arith.constant 0 : index
      %c0_11 = arith.constant 0 : index
      %13 = vector.load %arg5[%c0_10, %c0_11] : memref<16x256xf32, #tpu.memory_space<vmem>>, vector<16x256xf32>
      tpu.vector_store %arg5[%c0_10, %c0_11], %12 {strides = array<i32>} : memref<16x256xf32, #tpu.memory_space<vmem>>, vector<16x256xf32>,
    } else {
    }
    %c0 = arith.constant 0 : index
    %c0_1 = arith.constant 0 : index
    %3 = vector.load %arg5[%c0, %c0_1] : memref<16x256xf32, #tpu.memory_space<vmem>>, vector<16x256xf32>
    %c0_2 = arith.constant 0 : index
    %c0_3 = arith.constant 0 : index
    %4 = vector.load %arg3[%c0_2, %c0_3] : memref<16x128xbf16, #tpu.memory_space<vmem>>, vector<16x128xbf16>
    %c0_4 = arith.constant 0 : index
    %c0_5 = arith.constant 0 : index
    %5 = vector.load %arg4[%c0_4, %c0_5] : memref<128x256xbf16, #tpu.memory_space<vmem>>, vector<128x256xbf16>
    %cst = arith.constant dense<0.000000e+00> : vector<16x256xf32>
    %6 = tpu.matmul %4, %5, %cst {dimension_numbers = #tpu.dot_dimension_numbers<[1], [0], [0], [1], [0, 0, 1, 1], [], []>} : vector<16x128xbf16>, vector<128x256xbf16>, vector<16x256xf32> -> vector<16x256xf32>
    %7 = arith.addf %3, %6 : vector<16x256xf32>
    %c0_6 = arith.constant 0 : index
    %c0_7 = arith.constant 0 : index
    %8 = vector.load %arg5[%c0_6, %c0_7] : memref<16x256xf32, #tpu.memory_space<vmem>>, vector<16x256xf32>
    tpu.vector_store %arg5[%c0_6, %c0_7], %7 {strides = array<i32>} : memref<16x256xf32, #tpu.memory_space<vmem>>, vector<16x256xf32>,
    %c8_i32 = arith.constant 8 : i32
    %9 = arith.cmpi eq, %arg2, %c8_i32 : i32
    %10 = arith.extui %9 : i1 to i32
    %c0_i32_8 = arith.constant 0 : i32
    %11 = arith.cmpi ne, %10, %c0_i32_8 : i32
    scf.if %11 {
      %c0_9 = arith.constant 0 : index
      %c0_10 = arith.constant 0 : index
      %12 = vector.load %arg5[%c0_9, %c0_10] : memref<16x256xf32, #tpu.memory_space<vmem>>, vector<16x256xf32>
      %cst_11 = arith.constant dense<0.000000e+00> : vector<256xf32>
      %13 = vector.multi_reduction <add>, %12, %cst_11 [0] : vector<16x256xf32> to vector<256xf32>
      %14 = vector.shape_cast %13 : vector<256xf32> to vector<1x256xf32>
      %15 = arith.mulf %12, %12 : vector<16x256xf32>
      %cst_12 = arith.constant dense<0.000000e+00> : vector<256xf32>
      %16 = vector.multi_reduction <add>, %15, %cst_12 [0] : vector<16x256xf32> to vector<256xf32>
      %17 = vector.shape_cast %16 : vector<256xf32> to vector<1x256xf32>
      %18 = tpu.iota {dimensions = array<i32: 0>} : vector<8x256xi32>
      %c0_i32_13 = arith.constant 0 : i32
      %19 = vector.broadcast %c0_i32_13 : i32 to vector<8x256xi32>
      %20 = arith.cmpi eq, %18, %19 : vector<8x256xi32>
      %c1_i32 = arith.constant 1 : i32
      %21 = vector.broadcast %c1_i32 : i32 to vector<8x256xi32>
      %22 = arith.cmpi eq, %18, %21 : vector<8x256xi32>
      %cst_14 = arith.constant 0.000000e+00 : f32
      %23 = vector.shape_cast %17 : vector<1x256xf32> to vector<1x256xf32>
      %24 = vector.broadcast %23 : vector<1x256xf32> to vector<8x256xf32>
      %25 = vector.broadcast %cst_14 : f32 to vector<8x256xf32>
      %26 = arith.select %22, %24, %25 : vector<8x256xi1>, vector<8x256xf32>
      %27 = vector.shape_cast %14 : vector<1x256xf32> to vector<1x256xf32>
      %28 = vector.broadcast %27 : vector<1x256xf32> to vector<8x256xf32>
      %29 = arith.select %20, %28, %26 : vector<8x256xi1>, vector<8x256xf32>
      %30 = vector.shape_cast %29 : vector<8x256xf32> to vector<1x8x256xf32>
      %c0_15 = arith.constant 0 : index
      %c0_16 = arith.constant 0 : index
      %c0_17 = arith.constant 0 : index
      %31 = vector.load %arg6[%c0_15, %c0_16, %c0_17] : memref<1x8x256xf32, #tpu.memory_space<vmem>>, vector<1x8x256xf32>
      tpu.vector_store %arg6[%c0_15, %c0_16, %c0_17], %30 {strides = array<i32>} : memref<1x8x256xf32, #tpu.memory_space<vmem>>, vector<1x8x256xf32>,
    } else {
    }
    return
  }
  func.func @transform_0(%arg0: i32, %arg1: i32, %arg2: i32) -> (i32, i32) {
    %c0_i32 = arith.constant 0 : i32
    return %arg0, %arg2 : i32, i32
  }
  func.func @transform_1(%arg0: i32, %arg1: i32, %arg2: i32) -> (i32, i32) {
    %c0_i32 = arith.constant 0 : i32
    return %arg2, %arg1 : i32, i32
  }
  func.func @transform_2(%arg0: i32, %arg1: i32, %arg2: i32) -> (i32, i32) {
    %c0_i32 = arith.constant 0 : i32
    return %arg0, %arg1 : i32, i32
  }
  func.func @transform_3(%arg0: i32, %arg1: i32, %arg2: i32) -> (i32, i32, i32) {
    %c0_i32 = arith.constant 0 : i32
    %c0_i32_0 = arith.constant 0 : i32
    return %arg0, %c0_i32, %arg1 : i32, i32, i32
  }
}

module attributes {stable_mosaic.version = 11 : i64} {
  func.func @_affine_add_relu_kernel(%arg0: i32, %arg1: memref<16x256xf32, #tpu.memory_space<vmem>>, %arg2: memref<1x256xf32, #tpu.memory_space<vmem>>, %arg3: memref<1x256xf32, #tpu.memory_space<vmem>>, %arg4: memref<16x256xbf16, #tpu.memory_space<vmem>>, %arg5: memref<16x256xbf16, #tpu.memory_space<vmem>>) attributes {dimension_semantics = [#tpu.dimension_semantics<parallel>], iteration_bounds = array<i64: 1>, scalar_prefetch = 0 : i64, scratch_operands = 0 : i64, tpu.core_type = #tpu.core_type<tc>, window_params = [{transform_indices = @transform_0, window_bounds = array<i64: 16, 256>}, {pipeline_mode = #tpu.pipeline_mode<synchronous>, transform_indices = @transform_1, window_bounds = array<i64: 1, 256>}, {pipeline_mode = #tpu.pipeline_mode<synchronous>, transform_indices = @transform_2, window_bounds = array<i64: 1, 256>}, {transform_indices = @transform_3, window_bounds = array<i64: 16, 256>}, {transform_indices = @transform_4, window_bounds = array<i64: 16, 256>}]} {
    %c0 = arith.constant 0 : index
    %c0_0 = arith.constant 0 : index
    %0 = vector.load %arg1[%c0, %c0_0] : memref<16x256xf32, #tpu.memory_space<vmem>>, vector<16x256xf32>
    %c0_1 = arith.constant 0 : index
    %c0_2 = arith.constant 0 : index
    %1 = vector.load %arg2[%c0_1, %c0_2] : memref<1x256xf32, #tpu.memory_space<vmem>>, vector<1x256xf32>
    %2 = vector.broadcast %1 : vector<1x256xf32> to vector<16x256xf32>
    %3 = arith.mulf %0, %2 : vector<16x256xf32>
    %c0_3 = arith.constant 0 : index
    %c0_4 = arith.constant 0 : index
    %4 = vector.load %arg3[%c0_3, %c0_4] : memref<1x256xf32, #tpu.memory_space<vmem>>, vector<1x256xf32>
    %5 = vector.broadcast %4 : vector<1x256xf32> to vector<16x256xf32>
    %6 = arith.addf %3, %5 : vector<16x256xf32>
    %c0_5 = arith.constant 0 : index
    %c0_6 = arith.constant 0 : index
    %7 = vector.load %arg4[%c0_5, %c0_6] : memref<16x256xbf16, #tpu.memory_space<vmem>>, vector<16x256xbf16>
    %8 = arith.extf %7 : vector<16x256xbf16> to vector<16x256xf32>
    %9 = arith.addf %6, %8 : vector<16x256xf32>
    %cst = arith.constant 0.000000e+00 : f32
    %10 = vector.broadcast %cst : f32 to vector<16x256xf32>
    %11 = arith.maximumf %9, %10 : vector<16x256xf32>
    %12 = arith.truncf %11 : vector<16x256xf32> to vector<16x256xbf16>
    %c0_7 = arith.constant 0 : index
    %c0_8 = arith.constant 0 : index
    %13 = vector.load %arg5[%c0_7, %c0_8] : memref<16x256xbf16, #tpu.memory_space<vmem>>, vector<16x256xbf16>
    tpu.vector_store %arg5[%c0_7, %c0_8], %12 {strides = array<i32>} : memref<16x256xbf16, #tpu.memory_space<vmem>>, vector<16x256xbf16>,
    return
  }
  func.func @transform_0(%arg0: i32) -> (i32, i32) {
    %c0_i32 = arith.constant 0 : i32
    %c0_i32_0 = arith.constant 0 : i32
    return %arg0, %c0_i32 : i32, i32
  }
  func.func @transform_1(%arg0: i32) -> (i32, i32) {
    %c0_i32 = arith.constant 0 : i32
    %c0_i32_0 = arith.constant 0 : i32
    %c0_i32_1 = arith.constant 0 : i32
    return %c0_i32, %c0_i32_0 : i32, i32
  }
  func.func @transform_2(%arg0: i32) -> (i32, i32) {
    %c0_i32 = arith.constant 0 : i32
    %c0_i32_0 = arith.constant 0 : i32
    %c0_i32_1 = arith.constant 0 : i32
    return %c0_i32, %c0_i32_0 : i32, i32
  }
  func.func @transform_3(%arg0: i32) -> (i32, i32) {
    %c0_i32 = arith.constant 0 : i32
    %c0_i32_0 = arith.constant 0 : i32
    return %arg0, %c0_i32 : i32, i32
  }
  func.func @transform_4(%arg0: i32) -> (i32, i32) {
    %c0_i32 = arith.constant 0 : i32
    %c0_i32_0 = arith.constant 0 : i32
    return %arg0, %c0_i32 : i32, i32
  }
}

module attributes {stable_mosaic.version = 11 : i64} {
  func.func @_mm_stats_kernel(%arg0: i32, %arg1: i32, %arg2: i32, %arg3: memref<16x256xbf16, #tpu.memory_space<vmem>>, %arg4: memref<256x256xbf16, #tpu.memory_space<vmem>>, %arg5: memref<16x256xf32, #tpu.memory_space<vmem>>, %arg6: memref<1x8x256xf32, #tpu.memory_space<vmem>>) attributes {dimension_semantics = [#tpu.dimension_semantics<parallel>, #tpu.dimension_semantics<parallel>, #tpu.dimension_semantics<arbitrary>], iteration_bounds = array<i64: 1, 1, 9>, scalar_prefetch = 0 : i64, scratch_operands = 0 : i64, tpu.core_type = #tpu.core_type<tc>, window_params = [{transform_indices = @transform_0, window_bounds = array<i64: 16, 256>}, {transform_indices = @transform_1, window_bounds = array<i64: 256, 256>}, {transform_indices = @transform_2, window_bounds = array<i64: 16, 256>}, {transform_indices = @transform_3, window_bounds = array<i64: 1, 8, 256>}]} {
    %c0_i32 = arith.constant 0 : i32
    %0 = arith.cmpi eq, %arg2, %c0_i32 : i32
    %1 = arith.extui %0 : i1 to i32
    %c0_i32_0 = arith.constant 0 : i32
    %2 = arith.cmpi ne, %1, %c0_i32_0 : i32
    scf.if %2 {
      %cst_9 = arith.constant 0.000000e+00 : f32
      %12 = vector.broadcast %cst_9 : f32 to vector<16x256xf32>
      %c0_10 = arith.constant 0 : index
      %c0_11 = arith.constant 0 : index
      %13 = vector.load %arg5[%c0_10, %c0_11] : memref<16x256xf32, #tpu.memory_space<vmem>>, vector<16x256xf32>
      tpu.vector_store %arg5[%c0_10, %c0_11], %12 {strides = array<i32>} : memref<16x256xf32, #tpu.memory_space<vmem>>, vector<16x256xf32>,
    } else {
    }
    %c0 = arith.constant 0 : index
    %c0_1 = arith.constant 0 : index
    %3 = vector.load %arg5[%c0, %c0_1] : memref<16x256xf32, #tpu.memory_space<vmem>>, vector<16x256xf32>
    %c0_2 = arith.constant 0 : index
    %c0_3 = arith.constant 0 : index
    %4 = vector.load %arg3[%c0_2, %c0_3] : memref<16x256xbf16, #tpu.memory_space<vmem>>, vector<16x256xbf16>
    %c0_4 = arith.constant 0 : index
    %c0_5 = arith.constant 0 : index
    %5 = vector.load %arg4[%c0_4, %c0_5] : memref<256x256xbf16, #tpu.memory_space<vmem>>, vector<256x256xbf16>
    %cst = arith.constant dense<0.000000e+00> : vector<16x256xf32>
    %6 = tpu.matmul %4, %5, %cst {dimension_numbers = #tpu.dot_dimension_numbers<[1], [0], [0], [1], [0, 0, 1, 1], [], []>} : vector<16x256xbf16>, vector<256x256xbf16>, vector<16x256xf32> -> vector<16x256xf32>
    %7 = arith.addf %3, %6 : vector<16x256xf32>
    %c0_6 = arith.constant 0 : index
    %c0_7 = arith.constant 0 : index
    %8 = vector.load %arg5[%c0_6, %c0_7] : memref<16x256xf32, #tpu.memory_space<vmem>>, vector<16x256xf32>
    tpu.vector_store %arg5[%c0_6, %c0_7], %7 {strides = array<i32>} : memref<16x256xf32, #tpu.memory_space<vmem>>, vector<16x256xf32>,
    %c8_i32 = arith.constant 8 : i32
    %9 = arith.cmpi eq, %arg2, %c8_i32 : i32
    %10 = arith.extui %9 : i1 to i32
    %c0_i32_8 = arith.constant 0 : i32
    %11 = arith.cmpi ne, %10, %c0_i32_8 : i32
    scf.if %11 {
      %c0_9 = arith.constant 0 : index
      %c0_10 = arith.constant 0 : index
      %12 = vector.load %arg5[%c0_9, %c0_10] : memref<16x256xf32, #tpu.memory_space<vmem>>, vector<16x256xf32>
      %cst_11 = arith.constant dense<0.000000e+00> : vector<256xf32>
      %13 = vector.multi_reduction <add>, %12, %cst_11 [0] : vector<16x256xf32> to vector<256xf32>
      %14 = vector.shape_cast %13 : vector<256xf32> to vector<1x256xf32>
      %15 = arith.mulf %12, %12 : vector<16x256xf32>
      %cst_12 = arith.constant dense<0.000000e+00> : vector<256xf32>
      %16 = vector.multi_reduction <add>, %15, %cst_12 [0] : vector<16x256xf32> to vector<256xf32>
      %17 = vector.shape_cast %16 : vector<256xf32> to vector<1x256xf32>
      %18 = tpu.iota {dimensions = array<i32: 0>} : vector<8x256xi32>
      %c0_i32_13 = arith.constant 0 : i32
      %19 = vector.broadcast %c0_i32_13 : i32 to vector<8x256xi32>
      %20 = arith.cmpi eq, %18, %19 : vector<8x256xi32>
      %c1_i32 = arith.constant 1 : i32
      %21 = vector.broadcast %c1_i32 : i32 to vector<8x256xi32>
      %22 = arith.cmpi eq, %18, %21 : vector<8x256xi32>
      %cst_14 = arith.constant 0.000000e+00 : f32
      %23 = vector.shape_cast %17 : vector<1x256xf32> to vector<1x256xf32>
      %24 = vector.broadcast %23 : vector<1x256xf32> to vector<8x256xf32>
      %25 = vector.broadcast %cst_14 : f32 to vector<8x256xf32>
      %26 = arith.select %22, %24, %25 : vector<8x256xi1>, vector<8x256xf32>
      %27 = vector.shape_cast %14 : vector<1x256xf32> to vector<1x256xf32>
      %28 = vector.broadcast %27 : vector<1x256xf32> to vector<8x256xf32>
      %29 = arith.select %20, %28, %26 : vector<8x256xi1>, vector<8x256xf32>
      %30 = vector.shape_cast %29 : vector<8x256xf32> to vector<1x8x256xf32>
      %c0_15 = arith.constant 0 : index
      %c0_16 = arith.constant 0 : index
      %c0_17 = arith.constant 0 : index
      %31 = vector.load %arg6[%c0_15, %c0_16, %c0_17] : memref<1x8x256xf32, #tpu.memory_space<vmem>>, vector<1x8x256xf32>
      tpu.vector_store %arg6[%c0_15, %c0_16, %c0_17], %30 {strides = array<i32>} : memref<1x8x256xf32, #tpu.memory_space<vmem>>, vector<1x8x256xf32>,
    } else {
    }
    return
  }
  func.func @transform_0(%arg0: i32, %arg1: i32, %arg2: i32) -> (i32, i32) {
    %c0_i32 = arith.constant 0 : i32
    return %arg0, %arg2 : i32, i32
  }
  func.func @transform_1(%arg0: i32, %arg1: i32, %arg2: i32) -> (i32, i32) {
    %c0_i32 = arith.constant 0 : i32
    return %arg2, %arg1 : i32, i32
  }
  func.func @transform_2(%arg0: i32, %arg1: i32, %arg2: i32) -> (i32, i32) {
    %c0_i32 = arith.constant 0 : i32
    return %arg0, %arg1 : i32, i32
  }
  func.func @transform_3(%arg0: i32, %arg1: i32, %arg2: i32) -> (i32, i32, i32) {
    %c0_i32 = arith.constant 0 : i32
    %c0_i32_0 = arith.constant 0 : i32
    return %arg0, %c0_i32, %arg1 : i32, i32, i32
  }
}

module attributes {stable_mosaic.version = 11 : i64} {
  func.func @_mm_stats_kernel(%arg0: i32, %arg1: i32, %arg2: i32, %arg3: memref<16x256xbf16, #tpu.memory_space<vmem>>, %arg4: memref<256x256xbf16, #tpu.memory_space<vmem>>, %arg5: memref<16x256xf32, #tpu.memory_space<vmem>>, %arg6: memref<1x8x256xf32, #tpu.memory_space<vmem>>) attributes {dimension_semantics = [#tpu.dimension_semantics<parallel>, #tpu.dimension_semantics<parallel>, #tpu.dimension_semantics<arbitrary>], iteration_bounds = array<i64: 1, 2, 1>, scalar_prefetch = 0 : i64, scratch_operands = 0 : i64, tpu.core_type = #tpu.core_type<tc>, window_params = [{transform_indices = @transform_0, window_bounds = array<i64: 16, 256>}, {transform_indices = @transform_1, window_bounds = array<i64: 256, 256>}, {transform_indices = @transform_2, window_bounds = array<i64: 16, 256>}, {transform_indices = @transform_3, window_bounds = array<i64: 1, 8, 256>}]} {
    %c0_i32 = arith.constant 0 : i32
    %0 = arith.cmpi eq, %arg2, %c0_i32 : i32
    %1 = arith.extui %0 : i1 to i32
    %c0_i32_0 = arith.constant 0 : i32
    %2 = arith.cmpi ne, %1, %c0_i32_0 : i32
    scf.if %2 {
      %cst_10 = arith.constant 0.000000e+00 : f32
      %12 = vector.broadcast %cst_10 : f32 to vector<16x256xf32>
      %c0_11 = arith.constant 0 : index
      %c0_12 = arith.constant 0 : index
      %13 = vector.load %arg5[%c0_11, %c0_12] : memref<16x256xf32, #tpu.memory_space<vmem>>, vector<16x256xf32>
      tpu.vector_store %arg5[%c0_11, %c0_12], %12 {strides = array<i32>} : memref<16x256xf32, #tpu.memory_space<vmem>>, vector<16x256xf32>,
    } else {
    }
    %c0 = arith.constant 0 : index
    %c0_1 = arith.constant 0 : index
    %3 = vector.load %arg5[%c0, %c0_1] : memref<16x256xf32, #tpu.memory_space<vmem>>, vector<16x256xf32>
    %c0_2 = arith.constant 0 : index
    %c0_3 = arith.constant 0 : index
    %4 = vector.load %arg3[%c0_2, %c0_3] : memref<16x256xbf16, #tpu.memory_space<vmem>>, vector<16x256xbf16>
    %c0_4 = arith.constant 0 : index
    %c0_5 = arith.constant 0 : index
    %5 = vector.load %arg4[%c0_4, %c0_5] : memref<256x256xbf16, #tpu.memory_space<vmem>>, vector<256x256xbf16>
    %cst = arith.constant dense<0.000000e+00> : vector<16x256xf32>
    %6 = tpu.matmul %4, %5, %cst {dimension_numbers = #tpu.dot_dimension_numbers<[1], [0], [0], [1], [0, 0, 1, 1], [], []>} : vector<16x256xbf16>, vector<256x256xbf16>, vector<16x256xf32> -> vector<16x256xf32>
    %7 = arith.addf %3, %6 : vector<16x256xf32>
    %c0_6 = arith.constant 0 : index
    %c0_7 = arith.constant 0 : index
    %8 = vector.load %arg5[%c0_6, %c0_7] : memref<16x256xf32, #tpu.memory_space<vmem>>, vector<16x256xf32>
    tpu.vector_store %arg5[%c0_6, %c0_7], %7 {strides = array<i32>} : memref<16x256xf32, #tpu.memory_space<vmem>>, vector<16x256xf32>,
    %c0_i32_8 = arith.constant 0 : i32
    %9 = arith.cmpi eq, %arg2, %c0_i32_8 : i32
    %10 = arith.extui %9 : i1 to i32
    %c0_i32_9 = arith.constant 0 : i32
    %11 = arith.cmpi ne, %10, %c0_i32_9 : i32
    scf.if %11 {
      %c0_10 = arith.constant 0 : index
      %c0_11 = arith.constant 0 : index
      %12 = vector.load %arg5[%c0_10, %c0_11] : memref<16x256xf32, #tpu.memory_space<vmem>>, vector<16x256xf32>
      %cst_12 = arith.constant dense<0.000000e+00> : vector<256xf32>
      %13 = vector.multi_reduction <add>, %12, %cst_12 [0] : vector<16x256xf32> to vector<256xf32>
      %14 = vector.shape_cast %13 : vector<256xf32> to vector<1x256xf32>
      %15 = arith.mulf %12, %12 : vector<16x256xf32>
      %cst_13 = arith.constant dense<0.000000e+00> : vector<256xf32>
      %16 = vector.multi_reduction <add>, %15, %cst_13 [0] : vector<16x256xf32> to vector<256xf32>
      %17 = vector.shape_cast %16 : vector<256xf32> to vector<1x256xf32>
      %18 = tpu.iota {dimensions = array<i32: 0>} : vector<8x256xi32>
      %c0_i32_14 = arith.constant 0 : i32
      %19 = vector.broadcast %c0_i32_14 : i32 to vector<8x256xi32>
      %20 = arith.cmpi eq, %18, %19 : vector<8x256xi32>
      %c1_i32 = arith.constant 1 : i32
      %21 = vector.broadcast %c1_i32 : i32 to vector<8x256xi32>
      %22 = arith.cmpi eq, %18, %21 : vector<8x256xi32>
      %cst_15 = arith.constant 0.000000e+00 : f32
      %23 = vector.shape_cast %17 : vector<1x256xf32> to vector<1x256xf32>
      %24 = vector.broadcast %23 : vector<1x256xf32> to vector<8x256xf32>
      %25 = vector.broadcast %cst_15 : f32 to vector<8x256xf32>
      %26 = arith.select %22, %24, %25 : vector<8x256xi1>, vector<8x256xf32>
      %27 = vector.shape_cast %14 : vector<1x256xf32> to vector<1x256xf32>
      %28 = vector.broadcast %27 : vector<1x256xf32> to vector<8x256xf32>
      %29 = arith.select %20, %28, %26 : vector<8x256xi1>, vector<8x256xf32>
      %30 = vector.shape_cast %29 : vector<8x256xf32> to vector<1x8x256xf32>
      %c0_16 = arith.constant 0 : index
      %c0_17 = arith.constant 0 : index
      %c0_18 = arith.constant 0 : index
      %31 = vector.load %arg6[%c0_16, %c0_17, %c0_18] : memref<1x8x256xf32, #tpu.memory_space<vmem>>, vector<1x8x256xf32>
      tpu.vector_store %arg6[%c0_16, %c0_17, %c0_18], %30 {strides = array<i32>} : memref<1x8x256xf32, #tpu.memory_space<vmem>>, vector<1x8x256xf32>,
    } else {
    }
    return
  }
  func.func @transform_0(%arg0: i32, %arg1: i32, %arg2: i32) -> (i32, i32) {
    %c0_i32 = arith.constant 0 : i32
    return %arg0, %arg2 : i32, i32
  }
  func.func @transform_1(%arg0: i32, %arg1: i32, %arg2: i32) -> (i32, i32) {
    %c0_i32 = arith.constant 0 : i32
    return %arg2, %arg1 : i32, i32
  }
  func.func @transform_2(%arg0: i32, %arg1: i32, %arg2: i32) -> (i32, i32) {
    %c0_i32 = arith.constant 0 : i32
    return %arg0, %arg1 : i32, i32
  }
  func.func @transform_3(%arg0: i32, %arg1: i32, %arg2: i32) -> (i32, i32, i32) {
    %c0_i32 = arith.constant 0 : i32
    %c0_i32_0 = arith.constant 0 : i32
    return %arg0, %c0_i32, %arg1 : i32, i32, i32
  }
}

module attributes {stable_mosaic.version = 11 : i64} {
  func.func @_affine_kernel(%arg0: i32, %arg1: memref<16x512xf32, #tpu.memory_space<vmem>>, %arg2: memref<1x512xf32, #tpu.memory_space<vmem>>, %arg3: memref<1x512xf32, #tpu.memory_space<vmem>>, %arg4: memref<16x512xbf16, #tpu.memory_space<vmem>>) attributes {dimension_semantics = [#tpu.dimension_semantics<parallel>], iteration_bounds = array<i64: 1>, scalar_prefetch = 0 : i64, scratch_operands = 0 : i64, tpu.core_type = #tpu.core_type<tc>, window_params = [{transform_indices = @transform_0, window_bounds = array<i64: 16, 512>}, {pipeline_mode = #tpu.pipeline_mode<synchronous>, transform_indices = @transform_1, window_bounds = array<i64: 1, 512>}, {pipeline_mode = #tpu.pipeline_mode<synchronous>, transform_indices = @transform_2, window_bounds = array<i64: 1, 512>}, {transform_indices = @transform_3, window_bounds = array<i64: 16, 512>}]} {
    %c0 = arith.constant 0 : index
    %c0_0 = arith.constant 0 : index
    %0 = vector.load %arg1[%c0, %c0_0] : memref<16x512xf32, #tpu.memory_space<vmem>>, vector<16x512xf32>
    %c0_1 = arith.constant 0 : index
    %c0_2 = arith.constant 0 : index
    %1 = vector.load %arg2[%c0_1, %c0_2] : memref<1x512xf32, #tpu.memory_space<vmem>>, vector<1x512xf32>
    %2 = vector.broadcast %1 : vector<1x512xf32> to vector<16x512xf32>
    %3 = arith.mulf %0, %2 : vector<16x512xf32>
    %c0_3 = arith.constant 0 : index
    %c0_4 = arith.constant 0 : index
    %4 = vector.load %arg3[%c0_3, %c0_4] : memref<1x512xf32, #tpu.memory_space<vmem>>, vector<1x512xf32>
    %5 = vector.broadcast %4 : vector<1x512xf32> to vector<16x512xf32>
    %6 = arith.addf %3, %5 : vector<16x512xf32>
    %7 = arith.truncf %6 : vector<16x512xf32> to vector<16x512xbf16>
    %c0_5 = arith.constant 0 : index
    %c0_6 = arith.constant 0 : index
    %8 = vector.load %arg4[%c0_5, %c0_6] : memref<16x512xbf16, #tpu.memory_space<vmem>>, vector<16x512xbf16>
    tpu.vector_store %arg4[%c0_5, %c0_6], %7 {strides = array<i32>} : memref<16x512xbf16, #tpu.memory_space<vmem>>, vector<16x512xbf16>,
    return
  }
  func.func @transform_0(%arg0: i32) -> (i32, i32) {
    %c0_i32 = arith.constant 0 : i32
    %c0_i32_0 = arith.constant 0 : i32
    return %arg0, %c0_i32 : i32, i32
  }
  func.func @transform_1(%arg0: i32) -> (i32, i32) {
    %c0_i32 = arith.constant 0 : i32
    %c0_i32_0 = arith.constant 0 : i32
    %c0_i32_1 = arith.constant 0 : i32
    return %c0_i32, %c0_i32_0 : i32, i32
  }
  func.func @transform_2(%arg0: i32) -> (i32, i32) {
    %c0_i32 = arith.constant 0 : i32
    %c0_i32_0 = arith.constant 0 : i32
    %c0_i32_1 = arith.constant 0 : i32
    return %c0_i32, %c0_i32_0 : i32, i32
  }
  func.func @transform_3(%arg0: i32) -> (i32, i32) {
    %c0_i32 = arith.constant 0 : i32
    %c0_i32_0 = arith.constant 0 : i32
    return %arg0, %c0_i32 : i32, i32
  }
}

module attributes {stable_mosaic.version = 11 : i64} {
  func.func @_mm_stats_kernel(%arg0: i32, %arg1: i32, %arg2: i32, %arg3: memref<16x256xbf16, #tpu.memory_space<vmem>>, %arg4: memref<256x256xbf16, #tpu.memory_space<vmem>>, %arg5: memref<16x256xf32, #tpu.memory_space<vmem>>, %arg6: memref<1x8x256xf32, #tpu.memory_space<vmem>>) attributes {dimension_semantics = [#tpu.dimension_semantics<parallel>, #tpu.dimension_semantics<parallel>, #tpu.dimension_semantics<arbitrary>], iteration_bounds = array<i64: 1, 2, 9>, scalar_prefetch = 0 : i64, scratch_operands = 0 : i64, tpu.core_type = #tpu.core_type<tc>, window_params = [{transform_indices = @transform_0, window_bounds = array<i64: 16, 256>}, {transform_indices = @transform_1, window_bounds = array<i64: 256, 256>}, {transform_indices = @transform_2, window_bounds = array<i64: 16, 256>}, {transform_indices = @transform_3, window_bounds = array<i64: 1, 8, 256>}]} {
    %c0_i32 = arith.constant 0 : i32
    %0 = arith.cmpi eq, %arg2, %c0_i32 : i32
    %1 = arith.extui %0 : i1 to i32
    %c0_i32_0 = arith.constant 0 : i32
    %2 = arith.cmpi ne, %1, %c0_i32_0 : i32
    scf.if %2 {
      %cst_9 = arith.constant 0.000000e+00 : f32
      %12 = vector.broadcast %cst_9 : f32 to vector<16x256xf32>
      %c0_10 = arith.constant 0 : index
      %c0_11 = arith.constant 0 : index
      %13 = vector.load %arg5[%c0_10, %c0_11] : memref<16x256xf32, #tpu.memory_space<vmem>>, vector<16x256xf32>
      tpu.vector_store %arg5[%c0_10, %c0_11], %12 {strides = array<i32>} : memref<16x256xf32, #tpu.memory_space<vmem>>, vector<16x256xf32>,
    } else {
    }
    %c0 = arith.constant 0 : index
    %c0_1 = arith.constant 0 : index
    %3 = vector.load %arg5[%c0, %c0_1] : memref<16x256xf32, #tpu.memory_space<vmem>>, vector<16x256xf32>
    %c0_2 = arith.constant 0 : index
    %c0_3 = arith.constant 0 : index
    %4 = vector.load %arg3[%c0_2, %c0_3] : memref<16x256xbf16, #tpu.memory_space<vmem>>, vector<16x256xbf16>
    %c0_4 = arith.constant 0 : index
    %c0_5 = arith.constant 0 : index
    %5 = vector.load %arg4[%c0_4, %c0_5] : memref<256x256xbf16, #tpu.memory_space<vmem>>, vector<256x256xbf16>
    %cst = arith.constant dense<0.000000e+00> : vector<16x256xf32>
    %6 = tpu.matmul %4, %5, %cst {dimension_numbers = #tpu.dot_dimension_numbers<[1], [0], [0], [1], [0, 0, 1, 1], [], []>} : vector<16x256xbf16>, vector<256x256xbf16>, vector<16x256xf32> -> vector<16x256xf32>
    %7 = arith.addf %3, %6 : vector<16x256xf32>
    %c0_6 = arith.constant 0 : index
    %c0_7 = arith.constant 0 : index
    %8 = vector.load %arg5[%c0_6, %c0_7] : memref<16x256xf32, #tpu.memory_space<vmem>>, vector<16x256xf32>
    tpu.vector_store %arg5[%c0_6, %c0_7], %7 {strides = array<i32>} : memref<16x256xf32, #tpu.memory_space<vmem>>, vector<16x256xf32>,
    %c8_i32 = arith.constant 8 : i32
    %9 = arith.cmpi eq, %arg2, %c8_i32 : i32
    %10 = arith.extui %9 : i1 to i32
    %c0_i32_8 = arith.constant 0 : i32
    %11 = arith.cmpi ne, %10, %c0_i32_8 : i32
    scf.if %11 {
      %c0_9 = arith.constant 0 : index
      %c0_10 = arith.constant 0 : index
      %12 = vector.load %arg5[%c0_9, %c0_10] : memref<16x256xf32, #tpu.memory_space<vmem>>, vector<16x256xf32>
      %cst_11 = arith.constant dense<0.000000e+00> : vector<256xf32>
      %13 = vector.multi_reduction <add>, %12, %cst_11 [0] : vector<16x256xf32> to vector<256xf32>
      %14 = vector.shape_cast %13 : vector<256xf32> to vector<1x256xf32>
      %15 = arith.mulf %12, %12 : vector<16x256xf32>
      %cst_12 = arith.constant dense<0.000000e+00> : vector<256xf32>
      %16 = vector.multi_reduction <add>, %15, %cst_12 [0] : vector<16x256xf32> to vector<256xf32>
      %17 = vector.shape_cast %16 : vector<256xf32> to vector<1x256xf32>
      %18 = tpu.iota {dimensions = array<i32: 0>} : vector<8x256xi32>
      %c0_i32_13 = arith.constant 0 : i32
      %19 = vector.broadcast %c0_i32_13 : i32 to vector<8x256xi32>
      %20 = arith.cmpi eq, %18, %19 : vector<8x256xi32>
      %c1_i32 = arith.constant 1 : i32
      %21 = vector.broadcast %c1_i32 : i32 to vector<8x256xi32>
      %22 = arith.cmpi eq, %18, %21 : vector<8x256xi32>
      %cst_14 = arith.constant 0.000000e+00 : f32
      %23 = vector.shape_cast %17 : vector<1x256xf32> to vector<1x256xf32>
      %24 = vector.broadcast %23 : vector<1x256xf32> to vector<8x256xf32>
      %25 = vector.broadcast %cst_14 : f32 to vector<8x256xf32>
      %26 = arith.select %22, %24, %25 : vector<8x256xi1>, vector<8x256xf32>
      %27 = vector.shape_cast %14 : vector<1x256xf32> to vector<1x256xf32>
      %28 = vector.broadcast %27 : vector<1x256xf32> to vector<8x256xf32>
      %29 = arith.select %20, %28, %26 : vector<8x256xi1>, vector<8x256xf32>
      %30 = vector.shape_cast %29 : vector<8x256xf32> to vector<1x8x256xf32>
      %c0_15 = arith.constant 0 : index
      %c0_16 = arith.constant 0 : index
      %c0_17 = arith.constant 0 : index
      %31 = vector.load %arg6[%c0_15, %c0_16, %c0_17] : memref<1x8x256xf32, #tpu.memory_space<vmem>>, vector<1x8x256xf32>
      tpu.vector_store %arg6[%c0_15, %c0_16, %c0_17], %30 {strides = array<i32>} : memref<1x8x256xf32, #tpu.memory_space<vmem>>, vector<1x8x256xf32>,
    } else {
    }
    return
  }
  func.func @transform_0(%arg0: i32, %arg1: i32, %arg2: i32) -> (i32, i32) {
    %c0_i32 = arith.constant 0 : i32
    return %arg0, %arg2 : i32, i32
  }
  func.func @transform_1(%arg0: i32, %arg1: i32, %arg2: i32) -> (i32, i32) {
    %c0_i32 = arith.constant 0 : i32
    return %arg2, %arg1 : i32, i32
  }
  func.func @transform_2(%arg0: i32, %arg1: i32, %arg2: i32) -> (i32, i32) {
    %c0_i32 = arith.constant 0 : i32
    return %arg0, %arg1 : i32, i32
  }
  func.func @transform_3(%arg0: i32, %arg1: i32, %arg2: i32) -> (i32, i32, i32) {
    %c0_i32 = arith.constant 0 : i32
    %c0_i32_0 = arith.constant 0 : i32
    return %arg0, %c0_i32, %arg1 : i32, i32, i32
  }
}

module attributes {stable_mosaic.version = 11 : i64} {
  func.func @_affine_relu_kernel(%arg0: i32, %arg1: memref<16x512xf32, #tpu.memory_space<vmem>>, %arg2: memref<1x512xf32, #tpu.memory_space<vmem>>, %arg3: memref<1x512xf32, #tpu.memory_space<vmem>>, %arg4: memref<16x512xbf16, #tpu.memory_space<vmem>>) attributes {dimension_semantics = [#tpu.dimension_semantics<parallel>], iteration_bounds = array<i64: 1>, scalar_prefetch = 0 : i64, scratch_operands = 0 : i64, tpu.core_type = #tpu.core_type<tc>, window_params = [{transform_indices = @transform_0, window_bounds = array<i64: 16, 512>}, {pipeline_mode = #tpu.pipeline_mode<synchronous>, transform_indices = @transform_1, window_bounds = array<i64: 1, 512>}, {pipeline_mode = #tpu.pipeline_mode<synchronous>, transform_indices = @transform_2, window_bounds = array<i64: 1, 512>}, {transform_indices = @transform_3, window_bounds = array<i64: 16, 512>}]} {
    %c0 = arith.constant 0 : index
    %c0_0 = arith.constant 0 : index
    %0 = vector.load %arg1[%c0, %c0_0] : memref<16x512xf32, #tpu.memory_space<vmem>>, vector<16x512xf32>
    %c0_1 = arith.constant 0 : index
    %c0_2 = arith.constant 0 : index
    %1 = vector.load %arg2[%c0_1, %c0_2] : memref<1x512xf32, #tpu.memory_space<vmem>>, vector<1x512xf32>
    %2 = vector.broadcast %1 : vector<1x512xf32> to vector<16x512xf32>
    %3 = arith.mulf %0, %2 : vector<16x512xf32>
    %c0_3 = arith.constant 0 : index
    %c0_4 = arith.constant 0 : index
    %4 = vector.load %arg3[%c0_3, %c0_4] : memref<1x512xf32, #tpu.memory_space<vmem>>, vector<1x512xf32>
    %5 = vector.broadcast %4 : vector<1x512xf32> to vector<16x512xf32>
    %6 = arith.addf %3, %5 : vector<16x512xf32>
    %cst = arith.constant 0.000000e+00 : f32
    %7 = vector.broadcast %cst : f32 to vector<16x512xf32>
    %8 = arith.maximumf %6, %7 : vector<16x512xf32>
    %9 = arith.truncf %8 : vector<16x512xf32> to vector<16x512xbf16>
    %c0_5 = arith.constant 0 : index
    %c0_6 = arith.constant 0 : index
    %10 = vector.load %arg4[%c0_5, %c0_6] : memref<16x512xbf16, #tpu.memory_space<vmem>>, vector<16x512xbf16>
    tpu.vector_store %arg4[%c0_5, %c0_6], %9 {strides = array<i32>} : memref<16x512xbf16, #tpu.memory_space<vmem>>, vector<16x512xbf16>,
    return
  }
  func.func @transform_0(%arg0: i32) -> (i32, i32) {
    %c0_i32 = arith.constant 0 : i32
    %c0_i32_0 = arith.constant 0 : i32
    return %arg0, %c0_i32 : i32, i32
  }
  func.func @transform_1(%arg0: i32) -> (i32, i32) {
    %c0_i32 = arith.constant 0 : i32
    %c0_i32_0 = arith.constant 0 : i32
    %c0_i32_1 = arith.constant 0 : i32
    return %c0_i32, %c0_i32_0 : i32, i32
  }
  func.func @transform_2(%arg0: i32) -> (i32, i32) {
    %c0_i32 = arith.constant 0 : i32
    %c0_i32_0 = arith.constant 0 : i32
    %c0_i32_1 = arith.constant 0 : i32
    return %c0_i32, %c0_i32_0 : i32, i32
  }
  func.func @transform_3(%arg0: i32) -> (i32, i32) {
    %c0_i32 = arith.constant 0 : i32
    %c0_i32_0 = arith.constant 0 : i32
    return %arg0, %c0_i32 : i32, i32
  }
}

module attributes {stable_mosaic.version = 11 : i64} {
  func.func @_mm_stats_kernel(%arg0: i32, %arg1: i32, %arg2: i32, %arg3: memref<16x512xbf16, #tpu.memory_space<vmem>>, %arg4: memref<512x256xbf16, #tpu.memory_space<vmem>>, %arg5: memref<16x256xf32, #tpu.memory_space<vmem>>, %arg6: memref<1x8x256xf32, #tpu.memory_space<vmem>>) attributes {dimension_semantics = [#tpu.dimension_semantics<parallel>, #tpu.dimension_semantics<parallel>, #tpu.dimension_semantics<arbitrary>], iteration_bounds = array<i64: 1, 2, 9>, scalar_prefetch = 0 : i64, scratch_operands = 0 : i64, tpu.core_type = #tpu.core_type<tc>, window_params = [{transform_indices = @transform_0, window_bounds = array<i64: 16, 512>}, {transform_indices = @transform_1, window_bounds = array<i64: 512, 256>}, {transform_indices = @transform_2, window_bounds = array<i64: 16, 256>}, {transform_indices = @transform_3, window_bounds = array<i64: 1, 8, 256>}]} {
    %c0_i32 = arith.constant 0 : i32
    %0 = arith.cmpi eq, %arg2, %c0_i32 : i32
    %1 = arith.extui %0 : i1 to i32
    %c0_i32_0 = arith.constant 0 : i32
    %2 = arith.cmpi ne, %1, %c0_i32_0 : i32
    scf.if %2 {
      %cst_9 = arith.constant 0.000000e+00 : f32
      %12 = vector.broadcast %cst_9 : f32 to vector<16x256xf32>
      %c0_10 = arith.constant 0 : index
      %c0_11 = arith.constant 0 : index
      %13 = vector.load %arg5[%c0_10, %c0_11] : memref<16x256xf32, #tpu.memory_space<vmem>>, vector<16x256xf32>
      tpu.vector_store %arg5[%c0_10, %c0_11], %12 {strides = array<i32>} : memref<16x256xf32, #tpu.memory_space<vmem>>, vector<16x256xf32>,
    } else {
    }
    %c0 = arith.constant 0 : index
    %c0_1 = arith.constant 0 : index
    %3 = vector.load %arg5[%c0, %c0_1] : memref<16x256xf32, #tpu.memory_space<vmem>>, vector<16x256xf32>
    %c0_2 = arith.constant 0 : index
    %c0_3 = arith.constant 0 : index
    %4 = vector.load %arg3[%c0_2, %c0_3] : memref<16x512xbf16, #tpu.memory_space<vmem>>, vector<16x512xbf16>
    %c0_4 = arith.constant 0 : index
    %c0_5 = arith.constant 0 : index
    %5 = vector.load %arg4[%c0_4, %c0_5] : memref<512x256xbf16, #tpu.memory_space<vmem>>, vector<512x256xbf16>
    %cst = arith.constant dense<0.000000e+00> : vector<16x256xf32>
    %6 = tpu.matmul %4, %5, %cst {dimension_numbers = #tpu.dot_dimension_numbers<[1], [0], [0], [1], [0, 0, 1, 1], [], []>} : vector<16x512xbf16>, vector<512x256xbf16>, vector<16x256xf32> -> vector<16x256xf32>
    %7 = arith.addf %3, %6 : vector<16x256xf32>
    %c0_6 = arith.constant 0 : index
    %c0_7 = arith.constant 0 : index
    %8 = vector.load %arg5[%c0_6, %c0_7] : memref<16x256xf32, #tpu.memory_space<vmem>>, vector<16x256xf32>
    tpu.vector_store %arg5[%c0_6, %c0_7], %7 {strides = array<i32>} : memref<16x256xf32, #tpu.memory_space<vmem>>, vector<16x256xf32>,
    %c8_i32 = arith.constant 8 : i32
    %9 = arith.cmpi eq, %arg2, %c8_i32 : i32
    %10 = arith.extui %9 : i1 to i32
    %c0_i32_8 = arith.constant 0 : i32
    %11 = arith.cmpi ne, %10, %c0_i32_8 : i32
    scf.if %11 {
      %c0_9 = arith.constant 0 : index
      %c0_10 = arith.constant 0 : index
      %12 = vector.load %arg5[%c0_9, %c0_10] : memref<16x256xf32, #tpu.memory_space<vmem>>, vector<16x256xf32>
      %cst_11 = arith.constant dense<0.000000e+00> : vector<256xf32>
      %13 = vector.multi_reduction <add>, %12, %cst_11 [0] : vector<16x256xf32> to vector<256xf32>
      %14 = vector.shape_cast %13 : vector<256xf32> to vector<1x256xf32>
      %15 = arith.mulf %12, %12 : vector<16x256xf32>
      %cst_12 = arith.constant dense<0.000000e+00> : vector<256xf32>
      %16 = vector.multi_reduction <add>, %15, %cst_12 [0] : vector<16x256xf32> to vector<256xf32>
      %17 = vector.shape_cast %16 : vector<256xf32> to vector<1x256xf32>
      %18 = tpu.iota {dimensions = array<i32: 0>} : vector<8x256xi32>
      %c0_i32_13 = arith.constant 0 : i32
      %19 = vector.broadcast %c0_i32_13 : i32 to vector<8x256xi32>
      %20 = arith.cmpi eq, %18, %19 : vector<8x256xi32>
      %c1_i32 = arith.constant 1 : i32
      %21 = vector.broadcast %c1_i32 : i32 to vector<8x256xi32>
      %22 = arith.cmpi eq, %18, %21 : vector<8x256xi32>
      %cst_14 = arith.constant 0.000000e+00 : f32
      %23 = vector.shape_cast %17 : vector<1x256xf32> to vector<1x256xf32>
      %24 = vector.broadcast %23 : vector<1x256xf32> to vector<8x256xf32>
      %25 = vector.broadcast %cst_14 : f32 to vector<8x256xf32>
      %26 = arith.select %22, %24, %25 : vector<8x256xi1>, vector<8x256xf32>
      %27 = vector.shape_cast %14 : vector<1x256xf32> to vector<1x256xf32>
      %28 = vector.broadcast %27 : vector<1x256xf32> to vector<8x256xf32>
      %29 = arith.select %20, %28, %26 : vector<8x256xi1>, vector<8x256xf32>
      %30 = vector.shape_cast %29 : vector<8x256xf32> to vector<1x8x256xf32>
      %c0_15 = arith.constant 0 : index
      %c0_16 = arith.constant 0 : index
      %c0_17 = arith.constant 0 : index
      %31 = vector.load %arg6[%c0_15, %c0_16, %c0_17] : memref<1x8x256xf32, #tpu.memory_space<vmem>>, vector<1x8x256xf32>
      tpu.vector_store %arg6[%c0_15, %c0_16, %c0_17], %30 {strides = array<i32>} : memref<1x8x256xf32, #tpu.memory_space<vmem>>, vector<1x8x256xf32>,
    } else {
    }
    return
  }
  func.func @transform_0(%arg0: i32, %arg1: i32, %arg2: i32) -> (i32, i32) {
    %c0_i32 = arith.constant 0 : i32
    return %arg0, %arg2 : i32, i32
  }
  func.func @transform_1(%arg0: i32, %arg1: i32, %arg2: i32) -> (i32, i32) {
    %c0_i32 = arith.constant 0 : i32
    return %arg2, %arg1 : i32, i32
  }
  func.func @transform_2(%arg0: i32, %arg1: i32, %arg2: i32) -> (i32, i32) {
    %c0_i32 = arith.constant 0 : i32
    return %arg0, %arg1 : i32, i32
  }
  func.func @transform_3(%arg0: i32, %arg1: i32, %arg2: i32) -> (i32, i32, i32) {
    %c0_i32 = arith.constant 0 : i32
    %c0_i32_0 = arith.constant 0 : i32
    return %arg0, %c0_i32, %arg1 : i32, i32, i32
  }
}

module attributes {stable_mosaic.version = 11 : i64} {
  func.func @_affine_add_relu_kernel(%arg0: i32, %arg1: memref<16x512xf32, #tpu.memory_space<vmem>>, %arg2: memref<1x512xf32, #tpu.memory_space<vmem>>, %arg3: memref<1x512xf32, #tpu.memory_space<vmem>>, %arg4: memref<16x512xbf16, #tpu.memory_space<vmem>>, %arg5: memref<16x512xbf16, #tpu.memory_space<vmem>>) attributes {dimension_semantics = [#tpu.dimension_semantics<parallel>], iteration_bounds = array<i64: 1>, scalar_prefetch = 0 : i64, scratch_operands = 0 : i64, tpu.core_type = #tpu.core_type<tc>, window_params = [{transform_indices = @transform_0, window_bounds = array<i64: 16, 512>}, {pipeline_mode = #tpu.pipeline_mode<synchronous>, transform_indices = @transform_1, window_bounds = array<i64: 1, 512>}, {pipeline_mode = #tpu.pipeline_mode<synchronous>, transform_indices = @transform_2, window_bounds = array<i64: 1, 512>}, {transform_indices = @transform_3, window_bounds = array<i64: 16, 512>}, {transform_indices = @transform_4, window_bounds = array<i64: 16, 512>}]} {
    %c0 = arith.constant 0 : index
    %c0_0 = arith.constant 0 : index
    %0 = vector.load %arg1[%c0, %c0_0] : memref<16x512xf32, #tpu.memory_space<vmem>>, vector<16x512xf32>
    %c0_1 = arith.constant 0 : index
    %c0_2 = arith.constant 0 : index
    %1 = vector.load %arg2[%c0_1, %c0_2] : memref<1x512xf32, #tpu.memory_space<vmem>>, vector<1x512xf32>
    %2 = vector.broadcast %1 : vector<1x512xf32> to vector<16x512xf32>
    %3 = arith.mulf %0, %2 : vector<16x512xf32>
    %c0_3 = arith.constant 0 : index
    %c0_4 = arith.constant 0 : index
    %4 = vector.load %arg3[%c0_3, %c0_4] : memref<1x512xf32, #tpu.memory_space<vmem>>, vector<1x512xf32>
    %5 = vector.broadcast %4 : vector<1x512xf32> to vector<16x512xf32>
    %6 = arith.addf %3, %5 : vector<16x512xf32>
    %c0_5 = arith.constant 0 : index
    %c0_6 = arith.constant 0 : index
    %7 = vector.load %arg4[%c0_5, %c0_6] : memref<16x512xbf16, #tpu.memory_space<vmem>>, vector<16x512xbf16>
    %8 = arith.extf %7 : vector<16x512xbf16> to vector<16x512xf32>
    %9 = arith.addf %6, %8 : vector<16x512xf32>
    %cst = arith.constant 0.000000e+00 : f32
    %10 = vector.broadcast %cst : f32 to vector<16x512xf32>
    %11 = arith.maximumf %9, %10 : vector<16x512xf32>
    %12 = arith.truncf %11 : vector<16x512xf32> to vector<16x512xbf16>
    %c0_7 = arith.constant 0 : index
    %c0_8 = arith.constant 0 : index
    %13 = vector.load %arg5[%c0_7, %c0_8] : memref<16x512xbf16, #tpu.memory_space<vmem>>, vector<16x512xbf16>
    tpu.vector_store %arg5[%c0_7, %c0_8], %12 {strides = array<i32>} : memref<16x512xbf16, #tpu.memory_space<vmem>>, vector<16x512xbf16>,
    return
  }
  func.func @transform_0(%arg0: i32) -> (i32, i32) {
    %c0_i32 = arith.constant 0 : i32
    %c0_i32_0 = arith.constant 0 : i32
    return %arg0, %c0_i32 : i32, i32
  }
  func.func @transform_1(%arg0: i32) -> (i32, i32) {
    %c0_i32 = arith.constant 0 : i32
    %c0_i32_0 = arith.constant 0 : i32
    %c0_i32_1 = arith.constant 0 : i32
    return %c0_i32, %c0_i32_0 : i32, i32
  }
  func.func @transform_2(%arg0: i32) -> (i32, i32) {
    %c0_i32 = arith.constant 0 : i32
    %c0_i32_0 = arith.constant 0 : i32
    %c0_i32_1 = arith.constant 0 : i32
    return %c0_i32, %c0_i32_0 : i32, i32
  }
  func.func @transform_3(%arg0: i32) -> (i32, i32) {
    %c0_i32 = arith.constant 0 : i32
    %c0_i32_0 = arith.constant 0 : i32
    return %arg0, %c0_i32 : i32, i32
  }
  func.func @transform_4(%arg0: i32) -> (i32, i32) {
    %c0_i32 = arith.constant 0 : i32
    %c0_i32_0 = arith.constant 0 : i32
    return %arg0, %c0_i32 : i32, i32
  }
}

module attributes {stable_mosaic.version = 11 : i64} {
  func.func @_mm_bias_kernel(%arg0: i32, %arg1: i32, %arg2: i32, %arg3: memref<16x512xbf16, #tpu.memory_space<vmem>>, %arg4: memref<512x128xbf16, #tpu.memory_space<vmem>>, %arg5: memref<1x128xf32, #tpu.memory_space<vmem>>, %arg6: memref<16x128xf32, #tpu.memory_space<vmem>>) attributes {dimension_semantics = [#tpu.dimension_semantics<parallel>, #tpu.dimension_semantics<parallel>, #tpu.dimension_semantics<arbitrary>], iteration_bounds = array<i64: 1, 1, 1>, scalar_prefetch = 0 : i64, scratch_operands = 0 : i64, tpu.core_type = #tpu.core_type<tc>, window_params = [{transform_indices = @transform_0, window_bounds = array<i64: 16, 512>}, {transform_indices = @transform_1, window_bounds = array<i64: 512, 128>}, {transform_indices = @transform_2, window_bounds = array<i64: 1, 128>}, {transform_indices = @transform_3, window_bounds = array<i64: 16, 128>}]} {
    %c0_i32 = arith.constant 0 : i32
    %0 = arith.cmpi eq, %arg2, %c0_i32 : i32
    %1 = arith.extui %0 : i1 to i32
    %c0_i32_0 = arith.constant 0 : i32
    %2 = arith.cmpi ne, %1, %c0_i32_0 : i32
    scf.if %2 {
      %cst_10 = arith.constant 0.000000e+00 : f32
      %12 = vector.broadcast %cst_10 : f32 to vector<16x128xf32>
      %c0_11 = arith.constant 0 : index
      %c0_12 = arith.constant 0 : index
      %13 = vector.load %arg6[%c0_11, %c0_12] : memref<16x128xf32, #tpu.memory_space<vmem>>, vector<16x128xf32>
      tpu.vector_store %arg6[%c0_11, %c0_12], %12 {strides = array<i32>} : memref<16x128xf32, #tpu.memory_space<vmem>>, vector<16x128xf32>,
    } else {
    }
    %c0 = arith.constant 0 : index
    %c0_1 = arith.constant 0 : index
    %3 = vector.load %arg6[%c0, %c0_1] : memref<16x128xf32, #tpu.memory_space<vmem>>, vector<16x128xf32>
    %c0_2 = arith.constant 0 : index
    %c0_3 = arith.constant 0 : index
    %4 = vector.load %arg3[%c0_2, %c0_3] : memref<16x512xbf16, #tpu.memory_space<vmem>>, vector<16x512xbf16>
    %c0_4 = arith.constant 0 : index
    %c0_5 = arith.constant 0 : index
    %5 = vector.load %arg4[%c0_4, %c0_5] : memref<512x128xbf16, #tpu.memory_space<vmem>>, vector<512x128xbf16>
    %cst = arith.constant dense<0.000000e+00> : vector<16x128xf32>
    %6 = tpu.matmul %4, %5, %cst {dimension_numbers = #tpu.dot_dimension_numbers<[1], [0], [0], [1], [0, 0, 1, 1], [], []>} : vector<16x512xbf16>, vector<512x128xbf16>, vector<16x128xf32> -> vector<16x128xf32>
    %7 = arith.addf %3, %6 : vector<16x128xf32>
    %c0_6 = arith.constant 0 : index
    %c0_7 = arith.constant 0 : index
    %8 = vector.load %arg6[%c0_6, %c0_7] : memref<16x128xf32, #tpu.memory_space<vmem>>, vector<16x128xf32>
    tpu.vector_store %arg6[%c0_6, %c0_7], %7 {strides = array<i32>} : memref<16x128xf32, #tpu.memory_space<vmem>>, vector<16x128xf32>,
    %c0_i32_8 = arith.constant 0 : i32
    %9 = arith.cmpi eq, %arg2, %c0_i32_8 : i32
    %10 = arith.extui %9 : i1 to i32
    %c0_i32_9 = arith.constant 0 : i32
    %11 = arith.cmpi ne, %10, %c0_i32_9 : i32
    scf.if %11 {
      %c0_10 = arith.constant 0 : index
      %c0_11 = arith.constant 0 : index
      %12 = vector.load %arg6[%c0_10, %c0_11] : memref<16x128xf32, #tpu.memory_space<vmem>>, vector<16x128xf32>
      %c0_12 = arith.constant 0 : index
      %c0_13 = arith.constant 0 : index
      %13 = vector.load %arg5[%c0_12, %c0_13] : memref<1x128xf32, #tpu.memory_space<vmem>>, vector<1x128xf32>
      %14 = vector.broadcast %13 : vector<1x128xf32> to vector<16x128xf32>
      %15 = arith.addf %12, %14 : vector<16x128xf32>
      %c0_14 = arith.constant 0 : index
      %c0_15 = arith.constant 0 : index
      %16 = vector.load %arg6[%c0_14, %c0_15] : memref<16x128xf32, #tpu.memory_space<vmem>>, vector<16x128xf32>
      tpu.vector_store %arg6[%c0_14, %c0_15], %15 {strides = array<i32>} : memref<16x128xf32, #tpu.memory_space<vmem>>, vector<16x128xf32>,
    } else {
    }
    return
  }
  func.func @transform_0(%arg0: i32, %arg1: i32, %arg2: i32) -> (i32, i32) {
    %c0_i32 = arith.constant 0 : i32
    return %arg0, %arg2 : i32, i32
  }
  func.func @transform_1(%arg0: i32, %arg1: i32, %arg2: i32) -> (i32, i32) {
    %c0_i32 = arith.constant 0 : i32
    return %arg2, %arg1 : i32, i32
  }
  func.func @transform_2(%arg0: i32, %arg1: i32, %arg2: i32) -> (i32, i32) {
    %c0_i32 = arith.constant 0 : i32
    %c0_i32_0 = arith.constant 0 : i32
    return %c0_i32, %arg1 : i32, i32
  }
  func.func @transform_3(%arg0: i32, %arg1: i32, %arg2: i32) -> (i32, i32) {
    %c0_i32 = arith.constant 0 : i32
    return %arg0, %arg1 : i32, i32
  }
}

</mosaic_0001>

<bundles_post_ra>
// kernel: attribute_cnn_forward.42
= control target key start
LH: loop header
LB: loop body
LE: loop exit
PB: predicated region body
PF: predicated region fallthrough
CT: control target
= control target key end

     0   :  { %vm540_vm0 = vcmask 519168   ;;  %s1345_s0 = inlined_call_operand.vmem [shape: f32[512,64], index: 0, kind: input, shape index: {}]   ;;  %s1346_s1 = inlined_call_operand.vmem [shape: f32[1,64], index: 1, kind: input, shape index: {}]   ;;  %s1347_s2 = inlined_call_operand.vmem [shape: f32[1,64], index: 2, kind: input, shape index: {}]   ;;  %s1348_s3 = inlined_call_operand.vmem [shape: bf16[512,64], index: 3, kind: output, shape index: {}]  }
   0x1   :  { %v14_v0 = vld [vmem:[%s1345_s0] sm:$0xff]  ;;  %v15_v4 = vld [vmem:[%s1345_s0 + $0x8] sm:$0xff]  ;;  %v16_v5 = vld [vmem:[%s1345_s0 + $0x10] sm:$0xff] }
   0x2   :  { %v765_v1 = vld [vmem:[%s1346_s1] ss:$0 sm:$0xff]  ;;  %v17_v6 = vld [vmem:[%s1345_s0 + $0x18] sm:$0xff]  ;;  %v19_v11 = vld [vmem:[%s1345_s0 + $0x28] sm:$0xff] }
   0x3   :  { %v770_v2 = vld [vmem:[%s1347_s2] ss:$0 sm:$0xff]  ;;  %v85_v3 = vmul.f32 %v765_v1, %v14_v0  ;;  %v86_v7 = vmul.f32 %v765_v1, %v15_v4  ;;  %v87_v8 = vmul.f32 %v765_v1, %v16_v5  ;;  %v88_v9 = vmul.f32 %v765_v1, %v17_v6  ;;  %v20_v12 = vld [vmem:[%s1345_s0 + $0x30] sm:$0xff]  ;;  %v21_v17 = vld [vmem:[%s1345_s0 + $0x38] sm:$0xff] }
   0x4   :  { %v18_v10 = vld [vmem:[%s1345_s0 + $0x20] sm:$0xff]  ;;  %v90_v15 = vmul.f32 %v765_v1, %v19_v11  ;;  %v91_v16 = vmul.f32 %v765_v1, %v20_v12  ;;  %v92_v21 = vmul.f32 %v765_v1, %v21_v17  ;;  %v23_v35 = vld [vmem:[%s1345_s0 + $0x48] sm:$0xff]  ;;  %v24_v36 = vld [vmem:[%s1345_s0 + $0x50] sm:$0xff] }
   0x5   :  { %v156_v13 = vadd.f32 %v770_v2, %v85_v3  ;;  %v89_v14 = vmul.f32 %v765_v1, %v18_v10  ;;  %v157_v18 = vadd.f32 %v770_v2, %v86_v7  ;;  %v158_v19 = vadd.f32 %v770_v2, %v87_v8  ;;  %v22_v30 = vld [vmem:[%s1345_s0 + $0x40] sm:$0xff]  ;;  %v25_v37 = vld [vmem:[%s1345_s0 + $0x58] sm:$0xff]  ;;  %v27_v43 = vld [vmem:[%s1345_s0 + $0x68] sm:$0xff] }
   0x6   :  { %v159_v20 = vadd.f32 %v770_v2, %v88_v9  ;;  %v161_v24 = vadd.f32 %v770_v2, %v90_v15  ;;  %v162_v25 = vadd.f32 %v770_v2, %v91_v16  ;;  %v163_v29 = vadd.f32 %v770_v2, %v92_v21  ;;  %v26_v42 = vld [vmem:[%s1345_s0 + $0x60] sm:$0xff]  ;;  %v28_v44 = vld [vmem:[%s1345_s0 + $0x70] sm:$0xff]  ;;  %v29_v49 = vld [vmem:[%s1345_s0 + $0x78] sm:$0xff] }
   0x7   :  { %v220_v22 = vmax.f32 %v156_v13, 0.0  ;;  %v160_v23 = vadd.f32 %v770_v2, %v89_v14  ;;  %v221_v26 = vmax.f32 %v157_v18, 0.0  ;;  %v222_v27 = vmax.f32 %v158_v19, 0.0  ;;  %v30_v8 = vld [vmem:[%s1345_s0 + $0x80] sm:$0xff]  ;;  %v31_v13 = vld [vmem:[%s1345_s0 + $0x88] sm:$0xff]  ;;  %v32_v14 = vld [vmem:[%s1345_s0 + $0x90] sm:$0xff] }
   0x8   :  { %v223_v28 = vmax.f32 %v159_v20, 0.0  ;;  %v225_v33 = vmax.f32 %v161_v24, 0.0  ;;  %v226_v34 = vmax.f32 %v162_v25, 0.0  ;;  %v227_v41 = vmax.f32 %v163_v29, 0.0  ;;  %v33_v15 = vld [vmem:[%s1345_s0 + $0x98] sm:$0xff]  ;;  %v34_v20 = vld [vmem:[%s1345_s0 + $0xa0] sm:$0xff] }
   0x9   :  { %v675_v31 = vpack.c.bf16 %v220_v22, %v220_v22  ;;  %v224_v32 = vmax.f32 %v160_v23, 0.0  ;;  %v676_v38 = vpack.c.bf16 %v221_v26, %v221_v26  ;;  %v677_v39 = vpack.c.bf16 %v222_v27, %v222_v27  ;;  %v35_v21 = vld [vmem:[%s1345_s0 + $0xa8] sm:$0xff]  ;;  %v36_v22 = vld [vmem:[%s1345_s0 + $0xb0] sm:$0xff]  ;;  %v37_v27 = vld [vmem:[%s1345_s0 + $0xb8] sm:$0xff] }
   0xa   :  { %v678_v40 = vpack.c.bf16 %v223_v28, %v223_v28  ;;  %v680_v46 = vpack.c.bf16 %v225_v33, %v225_v33  ;;  %v681_v47 = vpack.c.bf16 %v226_v34, %v226_v34  ;;  %v93_v48 = vmul.f32 %v765_v1, %v22_v30 }
   0xb   :  { %541 = vst.msk [vmem:[%s1348_s3] sm:$0xf] %vm540_vm0, %v675_v31  ;;  %v679_v45 = vpack.c.bf16 %v224_v32, %v224_v32  ;;  %542 = vst.msk [vmem:[%s1348_s3 + $0x4] sm:$0xf] %vm540_vm0, %v676_v38  ;;  %v682_v50 = vpack.c.bf16 %v227_v41, %v227_v41  ;;  %v94_v51 = vmul.f32 %v765_v1, %v23_v35 }
   0xc   :  { %543 = vst.msk [vmem:[%s1348_s3 + $0x8] sm:$0xf] %vm540_vm0, %v677_v39  ;;  %544 = vst.msk [vmem:[%s1348_s3 + $0xc] sm:$0xf] %vm540_vm0, %v678_v40  ;;  %v95_v52 = vmul.f32 %v765_v1, %v24_v36  ;;  %v96_v53 = vmul.f32 %v765_v1, %v25_v37  ;;  %v164_v54 = vadd.f32 %v770_v2, %v93_v48  ;;  %v38_v48 = vld [vmem:[%s1345_s0 + $0xc0] sm:$0xff] }
   0xd   :  { %545 = vst.msk [vmem:[%s1348_s3 + $0x10] sm:$0xf] %vm540_vm0, %v679_v45  ;;  %546 = vst.msk [vmem:[%s1348_s3 + $0x14] sm:$0xf] %vm540_vm0, %v680_v46  ;;  %v97_v55 = vmul.f32 %v765_v1, %v26_v42  ;;  %v98_v56 = vmul.f32 %v765_v1, %v27_v43  ;;  %v99_v57 = vmul.f32 %v765_v1, %v28_v44 }
   0xe   :  { %547 = vst.msk [vmem:[%s1348_s3 + $0x18] sm:$0xf] %vm540_vm0, %v681_v47  ;;  %548 = vst.msk [vmem:[%s1348_s3 + $0x1c] sm:$0xf] %vm540_vm0, %v682_v50  ;;  %v165_v58 = vadd.f32 %v770_v2, %v94_v51  ;;  %v166_v59 = vadd.f32 %v770_v2, %v95_v52  ;;  %v167_v60 = vadd.f32 %v770_v2, %v96_v53  ;;  %v228_v62 = vmax.f32 %v164_v54, 0.0  ;;  %v39_v53 = vld [vmem:[%s1345_s0 + $0xc8] sm:$0xff] }
   0xf   :  { %v100_v61 = vmul.f32 %v765_v1, %v29_v49  ;;  %v168_v63 = vadd.f32 %v770_v2, %v97_v55  ;;  %v169_v0 = vadd.f32 %v770_v2, %v98_v56  ;;  %v170_v3 = vadd.f32 %v770_v2, %v99_v57  ;;  %v40_v54 = vld [vmem:[%s1345_s0 + $0xd0] sm:$0xff]  ;;  %v41_v55 = vld [vmem:[%s1345_s0 + $0xd8] sm:$0xff] }
  0x10   :  { %v229_v4 = vmax.f32 %v165_v58, 0.0  ;;  %v230_v5 = vmax.f32 %v166_v59, 0.0  ;;  %v231_v6 = vmax.f32 %v167_v60, 0.0  ;;  %v683_v9 = vpack.c.bf16 %v228_v62, %v228_v62  ;;  %v42_v60 = vld [vmem:[%s1345_s0 + $0xe0] sm:$0xff]  ;;  %v44_v62 = vld [vmem:[%s1345_s0 + $0xf0] sm:$0xff] }
  0x11   :  { %v171_v7 = vadd.f32 %v770_v2, %v100_v61  ;;  %v232_v10 = vmax.f32 %v168_v63, 0.0  ;;  %v233_v11 = vmax.f32 %v169_v0, 0.0  ;;  %v234_v12 = vmax.f32 %v170_v3, 0.0  ;;  %v43_v61 = vld [vmem:[%s1345_s0 + $0xe8] sm:$0xff] }
  0x12   :  { %v684_v16 = vpack.c.bf16 %v229_v4, %v229_v4  ;;  %v685_v17 = vpack.c.bf16 %v230_v5, %v230_v5  ;;  %v686_v18 = vpack.c.bf16 %v231_v6, %v231_v6  ;;  %549 = vst.msk [vmem:[%s1348_s3 + $0x20] sm:$0xf] %vm540_vm0, %v683_v9  ;;  %v101_v26 = vmul.f32 %v765_v1, %v30_v8  ;;  %v45_v5 = vld [vmem:[%s1345_s0 + $0xf8] sm:$0xff] }
  0x13   :  { %v235_v19 = vmax.f32 %v171_v7, 0.0  ;;  %v687_v23 = vpack.c.bf16 %v232_v10, %v232_v10  ;;  %v688_v24 = vpack.c.bf16 %v233_v11, %v233_v11  ;;  %v689_v25 = vpack.c.bf16 %v234_v12, %v234_v12 }
  0x14   :  { %550 = vst.msk [vmem:[%s1348_s3 + $0x24] sm:$0xf] %vm540_vm0, %v684_v16  ;;  %551 = vst.msk [vmem:[%s1348_s3 + $0x28] sm:$0xf] %vm540_vm0, %v685_v17  ;;  %v102_v29 = vmul.f32 %v765_v1, %v31_v13  ;;  %v103_v30 = vmul.f32 %v765_v1, %v32_v14  ;;  %v104_v31 = vmul.f32 %v765_v1, %v33_v15 }
  0x15   :  { %552 = vst.msk [vmem:[%s1348_s3 + $0x2c] sm:$0xf] %vm540_vm0, %v686_v18  ;;  %v690_v28 = vpack.c.bf16 %v235_v19, %v235_v19  ;;  %553 = vst.msk [vmem:[%s1348_s3 + $0x30] sm:$0xf] %vm540_vm0, %v687_v23  ;;  %v172_v32 = vadd.f32 %v770_v2, %v101_v26  ;;  %v105_v33 = vmul.f32 %v765_v1, %v34_v20  ;;  %v46_v26 = vld [vmem:[%s1345_s0 + $0x100] sm:$0xff] }
  0x16   :  { %554 = vst.msk [vmem:[%s1348_s3 + $0x34] sm:$0xf] %vm540_vm0, %v688_v24  ;;  %555 = vst.msk [vmem:[%s1348_s3 + $0x38] sm:$0xf] %vm540_vm0, %v689_v25  ;;  %v106_v34 = vmul.f32 %v765_v1, %v35_v21  ;;  %v107_v35 = vmul.f32 %v765_v1, %v36_v22  ;;  %v173_v36 = vadd.f32 %v770_v2, %v102_v29 }
  0x17   :  { %556 = vst.msk [vmem:[%s1348_s3 + $0x3c] sm:$0xf] %vm540_vm0, %v690_v28  ;;  %v174_v37 = vadd.f32 %v770_v2, %v103_v30  ;;  %v175_v38 = vadd.f32 %v770_v2, %v104_v31  ;;  %v108_v39 = vmul.f32 %v765_v1, %v37_v27  ;;  %v236_v40 = vmax.f32 %v172_v32, 0.0  ;;  %v47_v31 = vld [vmem:[%s1345_s0 + $0x108] sm:$0xff]  ;;  %v48_v32 = vld [vmem:[%s1345_s0 + $0x110] sm:$0xff] }
  0x18   :  { %v176_v41 = vadd.f32 %v770_v2, %v105_v33  ;;  %v177_v42 = vadd.f32 %v770_v2, %v106_v34  ;;  %v178_v43 = vadd.f32 %v770_v2, %v107_v35  ;;  %v237_v44 = vmax.f32 %v173_v36, 0.0  ;;  %v49_v33 = vld [vmem:[%s1345_s0 + $0x118] sm:$0xff] }
  0x19   :  { %v238_v45 = vmax.f32 %v174_v37, 0.0  ;;  %v239_v46 = vmax.f32 %v175_v38, 0.0  ;;  %v179_v47 = vadd.f32 %v770_v2, %v108_v39  ;;  %v691_v49 = vpack.c.bf16 %v236_v40, %v236_v40  ;;  %v50_v38 = vld [vmem:[%s1345_s0 + $0x120] sm:$0xff]  ;;  %v51_v39 = vld [vmem:[%s1345_s0 + $0x128] sm:$0xff]  ;;  %v52_v40 = vld [vmem:[%s1345_s0 + $0x130] sm:$0xff] }
  0x1a   :  { %v240_v50 = vmax.f32 %v176_v41, 0.0  ;;  %v241_v51 = vmax.f32 %v177_v42, 0.0  ;;  %v242_v52 = vmax.f32 %v178_v43, 0.0  ;;  %v692_v56 = vpack.c.bf16 %v237_v44, %v237_v44 }
  0x1b   :  { %v693_v57 = vpack.c.bf16 %v238_v45, %v238_v45  ;;  %v694_v58 = vpack.c.bf16 %v239_v46, %v239_v46  ;;  %v243_v59 = vmax.f32 %v179_v47, 0.0  ;;  %557 = vst.msk [vmem:[%s1348_s3 + $0x40] sm:$0xf] %vm540_vm0, %v691_v49  ;;  %v109_v4 = vmul.f32 %v765_v1, %v38_v48  ;;  %v53_v45 = vld [vmem:[%s1345_s0 + $0x138] sm:$0xff] }
  0x1c   :  { %v695_v63 = vpack.c.bf16 %v240_v50, %v240_v50  ;;  %v696_v0 = vpack.c.bf16 %v241_v51, %v241_v51  ;;  %v697_v3 = vpack.c.bf16 %v242_v52, %v242_v52  ;;  %558 = vst.msk [vmem:[%s1348_s3 + $0x44] sm:$0xf] %vm540_vm0, %v692_v56  ;;  %v110_v7 = vmul.f32 %v765_v1, %v39_v53 }
  0x1d   :  { %559 = vst.msk [vmem:[%s1348_s3 + $0x48] sm:$0xf] %vm540_vm0, %v693_v57  ;;  %560 = vst.msk [vmem:[%s1348_s3 + $0x4c] sm:$0xf] %vm540_vm0, %v694_v58  ;;  %v698_v6 = vpack.c.bf16 %v243_v59, %v243_v59  ;;  %v111_v8 = vmul.f32 %v765_v1, %v40_v54  ;;  %v112_v9 = vmul.f32 %v765_v1, %v41_v55 }
  0x1e   :  { %561 = vst.msk [vmem:[%s1348_s3 + $0x50] sm:$0xf] %vm540_vm0, %v695_v63  ;;  %562 = vst.msk [vmem:[%s1348_s3 + $0x54] sm:$0xf] %vm540_vm0, %v696_v0  ;;  %v180_v10 = vadd.f32 %v770_v2, %v109_v4  ;;  %v113_v11 = vmul.f32 %v765_v1, %v42_v60  ;;  %v114_v12 = vmul.f32 %v765_v1, %v43_v61  ;;  %v54_v4 = vld [vmem:[%s1345_s0 + $0x140] sm:$0xff] }
  0x1f   :  { %563 = vst.msk [vmem:[%s1348_s3 + $0x58] sm:$0xf] %vm540_vm0, %v697_v3  ;;  %v115_v13 = vmul.f32 %v765_v1, %v44_v62  ;;  %564 = vst.msk [vmem:[%s1348_s3 + $0x5c] sm:$0xf] %vm540_vm0, %v698_v6  ;;  %v181_v14 = vadd.f32 %v770_v2, %v110_v7  ;;  %v182_v15 = vadd.f32 %v770_v2, %v111_v8 }
  0x20   :  { %v183_v16 = vadd.f32 %v770_v2, %v112_v9  ;;  %v116_v17 = vmul.f32 %v765_v1, %v45_v5  ;;  %v244_v18 = vmax.f32 %v180_v10, 0.0  ;;  %v184_v19 = vadd.f32 %v770_v2, %v113_v11  ;;  %v55_v9 = vld [vmem:[%s1345_s0 + $0x148] sm:$0xff]  ;;  %v56_v10 = vld [vmem:[%s1345_s0 + $0x150] sm:$0xff]  ;;  %v57_v11 = vld [vmem:[%s1345_s0 + $0x158] sm:$0xff] }
  0x21   :  { %v185_v20 = vadd.f32 %v770_v2, %v114_v12  ;;  %v186_v21 = vadd.f32 %v770_v2, %v115_v13  ;;  %v245_v22 = vmax.f32 %v181_v14, 0.0  ;;  %v246_v23 = vmax.f32 %v182_v15, 0.0 }
  0x22   :  { %v247_v24 = vmax.f32 %v183_v16, 0.0  ;;  %v187_v25 = vadd.f32 %v770_v2, %v116_v17  ;;  %v699_v27 = vpack.c.bf16 %v244_v18, %v244_v18  ;;  %v248_v28 = vmax.f32 %v184_v19, 0.0  ;;  %v58_v16 = vld [vmem:[%s1345_s0 + $0x160] sm:$0xff]  ;;  %v59_v17 = vld [vmem:[%s1345_s0 + $0x168] sm:$0xff]  ;;  %v60_v18 = vld [vmem:[%s1345_s0 + $0x170] sm:$0xff] }
  0x23   :  { %v249_v29 = vmax.f32 %v185_v20, 0.0  ;;  %v250_v30 = vmax.f32 %v186_v21, 0.0  ;;  %v700_v34 = vpack.c.bf16 %v245_v22, %v245_v22  ;;  %v701_v35 = vpack.c.bf16 %v246_v23, %v246_v23  ;;  %v61_v23 = vld [vmem:[%s1345_s0 + $0x178] sm:$0xff] }
  0x24   :  { %v702_v36 = vpack.c.bf16 %v247_v24, %v247_v24  ;;  %v251_v37 = vmax.f32 %v187_v25, 0.0  ;;  %565 = vst.msk [vmem:[%s1348_s3 + $0x60] sm:$0xf] %vm540_vm0, %v699_v27  ;;  %v703_v41 = vpack.c.bf16 %v248_v28, %v248_v28  ;;  %v117_v44 = vmul.f32 %v765_v1, %v46_v26 }
  0x25   :  { %v704_v42 = vpack.c.bf16 %v249_v29, %v249_v29  ;;  %v705_v43 = vpack.c.bf16 %v250_v30, %v250_v30  ;;  %566 = vst.msk [vmem:[%s1348_s3 + $0x64] sm:$0xf] %vm540_vm0, %v700_v34  ;;  %567 = vst.msk [vmem:[%s1348_s3 + $0x68] sm:$0xf] %vm540_vm0, %v701_v35  ;;  %v118_v47 = vmul.f32 %v765_v1, %v47_v31 }
  0x26   :  { %568 = vst.msk [vmem:[%s1348_s3 + $0x6c] sm:$0xf] %vm540_vm0, %v702_v36  ;;  %v706_v46 = vpack.c.bf16 %v251_v37, %v251_v37  ;;  %v119_v48 = vmul.f32 %v765_v1, %v48_v32  ;;  %v120_v49 = vmul.f32 %v765_v1, %v49_v33  ;;  %569 = vst.msk [vmem:[%s1348_s3 + $0x70] sm:$0xf] %vm540_vm0, %v703_v41 }
  0x27   :  { %570 = vst.msk [vmem:[%s1348_s3 + $0x74] sm:$0xf] %vm540_vm0, %v704_v42  ;;  %571 = vst.msk [vmem:[%s1348_s3 + $0x78] sm:$0xf] %vm540_vm0, %v705_v43  ;;  %v188_v50 = vadd.f32 %v770_v2, %v117_v44  ;;  %v121_v51 = vmul.f32 %v765_v1, %v50_v38  ;;  %v122_v52 = vmul.f32 %v765_v1, %v51_v39  ;;  %v62_v44 = vld [vmem:[%s1345_s0 + $0x180] sm:$0xff] }
  0x28   :  { %v123_v53 = vmul.f32 %v765_v1, %v52_v40  ;;  %572 = vst.msk [vmem:[%s1348_s3 + $0x7c] sm:$0xf] %vm540_vm0, %v706_v46  ;;  %v189_v54 = vadd.f32 %v770_v2, %v118_v47  ;;  %v190_v55 = vadd.f32 %v770_v2, %v119_v48  ;;  %v191_v56 = vadd.f32 %v770_v2, %v120_v49  ;;  %v63_v49 = vld [vmem:[%s1345_s0 + $0x188] sm:$0xff] }
  0x29   :  { %v124_v57 = vmul.f32 %v765_v1, %v53_v45  ;;  %v252_v58 = vmax.f32 %v188_v50, 0.0  ;;  %v192_v59 = vadd.f32 %v770_v2, %v121_v51  ;;  %v193_v60 = vadd.f32 %v770_v2, %v122_v52  ;;  %v64_v50 = vld [vmem:[%s1345_s0 + $0x190] sm:$0xff]  ;;  %v65_v51 = vld [vmem:[%s1345_s0 + $0x198] sm:$0xff] }
  0x2a   :  { %v194_v61 = vadd.f32 %v770_v2, %v123_v53  ;;  %v253_v62 = vmax.f32 %v189_v54, 0.0  ;;  %v254_v63 = vmax.f32 %v190_v55, 0.0  ;;  %v255_v0 = vmax.f32 %v191_v56, 0.0  ;;  %v66_v56 = vld [vmem:[%s1345_s0 + $0x1a0] sm:$0xff] }
  0x2b   :  { %v195_v3 = vadd.f32 %v770_v2, %v124_v57  ;;  %v707_v5 = vpack.c.bf16 %v252_v58, %v252_v58  ;;  %v256_v6 = vmax.f32 %v192_v59, 0.0  ;;  %v257_v7 = vmax.f32 %v193_v60, 0.0  ;;  %v67_v57 = vld [vmem:[%s1345_s0 + $0x1a8] sm:$0xff]  ;;  %v68_v58 = vld [vmem:[%s1345_s0 + $0x1b0] sm:$0xff] }
  0x2c   :  { %v258_v8 = vmax.f32 %v194_v61, 0.0  ;;  %v708_v12 = vpack.c.bf16 %v253_v62, %v253_v62  ;;  %v709_v13 = vpack.c.bf16 %v254_v63, %v254_v63  ;;  %v710_v14 = vpack.c.bf16 %v255_v0, %v255_v0  ;;  %v69_v63 = vld [vmem:[%s1345_s0 + $0x1b8] sm:$0xff] }
  0x2d   :  { %v259_v15 = vmax.f32 %v195_v3, 0.0  ;;  %573 = vst.msk [vmem:[%s1348_s3 + $0x80] sm:$0xf] %vm540_vm0, %v707_v5  ;;  %v711_v19 = vpack.c.bf16 %v256_v6, %v256_v6  ;;  %v712_v20 = vpack.c.bf16 %v257_v7, %v257_v7  ;;  %v125_v22 = vmul.f32 %v765_v1, %v54_v4 }
  0x2e   :  { %v713_v21 = vpack.c.bf16 %v258_v8, %v258_v8  ;;  %574 = vst.msk [vmem:[%s1348_s3 + $0x84] sm:$0xf] %vm540_vm0, %v708_v12  ;;  %575 = vst.msk [vmem:[%s1348_s3 + $0x88] sm:$0xf] %vm540_vm0, %v709_v13  ;;  %v126_v25 = vmul.f32 %v765_v1, %v55_v9  ;;  %v127_v26 = vmul.f32 %v765_v1, %v56_v10 }
  0x2f   :  { %576 = vst.msk [vmem:[%s1348_s3 + $0x8c] sm:$0xf] %vm540_vm0, %v710_v14  ;;  %v714_v24 = vpack.c.bf16 %v259_v15, %v259_v15  ;;  %v128_v27 = vmul.f32 %v765_v1, %v57_v11  ;;  %577 = vst.msk [vmem:[%s1348_s3 + $0x90] sm:$0xf] %vm540_vm0, %v711_v19  ;;  %v196_v28 = vadd.f32 %v770_v2, %v125_v22  ;;  %v70_v22 = vld [vmem:[%s1345_s0 + $0x1c0] sm:$0xff] }
  0x30   :  { %578 = vst.msk [vmem:[%s1348_s3 + $0x94] sm:$0xf] %vm540_vm0, %v712_v20  ;;  %579 = vst.msk [vmem:[%s1348_s3 + $0x98] sm:$0xf] %vm540_vm0, %v713_v21  ;;  %v129_v29 = vmul.f32 %v765_v1, %v58_v16  ;;  %v130_v30 = vmul.f32 %v765_v1, %v59_v17  ;;  %v131_v31 = vmul.f32 %v765_v1, %v60_v18 }
  0x31   :  { %580 = vst.msk [vmem:[%s1348_s3 + $0x9c] sm:$0xf] %vm540_vm0, %v714_v24  ;;  %v197_v32 = vadd.f32 %v770_v2, %v126_v25  ;;  %v198_v33 = vadd.f32 %v770_v2, %v127_v26  ;;  %v199_v34 = vadd.f32 %v770_v2, %v128_v27  ;;  %v132_v35 = vmul.f32 %v765_v1, %v61_v23  ;;  %v71_v27 = vld [vmem:[%s1345_s0 + $0x1c8] sm:$0xff] }
  0x32   :  { %v260_v36 = vmax.f32 %v196_v28, 0.0  ;;  %v200_v37 = vadd.f32 %v770_v2, %v129_v29  ;;  %v201_v38 = vadd.f32 %v770_v2, %v130_v30  ;;  %v202_v39 = vadd.f32 %v770_v2, %v131_v31  ;;  %v72_v28 = vld [vmem:[%s1345_s0 + $0x1d0] sm:$0xff]  ;;  %v73_v29 = vld [vmem:[%s1345_s0 + $0x1d8] sm:$0xff] }
  0x33   :  { %v261_v40 = vmax.f32 %v197_v32, 0.0  ;;  %v262_v41 = vmax.f32 %v198_v33, 0.0  ;;  %v263_v42 = vmax.f32 %v199_v34, 0.0  ;;  %v203_v43 = vadd.f32 %v770_v2, %v132_v35  ;;  %v74_v34 = vld [vmem:[%s1345_s0 + $0x1e0] sm:$0xff]  ;;  %v75_v35 = vld [vmem:[%s1345_s0 + $0x1e8] sm:$0xff] }
  0x34   :  { %v715_v45 = vpack.c.bf16 %v260_v36, %v260_v36  ;;  %v264_v46 = vmax.f32 %v200_v37, 0.0  ;;  %v265_v47 = vmax.f32 %v201_v38, 0.0  ;;  %v266_v48 = vmax.f32 %v202_v39, 0.0  ;;  %v76_v36 = vld [vmem:[%s1345_s0 + $0x1f0] sm:$0xff] }
  0x35   :  { %v716_v52 = vpack.c.bf16 %v261_v40, %v261_v40  ;;  %v717_v53 = vpack.c.bf16 %v262_v41, %v262_v41  ;;  %v718_v54 = vpack.c.bf16 %v263_v42, %v263_v42  ;;  %v267_v55 = vmax.f32 %v203_v43, 0.0  ;;  %v77_v41 = vld [vmem:[%s1345_s0 + $0x1f8] sm:$0xff] }
  0x36   :  { %581 = vst.msk [vmem:[%s1348_s3 + $0xa0] sm:$0xf] %vm540_vm0, %v715_v45  ;;  %v719_v59 = vpack.c.bf16 %v264_v46, %v264_v46  ;;  %v720_v60 = vpack.c.bf16 %v265_v47, %v265_v47  ;;  %v721_v61 = vpack.c.bf16 %v266_v48, %v266_v48  ;;  %v133_v62 = vmul.f32 %v765_v1, %v62_v44 }
  0x37   :  { %582 = vst.msk [vmem:[%s1348_s3 + $0xa4] sm:$0xf] %vm540_vm0, %v716_v52  ;;  %583 = vst.msk [vmem:[%s1348_s3 + $0xa8] sm:$0xf] %vm540_vm0, %v717_v53  ;;  %v722_v0 = vpack.c.bf16 %v267_v55, %v267_v55  ;;  %v134_v3 = vmul.f32 %v765_v1, %v63_v49  ;;  %v135_v4 = vmul.f32 %v765_v1, %v64_v50 }
  0x38   :  { %584 = vst.msk [vmem:[%s1348_s3 + $0xac] sm:$0xf] %vm540_vm0, %v718_v54  ;;  %v136_v5 = vmul.f32 %v765_v1, %v65_v51  ;;  %585 = vst.msk [vmem:[%s1348_s3 + $0xb0] sm:$0xf] %vm540_vm0, %v719_v59  ;;  %v204_v6 = vadd.f32 %v770_v2, %v133_v62  ;;  %v137_v7 = vmul.f32 %v765_v1, %v66_v56 }
  0x39   :  { %586 = vst.msk [vmem:[%s1348_s3 + $0xb4] sm:$0xf] %vm540_vm0, %v720_v60  ;;  %587 = vst.msk [vmem:[%s1348_s3 + $0xb8] sm:$0xf] %vm540_vm0, %v721_v61  ;;  %v138_v8 = vmul.f32 %v765_v1, %v67_v57  ;;  %v139_v9 = vmul.f32 %v765_v1, %v68_v58  ;;  %v205_v10 = vadd.f32 %v770_v2, %v134_v3 }
  0x3a   :  { %588 = vst.msk [vmem:[%s1348_s3 + $0xbc] sm:$0xf] %vm540_vm0, %v722_v0  ;;  %v206_v11 = vadd.f32 %v770_v2, %v135_v4  ;;  %v207_v12 = vadd.f32 %v770_v2, %v136_v5  ;;  %v140_v13 = vmul.f32 %v765_v1, %v69_v63  ;;  %v268_v14 = vmax.f32 %v204_v6, 0.0 }
  0x3b   :  { %v208_v15 = vadd.f32 %v770_v2, %v137_v7  ;;  %v209_v16 = vadd.f32 %v770_v2, %v138_v8  ;;  %v210_v17 = vadd.f32 %v770_v2, %v139_v9  ;;  %v269_v18 = vmax.f32 %v205_v10, 0.0 }
  0x3c   :  { %v270_v19 = vmax.f32 %v206_v11, 0.0  ;;  %v271_v20 = vmax.f32 %v207_v12, 0.0  ;;  %v211_v21 = vadd.f32 %v770_v2, %v140_v13  ;;  %v723_v23 = vpack.c.bf16 %v268_v14, %v268_v14 }
  0x3d   :  { %v272_v24 = vmax.f32 %v208_v15, 0.0  ;;  %v273_v25 = vmax.f32 %v209_v16, 0.0  ;;  %v274_v26 = vmax.f32 %v210_v17, 0.0  ;;  %v724_v30 = vpack.c.bf16 %v269_v18, %v269_v18 }
  0x3e   :  { %v725_v31 = vpack.c.bf16 %v270_v19, %v270_v19  ;;  %v726_v32 = vpack.c.bf16 %v271_v20, %v271_v20  ;;  %v275_v33 = vmax.f32 %v211_v21, 0.0  ;;  %589 = vst.msk [vmem:[%s1348_s3 + $0xc0] sm:$0xf] %vm540_vm0, %v723_v23  ;;  %v141_v40 = vmul.f32 %v765_v1, %v70_v22 }
  0x3f   :  { %v727_v37 = vpack.c.bf16 %v272_v24, %v272_v24  ;;  %v728_v38 = vpack.c.bf16 %v273_v25, %v273_v25  ;;  %v729_v39 = vpack.c.bf16 %v274_v26, %v274_v26  ;;  %590 = vst.msk [vmem:[%s1348_s3 + $0xc4] sm:$0xf] %vm540_vm0, %v724_v30  ;;  %v142_v43 = vmul.f32 %v765_v1, %v71_v27 }
  0x40   :  { %591 = vst.msk [vmem:[%s1348_s3 + $0xc8] sm:$0xf] %vm540_vm0, %v725_v31  ;;  %592 = vst.msk [vmem:[%s1348_s3 + $0xcc] sm:$0xf] %vm540_vm0, %v726_v32  ;;  %v730_v42 = vpack.c.bf16 %v275_v33, %v275_v33  ;;  %v143_v44 = vmul.f32 %v765_v1, %v72_v28  ;;  %v144_v45 = vmul.f32 %v765_v1, %v73_v29 }
  0x41   :  { %593 = vst.msk [vmem:[%s1348_s3 + $0xd0] sm:$0xf] %vm540_vm0, %v727_v37  ;;  %594 = vst.msk [vmem:[%s1348_s3 + $0xd4] sm:$0xf] %vm540_vm0, %v728_v38  ;;  %v212_v46 = vadd.f32 %v770_v2, %v141_v40  ;;  %v145_v47 = vmul.f32 %v765_v1, %v74_v34  ;;  %v146_v48 = vmul.f32 %v765_v1, %v75_v35 }
  0x42   :  { %595 = vst.msk [vmem:[%s1348_s3 + $0xd8] sm:$0xf] %vm540_vm0, %v729_v39  ;;  %v147_v49 = vmul.f32 %v765_v1, %v76_v36  ;;  %596 = vst.msk [vmem:[%s1348_s3 + $0xdc] sm:$0xf] %vm540_vm0, %v730_v42  ;;  %v213_v50 = vadd.f32 %v770_v2, %v142_v43  ;;  %v214_v51 = vadd.f32 %v770_v2, %v143_v44 }
  0x43   :  { %v215_v52 = vadd.f32 %v770_v2, %v144_v45  ;;  %v148_v53 = vmul.f32 %v765_v1, %v77_v41  ;;  %v276_v54 = vmax.f32 %v212_v46, 0.0  ;;  %v216_v55 = vadd.f32 %v770_v2, %v145_v47 }
  0x44   :  { %v217_v56 = vadd.f32 %v770_v2, %v146_v48  ;;  %v218_v57 = vadd.f32 %v770_v2, %v147_v49  ;;  %v277_v58 = vmax.f32 %v213_v50, 0.0  ;;  %v278_v59 = vmax.f32 %v214_v51, 0.0 }
  0x45   :  { %v279_v60 = vmax.f32 %v215_v52, 0.0  ;;  %v219_v61 = vadd.f32 %v770_v2, %v148_v53  ;;  %v731_v62 = vpack.c.bf16 %v276_v54, %v276_v54  ;;  %v280_v63 = vmax.f32 %v216_v55, 0.0 }
  0x46   :  { %v281_v0 = vmax.f32 %v217_v56, 0.0  ;;  %v282_v3 = vmax.f32 %v218_v57, 0.0  ;;  %v732_v4 = vpack.c.bf16 %v277_v58, %v277_v58  ;;  %v733_v5 = vpack.c.bf16 %v278_v59, %v278_v59 }
  0x47   :  { %v734_v6 = vpack.c.bf16 %v279_v60, %v279_v60  ;;  %v283_v1 = vmax.f32 %v219_v61, 0.0  ;;  %597 = vst.msk [vmem:[%s1348_s3 + $0xe0] sm:$0xf] %vm540_vm0, %v731_v62  ;;  %v735_v7 = vpack.c.bf16 %v280_v63, %v280_v63 }
  0x48   :  { %v736_v8 = vpack.c.bf16 %v281_v0, %v281_v0  ;;  %v737_v9 = vpack.c.bf16 %v282_v3, %v282_v3  ;;  %598 = vst.msk [vmem:[%s1348_s3 + $0xe4] sm:$0xf] %vm540_vm0, %v732_v4  ;;  %599 = vst.msk [vmem:[%s1348_s3 + $0xe8] sm:$0xf] %vm540_vm0, %v733_v5 }
  0x49   :  { %600 = vst.msk [vmem:[%s1348_s3 + $0xec] sm:$0xf] %vm540_vm0, %v734_v6  ;;  %v738_v2 = vpack.c.bf16 %v283_v1, %v283_v1  ;;  %601 = vst.msk [vmem:[%s1348_s3 + $0xf0] sm:$0xf] %vm540_vm0, %v735_v7 }
  0x4a   :  { %602 = vst.msk [vmem:[%s1348_s3 + $0xf4] sm:$0xf] %vm540_vm0, %v736_v8  ;;  %603 = vst.msk [vmem:[%s1348_s3 + $0xf8] sm:$0xf] %vm540_vm0, %v737_v9 }
  0x4b   :  { %604 = vst.msk [vmem:[%s1348_s3 + $0xfc] sm:$0xf] %vm540_vm0, %v738_v2 }

// kernel: attribute_cnn_forward.41
= control target key start
LH: loop header
LB: loop body
LE: loop exit
PB: predicated region body
PF: predicated region fallthrough
CT: control target
= control target key end

     0   :  { %s1568_s12 = smov 0   ;;  %s1570_s13 = smov 0   ;;  %s1957_s0 = inlined_call_operand.vmem [shape: bf16[512,256], index: 0, kind: input, shape index: {}]   ;;  %s1958_s1 = inlined_call_operand.vmem [shape: bf16[256,64], index: 1, kind: input, shape index: {}]   ;;  %s1959_s2 = inlined_call_operand.vmem [shape: f32[512,64], index: 2, kind: output, shape index: {0}]   ;;  %s1960_s3 = inlined_call_operand.vmem [shape: f32[2,8,64], index: 3, kind: output, shape index: {1}]  }
   0x1   :  { %s1572_s14 = smov 0  }
   0x2 LB: > { %s33_s15 = sadd.s32 1, %s1541_s13  ;;  %p1248_p0 = scmp.ge.s32.totalorder %s1545_s14, 1  ;;  %s1545_s14 = sphi %s1572_s14, %s14_s14   ;;  %s1541_s13 = sphi %s1570_s13, %s1962_s13   ;;  %s1537_s12 = sphi %s1568_s12, %s1961_s12  }
   0x3   : > { %p35_p1 = scmp.ge.s32.totalorder %s33_s15, 2  ;;  %p188_p2 = scmp.lt.s32.totalorder %s1545_s14, 3 }
   0x5   : > { %s1964_s15 = smov (%p35_p1, %s33_s15), 0  ;;  %p189_p3 = pnand %p1248_p0, %p188_p2 }
   0x6   : > { %s1249_s18 = sshll.u32 (!%p189_p3), %s1537_s12, 5  ;;  %p265_p5 = scmp.lt.s32.totalorder (!%p189_p3), %s1537_s12, 1 }
   0x7   : > { %192 = sbr.rel (%p189_p3) target bundleno = 364 (0x16c), region = 28  ;;  %p237_p4 = scmp.lt.s32.totalorder (!%p189_p3), %s1249_s18, 63 }
   0xc   : > { %v1459_v0 = vld [vmem:[%s1958_s1 + $0x78] sm:$0xff]   ;;  %v1461_v2 = vld [vmem:[%s1958_s1 + $0x70] sm:$0xff]   ;;  %v1463_v4 = vld [vmem:[%s1958_s1 + $0x68] sm:$0xff]   ;;  %s1966_s18 = smov (!%p237_p4, %s1249_s18), 63  ;;  %vm277_vm0 = vcmask 523264   ;;  %v1547_v48 = vmov 0.0  }
   0xd   : > { %v1460_v1 = vld [vmem:[%s1958_s1 + $0x38] sm:$0xff]   ;;  %1306 = vmatprep.subr.bf16.mxu0 %v1459_v0  ;;  %1418 = vmatprep.subr.bf16.mxu1 %v1459_v0  ;;  %v1462_v3 = vld [vmem:[%s1958_s1 + $0x30] sm:$0xff]   ;;  %v1464_v5 = vld [vmem:[%s1958_s1 + $0x28] sm:$0xff]   ;;  %s1305_s6 = sshll.u32 %s1966_s18, 3  ;;  %s1968_s12 = smov (!%p265_p5, %s1537_s12), 1 }
   0xe   : > { %1307 = vmatpush3.bf16.msra.mxu0 %v1460_v1  ;;  %1426 = vmatpush3.bf16.msra.mxu1 %v1460_v1  ;;  %v1465_v6 = vld [vmem:[%s1958_s1 + $0x60] sm:$0xff]   ;;  %v1467_v8 = vld [vmem:[%s1958_s1 + $0x58] sm:$0xff]   ;;  %s1624_s11 = scalar_lea.vmem %s1957_s0, %s1305_s6  ;;  %v1469_v10 = vld [vmem:[%s1958_s1 + $0x50] sm:$0xff]   ;;  %s1684_s7 = scalar_lea.vmem %s1959_s2, %s1305_s6 }
   0xf   : > { %1308 = vmatprep.subr.bf16.mxu0 %v1461_v2  ;;  %1419 = vmatprep.subr.bf16.mxu1 %v1461_v2  ;;  %v1466_v7 = vld [vmem:[%s1958_s1 + $0x20] sm:$0xff]   ;;  %v1468_v9 = vld [vmem:[%s1958_s1 + $0x18] sm:$0xff]   ;;  %v1470_v12 = vld [vmem:[%s1958_s1 + $0x10] sm:$0xff]   ;;  %278 = vst.msk [vmem:[%s1684_s7] sm:$0xff] %vm277_vm0, %v1547_v48  ;;  %s1254_s18 = sshll.u32 %s1968_s12, 3 }
  0x10   : > { %v1477_v11 = vld [vmem:[%s1624_s11 + $0x4] ss:$8 sps:$4 sm:$0xff]   ;;  %v1475_v18 = vld [vmem:[%s1624_s11] ss:$8 sps:$4 sm:$0xff]   ;;  %v1478_v19 = vld [vmem:[%s1624_s11 + $0x14] ss:$8 sps:$4 sm:$0xff]   ;;  %s271_s9 = scalar_lea.vmem %s1960_s3, %s1254_s18 }
  0x11   : > { %694 = vmatprep.mubr.bf16.mxu0 %v1477_v11  ;;  %v1471_v13 = vld [vmem:[%s1958_s1 + $0x48] sm:$0xff]   ;;  %v1473_v16 = vld [vmem:[%s1958_s1 + $0x40] sm:$0xff]   ;;  %v1493_v21 = vld [vmem:[%s1624_s11 + $0x94] ss:$8 sps:$4 sm:$0xff]   ;;  %279 = vst.msk [vmem:[%s1684_s7 + $0x8] sm:$0xff] %vm277_vm0, %v1547_v48 }
  0x12   : > { %1309 = vmatpush3.bf16.msra.mxu0 %v1462_v3  ;;  %1427 = vmatpush3.bf16.msra.mxu1 %v1462_v3  ;;  %v1489_v14 = vld [vmem:[%s1624_s11 + $0x84] ss:$8 sps:$4 sm:$0xff]   ;;  %v1487_v20 = vld [vmem:[%s1624_s11 + $0x80] ss:$8 sps:$4 sm:$0xff]   ;;  %v1480_v22 = vld [vmem:[%s1624_s11 + $0x10] ss:$8 sps:$4 sm:$0xff]  }
  0x13   : > { %1310 = vmatprep.subr.bf16.mxu0 %v1463_v4  ;;  %1420 = vmatprep.subr.bf16.mxu1 %v1463_v4  ;;  %v1472_v15 = vld [vmem:[%s1958_s1 + $0x8] sm:$0xff]   ;;  %v1474_v17 = vld [vmem:[%s1958_s1] sm:$0xff]   ;;  %v1495_v24 = vld [vmem:[%s1624_s11 + $0x90] ss:$8 sps:$4 sm:$0xff]   ;;  %280 = vst.msk [vmem:[%s1684_s7 + $0x10] sm:$0xff] %vm277_vm0, %v1547_v48 }
  0x14   : > { %758 = vmatprep.mubr.bf16.mxu1 %v1489_v14  ;;  %v1481_v23 = vld [vmem:[%s1624_s11 + $0x24] ss:$8 sps:$4 sm:$0xff]   ;;  %v1483_v26 = vld [vmem:[%s1624_s11 + $0x20] ss:$8 sps:$4 sm:$0xff]   ;;  %v1484_v27 = vld [vmem:[%s1624_s11 + $0x34] ss:$8 sps:$4 sm:$0xff]  }
  0x15   : > { %v1499_v25 = vld [vmem:[%s1624_s11 + $0xa4] ss:$8 sps:$4 sm:$0xff]   ;;  %v1501_v28 = vld [vmem:[%s1624_s11 + $0xa0] ss:$8 sps:$4 sm:$0xff]   ;;  %v1505_v29 = vld [vmem:[%s1624_s11 + $0xb4] ss:$8 sps:$4 sm:$0xff]  }
  0x16   : > { %1311 = vmatpush3.bf16.msra.mxu0 %v1464_v5  ;;  %1428 = vmatpush3.bf16.msra.mxu1 %v1464_v5  ;;  %v1486_v30 = vld [vmem:[%s1624_s11 + $0x30] ss:$8 sps:$4 sm:$0xff]   ;;  %v1490_v31 = vld [vmem:[%s1624_s11 + $0x44] ss:$8 sps:$4 sm:$0xff]   ;;  %v1492_v34 = vld [vmem:[%s1624_s11 + $0x40] ss:$8 sps:$4 sm:$0xff]  }
  0x17   : > { %1312 = vmatprep.subr.bf16.mxu0 %v1465_v6  ;;  %1421 = vmatprep.subr.bf16.mxu1 %v1465_v6  ;;  %v1507_v32 = vld [vmem:[%s1624_s11 + $0xb0] ss:$8 sps:$4 sm:$0xff]   ;;  %v1511_v33 = vld [vmem:[%s1624_s11 + $0xc4] ss:$8 sps:$4 sm:$0xff]   ;;  %v1496_v35 = vld [vmem:[%s1624_s11 + $0x54] ss:$8 sps:$4 sm:$0xff]  }
  0x18   : > { %v1513_v36 = vld [vmem:[%s1624_s11 + $0xc0] ss:$8 sps:$4 sm:$0xff]   ;;  %v1514_v37 = vld [vmem:[%s1624_s11 + $0xd4] ss:$8 sps:$4 sm:$0xff]   ;;  %v1498_v38 = vld [vmem:[%s1624_s11 + $0x50] ss:$8 sps:$4 sm:$0xff]  }
  0x19   : > { %v1502_v39 = vld [vmem:[%s1624_s11 + $0x64] ss:$8 sps:$4 sm:$0xff]   ;;  %v1516_v40 = vld [vmem:[%s1624_s11 + $0xd0] ss:$8 sps:$4 sm:$0xff]   ;;  %v1504_v42 = vld [vmem:[%s1624_s11 + $0x60] ss:$8 sps:$4 sm:$0xff]  }
  0x1a   : > { %1313 = vmatpush3.bf16.msra.mxu0 %v1466_v7  ;;  %1429 = vmatpush3.bf16.msra.mxu1 %v1466_v7  ;;  %v1517_v41 = vld [vmem:[%s1624_s11 + $0xe4] ss:$8 sps:$4 sm:$0xff]   ;;  %v1508_v43 = vld [vmem:[%s1624_s11 + $0x74] ss:$8 sps:$4 sm:$0xff]   ;;  %v1519_v44 = vld [vmem:[%s1624_s11 + $0xe0] ss:$8 sps:$4 sm:$0xff]  }
  0x1b   : > { %1314 = vmatprep.subr.bf16.mxu0 %v1467_v8  ;;  %1422 = vmatprep.subr.bf16.mxu1 %v1467_v8  ;;  %v1520_v45 = vld [vmem:[%s1624_s11 + $0xf4] ss:$8 sps:$4 sm:$0xff]   ;;  %v1510_v46 = vld [vmem:[%s1624_s11 + $0x70] ss:$8 sps:$4 sm:$0xff]   ;;  %281 = vst.msk [vmem:[%s1684_s7 + $0x18] sm:$0xff] %vm277_vm0, %v1547_v48  ;;  %282 = vst.msk [vmem:[%s1684_s7 + $0x20] sm:$0xff] %vm277_vm0, %v1547_v48 }
  0x1c   : > { %v1522_v47 = vld [vmem:[%s1624_s11 + $0xf0] ss:$8 sps:$4 sm:$0xff]   ;;  %283 = vst.msk [vmem:[%s1684_s7 + $0x28] sm:$0xff] %vm277_vm0, %v1547_v48  ;;  %284 = vst.msk [vmem:[%s1684_s7 + $0x30] sm:$0xff] %vm277_vm0, %v1547_v48  ;;  %v310_v51 = vld [vmem:[%s1684_s7] sm:$0xff] }
  0x1d   : > { %285 = vst.msk [vmem:[%s1684_s7 + $0x38] sm:$0xff] %vm277_vm0, %v1547_v48  ;;  %286 = vst.msk [vmem:[%s1684_s7 + $0x40] sm:$0xff] %vm277_vm0, %v1547_v48  ;;  %v311_v60 = vld [vmem:[%s1684_s7 + $0x8] sm:$0xff]  ;;  %v312_v6 = vld [vmem:[%s1684_s7 + $0x10] sm:$0xff] }
  0x1e   : > { %1315 = vmatpush3.bf16.msra.mxu0 %v1468_v9  ;;  %1430 = vmatpush3.bf16.msra.mxu1 %v1468_v9  ;;  %287 = vst.msk [vmem:[%s1684_s7 + $0x48] sm:$0xff] %vm277_vm0, %v1547_v48  ;;  %288 = vst.msk [vmem:[%s1684_s7 + $0x50] sm:$0xff] %vm277_vm0, %v1547_v48 }
  0x1f   : > { %1316 = vmatprep.subr.bf16.mxu0 %v1469_v10  ;;  %1423 = vmatprep.subr.bf16.mxu1 %v1469_v10  ;;  %289 = vst.msk [vmem:[%s1684_s7 + $0x58] sm:$0xff] %vm277_vm0, %v1547_v48  ;;  %290 = vst.msk [vmem:[%s1684_s7 + $0x60] sm:$0xff] %vm277_vm0, %v1547_v48 }
  0x20   : > { %291 = vst.msk [vmem:[%s1684_s7 + $0x68] sm:$0xff] %vm277_vm0, %v1547_v48  ;;  %292 = vst.msk [vmem:[%s1684_s7 + $0x70] sm:$0xff] %vm277_vm0, %v1547_v48 }
  0x21   : > { %293 = vst.msk [vmem:[%s1684_s7 + $0x78] sm:$0xff] %vm277_vm0, %v1547_v48  ;;  %294 = vst.msk [vmem:[%s1684_s7 + $0x80] sm:$0xff] %vm277_vm0, %v1547_v48 }
  0x22   : > { %1317 = vmatpush3.bf16.msra.mxu0 %v1470_v12  ;;  %1431 = vmatpush3.bf16.msra.mxu1 %v1470_v12  ;;  %295 = vst.msk [vmem:[%s1684_s7 + $0x88] sm:$0xff] %vm277_vm0, %v1547_v48  ;;  %296 = vst.msk [vmem:[%s1684_s7 + $0x90] sm:$0xff] %vm277_vm0, %v1547_v48 }
  0x23   : > { %1318 = vmatprep.subr.bf16.mxu0 %v1471_v13  ;;  %1424 = vmatprep.subr.bf16.mxu1 %v1471_v13  ;;  %297 = vst.msk [vmem:[%s1684_s7 + $0x98] sm:$0xff] %vm277_vm0, %v1547_v48  ;;  %298 = vst.msk [vmem:[%s1684_s7 + $0xa0] sm:$0xff] %vm277_vm0, %v1547_v48 }
  0x24   : > { %299 = vst.msk [vmem:[%s1684_s7 + $0xa8] sm:$0xff] %vm277_vm0, %v1547_v48  ;;  %300 = vst.msk [vmem:[%s1684_s7 + $0xb0] sm:$0xff] %vm277_vm0, %v1547_v48 }
  0x25   : > { %301 = vst.msk [vmem:[%s1684_s7 + $0xb8] sm:$0xff] %vm277_vm0, %v1547_v48  ;;  %302 = vst.msk [vmem:[%s1684_s7 + $0xc0] sm:$0xff] %vm277_vm0, %v1547_v48 }
  0x26   : > { %1319 = vmatpush3.bf16.msra.mxu0 %v1472_v15  ;;  %1432 = vmatpush3.bf16.msra.mxu1 %v1472_v15  ;;  %303 = vst.msk [vmem:[%s1684_s7 + $0xc8] sm:$0xff] %vm277_vm0, %v1547_v48  ;;  %304 = vst.msk [vmem:[%s1684_s7 + $0xd0] sm:$0xff] %vm277_vm0, %v1547_v48 }
  0x27   : > { %1320 = vmatprep.subr.bf16.mxu0 %v1473_v16  ;;  %1425 = vmatprep.subr.bf16.mxu1 %v1473_v16  ;;  %305 = vst.msk [vmem:[%s1684_s7 + $0xd8] sm:$0xff] %vm277_vm0, %v1547_v48  ;;  %306 = vst.msk [vmem:[%s1684_s7 + $0xe0] sm:$0xff] %vm277_vm0, %v1547_v48  ;;  %v313_v16 = vld [vmem:[%s1684_s7 + $0x18] sm:$0xff] }
  0x28   : > { %307 = vst.msk [vmem:[%s1684_s7 + $0xe8] sm:$0xff] %vm277_vm0, %v1547_v48  ;;  %308 = vst.msk [vmem:[%s1684_s7 + $0xf0] sm:$0xff] %vm277_vm0, %v1547_v48  ;;  %v326_v54 = vld [vmem:[%s1684_s7 + $0x80] sm:$0xff] }
  0x29   : > { %309 = vst.msk [vmem:[%s1684_s7 + $0xf8] sm:$0xff] %vm277_vm0, %v1547_v48  ;;  %v327_v0 = vld [vmem:[%s1684_s7 + $0x88] sm:$0xff]  ;;  %v328_v10 = vld [vmem:[%s1684_s7 + $0x90] sm:$0xff] }
  0x2a   : > { %1321 = vmatpush3.bf16.msra.mxu0 %v1474_v17  ;;  %1433 = vmatpush3.bf16.msra.mxu1 %v1474_v17 }
  0x2d   : > { %695 = vmatmul.mubr.bf16.vlgmr.msra.gmra.mxu0 %v1475_v18  ;;  %759 = vmatmul.mubr.bf16.vlgmr.msra.gmra.mxu1 %v1487_v20  ;;  %v329_v20 = vld [vmem:[%s1684_s7 + $0x98] sm:$0xff] }
  0x2e   : > { %702 = vmatprep.mubr.bf16.mxu0 %v1478_v19  ;;  %766 = vmatprep.mubr.bf16.mxu1 %v1493_v21 }
  0x35   : > { %703 = vmatmul.mubr.bf16.gmra.mxu0 %v1480_v22  ;;  %767 = vmatmul.mubr.bf16.gmra.mxu1 %v1495_v24 }
  0x36   : > { %710 = vmatprep.mubr.bf16.mxu0 %v1481_v23  ;;  %774 = vmatprep.mubr.bf16.mxu1 %v1499_v25 }
  0x3d   : > { %711 = vmatmul.mubr.bf16.gmra.mxu0 %v1483_v26  ;;  %775 = vmatmul.mubr.bf16.gmra.mxu1 %v1501_v28  ;;  %v314_v26 = vld [vmem:[%s1684_s7 + $0x20] sm:$0xff] }
  0x3e   : > { %718 = vmatprep.mubr.bf16.mxu0 %v1484_v27  ;;  %782 = vmatprep.mubr.bf16.mxu1 %v1505_v29 }
  0x45   : > { %719 = vmatmul.mubr.bf16.gmra.mxu0 %v1486_v30  ;;  %783 = vmatmul.mubr.bf16.gmra.mxu1 %v1507_v32  ;;  %v330_v30 = vld [vmem:[%s1684_s7 + $0xa0] sm:$0xff] }
  0x46   : > { %726 = vmatprep.mubr.bf16.mxu0 %v1490_v31  ;;  %790 = vmatprep.mubr.bf16.mxu1 %v1511_v33 }
  0x4d   : > { %727 = vmatmul.mubr.bf16.gmra.mxu0 %v1492_v34  ;;  %791 = vmatmul.mubr.bf16.gmra.mxu1 %v1513_v36  ;;  %v315_v36 = vld [vmem:[%s1684_s7 + $0x28] sm:$0xff] }
  0x4e   : > { %734 = vmatprep.mubr.bf16.mxu0 %v1496_v35  ;;  %798 = vmatprep.mubr.bf16.mxu1 %v1514_v37 }
  0x55   : > { %735 = vmatmul.mubr.bf16.gmra.mxu0 %v1498_v38  ;;  %799 = vmatmul.mubr.bf16.gmra.mxu1 %v1516_v40  ;;  %v331_v40 = vld [vmem:[%s1684_s7 + $0xa8] sm:$0xff] }
  0x56   : > { %742 = vmatprep.mubr.bf16.mxu0 %v1502_v39  ;;  %806 = vmatprep.mubr.bf16.mxu1 %v1517_v41 }
  0x5d   : > { %743 = vmatmul.mubr.bf16.gmra.mxu0 %v1504_v42  ;;  %807 = vmatmul.mubr.bf16.gmra.mxu1 %v1519_v44 }
  0x5e   : > { %750 = vmatprep.mubr.bf16.mxu0 %v1508_v43  ;;  %814 = vmatprep.mubr.bf16.mxu1 %v1520_v45 }
  0x65   : > { %751 = vmatmul.mubr.bf16.gmra.mxu0 %v1510_v46  ;;  %815 = vmatmul.mubr.bf16.gmra.mxu1 %v1522_v47  ;;  %v316_v46 = vld [vmem:[%s1684_s7 + $0x30] sm:$0xff] }
  0xed   : > { %v1322_v49 = vpop.f32.mrf.mxu0  ;;  %v1370_v50 = vpop.f32.mrf.mxu1 }
  0xef   : > { %v1323_v52 = vpop.f32.mrf.mxu0  ;;  %v1371_v55 = vpop.f32.mrf.mxu1 }
  0xf0   : > { %v1324_v53 = vadd.f32 %v1323_v52, %v1322_v49  ;;  %v1372_v57 = vadd.f32 %v1371_v55, %v1370_v50  ;;  %v332_v50 = vld [vmem:[%s1684_s7 + $0xb0] sm:$0xff] }
  0xf1   : > { %v1325_v56 = vpop.f32.mrf.mxu0  ;;  %v1373_v59 = vpop.f32.mrf.mxu1 }
  0xf2   : > { %v823_v58 = vadd.f32 %v1324_v53, %v310_v51  ;;  %v839_v62 = vadd.f32 %v1372_v57, %v326_v54 }
  0xf3   : > { %v1326_v61 = vpop.f32.mrf.mxu0  ;;  %v1374_v1 = vpop.f32.mrf.mxu1 }
  0xf4   : > { %856 = vst.msk [vmem:[%s1684_s7] sm:$0xff] %vm277_vm0, %v823_v58  ;;  %v1327_v63 = vadd.f32 %v1326_v61, %v1325_v56  ;;  %872 = vst.msk [vmem:[%s1684_s7 + $0x80] sm:$0xff] %vm277_vm0, %v839_v62  ;;  %v1375_v3 = vadd.f32 %v1374_v1, %v1373_v59  ;;  %v317_v56 = vld [vmem:[%s1684_s7 + $0x38] sm:$0xff] }
  0xf5   : > { %v1328_v2 = vpop.f32.mrf.mxu0  ;;  %v1376_v5 = vpop.f32.mrf.mxu1 }
  0xf6   : > { %v824_v4 = vadd.f32 %v1327_v63, %v311_v60  ;;  %v840_v8 = vadd.f32 %v1375_v3, %v327_v0  ;;  %v333_v60 = vld [vmem:[%s1684_s7 + $0xb8] sm:$0xff] }
  0xf7   : > { %v1329_v7 = vpop.f32.mrf.mxu0  ;;  %v1377_v11 = vpop.f32.mrf.mxu1 }
  0xf8   : > { %857 = vst.msk [vmem:[%s1684_s7 + $0x8] sm:$0xff] %vm277_vm0, %v824_v4  ;;  %v1330_v9 = vadd.f32 %v1329_v7, %v1328_v2  ;;  %873 = vst.msk [vmem:[%s1684_s7 + $0x88] sm:$0xff] %vm277_vm0, %v840_v8  ;;  %v1378_v13 = vadd.f32 %v1377_v11, %v1376_v5  ;;  %v318_v2 = vld [vmem:[%s1684_s7 + $0x40] sm:$0xff] }
  0xf9   : > { %v1331_v12 = vpop.f32.mrf.mxu0  ;;  %v1379_v15 = vpop.f32.mrf.mxu1 }
  0xfa   : > { %v825_v14 = vadd.f32 %v1330_v9, %v312_v6  ;;  %v841_v18 = vadd.f32 %v1378_v13, %v328_v10  ;;  %v334_v6 = vld [vmem:[%s1684_s7 + $0xc0] sm:$0xff] }
  0xfb   : > { %v1332_v17 = vpop.f32.mrf.mxu0  ;;  %v1380_v21 = vpop.f32.mrf.mxu1 }
  0xfc   : > { %858 = vst.msk [vmem:[%s1684_s7 + $0x10] sm:$0xff] %vm277_vm0, %v825_v14  ;;  %v1333_v19 = vadd.f32 %v1332_v17, %v1331_v12  ;;  %874 = vst.msk [vmem:[%s1684_s7 + $0x90] sm:$0xff] %vm277_vm0, %v841_v18  ;;  %v1381_v23 = vadd.f32 %v1380_v21, %v1379_v15  ;;  %v319_v12 = vld [vmem:[%s1684_s7 + $0x48] sm:$0xff]  ;;  %v891_v21 = vld [vmem:[%s1684_s7] sm:$0xff] }
  0xfd   : > { %v1334_v22 = vpop.f32.mrf.mxu0  ;;  %v1382_v25 = vpop.f32.mrf.mxu1 }
  0xfe   : > { %v826_v24 = vadd.f32 %v1333_v19, %v313_v16  ;;  %v842_v28 = vadd.f32 %v1381_v23, %v329_v20  ;;  %v335_v16 = vld [vmem:[%s1684_s7 + $0xc8] sm:$0xff] }
  0xff   : > { %v1335_v27 = vpop.f32.mrf.mxu0  ;;  %v1383_v31 = vpop.f32.mrf.mxu1  ;;  %v892_v18 = vld [vmem:[%s1684_s7 + $0x8] sm:$0xff] }
 0x100   : > { %859 = vst.msk [vmem:[%s1684_s7 + $0x18] sm:$0xff] %vm277_vm0, %v826_v24  ;;  %v1336_v29 = vadd.f32 %v1335_v27, %v1334_v22  ;;  %875 = vst.msk [vmem:[%s1684_s7 + $0x98] sm:$0xff] %vm277_vm0, %v842_v28  ;;  %v1384_v33 = vadd.f32 %v1383_v31, %v1382_v25  ;;  %v320_v25 = vld [vmem:[%s1684_s7 + $0x50] sm:$0xff]  ;;  %v993_v28 = vmul.f32 %v892_v18, %v892_v18 }
 0x101   : > { %v1337_v32 = vpop.f32.mrf.mxu0  ;;  %v1385_v35 = vpop.f32.mrf.mxu1 }
 0x102   : > { %v827_v34 = vadd.f32 %v1336_v29, %v314_v26  ;;  %v843_v38 = vadd.f32 %v1384_v33, %v330_v30  ;;  %v336_v30 = vld [vmem:[%s1684_s7 + $0xd0] sm:$0xff] }
 0x103   : > { %v1338_v37 = vpop.f32.mrf.mxu0  ;;  %v1386_v41 = vpop.f32.mrf.mxu1  ;;  %v893_v24 = vld [vmem:[%s1684_s7 + $0x10] sm:$0xff] }
 0x104   : > { %860 = vst.msk [vmem:[%s1684_s7 + $0x20] sm:$0xff] %vm277_vm0, %v827_v34  ;;  %v1339_v39 = vadd.f32 %v1338_v37, %v1337_v32  ;;  %876 = vst.msk [vmem:[%s1684_s7 + $0xa0] sm:$0xff] %vm277_vm0, %v843_v38  ;;  %v1387_v43 = vadd.f32 %v1386_v41, %v1385_v35  ;;  %v992_v32 = vmul.f32 %v891_v21, %v891_v21 }
 0x105   : > { %v1340_v42 = vpop.f32.mrf.mxu0  ;;  %v1388_v45 = vpop.f32.mrf.mxu1  ;;  %v994_v37 = vmul.f32 %v893_v24, %v893_v24 }
 0x106   : > { %v828_v44 = vadd.f32 %v1339_v39, %v315_v36  ;;  %v844_v48 = vadd.f32 %v1387_v43, %v331_v40  ;;  %v924_v36 = vsel %vm277_vm0, %v892_v18, 0.0  ;;  %v923_v40 = vsel %vm277_vm0, %v891_v21, 0.0 }
 0x107   : > { %v1341_v47 = vpop.f32.mrf.mxu0  ;;  %v1389_v51 = vpop.f32.mrf.mxu1  ;;  %v894_v33 = vld [vmem:[%s1684_s7 + $0x18] sm:$0xff] }
 0x108   : > { %861 = vst.msk [vmem:[%s1684_s7 + $0x28] sm:$0xff] %vm277_vm0, %v828_v44  ;;  %v1342_v49 = vadd.f32 %v1341_v47, %v1340_v42  ;;  %877 = vst.msk [vmem:[%s1684_s7 + $0xa8] sm:$0xff] %vm277_vm0, %v844_v48  ;;  %v1390_v53 = vadd.f32 %v1389_v51, %v1388_v45  ;;  %v321_v42 = vld [vmem:[%s1684_s7 + $0x58] sm:$0xff]  ;;  %v1025_v45 = vsel %vm277_vm0, %v993_v28, 0.0  ;;  %v995_v47 = vmul.f32 %v894_v33, %v894_v33 }
 0x109   : > { %v1343_v52 = vpop.f32.mrf.mxu0  ;;  %v1391_v55 = vpop.f32.mrf.mxu1  ;;  %v1024_v51 = vsel %vm277_vm0, %v992_v32, 0.0 }
 0x10a   : > { %v829_v54 = vadd.f32 %v1342_v49, %v316_v46  ;;  %v845_v58 = vadd.f32 %v1390_v53, %v332_v50  ;;  %v926_v46 = vsel %vm277_vm0, %v893_v24, 0.0  ;;  %v337_v49 = vld [vmem:[%s1684_s7 + $0xd8] sm:$0xff] }
 0x10b   : > { %v1344_v57 = vpop.f32.mrf.mxu0  ;;  %v1392_v61 = vpop.f32.mrf.mxu1  ;;  %v895_v41 = vld [vmem:[%s1684_s7 + $0x20] sm:$0xff] }
 0x10c   : > { %862 = vst.msk [vmem:[%s1684_s7 + $0x30] sm:$0xff] %vm277_vm0, %v829_v54  ;;  %v1345_v59 = vadd.f32 %v1344_v57, %v1343_v52  ;;  %878 = vst.msk [vmem:[%s1684_s7 + $0xb0] sm:$0xff] %vm277_vm0, %v845_v58  ;;  %v1393_v63 = vadd.f32 %v1392_v61, %v1391_v55  ;;  %v925_v52 = vadd.f32 %v924_v36, %v923_v40  ;;  %v928_v57 = vsel %vm277_vm0, %v894_v33, 0.0 }
 0x10d   : > { %v1346_v62 = vpop.f32.mrf.mxu0  ;;  %v1394_v1 = vpop.f32.mrf.mxu1  ;;  %v996_v58 = vmul.f32 %v895_v41, %v895_v41  ;;  %v1026_v61 = vadd.f32 %v1025_v45, %v1024_v51  ;;  %v340_v51 = vld [vmem:[%s1684_s7 + $0xf0] sm:$0xff] }
 0x10e   : > { %v830_v0 = vadd.f32 %v1345_v59, %v317_v56  ;;  %v846_v4 = vadd.f32 %v1393_v63, %v333_v60  ;;  %v1027_v56 = vsel %vm277_vm0, %v994_v37, 0.0 }
 0x10f   : > { %v1347_v3 = vpop.f32.mrf.mxu0  ;;  %v1395_v7 = vpop.f32.mrf.mxu1  ;;  %v896_v53 = vld [vmem:[%s1684_s7 + $0x28] sm:$0xff] }
 0x110   : > { %863 = vst.msk [vmem:[%s1684_s7 + $0x38] sm:$0xff] %vm277_vm0, %v830_v0  ;;  %v1348_v5 = vadd.f32 %v1347_v3, %v1346_v62  ;;  %879 = vst.msk [vmem:[%s1684_s7 + $0xb8] sm:$0xff] %vm277_vm0, %v846_v4  ;;  %v1396_v9 = vadd.f32 %v1395_v7, %v1394_v1  ;;  %v927_v62 = vadd.f32 %v926_v46, %v925_v52  ;;  %v322_v0 = vld [vmem:[%s1684_s7 + $0x60] sm:$0xff]  ;;  %v1029_v3 = vsel %vm277_vm0, %v995_v47, 0.0 }
 0x111   : > { %v1349_v8 = vpop.f32.mrf.mxu0  ;;  %v1397_v11 = vpop.f32.mrf.mxu1  ;;  %v930_v4 = vsel %vm277_vm0, %v895_v41, 0.0  ;;  %v338_v7 = vld [vmem:[%s1684_s7 + $0xe0] sm:$0xff] }
 0x112   : > { %v831_v10 = vadd.f32 %v1348_v5, %v318_v2  ;;  %v847_v14 = vadd.f32 %v1396_v9, %v334_v6  ;;  %v997_v5 = vmul.f32 %v896_v53, %v896_v53  ;;  %v1028_v9 = vadd.f32 %v1027_v56, %v1026_v61 }
 0x113   : > { %v1350_v13 = vpop.f32.mrf.mxu0  ;;  %v1398_v17 = vpop.f32.mrf.mxu1  ;;  %v897_v63 = vld [vmem:[%s1684_s7 + $0x30] sm:$0xff] }
 0x114   : > { %864 = vst.msk [vmem:[%s1684_s7 + $0x40] sm:$0xff] %vm277_vm0, %v831_v10  ;;  %v1351_v15 = vadd.f32 %v1350_v13, %v1349_v8  ;;  %880 = vst.msk [vmem:[%s1684_s7 + $0xc0] sm:$0xff] %vm277_vm0, %v847_v14  ;;  %v1399_v20 = vadd.f32 %v1398_v17, %v1397_v11  ;;  %v929_v10 = vadd.f32 %v928_v57, %v927_v62  ;;  %v1031_v14 = vsel %vm277_vm0, %v996_v58, 0.0 }
 0x115   : > { %v1352_v19 = vpop.f32.mrf.mxu0  ;;  %v1400_v23 = vpop.f32.mrf.mxu1 }
 0x116   : > { %v832_v22 = vadd.f32 %v1351_v15, %v319_v12  ;;  %v848_v27 = vadd.f32 %v1399_v20, %v335_v16  ;;  %v932_v15 = vsel %vm277_vm0, %v896_v53, 0.0  ;;  %v998_v16 = vmul.f32 %v897_v63, %v897_v63 }
 0x117   : > { %v1353_v26 = vpop.f32.mrf.mxu0  ;;  %v1401_v31 = vpop.f32.mrf.mxu1  ;;  %v898_v11 = vld [vmem:[%s1684_s7 + $0x38] sm:$0xff]  ;;  %v931_v20 = vadd.f32 %v930_v4, %v929_v10 }
 0x118   : > { %865 = vst.msk [vmem:[%s1684_s7 + $0x48] sm:$0xff] %vm277_vm0, %v832_v22  ;;  %v1354_v29 = vadd.f32 %v1353_v26, %v1352_v19  ;;  %881 = vst.msk [vmem:[%s1684_s7 + $0xc8] sm:$0xff] %vm277_vm0, %v848_v27  ;;  %v1402_v35 = vadd.f32 %v1401_v31, %v1400_v23  ;;  %v1030_v19 = vadd.f32 %v1029_v3, %v1028_v9  ;;  %v323_v22 = vld [vmem:[%s1684_s7 + $0x68] sm:$0xff]  ;;  %v934_v26 = vsel %vm277_vm0, %v897_v63, 0.0  ;;  %v341_v9 = vld [vmem:[%s1684_s7 + $0xf8] sm:$0xff] }
 0x119   : > { %v1355_v34 = vpop.f32.mrf.mxu0  ;;  %v1403_v39 = vpop.f32.mrf.mxu1  ;;  %v999_v27 = vmul.f32 %v898_v11, %v898_v11  ;;  %v933_v32 = vadd.f32 %v932_v15, %v931_v20  ;;  %v1035_v36 = vsel %vm277_vm0, %v998_v16, 0.0  ;;  %v936_v37 = vsel %vm277_vm0, %v898_v11, 0.0 }
 0x11a   : > { %v833_v38 = vadd.f32 %v1354_v29, %v320_v25  ;;  %v849_v44 = vadd.f32 %v1402_v35, %v336_v30  ;;  %v1033_v25 = vsel %vm277_vm0, %v997_v5, 0.0  ;;  %v339_v29 = vld [vmem:[%s1684_s7 + $0xe8] sm:$0xff]  ;;  %v1032_v31 = vadd.f32 %v1031_v14, %v1030_v19 }
 0x11b   : > { %v1356_v43 = vpop.f32.mrf.mxu0  ;;  %v1404_v50 = vpop.f32.mrf.mxu1  ;;  %v899_v21 = vld [vmem:[%s1684_s7 + $0x40] sm:$0xff]  ;;  %v1037_v47 = vsel %vm277_vm0, %v999_v27, 0.0 }
 0x11c   : > { %866 = vst.msk [vmem:[%s1684_s7 + $0x50] sm:$0xff] %vm277_vm0, %v833_v38  ;;  %v1357_v48 = vadd.f32 %v1356_v43, %v1355_v34  ;;  %882 = vst.msk [vmem:[%s1684_s7 + $0xd0] sm:$0xff] %vm277_vm0, %v849_v44  ;;  %v1405_v55 = vadd.f32 %v1404_v50, %v1403_v39  ;;  %v1000_v38 = vmul.f32 %v899_v21, %v899_v21  ;;  %v324_v44 = vld [vmem:[%s1684_s7 + $0x70] sm:$0xff] }
 0x11d   : > { %v1358_v54 = vpop.f32.mrf.mxu0  ;;  %v1406_v60 = vpop.f32.mrf.mxu1  ;;  %v1034_v41 = vadd.f32 %v1033_v25, %v1032_v31 }
 0x11e   : > { %v834_v59 = vadd.f32 %v1357_v48, %v321_v42  ;;  %v850_v2 = vadd.f32 %v1405_v55, %v337_v49  ;;  %v935_v42 = vadd.f32 %v934_v26, %v933_v32  ;;  %v938_v48 = vsel %vm277_vm0, %v899_v21, 0.0 }
 0x11f   : > { %v1359_v1 = vpop.f32.mrf.mxu0  ;;  %v1407_v8 = vpop.f32.mrf.mxu1  ;;  %v900_v33 = vld [vmem:[%s1684_s7 + $0x48] sm:$0xff]  ;;  %v1036_v53 = vadd.f32 %v1035_v36, %v1034_v41  ;;  %v1039_v58 = vsel %vm277_vm0, %v1000_v38, 0.0 }
 0x120   : > { %867 = vst.msk [vmem:[%s1684_s7 + $0x58] sm:$0xff] %vm277_vm0, %v834_v59  ;;  %v1360_v6 = vadd.f32 %v1359_v1, %v1358_v54  ;;  %883 = vst.msk [vmem:[%s1684_s7 + $0xd8] sm:$0xff] %vm277_vm0, %v850_v2  ;;  %v1408_v13 = vadd.f32 %v1407_v8, %v1406_v60  ;;  %v1001_v49 = vmul.f32 %v900_v33, %v900_v33  ;;  %v940_v59 = vsel %vm277_vm0, %v900_v33, 0.0  ;;  %v325_v2 = vld [vmem:[%s1684_s7 + $0x78] sm:$0xff] }
 0x121   : > { %v1361_v12 = vpop.f32.mrf.mxu0  ;;  %v1409_v18 = vpop.f32.mrf.mxu1  ;;  %v937_v54 = vadd.f32 %v936_v37, %v935_v42  ;;  %v1038_v63 = vadd.f32 %v1037_v47, %v1036_v53 }
 0x122   : > { %v835_v17 = vadd.f32 %v1360_v6, %v322_v0  ;;  %v851_v24 = vadd.f32 %v1408_v13, %v338_v7  ;;  %v1041_v5 = vsel %vm277_vm0, %v1001_v49, 0.0 }
 0x123   : > { %v1362_v23 = vpop.f32.mrf.mxu0  ;;  %v1410_v30 = vpop.f32.mrf.mxu1  ;;  %v901_v43 = vld [vmem:[%s1684_s7 + $0x50] sm:$0xff]  ;;  %v939_v0 = vadd.f32 %v938_v48, %v937_v54  ;;  %v1040_v11 = vadd.f32 %v1039_v58, %v1038_v63  ;;  %v911_v58 = vld [vmem:[%s1684_s7 + $0xa0] sm:$0xff] }
 0x124   : > { %868 = vst.msk [vmem:[%s1684_s7 + $0x60] sm:$0xff] %vm277_vm0, %v835_v17  ;;  %v1363_v28 = vadd.f32 %v1362_v23, %v1361_v12  ;;  %884 = vst.msk [vmem:[%s1684_s7 + $0xe0] sm:$0xff] %vm277_vm0, %v851_v24  ;;  %v1411_v35 = vadd.f32 %v1410_v30, %v1409_v18  ;;  %v1002_v60 = vmul.f32 %v901_v43, %v901_v43  ;;  %v942_v6 = vsel %vm277_vm0, %v901_v43, 0.0 }
 0x125   : > { %v1364_v34 = vpop.f32.mrf.mxu0  ;;  %v1412_v40 = vpop.f32.mrf.mxu1  ;;  %v941_v12 = vadd.f32 %v940_v59, %v939_v0  ;;  %v1042_v18 = vadd.f32 %v1041_v5, %v1040_v11  ;;  %v912_v0 = vld [vmem:[%s1684_s7 + $0xa8] sm:$0xff]  ;;  %v1012_v5 = vmul.f32 %v911_v58, %v911_v58 }
 0x126   : > { %v836_v39 = vadd.f32 %v1363_v28, %v323_v22  ;;  %v852_v46 = vadd.f32 %v1411_v35, %v339_v29  ;;  %v1043_v14 = vsel %vm277_vm0, %v1002_v60, 0.0  ;;  %v907_v35 = vld [vmem:[%s1684_s7 + $0x80] sm:$0xff]  ;;  %v1013_v11 = vmul.f32 %v912_v0, %v912_v0 }
 0x127   : > { %v1365_v45 = vpop.f32.mrf.mxu0  ;;  %v1413_v52 = vpop.f32.mrf.mxu1  ;;  %v902_v55 = vld [vmem:[%s1684_s7 + $0x58] sm:$0xff]  ;;  %v943_v19 = vadd.f32 %v942_v6, %v941_v12  ;;  %v1044_v25 = vadd.f32 %v1043_v14, %v1042_v18  ;;  %v1008_v43 = vmul.f32 %v907_v35, %v907_v35  ;;  %v954_v49 = vsel %vm277_vm0, %v907_v35, 0.0  ;;  %v913_v6 = vld [vmem:[%s1684_s7 + $0xb0] sm:$0xff]  ;;  %v915_v18 = vld [vmem:[%s1684_s7 + $0xc0] sm:$0xff] }
 0x128   : > { %869 = vst.msk [vmem:[%s1684_s7 + $0x68] sm:$0xff] %vm277_vm0, %v836_v39  ;;  %v1366_v50 = vadd.f32 %v1365_v45, %v1364_v34  ;;  %885 = vst.msk [vmem:[%s1684_s7 + $0xe8] sm:$0xff] %vm277_vm0, %v852_v46  ;;  %v1414_v57 = vadd.f32 %v1413_v52, %v1412_v40  ;;  %v1003_v7 = vmul.f32 %v902_v55, %v902_v55  ;;  %v944_v15 = vsel %vm277_vm0, %v902_v55, 0.0  ;;  %v908_v39 = vld [vmem:[%s1684_s7 + $0x88] sm:$0xff]  ;;  %v909_v46 = vld [vmem:[%s1684_s7 + $0x90] sm:$0xff] }
 0x129   : > { %v1367_v56 = vpop.f32.mrf.mxu0  ;;  %v1415_v62 = vpop.f32.mrf.mxu1  ;;  %v945_v26 = vadd.f32 %v944_v15, %v943_v19  ;;  %v910_v52 = vld [vmem:[%s1684_s7 + $0x98] sm:$0xff]  ;;  %v1055_v55 = vsel %vm277_vm0, %v1008_v43, 0.0  ;;  %v1063_v15 = vsel %vm277_vm0, %v1012_v5, 0.0 }
 0x12a   : > { %v837_v61 = vadd.f32 %v1366_v50, %v324_v44  ;;  %v853_v4 = vadd.f32 %v1414_v57, %v340_v51  ;;  %v1045_v22 = vsel %vm277_vm0, %v1003_v7, 0.0  ;;  %v1009_v50 = vmul.f32 %v908_v39, %v908_v39  ;;  %v914_v12 = vld [vmem:[%s1684_s7 + $0xb8] sm:$0xff] }
 0x12b   : > { %v903_v1 = vld [vmem:[%s1684_s7 + $0x60] sm:$0xff]  ;;  %v1368_v3 = vpop.f32.mrf.mxu0  ;;  %v1416_v10 = vpop.f32.mrf.mxu1  ;;  %v1046_v29 = vadd.f32 %v1045_v22, %v1044_v25  ;;  %v1010_v57 = vmul.f32 %v909_v46, %v909_v46  ;;  %v1011_v63 = vmul.f32 %v910_v52, %v910_v52  ;;  %v966_v22 = vsel %vm277_vm0, %v913_v6, 0.0 }
 0x12c   : > { %870 = vst.msk [vmem:[%s1684_s7 + $0x70] sm:$0xff] %vm277_vm0, %v837_v61  ;;  %v1369_v8 = vadd.f32 %v1368_v3, %v1367_v56  ;;  %886 = vst.msk [vmem:[%s1684_s7 + $0xf0] sm:$0xff] %vm277_vm0, %v853_v4  ;;  %v1417_v13 = vadd.f32 %v1416_v10, %v1415_v62  ;;  %v1004_v16 = vmul.f32 %v903_v1, %v903_v1  ;;  %v946_v23 = vsel %vm277_vm0, %v903_v1, 0.0 }
 0x12d   : > { %v947_v30 = vadd.f32 %v946_v23, %v945_v26  ;;  %v956_v56 = vsel %vm277_vm0, %v908_v39, 0.0  ;;  %v1057_v61 = vsel %vm277_vm0, %v1009_v50, 0.0  ;;  %v958_v62 = vsel %vm277_vm0, %v909_v46, 0.0 }
 0x12e   : > { %v838_v17 = vadd.f32 %v1369_v8, %v325_v2  ;;  %v854_v21 = vadd.f32 %v1417_v13, %v341_v9  ;;  %v1047_v27 = vsel %vm277_vm0, %v1004_v16, 0.0  ;;  %v1059_v3 = vsel %vm277_vm0, %v1010_v57, 0.0 }
 0x12f   : > { %v904_v20 = vld [vmem:[%s1684_s7 + $0x68] sm:$0xff]  ;;  %v1048_v36 = vadd.f32 %v1047_v27, %v1046_v29  ;;  %v960_v4 = vsel %vm277_vm0, %v910_v52, 0.0  ;;  %v1061_v9 = vsel %vm277_vm0, %v1011_v63, 0.0  ;;  %v962_v10 = vsel %vm277_vm0, %v911_v58, 0.0 }
 0x130   : > { %v1005_v24 = vmul.f32 %v904_v20, %v904_v20  ;;  %871 = vst.msk [vmem:[%s1684_s7 + $0x78] sm:$0xff] %vm277_vm0, %v838_v17  ;;  %887 = vst.msk [vmem:[%s1684_s7 + $0xf8] sm:$0xff] %vm277_vm0, %v854_v21  ;;  %v948_v28 = vsel %vm277_vm0, %v904_v20, 0.0  ;;  %v964_v16 = vsel %vm277_vm0, %v912_v0, 0.0  ;;  %v1014_v17 = vmul.f32 %v913_v6, %v913_v6  ;;  %v920_v50 = vld [vmem:[%s1684_s7 + $0xe8] sm:$0xff] }
 0x131   : > { %v949_v37 = vadd.f32 %v948_v28, %v947_v30  ;;  %v1065_v21 = vsel %vm277_vm0, %v1013_v11, 0.0  ;;  %v1015_v23 = vmul.f32 %v914_v12, %v914_v12  ;;  %v968_v28 = vsel %vm277_vm0, %v914_v12, 0.0 }
 0x132   : > { %v1049_v32 = vsel %vm277_vm0, %v1005_v24, 0.0  ;;  %v916_v24 = vld [vmem:[%s1684_s7 + $0xc8] sm:$0xff]  ;;  %v1067_v27 = vsel %vm277_vm0, %v1014_v17, 0.0  ;;  %v1016_v29 = vmul.f32 %v915_v18, %v915_v18  ;;  %v980_v0 = vsel %vm277_vm0, %v920_v50, 0.0 }
 0x133   : > { %v905_v31 = vld [vmem:[%s1684_s7 + $0x70] sm:$0xff]  ;;  %v1050_v40 = vadd.f32 %v1049_v32, %v1048_v36  ;;  %v1017_v35 = vmul.f32 %v916_v24, %v916_v24 }
 0x134   : > { %v950_v33 = vsel %vm277_vm0, %v905_v31, 0.0  ;;  %v1006_v34 = vmul.f32 %v905_v31, %v905_v31  ;;  %v917_v32 = vld [vmem:[%s1684_s7 + $0xd0] sm:$0xff]  ;;  %v1071_v39 = vsel %vm277_vm0, %v1016_v29, 0.0 }
 0x135   : > { %v951_v41 = vadd.f32 %v950_v33, %v949_v37  ;;  %v1069_v33 = vsel %vm277_vm0, %v1015_v23, 0.0  ;;  %v974_v46 = vsel %vm277_vm0, %v917_v32, 0.0 }
 0x136   : > { %v1051_v38 = vsel %vm277_vm0, %v1006_v34, 0.0  ;;  %v970_v34 = vsel %vm277_vm0, %v915_v18, 0.0  ;;  %v1093_v18 = vlaneseq }
 0x137   : > { %v906_v42 = vld [vmem:[%s1684_s7 + $0x78] sm:$0xff]  ;;  %v1052_v47 = vadd.f32 %v1051_v38, %v1050_v40  ;;  %v972_v40 = vsel %vm277_vm0, %v916_v24, 0.0 }
 0x138   : > { %v952_v44 = vsel %vm277_vm0, %v906_v42, 0.0  ;;  %v1007_v45 = vmul.f32 %v906_v42, %v906_v42  ;;  %v918_v38 = vld [vmem:[%s1684_s7 + $0xd8] sm:$0xff]  ;;  %v1094_v23 = vshrl.u32 %v1093_v18, 7 }
 0x139   : > { %v953_v48 = vadd.f32 %v952_v44, %v951_v41  ;;  %v1018_v41 = vmul.f32 %v917_v32, %v917_v32  ;;  %v919_v44 = vld [vmem:[%s1684_s7 + $0xe0] sm:$0xff]  ;;  %v976_v52 = vsel %vm277_vm0, %v918_v38, 0.0 }
 0x13a   : > { %v1053_v51 = vsel %vm277_vm0, %v1007_v45, 0.0  ;;  %v1073_v45 = vsel %vm277_vm0, %v1017_v35, 0.0  ;;  %v978_v58 = vsel %vm277_vm0, %v919_v44, 0.0  ;;  %vm1096_vm1 = vcmp.eq.s32.totalorder %v1094_v23, 1 }
 0x13b   : > { %v955_v53 = vadd.f32 %v954_v49, %v953_v48  ;;  %v1054_v54 = vadd.f32 %v1053_v51, %v1052_v47  ;;  %v1019_v47 = vmul.f32 %v918_v38, %v918_v38  ;;  %v1075_v51 = vsel %vm277_vm0, %v1018_v41, 0.0 }
 0x13c   : > { %vm1095_vm2 = vcmp.eq.s32.totalorder %v1094_v23, 0 }
 0x13d   : > { %v957_v59 = vadd.f32 %v956_v56, %v955_v53  ;;  %v1056_v60 = vadd.f32 %v1055_v55, %v1054_v54  ;;  %v1020_v53 = vmul.f32 %v919_v44, %v919_v44  ;;  %v921_v56 = vld [vmem:[%s1684_s7 + $0xf0] sm:$0xff]  ;;  %v1077_v57 = vsel %vm277_vm0, %v1019_v47, 0.0 }
 0x13e   : > { %v982_v5 = vsel %vm277_vm0, %v921_v56, 0.0 }
 0x13f   : > { %v959_v1 = vadd.f32 %v958_v62, %v957_v59  ;;  %v1058_v2 = vadd.f32 %v1057_v61, %v1056_v60  ;;  %v1021_v59 = vmul.f32 %v920_v50, %v920_v50  ;;  %v922_v62 = vld [vmem:[%s1684_s7 + $0xf8] sm:$0xff]  ;;  %v1079_v63 = vsel %vm277_vm0, %v1020_v53, 0.0 }
 0x140   : > { %v1023_v6 = vmul.f32 %v922_v62, %v922_v62 }
 0x141   : > { %v961_v7 = vadd.f32 %v960_v4, %v959_v1  ;;  %v1060_v8 = vadd.f32 %v1059_v3, %v1058_v2  ;;  %v1022_v1 = vmul.f32 %v921_v56, %v921_v56  ;;  %v1081_v4 = vsel %vm277_vm0, %v1021_v59, 0.0 }
 0x143   : > { %v1062_v13 = vadd.f32 %v1061_v9, %v1060_v8  ;;  %v963_v14 = vadd.f32 %v962_v10, %v961_v7  ;;  %v1083_v9 = vsel %vm277_vm0, %v1022_v1, 0.0  ;;  %v984_v10 = vsel %vm277_vm0, %v922_v62, 0.0 }
 0x145   : > { %v965_v19 = vadd.f32 %v964_v16, %v963_v14  ;;  %v1064_v20 = vadd.f32 %v1063_v15, %v1062_v13  ;;  %v1085_v13 = vsel %vm277_vm0, %v1023_v6, 0.0 }
 0x147   : > { %v967_v25 = vadd.f32 %v966_v22, %v965_v19  ;;  %v1066_v26 = vadd.f32 %v1065_v21, %v1064_v20 }
 0x149   : > { %v969_v30 = vadd.f32 %v968_v28, %v967_v25  ;;  %v1068_v31 = vadd.f32 %v1067_v27, %v1066_v26 }
 0x14b   : > { %v971_v36 = vadd.f32 %v970_v34, %v969_v30  ;;  %v1070_v37 = vadd.f32 %v1069_v33, %v1068_v31 }
 0x14d   : > { %v973_v42 = vadd.f32 %v972_v40, %v971_v36  ;;  %v1072_v43 = vadd.f32 %v1071_v39, %v1070_v37 }
 0x14f   : > { %v1074_v48 = vadd.f32 %v1073_v45, %v1072_v43  ;;  %v975_v49 = vadd.f32 %v974_v46, %v973_v42 }
 0x151   : > { %v1076_v54 = vadd.f32 %v1075_v51, %v1074_v48  ;;  %v977_v55 = vadd.f32 %v976_v52, %v975_v49 }
 0x153   : > { %v1078_v60 = vadd.f32 %v1077_v57, %v1076_v54  ;;  %v979_v61 = vadd.f32 %v978_v58, %v977_v55 }
 0x155   : > { %v1080_v2 = vadd.f32 %v1079_v63, %v1078_v60  ;;  %v981_v3 = vadd.f32 %v980_v0, %v979_v61 }
 0x157   : > { %v1082_v7 = vadd.f32 %v1081_v4, %v1080_v2  ;;  %v983_v8 = vadd.f32 %v982_v5, %v981_v3 }
 0x159   : > { %v1084_v11 = vadd.f32 %v1083_v9, %v1082_v7  ;;  %v985_v12 = vadd.f32 %v984_v10, %v983_v8 }
 0x15b   : > { %v986_v14 = vrot.slane %v985_v12, 4  ;;  %v1086_v15 = vadd.f32 %v1085_v13, %v1084_v11 }
 0x15d   : > { %v987_v16 = vadd.f32 %v986_v14, %v985_v12  ;;  %v1087_v17 = vrot.slane %v1086_v15, 4 }
 0x15f   : > { %v988_v19 = vrot.slane %v987_v16, 2  ;;  %v1088_v20 = vadd.f32 %v1087_v17, %v1086_v15 }
 0x161   : > { %v989_v21 = vadd.f32 %v988_v19, %v987_v16  ;;  %v1089_v22 = vrot.slane %v1088_v20, 2 }
 0x163   : > { %v1090_v24 = vadd.f32 %v1089_v22, %v1088_v20  ;;  %v990_v25 = vrot.slane %v989_v21, 1 }
 0x165   : > { %v1091_v26 = vrot.slane %v1090_v24, 1  ;;  %v991_v28 = vadd.f32 %v990_v25, %v989_v21 }
 0x167   : > { %v1092_v27 = vadd.f32 %v1091_v26, %v1090_v24 }
 0x169   : > { %v1097_v29 = vsel %vm1096_vm1, %v1092_v27, 0.0 }
 0x16a   : > { %v1098_v30 = vsel %vm1095_vm2, %v991_v28, %v1097_v29 }
 0x16b   : > { %1099 = vst.msk [vmem:[%s271_s9] sm:$0xff] %vm277_vm0, %v1098_v30 }
 0x16c PF: > { %s14_s14 = sadd.s32 1, %s1545_s14   ;;  %s1961_s12 = smov %s1541_s13 }
 0x16d   : > { %p11_p6 = scmp.ge.s32.totalorder %s14_s14, 4   ;;  %s1962_s13 = smov %s1964_s15 }
 0x16f   :  { %13 = sbr.rel (!%p11_p6) target bundleno = 2 (0x2), region = 81 }

// kernel: attribute_cnn_forward.43
= control target key start
LH: loop header
LB: loop body
LE: loop exit
PB: predicated region body
PF: predicated region fallthrough
CT: control target
= control target key end

     0   :  { %s1123_s12 = smov 0   ;;  %s1125_s13 = smov 0   ;;  %s1488_s0 = inlined_call_operand.vmem [shape: bf16[128,640], index: 0, kind: input, shape index: {}]   ;;  %s1489_s1 = inlined_call_operand.vmem [shape: bf16[640,64], index: 1, kind: input, shape index: {}]   ;;  %s1490_s2 = inlined_call_operand.vmem [shape: f32[128,64], index: 2, kind: output, shape index: {0}]   ;;  %s1491_s3 = inlined_call_operand.vmem [shape: f32[1,8,64], index: 3, kind: output, shape index: {1}]  }
   0x1   :  { %s1127_s14 = smov 0   ;;  %s1129_s15 = smov 0  }
   0x2   :  { %s1131_s16 = smov 0  }
   0x3 LB: > { %s26_s17 = sadd.s32 1, %s1096_s15  ;;  %p49_p1 = scmp.ne.s32.totalorder %s1088_s13, %s1084_s12  ;;  %s1100_s16 = sphi %s1131_s16, %s14_s16   ;;  %s1096_s15 = sphi %s1129_s15, %s1495_s15   ;;  %s1092_s14 = sphi %s1127_s14, %s1494_s14   ;;  %s1088_s13 = sphi %s1125_s13, %s1493_s13   ;;  %s1084_s12 = sphi %s1123_s12, %s1492_s12  }
   0x4   : > { %p27_p0 = scmp.ge.s32.totalorder %s26_s17, 5  ;;  %p50_p2 = scmp.eq.s32.totalorder %s1100_s16, 0 }
   0x5   : > { %s42_s19 = sadd.s32 1, %s1088_s13  ;;  %p911_p5 = scmp.ge.s32.totalorder %s1100_s16, 5 }
   0x6   : > { %s1497_s17 = smov (%p27_p0, %s26_s17), 0  ;;  %p51_p3 = por %p50_p2, %p49_p1 }
   0x7   : > { %s38_s18 = ssub.s32 %s1096_s15, %s1497_s17  ;;  %159 = sbr.rel (%p911_p5) target bundleno = 26 (0x1a), region = 16 }
   0x8   : > { %p40_p4 = scmp.eq.s32.totalorder %s38_s18, 0 }
   0xa   : > { %s1158_s20 = scalar_select %p40_p4, %s1088_s13, %s42_s19  }
   0xc   : > { %162 = sbr.rel (!%p51_p3) target bundleno = 26 (0x1a), region = 20  ;;  %s164_s21 = sand.u32 (%p51_p3), 1, %s1088_s13  }
   0xd   : > { %s913_s22 = sshll.u32 (%p51_p3), %s1096_s15, 2  ;;  %s912_s23 = sshll.u32 (%p51_p3), %s164_s21, 6 }
   0xe   : > { %s1166_s26 = scalar_lea.vmem (%p51_p3), %s1488_s0, %s913_s22  ;;  %s166_s27 = scalar_lea.vmem (%p51_p3), [#allocation2], %s912_s23 }
   0xf   : > { %v188_v0 = vld [vmem:[%s1166_s26] sm:$0xf] (%p51_p3)  ;;  %v190_v1 = vld [vmem:[%s1166_s26 + $0x14] sm:$0xf] (%p51_p3)  ;;  %v192_v2 = vld [vmem:[%s1166_s26 + $0x28] sm:$0xf] (%p51_p3) }
  0x10   : > { %189 = vst [vmem:[%s166_s27] sm:$0xf] (%p51_p3), %v188_v0  ;;  %191 = vst [vmem:[%s166_s27 + $0x4] sm:$0xf] (%p51_p3), %v190_v1  ;;  %v194_v3 = vld [vmem:[%s1166_s26 + $0x3c] sm:$0xf] (%p51_p3) }
  0x11   : > { %v196_v4 = vld [vmem:[%s1166_s26 + $0x50] sm:$0xf]  ;;  %193 = vst [vmem:[%s166_s27 + $0x8] sm:$0xf] %v192_v2  ;;  %195 = vst [vmem:[%s166_s27 + $0xc] sm:$0xf] %v194_v3 }
  0x12   : > { %197 = vst [vmem:[%s166_s27 + $0x10] sm:$0xf] %v196_v4  ;;  %v198_v5 = vld [vmem:[%s1166_s26 + $0x64] sm:$0xf]  ;;  %v200_v6 = vld [vmem:[%s1166_s26 + $0x78] sm:$0xf] }
  0x13   : > { %v202_v7 = vld [vmem:[%s1166_s26 + $0x8c] sm:$0xf]  ;;  %199 = vst [vmem:[%s166_s27 + $0x14] sm:$0xf] %v198_v5  ;;  %201 = vst [vmem:[%s166_s27 + $0x18] sm:$0xf] %v200_v6 }
  0x14   : > { %203 = vst [vmem:[%s166_s27 + $0x1c] sm:$0xf] %v202_v7  ;;  %v204_v8 = vld [vmem:[%s1166_s26 + $0xa0] sm:$0xf]  ;;  %v206_v9 = vld [vmem:[%s1166_s26 + $0xb4] sm:$0xf] }
  0x15   : > { %v208_v10 = vld [vmem:[%s1166_s26 + $0xc8] sm:$0xf]  ;;  %205 = vst [vmem:[%s166_s27 + $0x20] sm:$0xf] %v204_v8  ;;  %207 = vst [vmem:[%s166_s27 + $0x24] sm:$0xf] %v206_v9 }
  0x16   : > { %209 = vst [vmem:[%s166_s27 + $0x28] sm:$0xf] %v208_v10  ;;  %v210_v11 = vld [vmem:[%s1166_s26 + $0xdc] sm:$0xf]  ;;  %v212_v12 = vld [vmem:[%s1166_s26 + $0xf0] sm:$0xf] }
  0x17   : > { %v214_v13 = vld [vmem:[%s1166_s26 + $0x104] sm:$0xf]  ;;  %211 = vst [vmem:[%s166_s27 + $0x2c] sm:$0xf] %v210_v11  ;;  %213 = vst [vmem:[%s166_s27 + $0x30] sm:$0xf] %v212_v12 }
  0x18   : > { %215 = vst [vmem:[%s166_s27 + $0x34] sm:$0xf] %v214_v13  ;;  %v216_v14 = vld [vmem:[%s1166_s26 + $0x118] sm:$0xf]  ;;  %v218_v15 = vld [vmem:[%s1166_s26 + $0x12c] sm:$0xf] }
  0x19   : > { %217 = vst [vmem:[%s166_s27 + $0x38] sm:$0xf] %v216_v14  ;;  %219 = vst [vmem:[%s166_s27 + $0x3c] sm:$0xf] %v218_v15 }
  0x1a PF: > { %p914_p6 = scmp.ge.s32.totalorder %s1100_s16, 1  ;;  %p286_p7 = scmp.lt.s32.totalorder %s1100_s16, 6 }
  0x1c   : > { %p287_p8 = pnand %p914_p6, %p286_p7 }
  0x1d   : > { %s293_s28 = sand.u32 (!%p287_p8), 1, %s1084_s12   ;;  %s916_s29 = sshll.u32 (!%p287_p8), %s1092_s14, 4 }
  0x1e   : > { %290 = sbr.rel (%p287_p8) target bundleno = 342 (0x156), region = 65  ;;  %s915_s30 = sshll.u32 (!%p287_p8), %s293_s28, 6 }
  0x1f   : > { %p336_p9 = scmp.lt.s32.totalorder (!%p287_p8), %s916_s29, 79  ;;  %s1193_s8 = scalar_lea.vmem (!%p287_p8), [#allocation2], %s915_s30 }
  0x20   : > { %p918_p10 = scmp.ne.s32.totalorder (!%p287_p8), %s1092_s14, 0 }
  0x23   : > { %s1499_s29 = smov (!%p336_p9, %s916_s29), 79  ;;  %364 = sbr.rel (%p918_p10) target bundleno = 49 (0x31), region = 73 }
  0x24   : > { %s917_s4 = sshll.u32 %s1499_s29, 2 }
  0x25   : > { %s1191_s7 = scalar_lea.vmem %s1489_s1, %s917_s4 }
  0x28   : > { %vm365_vm0 = vcmask 523264   ;;  %v1102_v16 = vmov 0.0  }
  0x29   : > { %366 = vst.msk [vmem:[%s1490_s2] sm:$0xff] %vm365_vm0, %v1102_v16  ;;  %367 = vst.msk [vmem:[%s1490_s2 + $0x8] sm:$0xff] %vm365_vm0, %v1102_v16 }
  0x2a   : > { %368 = vst.msk [vmem:[%s1490_s2 + $0x10] sm:$0xff] %vm365_vm0, %v1102_v16  ;;  %369 = vst.msk [vmem:[%s1490_s2 + $0x18] sm:$0xff] %vm365_vm0, %v1102_v16 }
  0x2b   : > { %370 = vst.msk [vmem:[%s1490_s2 + $0x20] sm:$0xff] %vm365_vm0, %v1102_v16  ;;  %371 = vst.msk [vmem:[%s1490_s2 + $0x28] sm:$0xff] %vm365_vm0, %v1102_v16 }
  0x2c   : > { %372 = vst.msk [vmem:[%s1490_s2 + $0x30] sm:$0xff] %vm365_vm0, %v1102_v16  ;;  %373 = vst.msk [vmem:[%s1490_s2 + $0x38] sm:$0xff] %vm365_vm0, %v1102_v16 }
  0x2d   : > { %374 = vst.msk [vmem:[%s1490_s2 + $0x40] sm:$0xff] %vm365_vm0, %v1102_v16  ;;  %375 = vst.msk [vmem:[%s1490_s2 + $0x48] sm:$0xff] %vm365_vm0, %v1102_v16 }
  0x2e   : > { %376 = vst.msk [vmem:[%s1490_s2 + $0x50] sm:$0xff] %vm365_vm0, %v1102_v16  ;;  %377 = vst.msk [vmem:[%s1490_s2 + $0x58] sm:$0xff] %vm365_vm0, %v1102_v16 }
  0x2f   : > { %378 = vst.msk [vmem:[%s1490_s2 + $0x60] sm:$0xff] %vm365_vm0, %v1102_v16  ;;  %379 = vst.msk [vmem:[%s1490_s2 + $0x68] sm:$0xff] %vm365_vm0, %v1102_v16 }
  0x30   : > { %380 = vst.msk [vmem:[%s1490_s2 + $0x70] sm:$0xff] %vm365_vm0, %v1102_v16  ;;  %381 = vst.msk [vmem:[%s1490_s2 + $0x78] sm:$0xff] %vm365_vm0, %v1102_v16 }
  0x31 PF: > { %v1046_v17 = vld [vmem:[%s1191_s7 + $0x38] sm:$0xff]   ;;  %v1047_v18 = vld [vmem:[%s1191_s7 + $0x30] sm:$0xff]   ;;  %v1048_v19 = vld [vmem:[%s1191_s7 + $0x28] sm:$0xff]   ;;  %vm639_vm1 = vcmask 523264   ;;  %p935_p11 = scmp.ne.s32.totalorder %s1092_s14, 4 }
  0x32   : > { %957 = vmatprep.subr.bf16.mxu0 %v1046_v17  ;;  %989 = vmatprep.subr.bf16.mxu1 %v1046_v17  ;;  %v1049_v20 = vld [vmem:[%s1191_s7 + $0x20] sm:$0xff]   ;;  %v1050_v23 = vld [vmem:[%s1191_s7 + $0x18] sm:$0xff]   ;;  %v1051_v24 = vld [vmem:[%s1191_s7 + $0x10] sm:$0xff]  }
  0x33   : > { %958 = vmatpush3.bf16.msra.mxu0 %v1046_v17  ;;  %997 = vmatpush3.bf16.msra.mxu1 %v1046_v17  ;;  %v1054_v21 = vld [vmem:[%s1193_s8] sm:$0xff]   ;;  %v1052_v25 = vld [vmem:[%s1191_s7 + $0x8] sm:$0xff]   ;;  %v1058_v29 = vld [vmem:[%s1193_s8 + $0x10] sm:$0xff]  }
  0x34   : > { %959 = vmatprep.subr.bf16.mxu0 %v1047_v18  ;;  %990 = vmatprep.subr.bf16.mxu1 %v1047_v18  ;;  %v1055_v22 = vld [vmem:[%s1193_s8 + $0x20] sm:$0xff]   ;;  %v1056_v27 = vld [vmem:[%s1193_s8 + $0x8] sm:$0xff]   ;;  %v1059_v30 = vld [vmem:[%s1193_s8 + $0x30] sm:$0xff]  }
  0x35   : > { %973 = vmatprep.mubr.bf16.mxu0 %v1054_v21  ;;  %981 = vmatprep.mubr.bf16.mxu1 %v1055_v22  ;;  %v1053_v26 = vld [vmem:[%s1191_s7] sm:$0xff]   ;;  %v1057_v28 = vld [vmem:[%s1193_s8 + $0x28] sm:$0xff]   ;;  %v1060_v31 = vld [vmem:[%s1193_s8 + $0x18] sm:$0xff]  }
  0x36   : > { %v1061_v32 = vld [vmem:[%s1193_s8 + $0x38] sm:$0xff]   ;;  %v384_v33 = vld [vmem:[%s1490_s2 + $0x10] sm:$0xff]  ;;  %v382_v37 = vld [vmem:[%s1490_s2] sm:$0xff] }
  0x37   : > { %960 = vmatpush3.bf16.msra.mxu0 %v1047_v18  ;;  %998 = vmatpush3.bf16.msra.mxu1 %v1047_v18  ;;  %v392_v34 = vld [vmem:[%s1490_s2 + $0x50] sm:$0xff]  ;;  %v390_v38 = vld [vmem:[%s1490_s2 + $0x40] sm:$0xff]  ;;  %v385_v43 = vld [vmem:[%s1490_s2 + $0x18] sm:$0xff] }
  0x38   : > { %961 = vmatprep.subr.bf16.mxu0 %v1048_v19  ;;  %991 = vmatprep.subr.bf16.mxu1 %v1048_v19  ;;  %v393_v44 = vld [vmem:[%s1490_s2 + $0x58] sm:$0xff]  ;;  %v383_v49 = vld [vmem:[%s1490_s2 + $0x8] sm:$0xff]  ;;  %v388_v55 = vld [vmem:[%s1490_s2 + $0x30] sm:$0xff] }
  0x39   : > { %v391_v50 = vld [vmem:[%s1490_s2 + $0x48] sm:$0xff]  ;;  %v396_v56 = vld [vmem:[%s1490_s2 + $0x70] sm:$0xff]  ;;  %v386_v61 = vld [vmem:[%s1490_s2 + $0x20] sm:$0xff] }
  0x3a   : > { %v394_v62 = vld [vmem:[%s1490_s2 + $0x60] sm:$0xff]  ;;  %v389_v3 = vld [vmem:[%s1490_s2 + $0x38] sm:$0xff]  ;;  %v387_v9 = vld [vmem:[%s1490_s2 + $0x28] sm:$0xff] }
  0x3b   : > { %962 = vmatpush3.bf16.msra.mxu0 %v1048_v19  ;;  %999 = vmatpush3.bf16.msra.mxu1 %v1048_v19  ;;  %v397_v4 = vld [vmem:[%s1490_s2 + $0x78] sm:$0xff]  ;;  %v395_v10 = vld [vmem:[%s1490_s2 + $0x68] sm:$0xff] }
  0x3c   : > { %963 = vmatprep.subr.bf16.mxu0 %v1049_v20  ;;  %992 = vmatprep.subr.bf16.mxu1 %v1049_v20 }
  0x3f   : > { %964 = vmatpush3.bf16.msra.mxu0 %v1049_v20  ;;  %1000 = vmatpush3.bf16.msra.mxu1 %v1049_v20 }
  0x40   : > { %965 = vmatprep.subr.bf16.mxu0 %v1050_v23  ;;  %993 = vmatprep.subr.bf16.mxu1 %v1050_v23 }
  0x43   : > { %966 = vmatpush3.bf16.msra.mxu0 %v1050_v23  ;;  %1001 = vmatpush3.bf16.msra.mxu1 %v1050_v23 }
  0x44   : > { %967 = vmatprep.subr.bf16.mxu0 %v1051_v24  ;;  %994 = vmatprep.subr.bf16.mxu1 %v1051_v24 }
  0x47   : > { %968 = vmatpush3.bf16.msra.mxu0 %v1051_v24  ;;  %1002 = vmatpush3.bf16.msra.mxu1 %v1051_v24 }
  0x48   : > { %969 = vmatprep.subr.bf16.mxu0 %v1052_v25  ;;  %995 = vmatprep.subr.bf16.mxu1 %v1052_v25 }
  0x4b   : > { %970 = vmatpush3.bf16.msra.mxu0 %v1052_v25  ;;  %1003 = vmatpush3.bf16.msra.mxu1 %v1052_v25 }
  0x4c   : > { %971 = vmatprep.subr.bf16.mxu0 %v1053_v26  ;;  %996 = vmatprep.subr.bf16.mxu1 %v1053_v26 }
  0x4f   : > { %972 = vmatpush3.bf16.msra.mxu0 %v1053_v26  ;;  %1004 = vmatpush3.bf16.msra.mxu1 %v1053_v26 }
  0x52   : > { %974 = vmatmul.mubr.bf16.vlgmr.msra.gmra.mxu0 %v1056_v27  ;;  %982 = vmatmul.mubr.bf16.vlgmr.msra.gmra.mxu1 %v1057_v28 }
  0x53   : > { %977 = vmatprep.mubr.bf16.mxu0 %v1058_v29  ;;  %985 = vmatprep.mubr.bf16.mxu1 %v1059_v30 }
  0x5a   : > { %978 = vmatmul.mubr.bf16.gmra.mxu0 %v1060_v31  ;;  %986 = vmatmul.mubr.bf16.gmra.mxu1 %v1061_v32 }
 0x112   : > { %v975_v35 = vpop.f32.mrf.mxu0  ;;  %v983_v36 = vpop.f32.mrf.mxu1 }
 0x113   : > { %v625_v39 = vadd.f32 %v975_v35, %v384_v33  ;;  %v633_v40 = vadd.f32 %v983_v36, %v392_v34 }
 0x114   : > { %v560_v41 = vpop.f32.mrf.mxu0  ;;  %v592_v42 = vpop.f32.mrf.mxu1 }
 0x115   : > { %642 = vst.msk [vmem:[%s1490_s2 + $0x10] sm:$0xff] %vm639_vm1, %v625_v39  ;;  %650 = vst.msk [vmem:[%s1490_s2 + $0x50] sm:$0xff] %vm639_vm1, %v633_v40  ;;  %v623_v45 = vadd.f32 %v560_v41, %v382_v37  ;;  %v631_v46 = vadd.f32 %v592_v42, %v390_v38 }
 0x116   : > { %v976_v47 = vpop.f32.mrf.mxu0  ;;  %v984_v48 = vpop.f32.mrf.mxu1 }
 0x117   : > { %640 = vst.msk [vmem:[%s1490_s2] sm:$0xff] %vm639_vm1, %v623_v45  ;;  %648 = vst.msk [vmem:[%s1490_s2 + $0x40] sm:$0xff] %vm639_vm1, %v631_v46  ;;  %v626_v51 = vadd.f32 %v976_v47, %v385_v43  ;;  %v634_v52 = vadd.f32 %v984_v48, %v393_v44 }
 0x118   : > { %v563_v53 = vpop.f32.mrf.mxu0  ;;  %v595_v54 = vpop.f32.mrf.mxu1 }
 0x119   : > { %643 = vst.msk [vmem:[%s1490_s2 + $0x18] sm:$0xff] %vm639_vm1, %v626_v51  ;;  %651 = vst.msk [vmem:[%s1490_s2 + $0x58] sm:$0xff] %vm639_vm1, %v634_v52  ;;  %v624_v57 = vadd.f32 %v563_v53, %v383_v49  ;;  %v632_v58 = vadd.f32 %v595_v54, %v391_v50 }
 0x11a   : > { %v979_v59 = vpop.f32.mrf.mxu0  ;;  %v987_v60 = vpop.f32.mrf.mxu1 }
 0x11b   : > { %641 = vst.msk [vmem:[%s1490_s2 + $0x8] sm:$0xff] %vm639_vm1, %v624_v57  ;;  %649 = vst.msk [vmem:[%s1490_s2 + $0x48] sm:$0xff] %vm639_vm1, %v632_v58  ;;  %v629_v63 = vadd.f32 %v979_v59, %v388_v55  ;;  %v637_v0 = vadd.f32 %v987_v60, %v396_v56 }
 0x11c   : > { %v576_v1 = vpop.f32.mrf.mxu0  ;;  %v608_v2 = vpop.f32.mrf.mxu1 }
 0x11d   : > { %646 = vst.msk [vmem:[%s1490_s2 + $0x30] sm:$0xff] %vm639_vm1, %v629_v63  ;;  %654 = vst.msk [vmem:[%s1490_s2 + $0x70] sm:$0xff] %vm639_vm1, %v637_v0  ;;  %v627_v5 = vadd.f32 %v576_v1, %v386_v61  ;;  %v635_v6 = vadd.f32 %v608_v2, %v394_v62 }
 0x11e   : > { %v980_v7 = vpop.f32.mrf.mxu0  ;;  %v988_v8 = vpop.f32.mrf.mxu1 }
 0x11f   : > { %644 = vst.msk [vmem:[%s1490_s2 + $0x20] sm:$0xff] %vm639_vm1, %v627_v5  ;;  %652 = vst.msk [vmem:[%s1490_s2 + $0x60] sm:$0xff] %vm639_vm1, %v635_v6  ;;  %v630_v11 = vadd.f32 %v980_v7, %v389_v3  ;;  %v638_v12 = vadd.f32 %v988_v8, %v397_v4  ;;  %659 = sbr.rel (%p935_p11) target bundleno = 342 (0x156), region = 77 }
 0x120   : > { %v579_v13 = vpop.f32.mrf.mxu0  ;;  %v611_v14 = vpop.f32.mrf.mxu1 }
 0x121   : > { %647 = vst.msk [vmem:[%s1490_s2 + $0x38] sm:$0xff] %vm639_vm1, %v630_v11  ;;  %655 = vst.msk [vmem:[%s1490_s2 + $0x78] sm:$0xff] %vm639_vm1, %v638_v12  ;;  %v628_v15 = vadd.f32 %v579_v13, %v387_v9  ;;  %v636_v16 = vadd.f32 %v611_v14, %v395_v10 }
 0x123   : > { %645 = vst.msk [vmem:[%s1490_s2 + $0x28] sm:$0xff] %vm639_vm1, %v628_v15  ;;  %653 = vst.msk [vmem:[%s1490_s2 + $0x68] sm:$0xff] %vm639_vm1, %v636_v16 }
 0x124   : > { %v660_v17 = vld [vmem:[%s1490_s2] sm:$0xff]  ;;  %v661_v18 = vld [vmem:[%s1490_s2 + $0x8] sm:$0xff]  ;;  %v662_v19 = vld [vmem:[%s1490_s2 + $0x10] sm:$0xff] }
 0x125   : > { %v676_v20 = vsel %vm639_vm1, %v660_v17, 0.0  ;;  %v677_v21 = vsel %vm639_vm1, %v661_v18, 0.0  ;;  %v679_v22 = vsel %vm639_vm1, %v662_v19, 0.0  ;;  %v663_v23 = vld [vmem:[%s1490_s2 + $0x18] sm:$0xff]  ;;  %v713_v31 = vmul.f32 %v660_v17, %v660_v17  ;;  %v666_v35 = vld [vmem:[%s1490_s2 + $0x30] sm:$0xff]  ;;  %v668_v47 = vld [vmem:[%s1490_s2 + $0x40] sm:$0xff] }
 0x126   : > { %v678_v24 = vadd.f32 %v677_v21, %v676_v20  ;;  %v681_v25 = vsel %vm639_vm1, %v663_v23, 0.0  ;;  %v664_v26 = vld [vmem:[%s1490_s2 + $0x20] sm:$0xff]  ;;  %v714_v32 = vmul.f32 %v661_v18, %v661_v18  ;;  %v715_v33 = vmul.f32 %v662_v19, %v662_v19  ;;  %v669_v53 = vld [vmem:[%s1490_s2 + $0x48] sm:$0xff]  ;;  %v670_v59 = vld [vmem:[%s1490_s2 + $0x50] sm:$0xff] }
 0x127   : > { %v683_v28 = vsel %vm639_vm1, %v664_v26, 0.0  ;;  %v716_v37 = vmul.f32 %v663_v23, %v663_v23  ;;  %v687_v38 = vsel %vm639_vm1, %v666_v35, 0.0  ;;  %v717_v39 = vmul.f32 %v664_v26, %v664_v26  ;;  %v671_v1 = vld [vmem:[%s1490_s2 + $0x58] sm:$0xff]  ;;  %v672_v7 = vld [vmem:[%s1490_s2 + $0x60] sm:$0xff]  ;;  %v674_v19 = vld [vmem:[%s1490_s2 + $0x70] sm:$0xff] }
 0x128   : > { %v680_v27 = vadd.f32 %v679_v22, %v678_v24  ;;  %v667_v40 = vld [vmem:[%s1490_s2 + $0x38] sm:$0xff]  ;;  %v729_v42 = vsel %vm639_vm1, %v713_v31, 0.0  ;;  %v730_v43 = vsel %vm639_vm1, %v714_v32, 0.0  ;;  %v732_v44 = vsel %vm639_vm1, %v715_v33, 0.0 }
 0x129   : > { %v689_v45 = vsel %vm639_vm1, %v667_v40, 0.0  ;;  %v731_v46 = vadd.f32 %v730_v43, %v729_v42  ;;  %v734_v50 = vsel %vm639_vm1, %v716_v37, 0.0  ;;  %v691_v51 = vsel %vm639_vm1, %v668_v47, 0.0 }
 0x12a   : > { %v665_v29 = vld [vmem:[%s1490_s2 + $0x28] sm:$0xff]  ;;  %v682_v30 = vadd.f32 %v681_v25, %v680_v27  ;;  %v719_v55 = vmul.f32 %v666_v35, %v666_v35  ;;  %v736_v56 = vsel %vm639_vm1, %v717_v39, 0.0  ;;  %v693_v57 = vsel %vm639_vm1, %v669_v53, 0.0  ;;  %v675_v25 = vld [vmem:[%s1490_s2 + $0x78] sm:$0xff] }
 0x12b   : > { %v685_v34 = vsel %vm639_vm1, %v665_v29, 0.0  ;;  %v718_v49 = vmul.f32 %v665_v29, %v665_v29  ;;  %v733_v52 = vadd.f32 %v732_v44, %v731_v46  ;;  %v720_v61 = vmul.f32 %v667_v40, %v667_v40  ;;  %v673_v13 = vld [vmem:[%s1490_s2 + $0x68] sm:$0xff] }
 0x12c   : > { %v684_v36 = vadd.f32 %v683_v28, %v682_v30  ;;  %v695_v63 = vsel %vm639_vm1, %v670_v59, 0.0  ;;  %v721_v3 = vmul.f32 %v668_v47, %v668_v47  ;;  %v740_v4 = vsel %vm639_vm1, %v719_v55, 0.0 }
 0x12d   : > { %v735_v58 = vadd.f32 %v734_v50, %v733_v52  ;;  %v738_v62 = vsel %vm639_vm1, %v718_v49, 0.0  ;;  %v697_v5 = vsel %vm639_vm1, %v671_v1, 0.0  ;;  %v722_v9 = vmul.f32 %v669_v53, %v669_v53 }
 0x12e   : > { %v686_v41 = vadd.f32 %v685_v34, %v684_v36  ;;  %v742_v10 = vsel %vm639_vm1, %v720_v61, 0.0  ;;  %v699_v11 = vsel %vm639_vm1, %v672_v7, 0.0  ;;  %v723_v15 = vmul.f32 %v670_v59, %v670_v59 }
 0x12f   : > { %v737_v0 = vadd.f32 %v736_v56, %v735_v58  ;;  %v744_v16 = vsel %vm639_vm1, %v721_v3, 0.0  ;;  %v701_v17 = vsel %vm639_vm1, %v673_v13, 0.0  ;;  %v724_v21 = vmul.f32 %v671_v1, %v671_v1 }
 0x130   : > { %v688_v48 = vadd.f32 %v687_v38, %v686_v41  ;;  %v746_v22 = vsel %vm639_vm1, %v722_v9, 0.0  ;;  %v703_v23 = vsel %vm639_vm1, %v674_v19, 0.0  ;;  %v725_v27 = vmul.f32 %v672_v7, %v672_v7 }
 0x131   : > { %v739_v6 = vadd.f32 %v738_v62, %v737_v0  ;;  %v748_v28 = vsel %vm639_vm1, %v723_v15, 0.0  ;;  %v705_v29 = vsel %vm639_vm1, %v675_v25, 0.0  ;;  %v726_v32 = vmul.f32 %v673_v13, %v673_v13 }
 0x132   : > { %v690_v54 = vadd.f32 %v689_v45, %v688_v48  ;;  %v750_v33 = vsel %vm639_vm1, %v724_v21, 0.0  ;;  %v727_v36 = vmul.f32 %v674_v19, %v674_v19  ;;  %v752_v37 = vsel %vm639_vm1, %v725_v27, 0.0 }
 0x133   : > { %v741_v12 = vadd.f32 %v740_v4, %v739_v6  ;;  %v728_v40 = vmul.f32 %v675_v25, %v675_v25  ;;  %v754_v41 = vsel %vm639_vm1, %v726_v32, 0.0  ;;  %v766_v52 = vlaneseq }
 0x134   : > { %v692_v60 = vadd.f32 %v691_v51, %v690_v54  ;;  %v756_v44 = vsel %vm639_vm1, %v727_v36, 0.0 }
 0x135   : > { %v743_v18 = vadd.f32 %v742_v10, %v741_v12  ;;  %v758_v46 = vsel %vm639_vm1, %v728_v40, 0.0  ;;  %v767_v56 = vshrl.u32 %v766_v52, 7 }
 0x136   : > { %v694_v2 = vadd.f32 %v693_v57, %v692_v60 }
 0x137   : > { %v745_v24 = vadd.f32 %v744_v16, %v743_v18  ;;  %vm769_vm2 = vcmp.eq.s32.totalorder %v767_v56, 1  ;;  %vm768_vm3 = vcmp.eq.s32.totalorder %v767_v56, 0 }
 0x138   : > { %v696_v8 = vadd.f32 %v695_v63, %v694_v2 }
 0x139   : > { %v747_v30 = vadd.f32 %v746_v22, %v745_v24 }
 0x13a   : > { %v698_v14 = vadd.f32 %v697_v5, %v696_v8 }
 0x13b   : > { %v749_v34 = vadd.f32 %v748_v28, %v747_v30 }
 0x13c   : > { %v700_v20 = vadd.f32 %v699_v11, %v698_v14 }
 0x13d   : > { %v751_v38 = vadd.f32 %v750_v33, %v749_v34 }
 0x13e   : > { %v702_v26 = vadd.f32 %v701_v17, %v700_v20 }
 0x13f   : > { %v753_v42 = vadd.f32 %v752_v37, %v751_v38 }
 0x140   : > { %v704_v31 = vadd.f32 %v703_v23, %v702_v26 }
 0x141   : > { %v755_v45 = vadd.f32 %v754_v41, %v753_v42 }
 0x142   : > { %v706_v35 = vadd.f32 %v705_v29, %v704_v31 }
 0x143   : > { %v757_v47 = vadd.f32 %v756_v44, %v755_v45 }
 0x144   : > { %v707_v39 = vrot.slane %v706_v35, 4 }
 0x145   : > { %v759_v49 = vadd.f32 %v758_v46, %v757_v47 }
 0x146   : > { %v708_v43 = vadd.f32 %v707_v39, %v706_v35 }
 0x147   : > { %v760_v50 = vrot.slane %v759_v49, 4 }
 0x148   : > { %v709_v48 = vrot.slane %v708_v43, 2 }
 0x149   : > { %v761_v53 = vadd.f32 %v760_v50, %v759_v49 }
 0x14a   : > { %v710_v51 = vadd.f32 %v709_v48, %v708_v43 }
 0x14b   : > { %v762_v54 = vrot.slane %v761_v53, 2 }
 0x14c   : > { %v711_v55 = vrot.slane %v710_v51, 1 }
 0x14d   : > { %v763_v57 = vadd.f32 %v762_v54, %v761_v53 }
 0x14e   : > { %v712_v59 = vadd.f32 %v711_v55, %v710_v51 }
 0x14f   : > { %v764_v58 = vrot.slane %v763_v57, 1 }
 0x151   : > { %v765_v60 = vadd.f32 %v764_v58, %v763_v57 }
 0x153   : > { %v770_v61 = vsel %vm769_vm2, %v765_v60, 0.0 }
 0x154   : > { %v771_v62 = vsel %vm768_vm3, %v712_v59, %v770_v61 }
 0x155   : > { %772 = vst.msk [vmem:[%s1491_s3] sm:$0xff] %vm639_vm1, %v771_v62 }
 0x156 PF: > { %s14_s16 = sadd.s32 1, %s1100_s16   ;;  %s1492_s12 = smov %s1088_s13 }
 0x157   : > { %p11_p12 = scmp.ge.s32.totalorder %s14_s16, 7   ;;  %s1493_s13 = smov %s1158_s20 }
 0x158   : > { %s1494_s14 = smov %s1096_s15  ;;  %s1495_s15 = smov %s1497_s17 }
 0x159   :  { %13 = sbr.rel (!%p11_p12) target bundleno = 3 (0x3), region = 127 }

// kernel: attribute_cnn_forward.44
= control target key start
LH: loop header
LB: loop body
LE: loop exit
PB: predicated region body
PF: predicated region fallthrough
CT: control target
= control target key end

     0   :  { %vm156_vm0 = vcmask 519168   ;;  %s385_s0 = inlined_call_operand.vmem [shape: f32[128,64], index: 0, kind: input, shape index: {}]   ;;  %s386_s1 = inlined_call_operand.vmem [shape: f32[1,64], index: 1, kind: input, shape index: {}]   ;;  %s387_s2 = inlined_call_operand.vmem [shape: f32[1,64], index: 2, kind: input, shape index: {}]   ;;  %s388_s3 = inlined_call_operand.vmem [shape: bf16[128,64], index: 3, kind: output, shape index: {}]  }
   0x1   :  { %v14_v0 = vld [vmem:[%s385_s0] sm:$0xff]  ;;  %v15_v4 = vld [vmem:[%s385_s0 + $0x8] sm:$0xff]  ;;  %v16_v5 = vld [vmem:[%s385_s0 + $0x10] sm:$0xff] }
   0x2   :  { %v237_v1 = vld [vmem:[%s386_s1] ss:$0 sm:$0xff]  ;;  %v17_v6 = vld [vmem:[%s385_s0 + $0x18] sm:$0xff]  ;;  %v19_v11 = vld [vmem:[%s385_s0 + $0x28] sm:$0xff] }
   0x3   :  { %v242_v2 = vld [vmem:[%s387_s2] ss:$0 sm:$0xff]  ;;  %v37_v3 = vmul.f32 %v237_v1, %v14_v0  ;;  %v38_v7 = vmul.f32 %v237_v1, %v15_v4  ;;  %v39_v8 = vmul.f32 %v237_v1, %v16_v5  ;;  %v40_v9 = vmul.f32 %v237_v1, %v17_v6  ;;  %v20_v12 = vld [vmem:[%s385_s0 + $0x30] sm:$0xff]  ;;  %v21_v17 = vld [vmem:[%s385_s0 + $0x38] sm:$0xff] }
   0x4   :  { %v18_v10 = vld [vmem:[%s385_s0 + $0x20] sm:$0xff]  ;;  %v42_v15 = vmul.f32 %v237_v1, %v19_v11  ;;  %v43_v16 = vmul.f32 %v237_v1, %v20_v12  ;;  %v44_v21 = vmul.f32 %v237_v1, %v21_v17  ;;  %v23_v35 = vld [vmem:[%s385_s0 + $0x48] sm:$0xff]  ;;  %v24_v36 = vld [vmem:[%s385_s0 + $0x50] sm:$0xff] }
   0x5   :  { %v60_v13 = vadd.f32 %v242_v2, %v37_v3  ;;  %v41_v14 = vmul.f32 %v237_v1, %v18_v10  ;;  %v61_v18 = vadd.f32 %v242_v2, %v38_v7  ;;  %v62_v19 = vadd.f32 %v242_v2, %v39_v8  ;;  %v22_v30 = vld [vmem:[%s385_s0 + $0x40] sm:$0xff]  ;;  %v25_v37 = vld [vmem:[%s385_s0 + $0x58] sm:$0xff]  ;;  %v27_v43 = vld [vmem:[%s385_s0 + $0x68] sm:$0xff] }
   0x6   :  { %v63_v20 = vadd.f32 %v242_v2, %v40_v9  ;;  %v65_v24 = vadd.f32 %v242_v2, %v42_v15  ;;  %v66_v25 = vadd.f32 %v242_v2, %v43_v16  ;;  %v67_v29 = vadd.f32 %v242_v2, %v44_v21  ;;  %v26_v42 = vld [vmem:[%s385_s0 + $0x60] sm:$0xff]  ;;  %v28_v44 = vld [vmem:[%s385_s0 + $0x70] sm:$0xff]  ;;  %v29_v49 = vld [vmem:[%s385_s0 + $0x78] sm:$0xff] }
   0x7   :  { %v76_v22 = vmax.f32 %v60_v13, 0.0  ;;  %v64_v23 = vadd.f32 %v242_v2, %v41_v14  ;;  %v77_v26 = vmax.f32 %v61_v18, 0.0  ;;  %v78_v27 = vmax.f32 %v62_v19, 0.0 }
   0x8   :  { %v79_v28 = vmax.f32 %v63_v20, 0.0  ;;  %v81_v33 = vmax.f32 %v65_v24, 0.0  ;;  %v82_v34 = vmax.f32 %v66_v25, 0.0  ;;  %v83_v41 = vmax.f32 %v67_v29, 0.0 }
   0x9   :  { %v195_v31 = vpack.c.bf16 %v76_v22, %v76_v22  ;;  %v80_v32 = vmax.f32 %v64_v23, 0.0  ;;  %v196_v38 = vpack.c.bf16 %v77_v26, %v77_v26  ;;  %v197_v39 = vpack.c.bf16 %v78_v27, %v78_v27 }
   0xa   :  { %v198_v40 = vpack.c.bf16 %v79_v28, %v79_v28  ;;  %v200_v46 = vpack.c.bf16 %v81_v33, %v81_v33  ;;  %v201_v47 = vpack.c.bf16 %v82_v34, %v82_v34  ;;  %v45_v48 = vmul.f32 %v237_v1, %v22_v30 }
   0xb   :  { %157 = vst.msk [vmem:[%s388_s3] sm:$0xf] %vm156_vm0, %v195_v31  ;;  %v199_v45 = vpack.c.bf16 %v80_v32, %v80_v32  ;;  %158 = vst.msk [vmem:[%s388_s3 + $0x4] sm:$0xf] %vm156_vm0, %v196_v38  ;;  %v202_v50 = vpack.c.bf16 %v83_v41, %v83_v41  ;;  %v46_v51 = vmul.f32 %v237_v1, %v23_v35 }
   0xc   :  { %159 = vst.msk [vmem:[%s388_s3 + $0x8] sm:$0xf] %vm156_vm0, %v197_v39  ;;  %160 = vst.msk [vmem:[%s388_s3 + $0xc] sm:$0xf] %vm156_vm0, %v198_v40  ;;  %v47_v52 = vmul.f32 %v237_v1, %v24_v36  ;;  %v48_v53 = vmul.f32 %v237_v1, %v25_v37  ;;  %v68_v54 = vadd.f32 %v242_v2, %v45_v48 }
   0xd   :  { %161 = vst.msk [vmem:[%s388_s3 + $0x10] sm:$0xf] %vm156_vm0, %v199_v45  ;;  %162 = vst.msk [vmem:[%s388_s3 + $0x14] sm:$0xf] %vm156_vm0, %v200_v46  ;;  %v49_v55 = vmul.f32 %v237_v1, %v26_v42  ;;  %v50_v56 = vmul.f32 %v237_v1, %v27_v43  ;;  %v51_v57 = vmul.f32 %v237_v1, %v28_v44 }
   0xe   :  { %163 = vst.msk [vmem:[%s388_s3 + $0x18] sm:$0xf] %vm156_vm0, %v201_v47  ;;  %164 = vst.msk [vmem:[%s388_s3 + $0x1c] sm:$0xf] %vm156_vm0, %v202_v50  ;;  %v69_v58 = vadd.f32 %v242_v2, %v46_v51  ;;  %v70_v59 = vadd.f32 %v242_v2, %v47_v52  ;;  %v71_v60 = vadd.f32 %v242_v2, %v48_v53  ;;  %v84_v62 = vmax.f32 %v68_v54, 0.0 }
   0xf   :  { %v52_v61 = vmul.f32 %v237_v1, %v29_v49  ;;  %v72_v63 = vadd.f32 %v242_v2, %v49_v55  ;;  %v73_v0 = vadd.f32 %v242_v2, %v50_v56  ;;  %v74_v3 = vadd.f32 %v242_v2, %v51_v57 }
  0x10   :  { %v85_v4 = vmax.f32 %v69_v58, 0.0  ;;  %v86_v5 = vmax.f32 %v70_v59, 0.0  ;;  %v87_v6 = vmax.f32 %v71_v60, 0.0  ;;  %v203_v8 = vpack.c.bf16 %v84_v62, %v84_v62 }
  0x11   :  { %v75_v7 = vadd.f32 %v242_v2, %v52_v61  ;;  %v88_v9 = vmax.f32 %v72_v63, 0.0  ;;  %v89_v10 = vmax.f32 %v73_v0, 0.0  ;;  %v90_v11 = vmax.f32 %v74_v3, 0.0 }
  0x12   :  { %v204_v12 = vpack.c.bf16 %v85_v4, %v85_v4  ;;  %v205_v13 = vpack.c.bf16 %v86_v5, %v86_v5  ;;  %v206_v14 = vpack.c.bf16 %v87_v6, %v87_v6  ;;  %165 = vst.msk [vmem:[%s388_s3 + $0x20] sm:$0xf] %vm156_vm0, %v203_v8 }
  0x13   :  { %v91_v1 = vmax.f32 %v75_v7, 0.0  ;;  %v207_v15 = vpack.c.bf16 %v88_v9, %v88_v9  ;;  %v208_v16 = vpack.c.bf16 %v89_v10, %v89_v10  ;;  %v209_v17 = vpack.c.bf16 %v90_v11, %v90_v11 }
  0x14   :  { %166 = vst.msk [vmem:[%s388_s3 + $0x24] sm:$0xf] %vm156_vm0, %v204_v12  ;;  %167 = vst.msk [vmem:[%s388_s3 + $0x28] sm:$0xf] %vm156_vm0, %v205_v13 }
  0x15   :  { %168 = vst.msk [vmem:[%s388_s3 + $0x2c] sm:$0xf] %vm156_vm0, %v206_v14  ;;  %v210_v2 = vpack.c.bf16 %v91_v1, %v91_v1  ;;  %169 = vst.msk [vmem:[%s388_s3 + $0x30] sm:$0xf] %vm156_vm0, %v207_v15 }
  0x16   :  { %170 = vst.msk [vmem:[%s388_s3 + $0x34] sm:$0xf] %vm156_vm0, %v208_v16  ;;  %171 = vst.msk [vmem:[%s388_s3 + $0x38] sm:$0xf] %vm156_vm0, %v209_v17 }
  0x17   :  { %172 = vst.msk [vmem:[%s388_s3 + $0x3c] sm:$0xf] %vm156_vm0, %v210_v2 }

// kernel: attribute_cnn_forward.46
= control target key start
LH: loop header
LB: loop body
LE: loop exit
PB: predicated region body
PF: predicated region fallthrough
CT: control target
= control target key end

     0   :  { %vm207_vm0 = vcmask 519168   ;;  %s504_s0 = inlined_call_operand.vmem [shape: f32[128,64], index: 0, kind: input, shape index: {}]   ;;  %s505_s1 = inlined_call_operand.vmem [shape: f32[1,64], index: 1, kind: input, shape index: {}]   ;;  %s506_s2 = inlined_call_operand.vmem [shape: f32[1,64], index: 2, kind: input, shape index: {}]   ;;  %s507_s3 = inlined_call_operand.vmem [shape: bf16[128,64], index: 3, kind: input, shape index: {}]   ;;  %s508_s4 = inlined_call_operand.vmem [shape: bf16[128,64], index: 4, kind: output, shape index: {}]  }
   0x1   :  { %v17_v0 = vld [vmem:[%s504_s0] sm:$0xff]  ;;  %v18_v5 = vld [vmem:[%s504_s0 + $0x8] sm:$0xff]  ;;  %v19_v6 = vld [vmem:[%s504_s0 + $0x10] sm:$0xff] }
   0x2   :  { %v332_v1 = vld [vmem:[%s505_s1] ss:$0 sm:$0xff]  ;;  %v294_v11 = vld [vmem:[%s507_s3 + $0x8] sm:$0xff]   ;;  %v20_v12 = vld [vmem:[%s504_s0 + $0x18] sm:$0xff] }
   0x3   :  { %v337_v2 = vld [vmem:[%s506_s2] ss:$0 sm:$0xff]  ;;  %v40_v3 = vmul.f32 %v332_v1, %v17_v0  ;;  %v41_v8 = vmul.f32 %v332_v1, %v18_v5  ;;  %v42_v10 = vmul.f32 %v332_v1, %v19_v6  ;;  %v268_v15 = vunpack.c.l.bf16 %v294_v11  ;;  %v295_v18 = vld [vmem:[%s507_s3 + $0x10] sm:$0xff]   ;;  %v22_v19 = vld [vmem:[%s504_s0 + $0x28] sm:$0xff] }
   0x4   :  { %v263_v4 = vld [vmem:[%s507_s3] sm:$0xff]   ;;  %v43_v16 = vmul.f32 %v332_v1, %v20_v12  ;;  %v269_v17 = vunpack.c.h.bf16 %v294_v11  ;;  %v23_v20 = vld [vmem:[%s504_s0 + $0x30] sm:$0xff]  ;;  %v272_v24 = vunpack.c.l.bf16 %v295_v18  ;;  %v296_v25 = vld [vmem:[%s507_s3 + $0x18] sm:$0xff]   ;;  %v45_v28 = vmul.f32 %v332_v1, %v22_v19 }
   0x5   :  { %v264_v7 = vunpack.c.l.bf16 %v263_v4  ;;  %v265_v9 = vunpack.c.h.bf16 %v263_v4  ;;  %v21_v13 = vld [vmem:[%s504_s0 + $0x20] sm:$0xff]  ;;  %v63_v14 = vadd.f32 %v337_v2, %v40_v3  ;;  %v64_v21 = vadd.f32 %v337_v2, %v41_v8  ;;  %v24_v34 = vld [vmem:[%s504_s0 + $0x38] sm:$0xff]  ;;  %v26_v53 = vld [vmem:[%s504_s0 + $0x48] sm:$0xff] }
   0x6   :  { %v65_v22 = vadd.f32 %v337_v2, %v42_v10  ;;  %v44_v23 = vmul.f32 %v332_v1, %v21_v13  ;;  %v66_v27 = vadd.f32 %v337_v2, %v43_v16  ;;  %v273_v29 = vunpack.c.h.bf16 %v295_v18  ;;  %v25_v47 = vld [vmem:[%s504_s0 + $0x40] sm:$0xff]  ;;  %v27_v58 = vld [vmem:[%s504_s0 + $0x50] sm:$0xff]  ;;  %v298_v59 = vld [vmem:[%s507_s3 + $0x28] sm:$0xff]  }
   0x7   :  { %v111_v26 = vadd.f32 %v264_v7, %v63_v14  ;;  %v112_v30 = vadd.f32 %v265_v9, %v64_v21  ;;  %v46_v33 = vmul.f32 %v332_v1, %v23_v20  ;;  %v68_v37 = vadd.f32 %v337_v2, %v45_v28  ;;  %v297_v48 = vld [vmem:[%s507_s3 + $0x20] sm:$0xff]   ;;  %v28_v0 = vld [vmem:[%s504_s0 + $0x58] sm:$0xff]  ;;  %v299_v8 = vld [vmem:[%s507_s3 + $0x30] sm:$0xff]  }
   0x8   :  { %v113_v31 = vadd.f32 %v268_v15, %v65_v22  ;;  %v67_v32 = vadd.f32 %v337_v2, %v44_v23  ;;  %v114_v36 = vadd.f32 %v269_v17, %v66_v27  ;;  %v276_v38 = vunpack.c.l.bf16 %v296_v25  ;;  %v29_v7 = vld [vmem:[%s504_s0 + $0x60] sm:$0xff]  ;;  %v30_v13 = vld [vmem:[%s504_s0 + $0x68] sm:$0xff]  ;;  %v31_v22 = vld [vmem:[%s504_s0 + $0x70] sm:$0xff] }
   0x9   :  { %v127_v35 = vmax.f32 %v111_v26, 0.0  ;;  %v128_v39 = vmax.f32 %v112_v30, 0.0  ;;  %v69_v42 = vadd.f32 %v337_v2, %v46_v33  ;;  %v116_v45 = vadd.f32 %v273_v29, %v68_v37  ;;  %v300_v27 = vld [vmem:[%s507_s3 + $0x38] sm:$0xff]  }
   0xa   :  { %v129_v40 = vmax.f32 %v113_v31, 0.0  ;;  %v115_v41 = vadd.f32 %v272_v24, %v67_v32  ;;  %v130_v44 = vmax.f32 %v114_v36, 0.0  ;;  %v47_v46 = vmul.f32 %v332_v1, %v24_v34  ;;  %v32_v36 = vld [vmem:[%s504_s0 + $0x78] sm:$0xff] }
   0xb   :  { %v246_v43 = vpack.c.bf16 %v127_v35, %v127_v35  ;;  %v247_v49 = vpack.c.bf16 %v128_v39, %v128_v39  ;;  %v117_v52 = vadd.f32 %v276_v38, %v69_v42  ;;  %v132_v55 = vmax.f32 %v116_v45, 0.0 }
   0xc   :  { %v248_v50 = vpack.c.bf16 %v129_v40, %v129_v40  ;;  %v131_v51 = vmax.f32 %v115_v41, 0.0  ;;  %v249_v54 = vpack.c.bf16 %v130_v44, %v130_v44  ;;  %v70_v56 = vadd.f32 %v337_v2, %v47_v46 }
   0xd   :  { %208 = vst.msk [vmem:[%s508_s4] sm:$0xf] %vm207_vm0, %v246_v43  ;;  %v277_v57 = vunpack.c.h.bf16 %v296_v25  ;;  %209 = vst.msk [vmem:[%s508_s4 + $0x4] sm:$0xf] %vm207_vm0, %v247_v49  ;;  %v133_v61 = vmax.f32 %v117_v52, 0.0  ;;  %v48_v62 = vmul.f32 %v332_v1, %v25_v47  ;;  %v280_v63 = vunpack.c.l.bf16 %v297_v48 }
   0xe   :  { %210 = vst.msk [vmem:[%s508_s4 + $0x8] sm:$0xf] %vm207_vm0, %v248_v50  ;;  %v250_v60 = vpack.c.bf16 %v131_v51, %v131_v51  ;;  %211 = vst.msk [vmem:[%s508_s4 + $0xc] sm:$0xf] %vm207_vm0, %v249_v54  ;;  %v251_v3 = vpack.c.bf16 %v132_v55, %v132_v55  ;;  %v49_v5 = vmul.f32 %v332_v1, %v26_v53  ;;  %v281_v6 = vunpack.c.h.bf16 %v297_v48 }
   0xf   :  { %v118_v4 = vadd.f32 %v277_v57, %v70_v56  ;;  %v252_v9 = vpack.c.bf16 %v133_v61, %v133_v61  ;;  %v71_v10 = vadd.f32 %v337_v2, %v48_v62  ;;  %v50_v11 = vmul.f32 %v332_v1, %v27_v58 }
  0x10   :  { %212 = vst.msk [vmem:[%s508_s4 + $0x10] sm:$0xf] %vm207_vm0, %v250_v60  ;;  %v284_v12 = vunpack.c.l.bf16 %v298_v59  ;;  %213 = vst.msk [vmem:[%s508_s4 + $0x14] sm:$0xf] %vm207_vm0, %v251_v3  ;;  %v72_v15 = vadd.f32 %v337_v2, %v49_v5  ;;  %v51_v16 = vmul.f32 %v332_v1, %v28_v0  ;;  %v285_v17 = vunpack.c.h.bf16 %v298_v59 }
  0x11   :  { %v134_v14 = vmax.f32 %v118_v4, 0.0  ;;  %214 = vst.msk [vmem:[%s508_s4 + $0x18] sm:$0xf] %vm207_vm0, %v252_v9  ;;  %v119_v18 = vadd.f32 %v280_v63, %v71_v10  ;;  %v73_v19 = vadd.f32 %v337_v2, %v50_v11  ;;  %v52_v20 = vmul.f32 %v332_v1, %v29_v7 }
  0x12   :  { %v288_v21 = vunpack.c.l.bf16 %v299_v8  ;;  %v120_v24 = vadd.f32 %v281_v6, %v72_v15  ;;  %v74_v25 = vadd.f32 %v337_v2, %v51_v16  ;;  %v53_v26 = vmul.f32 %v332_v1, %v30_v13 }
  0x13   :  { %v253_v23 = vpack.c.bf16 %v134_v14, %v134_v14  ;;  %v135_v28 = vmax.f32 %v119_v18, 0.0  ;;  %v121_v29 = vadd.f32 %v284_v12, %v73_v19  ;;  %v75_v30 = vadd.f32 %v337_v2, %v52_v20 }
  0x14   :  { %v289_v31 = vunpack.c.h.bf16 %v299_v8  ;;  %v136_v32 = vmax.f32 %v120_v24, 0.0  ;;  %v122_v33 = vadd.f32 %v285_v17, %v74_v25  ;;  %v76_v34 = vadd.f32 %v337_v2, %v53_v26 }
  0x15   :  { %215 = vst.msk [vmem:[%s508_s4 + $0x1c] sm:$0xf] %vm207_vm0, %v253_v23  ;;  %v54_v35 = vmul.f32 %v332_v1, %v31_v22  ;;  %v254_v37 = vpack.c.bf16 %v135_v28, %v135_v28  ;;  %v137_v38 = vmax.f32 %v121_v29, 0.0  ;;  %v123_v39 = vadd.f32 %v288_v21, %v75_v30 }
  0x16   :  { %v292_v40 = vunpack.c.l.bf16 %v300_v27  ;;  %v255_v41 = vpack.c.bf16 %v136_v32, %v136_v32  ;;  %v138_v42 = vmax.f32 %v122_v33, 0.0  ;;  %v124_v43 = vadd.f32 %v289_v31, %v76_v34 }
  0x17   :  { %v77_v44 = vadd.f32 %v337_v2, %v54_v35  ;;  %216 = vst.msk [vmem:[%s508_s4 + $0x20] sm:$0xf] %vm207_vm0, %v254_v37  ;;  %v256_v45 = vpack.c.bf16 %v137_v38, %v137_v38  ;;  %v139_v46 = vmax.f32 %v123_v39, 0.0  ;;  %v55_v47 = vmul.f32 %v332_v1, %v32_v36 }
  0x18   :  { %v293_v48 = vunpack.c.h.bf16 %v300_v27  ;;  %217 = vst.msk [vmem:[%s508_s4 + $0x24] sm:$0xf] %vm207_vm0, %v255_v41  ;;  %v257_v49 = vpack.c.bf16 %v138_v42, %v138_v42  ;;  %v140_v50 = vmax.f32 %v124_v43, 0.0 }
  0x19   :  { %v125_v51 = vadd.f32 %v292_v40, %v77_v44  ;;  %218 = vst.msk [vmem:[%s508_s4 + $0x28] sm:$0xf] %vm207_vm0, %v256_v45  ;;  %v258_v52 = vpack.c.bf16 %v139_v46, %v139_v46  ;;  %v78_v53 = vadd.f32 %v337_v2, %v55_v47 }
  0x1a   :  { %219 = vst.msk [vmem:[%s508_s4 + $0x2c] sm:$0xf] %vm207_vm0, %v257_v49  ;;  %v259_v1 = vpack.c.bf16 %v140_v50, %v140_v50 }
  0x1b   :  { %v141_v54 = vmax.f32 %v125_v51, 0.0  ;;  %220 = vst.msk [vmem:[%s508_s4 + $0x30] sm:$0xf] %vm207_vm0, %v258_v52  ;;  %v126_v55 = vadd.f32 %v293_v48, %v78_v53 }
  0x1c   :  { %221 = vst.msk [vmem:[%s508_s4 + $0x34] sm:$0xf] %vm207_vm0, %v259_v1 }
  0x1d   :  { %v260_v56 = vpack.c.bf16 %v141_v54, %v141_v54  ;;  %v142_v2 = vmax.f32 %v126_v55, 0.0 }
  0x1f   :  { %222 = vst.msk [vmem:[%s508_s4 + $0x38] sm:$0xf] %vm207_vm0, %v260_v56  ;;  %v261_v57 = vpack.c.bf16 %v142_v2, %v142_v2 }
  0x21   :  { %223 = vst.msk [vmem:[%s508_s4 + $0x3c] sm:$0xf] %vm207_vm0, %v261_v57 }

// kernel: attribute_cnn_forward.55
= control target key start
LH: loop header
LB: loop body
LE: loop exit
PB: predicated region body
PF: predicated region fallthrough
CT: control target
= control target key end

     0   :  { %s129_s0 = inlined_call_operand.vmem [shape: f32[32,128], index: 0, kind: input, shape index: {}]   ;;  %s130_s1 = inlined_call_operand.vmem [shape: f32[1,128], index: 1, kind: input, shape index: {}]   ;;  %s131_s2 = inlined_call_operand.vmem [shape: f32[1,128], index: 2, kind: input, shape index: {}]   ;;  %s132_s3 = inlined_call_operand.vmem [shape: bf16[32,128], index: 3, kind: output, shape index: {}]  }
   0x1   :  { %v14_v0 = vld [vmem:[%s129_s0] sm:$0xff]  ;;  %v15_v1 = vld [vmem:[%s129_s0 + $0x8] sm:$0xff]  ;;  %v16_v6 = vld [vmem:[%s129_s0 + $0x10] sm:$0xff] }
   0x2   :  { %v64_v2 = vld [vmem:[%s130_s1] ss:$0 sm:$0xff]  ;;  %v17_v7 = vld [vmem:[%s129_s0 + $0x18] sm:$0xff] }
   0x3   :  { %v25_v3 = vmul.f32 %v64_v2, %v14_v0  ;;  %v26_v4 = vmul.f32 %v64_v2, %v15_v1  ;;  %v65_v5 = vld [vmem:[%s131_s2] ss:$0 sm:$0xff]  ;;  %v27_v8 = vmul.f32 %v64_v2, %v16_v6  ;;  %v28_v9 = vmul.f32 %v64_v2, %v17_v7 }
   0x5   :  { %v36_v10 = vadd.f32 %v65_v5, %v25_v3  ;;  %v37_v11 = vadd.f32 %v65_v5, %v26_v4  ;;  %v38_v12 = vadd.f32 %v65_v5, %v27_v8  ;;  %v39_v13 = vadd.f32 %v65_v5, %v28_v9 }
   0x7   :  { %v77_v14 = vpack.c.bf16 %v37_v11, %v36_v10  ;;  %v82_v15 = vpack.c.bf16 %v39_v13, %v38_v12 }
   0x9   :  { %78 = vst [vmem:[%s132_s3] sm:$0xff] %v77_v14   ;;  %84 = vst [vmem:[%s132_s3 + $0x8] sm:$0xff] %v82_v15  }

// kernel: attribute_cnn_forward.54
= control target key start
LH: loop header
LB: loop body
LE: loop exit
PB: predicated region body
PF: predicated region fallthrough
CT: control target
= control target key end

     0   :  { %v192_v27 = vlaneseq  ;;  %s323_s1 = inlined_call_operand.vmem [shape: bf16[128,128], index: 1, kind: input, shape index: {}]   ;;  %s324_s0 = inlined_call_operand.vmem [shape: bf16[32,128], index: 0, kind: input, shape index: {}]   ;;  %s325_s2 = inlined_call_operand.vmem [shape: f32[32,128], index: 2, kind: output, shape index: {0}]   ;;  %s326_s3 = inlined_call_operand.vmem [shape: f32[1,8,128], index: 3, kind: output, shape index: {1}]  }
   0x1   :  { %v248_v0 = vld [vmem:[%s323_s1 + $0x38] sm:$0xff]   ;;  %v249_v1 = vld [vmem:[%s323_s1 + $0x30] sm:$0xff]   ;;  %v250_v2 = vld [vmem:[%s323_s1 + $0x28] sm:$0xff]  }
   0x2   :  { %227 = vmatprep.subr.bf16.mxu0 %v248_v0  ;;  %v251_v3 = vld [vmem:[%s323_s1 + $0x20] sm:$0xff]   ;;  %v252_v5 = vld [vmem:[%s323_s1 + $0x18] sm:$0xff]   ;;  %v253_v6 = vld [vmem:[%s323_s1 + $0x10] sm:$0xff]   ;;  %v193_v32 = vshrl.u32 %v192_v27, 7 }
   0x3   :  { %228 = vmatpush3.bf16.msra.mxu0 %v248_v0  ;;  %v256_v4 = vld [vmem:[%s324_s0] sm:$0xff]   ;;  %v254_v7 = vld [vmem:[%s323_s1 + $0x8] sm:$0xff]  }
   0x4   :  { %229 = vmatprep.subr.bf16.mxu0 %v249_v1  ;;  %243 = vmatprep.mubr.bf16.mxu0 %v256_v4  ;;  %v255_v8 = vld [vmem:[%s323_s1] sm:$0xff]   ;;  %v257_v9 = vld [vmem:[%s324_s0 + $0x8] sm:$0xff]   ;;  %vm195_vm0 = vcmp.eq.s32.totalorder %v193_v32, 1  ;;  %vm194_vm1 = vcmp.eq.s32.totalorder %v193_v32, 0 }
   0x7   :  { %230 = vmatpush3.bf16.msra.mxu0 %v249_v1 }
   0x8   :  { %231 = vmatprep.subr.bf16.mxu0 %v250_v2 }
   0xb   :  { %232 = vmatpush3.bf16.msra.mxu0 %v250_v2 }
   0xc   :  { %233 = vmatprep.subr.bf16.mxu0 %v251_v3 }
   0xf   :  { %234 = vmatpush3.bf16.msra.mxu0 %v251_v3 }
  0x10   :  { %235 = vmatprep.subr.bf16.mxu0 %v252_v5 }
  0x13   :  { %236 = vmatpush3.bf16.msra.mxu0 %v252_v5 }
  0x14   :  { %237 = vmatprep.subr.bf16.mxu0 %v253_v6 }
  0x17   :  { %238 = vmatpush3.bf16.msra.mxu0 %v253_v6 }
  0x18   :  { %239 = vmatprep.subr.bf16.mxu0 %v254_v7 }
  0x1b   :  { %240 = vmatpush3.bf16.msra.mxu0 %v254_v7 }
  0x1c   :  { %241 = vmatprep.subr.bf16.mxu0 %v255_v8 }
  0x1f   :  { %242 = vmatpush3.bf16.msra.mxu0 %v255_v8 }
  0x22   :  { %244 = vmatmul.mubr.bf16.vlgmr.msra.gmra.mxu0 %v257_v9 }
  0xe2   :  { %v245_v10 = vpop.f32.mrf.mxu0 }
  0xe3   :  { %161 = vst [vmem:[%s325_s2 + $0x10] sm:$0xff] %v245_v10  ;;  %v181_v17 = vmul.f32 %v245_v10, %v245_v10 }
  0xe4   :  { %v140_v11 = vpop.f32.mrf.mxu0 }
  0xe5   :  { %159 = vst [vmem:[%s325_s2] sm:$0xff] %v140_v11  ;;  %v179_v14 = vmul.f32 %v140_v11, %v140_v11 }
  0xe6   :  { %v246_v12 = vpop.f32.mrf.mxu0 }
  0xe7   :  { %162 = vst [vmem:[%s325_s2 + $0x18] sm:$0xff] %v246_v12  ;;  %v182_v20 = vmul.f32 %v246_v12, %v246_v12 }
  0xe8   :  { %v143_v13 = vpop.f32.mrf.mxu0 }
  0xe9   :  { %160 = vst [vmem:[%s325_s2 + $0x8] sm:$0xff] %v143_v13  ;;  %v170_v15 = vadd.f32 %v143_v13, %v140_v11  ;;  %v180_v16 = vmul.f32 %v143_v13, %v143_v13 }
  0xeb   :  { %v171_v18 = vadd.f32 %v245_v10, %v170_v15  ;;  %v183_v19 = vadd.f32 %v180_v16, %v179_v14 }
  0xed   :  { %v172_v21 = vadd.f32 %v246_v12, %v171_v18  ;;  %v184_v22 = vadd.f32 %v183_v19, %v181_v17 }
  0xef   :  { %v173_v23 = vrot.slane %v172_v21, 4  ;;  %v185_v24 = vadd.f32 %v184_v22, %v182_v20 }
  0xf1   :  { %v174_v25 = vadd.f32 %v173_v23, %v172_v21  ;;  %v186_v26 = vrot.slane %v185_v24, 4 }
  0xf3   :  { %v175_v28 = vrot.slane %v174_v25, 2  ;;  %v187_v29 = vadd.f32 %v186_v26, %v185_v24 }
  0xf5   :  { %v176_v30 = vadd.f32 %v175_v28, %v174_v25  ;;  %v188_v31 = vrot.slane %v187_v29, 2 }
  0xf7   :  { %v189_v33 = vadd.f32 %v188_v31, %v187_v29  ;;  %v177_v34 = vrot.slane %v176_v30, 1 }
  0xf9   :  { %v190_v35 = vrot.slane %v189_v33, 1  ;;  %v178_v37 = vadd.f32 %v177_v34, %v176_v30 }
  0xfb   :  { %v191_v36 = vadd.f32 %v190_v35, %v189_v33 }
  0xfd   :  { %v196_v38 = vsel %vm195_vm0, %v191_v36, 0.0 }
  0xfe   :  { %v197_v39 = vsel %vm194_vm1, %v178_v37, %v196_v38 }
  0xff   :  { %198 = vst [vmem:[%s326_s3] sm:$0xff] %v197_v39 }

// kernel: attribute_cnn_forward.52
= control target key start
LH: loop header
LB: loop body
LE: loop exit
PB: predicated region body
PF: predicated region fallthrough
CT: control target
= control target key end

     0   :  { %s133_s0 = inlined_call_operand.vmem [shape: f32[32,128], index: 0, kind: input, shape index: {}]   ;;  %s134_s1 = inlined_call_operand.vmem [shape: f32[1,128], index: 1, kind: input, shape index: {}]   ;;  %s135_s2 = inlined_call_operand.vmem [shape: f32[1,128], index: 2, kind: input, shape index: {}]   ;;  %s136_s3 = inlined_call_operand.vmem [shape: bf16[32,128], index: 3, kind: output, shape index: {}]  }
   0x1   :  { %v14_v0 = vld [vmem:[%s133_s0] sm:$0xff]  ;;  %v15_v1 = vld [vmem:[%s133_s0 + $0x8] sm:$0xff]  ;;  %v16_v6 = vld [vmem:[%s133_s0 + $0x10] sm:$0xff] }
   0x2   :  { %v68_v2 = vld [vmem:[%s134_s1] ss:$0 sm:$0xff]  ;;  %v17_v7 = vld [vmem:[%s133_s0 + $0x18] sm:$0xff] }
   0x3   :  { %v25_v3 = vmul.f32 %v68_v2, %v14_v0  ;;  %v26_v4 = vmul.f32 %v68_v2, %v15_v1  ;;  %v69_v5 = vld [vmem:[%s135_s2] ss:$0 sm:$0xff]  ;;  %v27_v8 = vmul.f32 %v68_v2, %v16_v6  ;;  %v28_v9 = vmul.f32 %v68_v2, %v17_v7 }
   0x5   :  { %v36_v10 = vadd.f32 %v69_v5, %v25_v3  ;;  %v37_v11 = vadd.f32 %v69_v5, %v26_v4  ;;  %v38_v12 = vadd.f32 %v69_v5, %v27_v8  ;;  %v39_v13 = vadd.f32 %v69_v5, %v28_v9 }
   0x7   :  { %v40_v14 = vmax.f32 %v36_v10, 0.0  ;;  %v41_v15 = vmax.f32 %v37_v11, 0.0  ;;  %v42_v16 = vmax.f32 %v38_v12, 0.0  ;;  %v43_v17 = vmax.f32 %v39_v13, 0.0 }
   0x9   :  { %v81_v18 = vpack.c.bf16 %v41_v15, %v40_v14  ;;  %v86_v19 = vpack.c.bf16 %v43_v17, %v42_v16 }
   0xb   :  { %82 = vst [vmem:[%s136_s3] sm:$0xff] %v81_v18   ;;  %88 = vst [vmem:[%s136_s3 + $0x8] sm:$0xff] %v86_v19  }

// kernel: attribute_cnn_forward.51
= control target key start
LH: loop header
LB: loop body
LE: loop exit
PB: predicated region body
PF: predicated region fallthrough
CT: control target
= control target key end

     0   :  { %s803_s12 = smov 0   ;;  %s805_s13 = smov 0   ;;  %s938_s0 = inlined_call_operand.vmem [shape: bf16[32,640], index: 0, kind: input, shape index: {}]   ;;  %s939_s1 = inlined_call_operand.vmem [shape: bf16[640,128], index: 1, kind: input, shape index: {}]   ;;  %s940_s2 = inlined_call_operand.vmem [shape: f32[32,128], index: 2, kind: output, shape index: {0}]   ;;  %s941_s3 = inlined_call_operand.vmem [shape: f32[1,8,128], index: 3, kind: output, shape index: {1}]  }
   0x1   :  { %s807_s14 = smov 0   ;;  %s809_s15 = smov 0  }
   0x2   :  { %s811_s16 = smov 0  }
   0x3 LB: > { %s26_s17 = sadd.s32 1, %s776_s15  ;;  %p49_p1 = scmp.ne.s32.totalorder %s768_s13, %s764_s12  ;;  %s780_s16 = sphi %s811_s16, %s14_s16   ;;  %s776_s15 = sphi %s809_s15, %s945_s15   ;;  %s772_s14 = sphi %s807_s14, %s944_s14   ;;  %s768_s13 = sphi %s805_s13, %s943_s13   ;;  %s764_s12 = sphi %s803_s12, %s942_s12  }
   0x4   : > { %p27_p0 = scmp.ge.s32.totalorder %s26_s17, 5  ;;  %p50_p2 = scmp.eq.s32.totalorder %s780_s16, 0 }
   0x5   : > { %s42_s19 = sadd.s32 1, %s768_s13  ;;  %p637_p5 = scmp.ge.s32.totalorder %s780_s16, 5 }
   0x6   : > { %s947_s17 = smov (%p27_p0, %s26_s17), 0  ;;  %p51_p3 = por %p50_p2, %p49_p1 }
   0x7   : > { %s38_s18 = ssub.s32 %s776_s15, %s947_s17  ;;  %159 = sbr.rel (%p637_p5) target bundleno = 18 (0x12), region = 16 }
   0x8   : > { %p40_p4 = scmp.eq.s32.totalorder %s38_s18, 0 }
   0xa   : > { %s838_s20 = scalar_select %p40_p4, %s768_s13, %s42_s19  }
   0xc   : > { %162 = sbr.rel (!%p51_p3) target bundleno = 18 (0x12), region = 20  ;;  %s164_s21 = sand.u32 (%p51_p3), 1, %s768_s13  }
   0xd   : > { %s639_s22 = sshll.u32 (%p51_p3), %s776_s15, 2  ;;  %s638_s23 = sshll.u32 (%p51_p3), %s164_s21, 4 }
   0xe   : > { %s171_s26 = scalar_lea.vmem (%p51_p3), %s938_s0, %s639_s22  ;;  %s166_s27 = scalar_lea.vmem (%p51_p3), [#allocation2], %s638_s23 }
   0xf   : > { %v188_v0 = vld [vmem:[%s171_s26] sm:$0xf] (%p51_p3)  ;;  %v190_v1 = vld [vmem:[%s171_s26 + $0x14] sm:$0xf] (%p51_p3)  ;;  %v192_v2 = vld [vmem:[%s171_s26 + $0x28] sm:$0xf] (%p51_p3) }
  0x10   : > { %189 = vst [vmem:[%s166_s27] sm:$0xf] (%p51_p3), %v188_v0  ;;  %191 = vst [vmem:[%s166_s27 + $0x4] sm:$0xf] (%p51_p3), %v190_v1  ;;  %v194_v3 = vld [vmem:[%s171_s26 + $0x3c] sm:$0xf] (%p51_p3) }
  0x11   : > { %193 = vst [vmem:[%s166_s27 + $0x8] sm:$0xf] %v192_v2  ;;  %195 = vst [vmem:[%s166_s27 + $0xc] sm:$0xf] %v194_v3 }
  0x12 PF: > { %p640_p6 = scmp.ge.s32.totalorder %s780_s16, 1  ;;  %p238_p7 = scmp.lt.s32.totalorder %s780_s16, 6 }
  0x14   : > { %p239_p8 = pnand %p640_p6, %p238_p7 }
  0x15   : > { %s245_s28 = sand.u32 (!%p239_p8), 1, %s764_s12   ;;  %s642_s29 = sshll.u32 (!%p239_p8), %s772_s14, 4 }
  0x16   : > { %242 = sbr.rel (%p239_p8) target bundleno = 300 (0x12c), region = 65  ;;  %s850_s30 = sshll.u32 (!%p239_p8), %s245_s28, 4 }
  0x17   : > { %p288_p9 = scmp.lt.s32.totalorder (!%p239_p8), %s642_s29, 79  ;;  %s247_s8 = scalar_lea.vmem (!%p239_p8), [#allocation2], %s850_s30 }
  0x18   : > { %p644_p10 = scmp.ne.s32.totalorder (!%p239_p8), %s772_s14, 0 }
  0x1b   : > { %s949_s29 = smov (!%p288_p9, %s642_s29), 79  ;;  %316 = sbr.rel (%p644_p10) target bundleno = 35 (0x23), region = 73 }
  0x1c   : > { %s643_s4 = sshll.u32 %s949_s29, 2 }
  0x1d   : > { %s855_s7 = scalar_lea.vmem %s939_s1, %s643_s4 }
  0x20   : > { %v782_v4 = vmov 0.0  }
  0x21   : > { %317 = vst [vmem:[%s940_s2] sm:$0xff] %v782_v4  ;;  %318 = vst [vmem:[%s940_s2 + $0x8] sm:$0xff] %v782_v4 }
  0x22   : > { %319 = vst [vmem:[%s940_s2 + $0x10] sm:$0xff] %v782_v4  ;;  %320 = vst [vmem:[%s940_s2 + $0x18] sm:$0xff] %v782_v4 }
  0x23 PF: > { %v732_v5 = vld [vmem:[%s855_s7 + $0x38] sm:$0xff]   ;;  %v733_v6 = vld [vmem:[%s855_s7 + $0x30] sm:$0xff]   ;;  %v734_v7 = vld [vmem:[%s855_s7 + $0x28] sm:$0xff]   ;;  %p655_p11 = scmp.ne.s32.totalorder %s772_s14, 4 }
  0x24   : > { %671 = vmatprep.subr.bf16.mxu0 %v732_v5  ;;  %v735_v8 = vld [vmem:[%s855_s7 + $0x20] sm:$0xff]   ;;  %v736_v10 = vld [vmem:[%s855_s7 + $0x18] sm:$0xff]   ;;  %v737_v11 = vld [vmem:[%s855_s7 + $0x10] sm:$0xff]  }
  0x25   : > { %672 = vmatpush3.bf16.msra.mxu0 %v732_v5  ;;  %v740_v9 = vld [vmem:[%s247_s8] sm:$0xff]   ;;  %v738_v12 = vld [vmem:[%s855_s7 + $0x8] sm:$0xff]  }
  0x26   : > { %673 = vmatprep.subr.bf16.mxu0 %v733_v6  ;;  %687 = vmatprep.mubr.bf16.mxu0 %v740_v9  ;;  %v739_v13 = vld [vmem:[%s855_s7] sm:$0xff]   ;;  %v741_v14 = vld [vmem:[%s247_s8 + $0x8] sm:$0xff]  }
  0x28   : > { %v321_v17 = vld [vmem:[%s940_s2] sm:$0xff]  ;;  %v322_v23 = vld [vmem:[%s940_s2 + $0x8] sm:$0xff] }
  0x29   : > { %674 = vmatpush3.bf16.msra.mxu0 %v733_v6  ;;  %v323_v15 = vld [vmem:[%s940_s2 + $0x10] sm:$0xff]  ;;  %v324_v20 = vld [vmem:[%s940_s2 + $0x18] sm:$0xff] }
  0x2a   : > { %675 = vmatprep.subr.bf16.mxu0 %v734_v7 }
  0x2d   : > { %676 = vmatpush3.bf16.msra.mxu0 %v734_v7 }
  0x2e   : > { %677 = vmatprep.subr.bf16.mxu0 %v735_v8 }
  0x31   : > { %678 = vmatpush3.bf16.msra.mxu0 %v735_v8 }
  0x32   : > { %679 = vmatprep.subr.bf16.mxu0 %v736_v10 }
  0x35   : > { %680 = vmatpush3.bf16.msra.mxu0 %v736_v10 }
  0x36   : > { %681 = vmatprep.subr.bf16.mxu0 %v737_v11 }
  0x39   : > { %682 = vmatpush3.bf16.msra.mxu0 %v737_v11 }
  0x3a   : > { %683 = vmatprep.subr.bf16.mxu0 %v738_v12 }
  0x3d   : > { %684 = vmatpush3.bf16.msra.mxu0 %v738_v12 }
  0x3e   : > { %685 = vmatprep.subr.bf16.mxu0 %v739_v13 }
  0x41   : > { %686 = vmatpush3.bf16.msra.mxu0 %v739_v13 }
  0x44   : > { %688 = vmatmul.mubr.bf16.vlgmr.msra.gmra.mxu0 %v741_v14 }
 0x104   : > { %v689_v16 = vpop.f32.mrf.mxu0 }
 0x105   : > { %v456_v18 = vadd.f32 %v689_v16, %v323_v15 }
 0x106   : > { %v439_v19 = vpop.f32.mrf.mxu0 }
 0x107   : > { %460 = vst [vmem:[%s940_s2 + $0x10] sm:$0xff] %v456_v18  ;;  %v454_v21 = vadd.f32 %v439_v19, %v321_v17 }
 0x108   : > { %v690_v22 = vpop.f32.mrf.mxu0 }
 0x109   : > { %458 = vst [vmem:[%s940_s2] sm:$0xff] %v454_v21  ;;  %v457_v24 = vadd.f32 %v690_v22, %v324_v20  ;;  %465 = sbr.rel (%p655_p11) target bundleno = 300 (0x12c), region = 77 }
 0x10a   : > { %v442_v25 = vpop.f32.mrf.mxu0 }
 0x10b   : > { %461 = vst [vmem:[%s940_s2 + $0x18] sm:$0xff] %v457_v24  ;;  %v455_v26 = vadd.f32 %v442_v25, %v322_v23 }
 0x10d   : > { %459 = vst [vmem:[%s940_s2 + $0x8] sm:$0xff] %v455_v26 }
 0x10e   : > { %v468_v29 = vld [vmem:[%s940_s2 + $0x10] sm:$0xff]  ;;  %v492_v44 = vlaneseq }
 0x10f   : > { %v481_v34 = vmul.f32 %v468_v29, %v468_v29 }
 0x110   : > { %v466_v27 = vld [vmem:[%s940_s2] sm:$0xff]  ;;  %v493_v49 = vshrl.u32 %v492_v44, 7 }
 0x111   : > { %v479_v32 = vmul.f32 %v466_v27, %v466_v27 }
 0x112   : > { %v469_v30 = vld [vmem:[%s940_s2 + $0x18] sm:$0xff]  ;;  %vm495_vm0 = vcmp.eq.s32.totalorder %v493_v49, 1  ;;  %vm494_vm1 = vcmp.eq.s32.totalorder %v493_v49, 0 }
 0x113   : > { %v482_v36 = vmul.f32 %v469_v30, %v469_v30 }
 0x114   : > { %v467_v28 = vld [vmem:[%s940_s2 + $0x8] sm:$0xff] }
 0x115   : > { %v470_v31 = vadd.f32 %v467_v28, %v466_v27  ;;  %v480_v33 = vmul.f32 %v467_v28, %v467_v28 }
 0x117   : > { %v471_v35 = vadd.f32 %v470_v31, %v468_v29  ;;  %v483_v37 = vadd.f32 %v480_v33, %v479_v32 }
 0x119   : > { %v472_v38 = vadd.f32 %v471_v35, %v469_v30  ;;  %v484_v39 = vadd.f32 %v483_v37, %v481_v34 }
 0x11b   : > { %v473_v40 = vrot.slane %v472_v38, 4  ;;  %v485_v41 = vadd.f32 %v484_v39, %v482_v36 }
 0x11d   : > { %v474_v42 = vadd.f32 %v473_v40, %v472_v38  ;;  %v486_v43 = vrot.slane %v485_v41, 4 }
 0x11f   : > { %v475_v45 = vrot.slane %v474_v42, 2  ;;  %v487_v46 = vadd.f32 %v486_v43, %v485_v41 }
 0x121   : > { %v476_v47 = vadd.f32 %v475_v45, %v474_v42  ;;  %v488_v48 = vrot.slane %v487_v46, 2 }
 0x123   : > { %v477_v50 = vrot.slane %v476_v47, 1  ;;  %v489_v51 = vadd.f32 %v488_v48, %v487_v46 }
 0x125   : > { %v490_v52 = vrot.slane %v489_v51, 1  ;;  %v478_v53 = vadd.f32 %v477_v50, %v476_v47 }
 0x127   : > { %v491_v54 = vadd.f32 %v490_v52, %v489_v51 }
 0x129   : > { %v496_v55 = vsel %vm495_vm0, %v491_v54, 0.0 }
 0x12a   : > { %v497_v56 = vsel %vm494_vm1, %v478_v53, %v496_v55 }
 0x12b   : > { %498 = vst [vmem:[%s941_s3] sm:$0xff] %v497_v56 }
 0x12c PF: > { %s14_s16 = sadd.s32 1, %s780_s16   ;;  %s942_s12 = smov %s768_s13 }
 0x12d   : > { %p11_p12 = scmp.ge.s32.totalorder %s14_s16, 7   ;;  %s943_s13 = smov %s838_s20 }
 0x12e   : > { %s944_s14 = smov %s776_s15  ;;  %s945_s15 = smov %s947_s17 }
 0x12f   :  { %13 = sbr.rel (!%p11_p12) target bundleno = 3 (0x3), region = 127 }

// kernel: attribute_cnn_forward.53
= control target key start
LH: loop header
LB: loop body
LE: loop exit
PB: predicated region body
PF: predicated region fallthrough
CT: control target
= control target key end

     0   :  { %s803_s12 = smov 0   ;;  %s805_s13 = smov 0   ;;  %s938_s0 = inlined_call_operand.vmem [shape: bf16[32,1152], index: 0, kind: input, shape index: {}]   ;;  %s939_s1 = inlined_call_operand.vmem [shape: bf16[1152,128], index: 1, kind: input, shape index: {}]   ;;  %s940_s2 = inlined_call_operand.vmem [shape: f32[32,128], index: 2, kind: output, shape index: {0}]   ;;  %s941_s3 = inlined_call_operand.vmem [shape: f32[1,8,128], index: 3, kind: output, shape index: {1}]  }
   0x1   :  { %s807_s14 = smov 0   ;;  %s809_s15 = smov 0  }
   0x2   :  { %s811_s16 = smov 0  }
   0x3 LB: > { %s26_s17 = sadd.s32 1, %s776_s15  ;;  %p49_p1 = scmp.ne.s32.totalorder %s768_s13, %s764_s12  ;;  %s780_s16 = sphi %s811_s16, %s14_s16   ;;  %s776_s15 = sphi %s809_s15, %s945_s15   ;;  %s772_s14 = sphi %s807_s14, %s944_s14   ;;  %s768_s13 = sphi %s805_s13, %s943_s13   ;;  %s764_s12 = sphi %s803_s12, %s942_s12  }
   0x4   : > { %p27_p0 = scmp.ge.s32.totalorder %s26_s17, 9  ;;  %p50_p2 = scmp.eq.s32.totalorder %s780_s16, 0 }
   0x5   : > { %s42_s19 = sadd.s32 1, %s768_s13  ;;  %p637_p5 = scmp.ge.s32.totalorder %s780_s16, 9 }
   0x6   : > { %s947_s17 = smov (%p27_p0, %s26_s17), 0  ;;  %p51_p3 = por %p50_p2, %p49_p1 }
   0x7   : > { %s38_s18 = ssub.s32 %s776_s15, %s947_s17  ;;  %159 = sbr.rel (%p637_p5) target bundleno = 18 (0x12), region = 16 }
   0x8   : > { %p40_p4 = scmp.eq.s32.totalorder %s38_s18, 0 }
   0xa   : > { %s838_s20 = scalar_select %p40_p4, %s768_s13, %s42_s19  }
   0xc   : > { %162 = sbr.rel (!%p51_p3) target bundleno = 18 (0x12), region = 20  ;;  %s164_s21 = sand.u32 (%p51_p3), 1, %s768_s13  }
   0xd   : > { %s639_s22 = sshll.u32 (%p51_p3), %s776_s15, 2  ;;  %s638_s23 = sshll.u32 (%p51_p3), %s164_s21, 4 }
   0xe   : > { %s171_s26 = scalar_lea.vmem (%p51_p3), %s938_s0, %s639_s22  ;;  %s166_s27 = scalar_lea.vmem (%p51_p3), [#allocation2], %s638_s23 }
   0xf   : > { %v188_v0 = vld [vmem:[%s171_s26] sm:$0xf] (%p51_p3)  ;;  %v190_v1 = vld [vmem:[%s171_s26 + $0x24] sm:$0xf] (%p51_p3)  ;;  %v192_v2 = vld [vmem:[%s171_s26 + $0x48] sm:$0xf] (%p51_p3) }
  0x10   : > { %189 = vst [vmem:[%s166_s27] sm:$0xf] (%p51_p3), %v188_v0  ;;  %191 = vst [vmem:[%s166_s27 + $0x4] sm:$0xf] (%p51_p3), %v190_v1  ;;  %v194_v3 = vld [vmem:[%s171_s26 + $0x6c] sm:$0xf] (%p51_p3) }
  0x11   : > { %193 = vst [vmem:[%s166_s27 + $0x8] sm:$0xf] %v192_v2  ;;  %195 = vst [vmem:[%s166_s27 + $0xc] sm:$0xf] %v194_v3 }
  0x12 PF: > { %p640_p6 = scmp.ge.s32.totalorder %s780_s16, 1  ;;  %p238_p7 = scmp.lt.s32.totalorder %s780_s16, 10 }
  0x14   : > { %p239_p8 = pnand %p640_p6, %p238_p7 }
  0x15   : > { %s245_s28 = sand.u32 (!%p239_p8), 1, %s764_s12   ;;  %s642_s29 = sshll.u32 (!%p239_p8), %s772_s14, 4 }
  0x16   : > { %242 = sbr.rel (%p239_p8) target bundleno = 300 (0x12c), region = 65  ;;  %s850_s30 = sshll.u32 (!%p239_p8), %s245_s28, 4 }
  0x17   : > { %p288_p9 = scmp.lt.s32.totalorder (!%p239_p8), %s642_s29, 143  ;;  %s247_s8 = scalar_lea.vmem (!%p239_p8), [#allocation2], %s850_s30 }
  0x18   : > { %p644_p10 = scmp.ne.s32.totalorder (!%p239_p8), %s772_s14, 0 }
  0x1b   : > { %s949_s29 = smov (!%p288_p9, %s642_s29), 143  ;;  %316 = sbr.rel (%p644_p10) target bundleno = 35 (0x23), region = 73 }
  0x1c   : > { %s643_s4 = sshll.u32 %s949_s29, 2 }
  0x1d   : > { %s855_s7 = scalar_lea.vmem %s939_s1, %s643_s4 }
  0x20   : > { %v782_v4 = vmov 0.0  }
  0x21   : > { %317 = vst [vmem:[%s940_s2] sm:$0xff] %v782_v4  ;;  %318 = vst [vmem:[%s940_s2 + $0x8] sm:$0xff] %v782_v4 }
  0x22   : > { %319 = vst [vmem:[%s940_s2 + $0x10] sm:$0xff] %v782_v4  ;;  %320 = vst [vmem:[%s940_s2 + $0x18] sm:$0xff] %v782_v4 }
  0x23 PF: > { %v732_v5 = vld [vmem:[%s855_s7 + $0x38] sm:$0xff]   ;;  %v733_v6 = vld [vmem:[%s855_s7 + $0x30] sm:$0xff]   ;;  %v734_v7 = vld [vmem:[%s855_s7 + $0x28] sm:$0xff]   ;;  %p655_p11 = scmp.ne.s32.totalorder %s772_s14, 8 }
  0x24   : > { %671 = vmatprep.subr.bf16.mxu0 %v732_v5  ;;  %v735_v8 = vld [vmem:[%s855_s7 + $0x20] sm:$0xff]   ;;  %v736_v10 = vld [vmem:[%s855_s7 + $0x18] sm:$0xff]   ;;  %v737_v11 = vld [vmem:[%s855_s7 + $0x10] sm:$0xff]  }
  0x25   : > { %672 = vmatpush3.bf16.msra.mxu0 %v732_v5  ;;  %v740_v9 = vld [vmem:[%s247_s8] sm:$0xff]   ;;  %v738_v12 = vld [vmem:[%s855_s7 + $0x8] sm:$0xff]  }
  0x26   : > { %673 = vmatprep.subr.bf16.mxu0 %v733_v6  ;;  %687 = vmatprep.mubr.bf16.mxu0 %v740_v9  ;;  %v739_v13 = vld [vmem:[%s855_s7] sm:$0xff]   ;;  %v741_v14 = vld [vmem:[%s247_s8 + $0x8] sm:$0xff]  }
  0x28   : > { %v321_v17 = vld [vmem:[%s940_s2] sm:$0xff]  ;;  %v322_v23 = vld [vmem:[%s940_s2 + $0x8] sm:$0xff] }
  0x29   : > { %674 = vmatpush3.bf16.msra.mxu0 %v733_v6  ;;  %v323_v15 = vld [vmem:[%s940_s2 + $0x10] sm:$0xff]  ;;  %v324_v20 = vld [vmem:[%s940_s2 + $0x18] sm:$0xff] }
  0x2a   : > { %675 = vmatprep.subr.bf16.mxu0 %v734_v7 }
  0x2d   : > { %676 = vmatpush3.bf16.msra.mxu0 %v734_v7 }
  0x2e   : > { %677 = vmatprep.subr.bf16.mxu0 %v735_v8 }
  0x31   : > { %678 = vmatpush3.bf16.msra.mxu0 %v735_v8 }
  0x32   : > { %679 = vmatprep.subr.bf16.mxu0 %v736_v10 }
  0x35   : > { %680 = vmatpush3.bf16.msra.mxu0 %v736_v10 }
  0x36   : > { %681 = vmatprep.subr.bf16.mxu0 %v737_v11 }
  0x39   : > { %682 = vmatpush3.bf16.msra.mxu0 %v737_v11 }
  0x3a   : > { %683 = vmatprep.subr.bf16.mxu0 %v738_v12 }
  0x3d   : > { %684 = vmatpush3.bf16.msra.mxu0 %v738_v12 }
  0x3e   : > { %685 = vmatprep.subr.bf16.mxu0 %v739_v13 }
  0x41   : > { %686 = vmatpush3.bf16.msra.mxu0 %v739_v13 }
  0x44   : > { %688 = vmatmul.mubr.bf16.vlgmr.msra.gmra.mxu0 %v741_v14 }
 0x104   : > { %v689_v16 = vpop.f32.mrf.mxu0 }
 0x105   : > { %v456_v18 = vadd.f32 %v689_v16, %v323_v15 }
 0x106   : > { %v439_v19 = vpop.f32.mrf.mxu0 }
 0x107   : > { %460 = vst [vmem:[%s940_s2 + $0x10] sm:$0xff] %v456_v18  ;;  %v454_v21 = vadd.f32 %v439_v19, %v321_v17 }
 0x108   : > { %v690_v22 = vpop.f32.mrf.mxu0 }
 0x109   : > { %458 = vst [vmem:[%s940_s2] sm:$0xff] %v454_v21  ;;  %v457_v24 = vadd.f32 %v690_v22, %v324_v20  ;;  %465 = sbr.rel (%p655_p11) target bundleno = 300 (0x12c), region = 77 }
 0x10a   : > { %v442_v25 = vpop.f32.mrf.mxu0 }
 0x10b   : > { %461 = vst [vmem:[%s940_s2 + $0x18] sm:$0xff] %v457_v24  ;;  %v455_v26 = vadd.f32 %v442_v25, %v322_v23 }
 0x10d   : > { %459 = vst [vmem:[%s940_s2 + $0x8] sm:$0xff] %v455_v26 }
 0x10e   : > { %v468_v29 = vld [vmem:[%s940_s2 + $0x10] sm:$0xff]  ;;  %v492_v44 = vlaneseq }
 0x10f   : > { %v481_v34 = vmul.f32 %v468_v29, %v468_v29 }
 0x110   : > { %v466_v27 = vld [vmem:[%s940_s2] sm:$0xff]  ;;  %v493_v49 = vshrl.u32 %v492_v44, 7 }
 0x111   : > { %v479_v32 = vmul.f32 %v466_v27, %v466_v27 }
 0x112   : > { %v469_v30 = vld [vmem:[%s940_s2 + $0x18] sm:$0xff]  ;;  %vm495_vm0 = vcmp.eq.s32.totalorder %v493_v49, 1  ;;  %vm494_vm1 = vcmp.eq.s32.totalorder %v493_v49, 0 }
 0x113   : > { %v482_v36 = vmul.f32 %v469_v30, %v469_v30 }
 0x114   : > { %v467_v28 = vld [vmem:[%s940_s2 + $0x8] sm:$0xff] }
 0x115   : > { %v470_v31 = vadd.f32 %v467_v28, %v466_v27  ;;  %v480_v33 = vmul.f32 %v467_v28, %v467_v28 }
 0x117   : > { %v471_v35 = vadd.f32 %v470_v31, %v468_v29  ;;  %v483_v37 = vadd.f32 %v480_v33, %v479_v32 }
 0x119   : > { %v472_v38 = vadd.f32 %v471_v35, %v469_v30  ;;  %v484_v39 = vadd.f32 %v483_v37, %v481_v34 }
 0x11b   : > { %v473_v40 = vrot.slane %v472_v38, 4  ;;  %v485_v41 = vadd.f32 %v484_v39, %v482_v36 }
 0x11d   : > { %v474_v42 = vadd.f32 %v473_v40, %v472_v38  ;;  %v486_v43 = vrot.slane %v485_v41, 4 }
 0x11f   : > { %v475_v45 = vrot.slane %v474_v42, 2  ;;  %v487_v46 = vadd.f32 %v486_v43, %v485_v41 }
 0x121   : > { %v476_v47 = vadd.f32 %v475_v45, %v474_v42  ;;  %v488_v48 = vrot.slane %v487_v46, 2 }
 0x123   : > { %v477_v50 = vrot.slane %v476_v47, 1  ;;  %v489_v51 = vadd.f32 %v488_v48, %v487_v46 }
 0x125   : > { %v490_v52 = vrot.slane %v489_v51, 1  ;;  %v478_v53 = vadd.f32 %v477_v50, %v476_v47 }
 0x127   : > { %v491_v54 = vadd.f32 %v490_v52, %v489_v51 }
 0x129   : > { %v496_v55 = vsel %vm495_vm0, %v491_v54, 0.0 }
 0x12a   : > { %v497_v56 = vsel %vm494_vm1, %v478_v53, %v496_v55 }
 0x12b   : > { %498 = vst [vmem:[%s941_s3] sm:$0xff] %v497_v56 }
 0x12c PF: > { %s14_s16 = sadd.s32 1, %s780_s16   ;;  %s942_s12 = smov %s768_s13 }
 0x12d   : > { %p11_p12 = scmp.ge.s32.totalorder %s14_s16, 11   ;;  %s943_s13 = smov %s838_s20 }
 0x12e   : > { %s944_s14 = smov %s776_s15  ;;  %s945_s15 = smov %s947_s17 }
 0x12f   :  { %13 = sbr.rel (!%p11_p12) target bundleno = 3 (0x3), region = 127 }

// kernel: attribute_cnn_forward.56
= control target key start
LH: loop header
LB: loop body
LE: loop exit
PB: predicated region body
PF: predicated region fallthrough
CT: control target
= control target key end

     0   :  { %s168_s0 = inlined_call_operand.vmem [shape: f32[32,128], index: 0, kind: input, shape index: {}]   ;;  %s169_s1 = inlined_call_operand.vmem [shape: f32[1,128], index: 1, kind: input, shape index: {}]   ;;  %s170_s2 = inlined_call_operand.vmem [shape: f32[1,128], index: 2, kind: input, shape index: {}]   ;;  %s171_s3 = inlined_call_operand.vmem [shape: bf16[32,128], index: 3, kind: input, shape index: {}]   ;;  %s172_s4 = inlined_call_operand.vmem [shape: bf16[32,128], index: 4, kind: output, shape index: {}]  }
   0x1   :  { %v17_v0 = vld [vmem:[%s168_s0] sm:$0xff]  ;;  %v18_v1 = vld [vmem:[%s168_s0 + $0x8] sm:$0xff]  ;;  %v19_v7 = vld [vmem:[%s168_s0 + $0x10] sm:$0xff] }
   0x2   :  { %v83_v2 = vld [vmem:[%s169_s1] ss:$0 sm:$0xff]  ;;  %v20_v10 = vld [vmem:[%s168_s0 + $0x18] sm:$0xff]  ;;  %v111_v12 = vld [vmem:[%s171_s3 + $0x8] sm:$0xff]  }
   0x3   :  { %v28_v3 = vmul.f32 %v83_v2, %v17_v0  ;;  %v29_v4 = vmul.f32 %v83_v2, %v18_v1  ;;  %v84_v5 = vld [vmem:[%s170_s2] ss:$0 sm:$0xff]  ;;  %v30_v11 = vmul.f32 %v83_v2, %v19_v7  ;;  %v31_v15 = vmul.f32 %v83_v2, %v20_v10 }
   0x4   :  { %v94_v6 = vld [vmem:[%s171_s3] sm:$0xff]   ;;  %v99_v16 = vunpack.c.l.bf16 %v111_v12  ;;  %v100_v18 = vunpack.c.h.bf16 %v111_v12 }
   0x5   :  { %v95_v8 = vunpack.c.l.bf16 %v94_v6  ;;  %v96_v9 = vunpack.c.h.bf16 %v94_v6  ;;  %v39_v13 = vadd.f32 %v84_v5, %v28_v3  ;;  %v40_v14 = vadd.f32 %v84_v5, %v29_v4 }
   0x6   :  { %v41_v17 = vadd.f32 %v84_v5, %v30_v11  ;;  %v42_v21 = vadd.f32 %v84_v5, %v31_v15 }
   0x7   :  { %v51_v19 = vadd.f32 %v95_v8, %v39_v13  ;;  %v52_v20 = vadd.f32 %v96_v9, %v40_v14 }
   0x8   :  { %v53_v22 = vadd.f32 %v99_v16, %v41_v17  ;;  %v54_v25 = vadd.f32 %v100_v18, %v42_v21 }
   0x9   :  { %v55_v23 = vmax.f32 %v51_v19, 0.0  ;;  %v56_v24 = vmax.f32 %v52_v20, 0.0 }
   0xa   :  { %v57_v26 = vmax.f32 %v53_v22, 0.0  ;;  %v58_v28 = vmax.f32 %v54_v25, 0.0 }
   0xb   :  { %v104_v27 = vpack.c.bf16 %v56_v24, %v55_v23 }
   0xc   :  { %v109_v29 = vpack.c.bf16 %v58_v28, %v57_v26 }
   0xd   :  { %105 = vst [vmem:[%s172_s4] sm:$0xff] %v104_v27  }
   0xe   :  { %112 = vst [vmem:[%s172_s4 + $0x8] sm:$0xff] %v109_v29  }

// kernel: attribute_cnn_forward.65
= control target key start
LH: loop header
LB: loop body
LE: loop exit
PB: predicated region body
PF: predicated region fallthrough
CT: control target
= control target key end

     0   :  { %v20_v0 = vlaneseq  ;;  %s116_s1 = inlined_call_operand.vmem [shape: f32[1,256], index: 1, kind: input, shape index: {}]   ;;  %s117_s2 = inlined_call_operand.vmem [shape: f32[1,256], index: 2, kind: input, shape index: {}]   ;;  %s118_s0 = inlined_call_operand.vmem [shape: f32[16,256], index: 0, kind: input, shape index: {}]   ;;  %s119_s3 = inlined_call_operand.vmem [shape: bf16[16,256], index: 3, kind: output, shape index: {}]  }
   0x1   :  { %v18_v2 = vld [vmem:[%s116_s1] sm:$0x3]  ;;  %v15_v7 = vld [vmem:[%s118_s0 + $0x8] sm:$0xff]  ;;  %v16_v8 = vld [vmem:[%s118_s0 + $0x10] sm:$0xff] }
   0x2   :  { %v21_v1 = vshrl.u32 %v20_v0, 7  ;;  %v34_v3 = vld [vmem:[%s117_s2] sm:$0x3]  ;;  %v17_v9 = vld [vmem:[%s118_s0 + $0x18] sm:$0xff] }
   0x3   :  { %v14_v4 = vld [vmem:[%s118_s0] sm:$0xff] }
   0x4   :  { %v22_v5 = vsub.s32 0, %v21_v1  ;;  %v26_v6 = vsub.s32 1, %v21_v1 }
   0x6   :  { %v23_v10 = vrot.slane %v18_v2, %v22_v5  ;;  %v27_v11 = vrot.slane %v18_v2, %v26_v6  ;;  %v39_v12 = vrot.slane %v34_v3, %v22_v5  ;;  %v43_v13 = vrot.slane %v34_v3, %v26_v6 }
   0x8   :  { %v30_v14 = vmul.f32 %v23_v10, %v14_v4  ;;  %v31_v15 = vmul.f32 %v27_v11, %v15_v7  ;;  %v32_v16 = vmul.f32 %v23_v10, %v16_v8  ;;  %v33_v17 = vmul.f32 %v27_v11, %v17_v9 }
   0xa   :  { %v46_v18 = vadd.f32 %v39_v12, %v30_v14  ;;  %v47_v19 = vadd.f32 %v43_v13, %v31_v15  ;;  %v48_v20 = vadd.f32 %v39_v12, %v32_v16  ;;  %v49_v21 = vadd.f32 %v43_v13, %v33_v17 }
   0xc   :  { %v70_v22 = vpack.c.bf16 %v47_v19, %v46_v18  ;;  %v71_v23 = vpack.c.bf16 %v49_v21, %v48_v20 }
   0xe   :  { %62 = vst [vmem:[%s119_s3] sm:$0xff] %v70_v22  ;;  %63 = vst [vmem:[%s119_s3 + $0x8] sm:$0xff] %v71_v23 }

// kernel: attribute_cnn_forward.64
= control target key start
LH: loop header
LB: loop body
LE: loop exit
PB: predicated region body
PF: predicated region fallthrough
CT: control target
= control target key end

     0   :  { %v282_v1 = vmov 0   ;;  %v220_v34 = vlaneseq  ;;  %s372_s1 = inlined_call_operand.vmem [shape: bf16[128,256], index: 1, kind: input, shape index: {}]   ;;  %s373_s0 = inlined_call_operand.vmem [shape: bf16[16,128], index: 0, kind: input, shape index: {}]   ;;  %s374_s2 = inlined_call_operand.vmem [shape: f32[16,256], index: 2, kind: output, shape index: {0}]   ;;  %s375_s3 = inlined_call_operand.vmem [shape: f32[1,8,256], index: 3, kind: output, shape index: {1}]  }
   0x1   :  { %v257_v0 = vld [vmem:[%s372_s1 + $0x74] ss:$8 sps:$4 sm:$0xff]   ;;  %162 = vmatprep.mubr.bf16.mxu0 %v282_v1  ;;  %v259_v2 = vld [vmem:[%s372_s1 + $0x70] ss:$8 sps:$4 sm:$0xff]   ;;  %v260_v3 = vld [vmem:[%s372_s1 + $0x64] ss:$8 sps:$4 sm:$0xff]  }
   0x2   :  { %130 = vmatprep.subr.bf16.mxu0 %v257_v0  ;;  %v262_v4 = vld [vmem:[%s372_s1 + $0x60] ss:$8 sps:$4 sm:$0xff]   ;;  %v263_v5 = vld [vmem:[%s372_s1 + $0x54] ss:$8 sps:$4 sm:$0xff]   ;;  %v265_v6 = vld [vmem:[%s372_s1 + $0x50] ss:$8 sps:$4 sm:$0xff]  }
   0x3   :  { %131 = vmatpush1.bf16.msra.mxu0 %v259_v2  ;;  %v266_v7 = vld [vmem:[%s372_s1 + $0x44] ss:$8 sps:$4 sm:$0xff]   ;;  %v268_v8 = vld [vmem:[%s372_s1 + $0x40] ss:$8 sps:$4 sm:$0xff]   ;;  %v269_v9 = vld [vmem:[%s372_s1 + $0x34] ss:$8 sps:$4 sm:$0xff]  }
   0x4   :  { %132 = vmatprep.subr.bf16.mxu0 %v260_v3  ;;  %v271_v10 = vld [vmem:[%s372_s1 + $0x30] ss:$8 sps:$4 sm:$0xff]   ;;  %v272_v11 = vld [vmem:[%s372_s1 + $0x24] ss:$8 sps:$4 sm:$0xff]   ;;  %v274_v12 = vld [vmem:[%s372_s1 + $0x20] ss:$8 sps:$4 sm:$0xff]  }
   0x5   :  { %v275_v13 = vld [vmem:[%s372_s1 + $0x14] ss:$8 sps:$4 sm:$0xff]   ;;  %v277_v14 = vld [vmem:[%s372_s1 + $0x10] ss:$8 sps:$4 sm:$0xff]   ;;  %v278_v15 = vld [vmem:[%s372_s1 + $0x4] ss:$8 sps:$4 sm:$0xff]  }
   0x6   :  { %v280_v16 = vld [vmem:[%s372_s1] ss:$8 sps:$4 sm:$0xff]   ;;  %v221_v43 = vshrl.u32 %v220_v34, 7 }
   0x7   :  { %133 = vmatpush1.bf16.msra.mxu0 %v262_v4  ;;  %v281_v17 = vld [vmem:[%s373_s0] sm:$0xff]  }
   0x8   :  { %134 = vmatprep.subr.bf16.mxu0 %v263_v5  ;;  %vm223_vm0 = vcmp.eq.s32.totalorder %v221_v43, 1  ;;  %vm222_vm1 = vcmp.eq.s32.totalorder %v221_v43, 0 }
   0xb   :  { %135 = vmatpush1.bf16.msra.mxu0 %v265_v6 }
   0xc   :  { %136 = vmatprep.subr.bf16.mxu0 %v266_v7 }
   0xf   :  { %137 = vmatpush1.bf16.msra.mxu0 %v268_v8 }
  0x10   :  { %138 = vmatprep.subr.bf16.mxu0 %v269_v9 }
  0x13   :  { %139 = vmatpush1.bf16.msra.mxu0 %v271_v10 }
  0x14   :  { %140 = vmatprep.subr.bf16.mxu0 %v272_v11 }
  0x17   :  { %141 = vmatpush1.bf16.msra.mxu0 %v274_v12 }
  0x18   :  { %142 = vmatprep.subr.bf16.mxu0 %v275_v13 }
  0x1b   :  { %143 = vmatpush1.bf16.msra.mxu0 %v277_v14 }
  0x1c   :  { %144 = vmatprep.subr.bf16.mxu0 %v278_v15 }
  0x1f   :  { %145 = vmatpush1.bf16.msra.mxu0 %v280_v16 }
  0x22   :  { %163 = vmatmul.mubr.bf16.vlgmr.msra.gmra.mxu0 %v281_v17 }
  0xe2   :  { %v164_v18 = vpop.f32.mrf.mxu0 }
  0xe3   :  { %177 = vst [vmem:[%s374_s2] sm:$0xff] %v164_v18  ;;  %v202_v22 = vmul.f32 %v164_v18, %v164_v18 }
  0xe4   :  { %v166_v19 = vpop.f32.mrf.mxu0 }
  0xe5   :  { %178 = vst [vmem:[%s374_s2 + $0x8] sm:$0xff] %v166_v19  ;;  %v203_v25 = vmul.f32 %v166_v19, %v166_v19 }
  0xe6   :  { %v168_v20 = vpop.f32.mrf.mxu0 }
  0xe7   :  { %179 = vst [vmem:[%s374_s2 + $0x10] sm:$0xff] %v168_v20  ;;  %v188_v23 = vadd.f32 %v168_v20, %v164_v18  ;;  %v204_v24 = vmul.f32 %v168_v20, %v168_v20 }
  0xe8   :  { %v170_v21 = vpop.f32.mrf.mxu0 }
  0xe9   :  { %v189_v26 = vrot.slane %v188_v23, 4  ;;  %v206_v27 = vadd.f32 %v204_v24, %v202_v22  ;;  %180 = vst [vmem:[%s374_s2 + $0x18] sm:$0xff] %v170_v21  ;;  %v195_v28 = vadd.f32 %v170_v21, %v166_v19  ;;  %v205_v29 = vmul.f32 %v170_v21, %v170_v21 }
  0xeb   :  { %v190_v30 = vadd.f32 %v189_v26, %v188_v23  ;;  %v207_v31 = vrot.slane %v206_v27, 4  ;;  %v196_v32 = vrot.slane %v195_v28, 4  ;;  %v213_v33 = vadd.f32 %v205_v29, %v203_v25 }
  0xed   :  { %v191_v35 = vrot.slane %v190_v30, 2  ;;  %v208_v36 = vadd.f32 %v207_v31, %v206_v27  ;;  %v197_v37 = vadd.f32 %v196_v32, %v195_v28  ;;  %v214_v38 = vrot.slane %v213_v33, 4 }
  0xef   :  { %v192_v39 = vadd.f32 %v191_v35, %v190_v30  ;;  %v209_v40 = vrot.slane %v208_v36, 2  ;;  %v198_v41 = vrot.slane %v197_v37, 2  ;;  %v215_v42 = vadd.f32 %v214_v38, %v213_v33 }
  0xf1   :  { %v210_v44 = vadd.f32 %v209_v40, %v208_v36  ;;  %v199_v45 = vadd.f32 %v198_v41, %v197_v37  ;;  %v216_v46 = vrot.slane %v215_v42, 2  ;;  %v193_v47 = vrot.slane %v192_v39, 1 }
  0xf3   :  { %v211_v48 = vrot.slane %v210_v44, 1  ;;  %v217_v49 = vadd.f32 %v216_v46, %v215_v42  ;;  %v200_v50 = vrot.slane %v199_v45, 1  ;;  %v194_v53 = vadd.f32 %v193_v47, %v192_v39 }
  0xf5   :  { %v212_v51 = vadd.f32 %v211_v48, %v210_v44  ;;  %v218_v52 = vrot.slane %v217_v49, 1  ;;  %v201_v57 = vadd.f32 %v200_v50, %v199_v45 }
  0xf7   :  { %v224_v54 = vsel %vm223_vm0, %v212_v51, 0.0  ;;  %v219_v55 = vadd.f32 %v218_v52, %v217_v49 }
  0xf8   :  { %v226_v56 = vsel %vm222_vm1, %v194_v53, %v224_v54 }
  0xf9   :  { %228 = vst [vmem:[%s375_s3] sm:$0xff] %v226_v56  ;;  %v225_v58 = vsel %vm223_vm0, %v219_v55, 0.0 }
  0xfa   :  { %v227_v59 = vsel %vm222_vm1, %v201_v57, %v225_v58 }
  0xfb   :  { %229 = vst [vmem:[%s375_s3 + $0x8] sm:$0xff] %v227_v59 }

// kernel: attribute_cnn_forward.62
= control target key start
LH: loop header
LB: loop body
LE: loop exit
PB: predicated region body
PF: predicated region fallthrough
CT: control target
= control target key end

     0   :  { %v20_v0 = vlaneseq  ;;  %s120_s1 = inlined_call_operand.vmem [shape: f32[1,256], index: 1, kind: input, shape index: {}]   ;;  %s121_s2 = inlined_call_operand.vmem [shape: f32[1,256], index: 2, kind: input, shape index: {}]   ;;  %s122_s0 = inlined_call_operand.vmem [shape: f32[16,256], index: 0, kind: input, shape index: {}]   ;;  %s123_s3 = inlined_call_operand.vmem [shape: bf16[16,256], index: 3, kind: output, shape index: {}]  }
   0x1   :  { %v18_v2 = vld [vmem:[%s120_s1] sm:$0x3]  ;;  %v15_v7 = vld [vmem:[%s122_s0 + $0x8] sm:$0xff]  ;;  %v16_v8 = vld [vmem:[%s122_s0 + $0x10] sm:$0xff] }
   0x2   :  { %v21_v1 = vshrl.u32 %v20_v0, 7  ;;  %v34_v3 = vld [vmem:[%s121_s2] sm:$0x3]  ;;  %v17_v9 = vld [vmem:[%s122_s0 + $0x18] sm:$0xff] }
   0x3   :  { %v14_v4 = vld [vmem:[%s122_s0] sm:$0xff] }
   0x4   :  { %v22_v5 = vsub.s32 0, %v21_v1  ;;  %v26_v6 = vsub.s32 1, %v21_v1 }
   0x6   :  { %v23_v10 = vrot.slane %v18_v2, %v22_v5  ;;  %v27_v11 = vrot.slane %v18_v2, %v26_v6  ;;  %v39_v12 = vrot.slane %v34_v3, %v22_v5  ;;  %v43_v13 = vrot.slane %v34_v3, %v26_v6 }
   0x8   :  { %v30_v14 = vmul.f32 %v23_v10, %v14_v4  ;;  %v31_v15 = vmul.f32 %v27_v11, %v15_v7  ;;  %v32_v16 = vmul.f32 %v23_v10, %v16_v8  ;;  %v33_v17 = vmul.f32 %v27_v11, %v17_v9 }
   0xa   :  { %v46_v18 = vadd.f32 %v39_v12, %v30_v14  ;;  %v47_v19 = vadd.f32 %v43_v13, %v31_v15  ;;  %v48_v20 = vadd.f32 %v39_v12, %v32_v16  ;;  %v49_v21 = vadd.f32 %v43_v13, %v33_v17 }
   0xc   :  { %v50_v22 = vmax.f32 %v46_v18, 0.0  ;;  %v51_v23 = vmax.f32 %v47_v19, 0.0  ;;  %v52_v24 = vmax.f32 %v48_v20, 0.0  ;;  %v53_v25 = vmax.f32 %v49_v21, 0.0 }
   0xe   :  { %v74_v26 = vpack.c.bf16 %v51_v23, %v50_v22  ;;  %v75_v27 = vpack.c.bf16 %v53_v25, %v52_v24 }
  0x10   :  { %66 = vst [vmem:[%s123_s3] sm:$0xff] %v74_v26  ;;  %67 = vst [vmem:[%s123_s3 + $0x8] sm:$0xff] %v75_v27 }

// kernel: attribute_cnn_forward.61
= control target key start
LH: loop header
LB: loop body
LE: loop exit
PB: predicated region body
PF: predicated region fallthrough
CT: control target
= control target key end

     0   :  { %s862_s12 = smov 0   ;;  %s864_s13 = smov 0   ;;  %s1006_s0 = inlined_call_operand.vmem [shape: bf16[16,1152], index: 0, kind: input, shape index: {}]   ;;  %s1007_s1 = inlined_call_operand.vmem [shape: bf16[1152,256], index: 1, kind: input, shape index: {}]   ;;  %s1008_s2 = inlined_call_operand.vmem [shape: f32[16,256], index: 2, kind: output, shape index: {0}]   ;;  %s1009_s3 = inlined_call_operand.vmem [shape: f32[1,8,256], index: 3, kind: output, shape index: {1}]  }
   0x1   :  { %s866_s14 = smov 0   ;;  %s868_s15 = smov 0  }
   0x2   :  { %s870_s16 = smov 0  }
   0x3 LB: > { %s26_s17 = sadd.s32 1, %s834_s15  ;;  %p49_p1 = scmp.ne.s32.totalorder %s826_s13, %s822_s12  ;;  %s838_s16 = sphi %s870_s16, %s14_s16   ;;  %s834_s15 = sphi %s868_s15, %s1013_s15   ;;  %s830_s14 = sphi %s866_s14, %s1012_s14   ;;  %s826_s13 = sphi %s864_s13, %s1011_s13   ;;  %s822_s12 = sphi %s862_s12, %s1010_s12  }
   0x4   : > { %p27_p0 = scmp.ge.s32.totalorder %s26_s17, 9  ;;  %p50_p2 = scmp.eq.s32.totalorder %s838_s16, 0 }
   0x5   : > { %s42_s19 = sadd.s32 1, %s826_s13  ;;  %p699_p5 = scmp.ge.s32.totalorder %s838_s16, 9 }
   0x6   : > { %s1015_s17 = smov (%p27_p0, %s26_s17), 0  ;;  %p51_p3 = por %p50_p2, %p49_p1 }
   0x7   : > { %s38_s18 = ssub.s32 %s834_s15, %s1015_s17  ;;  %159 = sbr.rel (%p699_p5) target bundleno = 17 (0x11), region = 16 }
   0x8   : > { %p40_p4 = scmp.eq.s32.totalorder %s38_s18, 0 }
   0xa   : > { %s897_s20 = scalar_select %p40_p4, %s826_s13, %s42_s19  }
   0xc   : > { %162 = sbr.rel (!%p51_p3) target bundleno = 17 (0x11), region = 20  ;;  %s164_s21 = sand.u32 (%p51_p3), 1, %s826_s13  }
   0xd   : > { %s701_s22 = sshll.u32 (%p51_p3), %s834_s15, 2  ;;  %s700_s23 = sshll.u32 (%p51_p3), %s164_s21, 3 }
   0xe   : > { %s171_s26 = scalar_lea.vmem (%p51_p3), %s1006_s0, %s701_s22  ;;  %s166_s27 = scalar_lea.vmem (%p51_p3), [#allocation2], %s700_s23 }
   0xf   : > { %v188_v0 = vld [vmem:[%s171_s26] sm:$0xf] (%p51_p3)  ;;  %v190_v1 = vld [vmem:[%s171_s26 + $0x24] sm:$0xf] (%p51_p3) }
  0x10   : > { %189 = vst [vmem:[%s166_s27] sm:$0xf] (%p51_p3), %v188_v0  ;;  %191 = vst [vmem:[%s166_s27 + $0x4] sm:$0xf] (%p51_p3), %v190_v1 }
  0x11 PF: > { %p702_p6 = scmp.ge.s32.totalorder %s838_s16, 1  ;;  %p233_p7 = scmp.lt.s32.totalorder %s838_s16, 10 }
  0x13   : > { %p234_p8 = pnand %p702_p6, %p233_p7 }
  0x14   : > { %s240_s28 = sand.u32 (!%p234_p8), 1, %s822_s12   ;;  %s704_s29 = sshll.u32 (!%p234_p8), %s830_s14, 4 }
  0x15   : > { %237 = sbr.rel (%p234_p8) target bundleno = 295 (0x127), region = 65  ;;  %s909_s30 = sshll.u32 (!%p234_p8), %s240_s28, 3 }
  0x16   : > { %p290_p9 = scmp.lt.s32.totalorder (!%p234_p8), %s704_s29, 143  ;;  %s242_s8 = scalar_lea.vmem (!%p234_p8), [#allocation2], %s909_s30 }
  0x17   : > { %p707_p10 = scmp.ne.s32.totalorder (!%p234_p8), %s830_s14, 0 }
  0x1a   : > { %s1017_s29 = smov (!%p290_p9, %s704_s29), 143  ;;  %326 = sbr.rel (%p707_p10) target bundleno = 34 (0x22), region = 73 }
  0x1b   : > { %s732_s4 = sshll.u32 %s1017_s29, 3 }
  0x1c   : > { %s914_s7 = scalar_lea.vmem %s1007_s1, %s732_s4 }
  0x1f   : > { %v840_v2 = vmov 0.0  }
  0x20   : > { %327 = vst [vmem:[%s1008_s2] sm:$0xff] %v840_v2  ;;  %328 = vst [vmem:[%s1008_s2 + $0x8] sm:$0xff] %v840_v2 }
  0x21   : > { %329 = vst [vmem:[%s1008_s2 + $0x10] sm:$0xff] %v840_v2  ;;  %330 = vst [vmem:[%s1008_s2 + $0x18] sm:$0xff] %v840_v2 }
  0x22 PF: > { %v775_v3 = vld [vmem:[%s914_s7 + $0x74] ss:$8 sps:$4 sm:$0xff]   ;;  %v777_v4 = vld [vmem:[%s914_s7 + $0x70] ss:$8 sps:$4 sm:$0xff]   ;;  %v841_v5 = vmov 0   ;;  %v799_v20 = vld [vmem:[%s242_s8] sm:$0xff]  }
  0x23   : > { %471 = vmatprep.mubr.bf16.mxu0 %v841_v5  ;;  %439 = vmatprep.subr.bf16.mxu0 %v775_v3  ;;  %v778_v6 = vld [vmem:[%s914_s7 + $0x64] ss:$8 sps:$4 sm:$0xff]   ;;  %v780_v7 = vld [vmem:[%s914_s7 + $0x60] ss:$8 sps:$4 sm:$0xff]   ;;  %v781_v8 = vld [vmem:[%s914_s7 + $0x54] ss:$8 sps:$4 sm:$0xff]  }
  0x24   : > { %440 = vmatpush1.bf16.msra.mxu0 %v777_v4  ;;  %v783_v9 = vld [vmem:[%s914_s7 + $0x50] ss:$8 sps:$4 sm:$0xff]   ;;  %v784_v10 = vld [vmem:[%s914_s7 + $0x44] ss:$8 sps:$4 sm:$0xff]   ;;  %v786_v11 = vld [vmem:[%s914_s7 + $0x40] ss:$8 sps:$4 sm:$0xff]  }
  0x25   : > { %441 = vmatprep.subr.bf16.mxu0 %v778_v6  ;;  %v787_v12 = vld [vmem:[%s914_s7 + $0x34] ss:$8 sps:$4 sm:$0xff]   ;;  %v789_v13 = vld [vmem:[%s914_s7 + $0x30] ss:$8 sps:$4 sm:$0xff]   ;;  %v790_v14 = vld [vmem:[%s914_s7 + $0x24] ss:$8 sps:$4 sm:$0xff]  }
  0x26   : > { %v792_v15 = vld [vmem:[%s914_s7 + $0x20] ss:$8 sps:$4 sm:$0xff]   ;;  %v793_v16 = vld [vmem:[%s914_s7 + $0x14] ss:$8 sps:$4 sm:$0xff]   ;;  %v795_v17 = vld [vmem:[%s914_s7 + $0x10] ss:$8 sps:$4 sm:$0xff]  }
  0x27   : > { %v796_v18 = vld [vmem:[%s914_s7 + $0x4] ss:$8 sps:$4 sm:$0xff]   ;;  %v798_v19 = vld [vmem:[%s914_s7] ss:$8 sps:$4 sm:$0xff]   ;;  %p725_p11 = scmp.ne.s32.totalorder %s830_s14, 8 }
  0x28   : > { %442 = vmatpush1.bf16.msra.mxu0 %v780_v7  ;;  %v331_v21 = vld [vmem:[%s1008_s2] sm:$0xff]  ;;  %v332_v23 = vld [vmem:[%s1008_s2 + $0x8] sm:$0xff]  ;;  %v333_v26 = vld [vmem:[%s1008_s2 + $0x10] sm:$0xff] }
  0x29   : > { %443 = vmatprep.subr.bf16.mxu0 %v781_v8  ;;  %v334_v29 = vld [vmem:[%s1008_s2 + $0x18] sm:$0xff] }
  0x2c   : > { %444 = vmatpush1.bf16.msra.mxu0 %v783_v9 }
  0x2d   : > { %445 = vmatprep.subr.bf16.mxu0 %v784_v10 }
  0x30   : > { %446 = vmatpush1.bf16.msra.mxu0 %v786_v11 }
  0x31   : > { %447 = vmatprep.subr.bf16.mxu0 %v787_v12 }
  0x34   : > { %448 = vmatpush1.bf16.msra.mxu0 %v789_v13 }
  0x35   : > { %449 = vmatprep.subr.bf16.mxu0 %v790_v14 }
  0x38   : > { %450 = vmatpush1.bf16.msra.mxu0 %v792_v15 }
  0x39   : > { %451 = vmatprep.subr.bf16.mxu0 %v793_v16 }
  0x3c   : > { %452 = vmatpush1.bf16.msra.mxu0 %v795_v17 }
  0x3d   : > { %453 = vmatprep.subr.bf16.mxu0 %v796_v18 }
  0x40   : > { %454 = vmatpush1.bf16.msra.mxu0 %v798_v19 }
  0x43   : > { %472 = vmatmul.mubr.bf16.vlgmr.msra.gmra.mxu0 %v799_v20 }
 0x103   : > { %v473_v22 = vpop.f32.mrf.mxu0 }
 0x104   : > { %v482_v24 = vadd.f32 %v473_v22, %v331_v21 }
 0x105   : > { %v475_v25 = vpop.f32.mrf.mxu0 }
 0x106   : > { %486 = vst [vmem:[%s1008_s2] sm:$0xff] %v482_v24  ;;  %v483_v27 = vadd.f32 %v475_v25, %v332_v23 }
 0x107   : > { %v477_v28 = vpop.f32.mrf.mxu0 }
 0x108   : > { %487 = vst [vmem:[%s1008_s2 + $0x8] sm:$0xff] %v483_v27  ;;  %v484_v30 = vadd.f32 %v477_v28, %v333_v26  ;;  %493 = sbr.rel (%p725_p11) target bundleno = 295 (0x127), region = 77 }
 0x109   : > { %v479_v31 = vpop.f32.mrf.mxu0 }
 0x10a   : > { %488 = vst [vmem:[%s1008_s2 + $0x10] sm:$0xff] %v484_v30  ;;  %v485_v32 = vadd.f32 %v479_v31, %v334_v29 }
 0x10c   : > { %489 = vst [vmem:[%s1008_s2 + $0x18] sm:$0xff] %v485_v32 }
 0x10d   : > { %v494_v33 = vld [vmem:[%s1008_s2] sm:$0xff]  ;;  %v530_v49 = vlaneseq }
 0x10e   : > { %v512_v37 = vmul.f32 %v494_v33, %v494_v33 }
 0x10f   : > { %v495_v35 = vld [vmem:[%s1008_s2 + $0x8] sm:$0xff]  ;;  %v531_v58 = vshrl.u32 %v530_v49, 7 }
 0x110   : > { %v513_v40 = vmul.f32 %v495_v35, %v495_v35 }
 0x111   : > { %v496_v34 = vld [vmem:[%s1008_s2 + $0x10] sm:$0xff]  ;;  %vm533_vm0 = vcmp.eq.s32.totalorder %v531_v58, 1  ;;  %vm532_vm1 = vcmp.eq.s32.totalorder %v531_v58, 0 }
 0x112   : > { %v498_v36 = vadd.f32 %v496_v34, %v494_v33  ;;  %v514_v38 = vmul.f32 %v496_v34, %v496_v34 }
 0x113   : > { %v497_v39 = vld [vmem:[%s1008_s2 + $0x18] sm:$0xff] }
 0x114   : > { %v505_v41 = vadd.f32 %v497_v39, %v495_v35  ;;  %v515_v42 = vmul.f32 %v497_v39, %v497_v39  ;;  %v499_v43 = vrot.slane %v498_v36, 4  ;;  %v516_v44 = vadd.f32 %v514_v38, %v512_v37 }
 0x116   : > { %v506_v45 = vrot.slane %v505_v41, 4  ;;  %v523_v46 = vadd.f32 %v515_v42, %v513_v40  ;;  %v500_v47 = vadd.f32 %v499_v43, %v498_v36  ;;  %v517_v48 = vrot.slane %v516_v44, 4 }
 0x118   : > { %v507_v50 = vadd.f32 %v506_v45, %v505_v41  ;;  %v524_v51 = vrot.slane %v523_v46, 4  ;;  %v501_v52 = vrot.slane %v500_v47, 2  ;;  %v518_v53 = vadd.f32 %v517_v48, %v516_v44 }
 0x11a   : > { %v508_v54 = vrot.slane %v507_v50, 2  ;;  %v525_v55 = vadd.f32 %v524_v51, %v523_v46  ;;  %v502_v56 = vadd.f32 %v501_v52, %v500_v47  ;;  %v519_v57 = vrot.slane %v518_v53, 2 }
 0x11c   : > { %v509_v59 = vadd.f32 %v508_v54, %v507_v50  ;;  %v526_v60 = vrot.slane %v525_v55, 2  ;;  %v503_v61 = vrot.slane %v502_v56, 1  ;;  %v520_v62 = vadd.f32 %v519_v57, %v518_v53 }
 0x11e   : > { %v510_v63 = vrot.slane %v509_v59, 1  ;;  %v527_v0 = vadd.f32 %v526_v60, %v525_v55  ;;  %v521_v1 = vrot.slane %v520_v62, 1  ;;  %v504_v2 = vadd.f32 %v503_v61, %v502_v56 }
 0x120   : > { %v528_v3 = vrot.slane %v527_v0, 1  ;;  %v522_v4 = vadd.f32 %v521_v1, %v520_v62  ;;  %v511_v5 = vadd.f32 %v510_v63, %v509_v59 }
 0x122   : > { %v529_v6 = vadd.f32 %v528_v3, %v527_v0  ;;  %v534_v7 = vsel %vm533_vm0, %v522_v4, 0.0 }
 0x123   : > { %v536_v8 = vsel %vm532_vm1, %v504_v2, %v534_v7 }
 0x124   : > { %v535_v9 = vsel %vm533_vm0, %v529_v6, 0.0  ;;  %538 = vst [vmem:[%s1009_s3] sm:$0xff] %v536_v8 }
 0x125   : > { %v537_v10 = vsel %vm532_vm1, %v511_v5, %v535_v9 }
 0x126   : > { %539 = vst [vmem:[%s1009_s3 + $0x8] sm:$0xff] %v537_v10 }
 0x127 PF: > { %s14_s16 = sadd.s32 1, %s838_s16   ;;  %s1010_s12 = smov %s826_s13 }
 0x128   : > { %p11_p12 = scmp.ge.s32.totalorder %s14_s16, 11   ;;  %s1011_s13 = smov %s897_s20 }
 0x129   : > { %s1012_s14 = smov %s834_s15  ;;  %s1013_s15 = smov %s1015_s17 }
 0x12a   :  { %13 = sbr.rel (!%p11_p12) target bundleno = 3 (0x3), region = 127 }

// kernel: attribute_cnn_forward.66
= control target key start
LH: loop header
LB: loop body
LE: loop exit
PB: predicated region body
PF: predicated region fallthrough
CT: control target
= control target key end

     0   :  { %v23_v0 = vlaneseq  ;;  %s144_s1 = inlined_call_operand.vmem [shape: f32[1,256], index: 1, kind: input, shape index: {}]   ;;  %s145_s2 = inlined_call_operand.vmem [shape: f32[1,256], index: 2, kind: input, shape index: {}]   ;;  %s146_s0 = inlined_call_operand.vmem [shape: f32[16,256], index: 0, kind: input, shape index: {}]   ;;  %s147_s3 = inlined_call_operand.vmem [shape: bf16[16,256], index: 3, kind: input, shape index: {}]   ;;  %s148_s4 = inlined_call_operand.vmem [shape: bf16[16,256], index: 4, kind: output, shape index: {}]  }
   0x1   :  { %v21_v2 = vld [vmem:[%s144_s1] sm:$0x3]  ;;  %v54_v8 = vld [vmem:[%s147_s3 + $0x8] sm:$0xff]  ;;  %v19_v10 = vld [vmem:[%s146_s0 + $0x10] sm:$0xff] }
   0x2   :  { %v24_v1 = vshrl.u32 %v23_v0, 7  ;;  %v37_v3 = vld [vmem:[%s145_s2] sm:$0x3]  ;;  %v18_v9 = vld [vmem:[%s146_s0 + $0x8] sm:$0xff]  ;;  %v20_v11 = vld [vmem:[%s146_s0 + $0x18] sm:$0xff]  ;;  %v57_v18 = vunpack.c.l.bf16 %v54_v8  ;;  %v58_v19 = vunpack.c.h.bf16 %v54_v8 }
   0x3   :  { %v17_v4 = vld [vmem:[%s146_s0] sm:$0xff] }
   0x4   :  { %v25_v5 = vsub.s32 0, %v24_v1  ;;  %v29_v6 = vsub.s32 1, %v24_v1  ;;  %v53_v7 = vld [vmem:[%s147_s3] sm:$0xff] }
   0x5   :  { %v55_v16 = vunpack.c.l.bf16 %v53_v7  ;;  %v56_v17 = vunpack.c.h.bf16 %v53_v7 }
   0x6   :  { %v26_v12 = vrot.slane %v21_v2, %v25_v5  ;;  %v30_v13 = vrot.slane %v21_v2, %v29_v6  ;;  %v42_v14 = vrot.slane %v37_v3, %v25_v5  ;;  %v46_v15 = vrot.slane %v37_v3, %v29_v6 }
   0x8   :  { %v33_v20 = vmul.f32 %v26_v12, %v17_v4  ;;  %v34_v21 = vmul.f32 %v30_v13, %v18_v9  ;;  %v35_v22 = vmul.f32 %v26_v12, %v19_v10  ;;  %v36_v23 = vmul.f32 %v30_v13, %v20_v11 }
   0xa   :  { %v49_v24 = vadd.f32 %v42_v14, %v33_v20  ;;  %v50_v25 = vadd.f32 %v46_v15, %v34_v21  ;;  %v51_v26 = vadd.f32 %v42_v14, %v35_v22  ;;  %v52_v27 = vadd.f32 %v46_v15, %v36_v23 }
   0xc   :  { %v59_v28 = vadd.f32 %v55_v16, %v49_v24  ;;  %v60_v29 = vadd.f32 %v56_v17, %v50_v25  ;;  %v61_v30 = vadd.f32 %v57_v18, %v51_v26  ;;  %v62_v31 = vadd.f32 %v58_v19, %v52_v27 }
   0xe   :  { %v63_v32 = vmax.f32 %v59_v28, 0.0  ;;  %v64_v33 = vmax.f32 %v60_v29, 0.0  ;;  %v65_v34 = vmax.f32 %v61_v30, 0.0  ;;  %v66_v35 = vmax.f32 %v62_v31, 0.0 }
  0x10   :  { %v87_v36 = vpack.c.bf16 %v64_v33, %v63_v32  ;;  %v88_v37 = vpack.c.bf16 %v66_v35, %v65_v34 }
  0x12   :  { %79 = vst [vmem:[%s148_s4] sm:$0xff] %v87_v36  ;;  %80 = vst [vmem:[%s148_s4 + $0x8] sm:$0xff] %v88_v37 }

// kernel: attribute_cnn_forward.63
= control target key start
LH: loop header
LB: loop body
LE: loop exit
PB: predicated region body
PF: predicated region fallthrough
CT: control target
= control target key end

     0   :  { %s999_s12 = smov 0   ;;  %s1001_s13 = smov 0   ;;  %s1161_s0 = inlined_call_operand.vmem [shape: bf16[16,2304], index: 0, kind: input, shape index: {}]   ;;  %s1162_s1 = inlined_call_operand.vmem [shape: bf16[2304,256], index: 1, kind: input, shape index: {}]   ;;  %s1163_s2 = inlined_call_operand.vmem [shape: f32[16,256], index: 2, kind: output, shape index: {0}]   ;;  %s1164_s3 = inlined_call_operand.vmem [shape: f32[1,8,256], index: 3, kind: output, shape index: {1}]  }
   0x1   :  { %s1003_s14 = smov 0   ;;  %s1005_s15 = smov 0  }
   0x2   :  { %s1007_s16 = smov 0  }
   0x3 LB: > { %s26_s17 = sadd.s32 1, %s972_s15  ;;  %p49_p1 = scmp.ne.s32.totalorder %s964_s13, %s960_s12  ;;  %s976_s16 = sphi %s1007_s16, %s14_s16   ;;  %s972_s15 = sphi %s1005_s15, %s1168_s15   ;;  %s968_s14 = sphi %s1003_s14, %s1167_s14   ;;  %s964_s13 = sphi %s1001_s13, %s1166_s13   ;;  %s960_s12 = sphi %s999_s12, %s1165_s12  }
   0x4   : > { %p27_p0 = scmp.ge.s32.totalorder %s26_s17, 9  ;;  %p50_p2 = scmp.eq.s32.totalorder %s976_s16, 0 }
   0x5   : > { %s42_s19 = sadd.s32 1, %s964_s13  ;;  %p793_p5 = scmp.ge.s32.totalorder %s976_s16, 9 }
   0x6   : > { %s1170_s17 = smov (%p27_p0, %s26_s17), 0  ;;  %p51_p3 = por %p50_p2, %p49_p1 }
   0x7   : > { %s38_s18 = ssub.s32 %s972_s15, %s1170_s17  ;;  %159 = sbr.rel (%p793_p5) target bundleno = 17 (0x11), region = 16 }
   0x8   : > { %p40_p4 = scmp.eq.s32.totalorder %s38_s18, 0 }
   0xa   : > { %s1034_s20 = scalar_select %p40_p4, %s964_s13, %s42_s19  }
   0xc   : > { %162 = sbr.rel (!%p51_p3) target bundleno = 17 (0x11), region = 20  ;;  %s164_s21 = sand.u32 (%p51_p3), 1, %s964_s13  }
   0xd   : > { %s844_s22 = sshll.u32 (%p51_p3), %s972_s15, 3  ;;  %s794_s23 = sshll.u32 (%p51_p3), %s164_s21, 4 }
   0xe   : > { %s172_s26 = scalar_lea.vmem (%p51_p3), %s1161_s0, %s844_s22  ;;  %s166_s27 = scalar_lea.vmem (%p51_p3), [#allocation2], %s794_s23 }
   0xf   : > { %v203_v0 = vld [vmem:[%s172_s26] sm:$0xff] (%p51_p3)  ;;  %v205_v1 = vld [vmem:[%s172_s26 + $0x48] sm:$0xff] (%p51_p3) }
  0x10   : > { %204 = vst [vmem:[%s166_s27] sm:$0xff] (%p51_p3), %v203_v0  ;;  %206 = vst [vmem:[%s166_s27 + $0x8] sm:$0xff] (%p51_p3), %v205_v1 }
  0x11 PF: > { %p797_p6 = scmp.ge.s32.totalorder %s976_s16, 1  ;;  %p226_p7 = scmp.lt.s32.totalorder %s976_s16, 10 }
  0x13   : > { %p227_p8 = pnand %p797_p6, %p226_p7 }
  0x14   : > { %s233_s28 = sand.u32 (!%p227_p8), 1, %s960_s12   ;;  %s799_s29 = sshll.u32 (!%p227_p8), %s968_s14, 5 }
  0x15   : > { %230 = sbr.rel (%p227_p8) target bundleno = 327 (0x147), region = 62  ;;  %s1046_s30 = sshll.u32 (!%p227_p8), %s233_s28, 4 }
  0x16   : > { %p284_p9 = scmp.lt.s32.totalorder (!%p227_p8), %s799_s29, 287  ;;  %s235_s8 = scalar_lea.vmem (!%p227_p8), [#allocation2], %s1046_s30 }
  0x17   : > { %p802_p10 = scmp.ne.s32.totalorder (!%p227_p8), %s968_s14, 0 }
  0x1a   : > { %s1172_s29 = smov (!%p284_p9, %s799_s29), 287  ;;  %319 = sbr.rel (%p802_p10) target bundleno = 34 (0x22), region = 70 }
  0x1b   : > { %s845_s4 = sshll.u32 %s1172_s29, 3 }
  0x1c   : > { %s1051_s7 = scalar_lea.vmem %s1162_s1, %s845_s4 }
  0x1f   : > { %v978_v2 = vmov 0.0  }
  0x20   : > { %320 = vst [vmem:[%s1163_s2] sm:$0xff] %v978_v2  ;;  %321 = vst [vmem:[%s1163_s2 + $0x8] sm:$0xff] %v978_v2 }
  0x21   : > { %322 = vst [vmem:[%s1163_s2 + $0x10] sm:$0xff] %v978_v2  ;;  %323 = vst [vmem:[%s1163_s2 + $0x18] sm:$0xff] %v978_v2 }
  0x22 PF: > { %v887_v3 = vld [vmem:[%s1051_s7 + $0x74] ss:$8 sps:$4 sm:$0xff]   ;;  %v889_v4 = vld [vmem:[%s1051_s7 + $0x70] ss:$8 sps:$4 sm:$0xff]   ;;  %v890_v5 = vld [vmem:[%s1051_s7 + $0x64] ss:$8 sps:$4 sm:$0xff]  }
  0x23   : > { %532 = vmatprep.subr.bf16.mxu0 %v887_v3  ;;  %v892_v6 = vld [vmem:[%s1051_s7 + $0x60] ss:$8 sps:$4 sm:$0xff]   ;;  %v893_v7 = vld [vmem:[%s1051_s7 + $0x54] ss:$8 sps:$4 sm:$0xff]   ;;  %v895_v8 = vld [vmem:[%s1051_s7 + $0x50] ss:$8 sps:$4 sm:$0xff]  }
  0x24   : > { %533 = vmatpush1.bf16.msra.mxu0 %v889_v4  ;;  %v896_v9 = vld [vmem:[%s1051_s7 + $0x44] ss:$8 sps:$4 sm:$0xff]   ;;  %v898_v10 = vld [vmem:[%s1051_s7 + $0x40] ss:$8 sps:$4 sm:$0xff]   ;;  %v899_v11 = vld [vmem:[%s1051_s7 + $0x34] ss:$8 sps:$4 sm:$0xff]  }
  0x25   : > { %534 = vmatprep.subr.bf16.mxu0 %v890_v5  ;;  %v901_v12 = vld [vmem:[%s1051_s7 + $0x30] ss:$8 sps:$4 sm:$0xff]   ;;  %v902_v13 = vld [vmem:[%s1051_s7 + $0x24] ss:$8 sps:$4 sm:$0xff]   ;;  %v904_v14 = vld [vmem:[%s1051_s7 + $0x20] ss:$8 sps:$4 sm:$0xff]  }
  0x26   : > { %v905_v15 = vld [vmem:[%s1051_s7 + $0x14] ss:$8 sps:$4 sm:$0xff]   ;;  %v907_v17 = vld [vmem:[%s1051_s7 + $0x10] ss:$8 sps:$4 sm:$0xff]   ;;  %v908_v18 = vld [vmem:[%s1051_s7 + $0x4] ss:$8 sps:$4 sm:$0xff]  }
  0x27   : > { %v937_v16 = vld [vmem:[%s235_s8 + $0x4] ss:$8 sps:$4 sm:$0xff]   ;;  %v910_v19 = vld [vmem:[%s1051_s7] ss:$8 sps:$4 sm:$0xff]   ;;  %v913_v21 = vld [vmem:[%s1051_s7 + $0xf0] ss:$8 sps:$4 sm:$0xff]  }
  0x28   : > { %535 = vmatpush1.bf16.msra.mxu0 %v892_v6  ;;  %564 = vmatprep.mubr.bf16.mxu0 %v937_v16  ;;  %v911_v20 = vld [vmem:[%s1051_s7 + $0xf4] ss:$8 sps:$4 sm:$0xff]   ;;  %v914_v22 = vld [vmem:[%s1051_s7 + $0xe4] ss:$8 sps:$4 sm:$0xff]   ;;  %v916_v23 = vld [vmem:[%s1051_s7 + $0xe0] ss:$8 sps:$4 sm:$0xff]  }
  0x29   : > { %536 = vmatprep.subr.bf16.mxu0 %v893_v7  ;;  %v917_v24 = vld [vmem:[%s1051_s7 + $0xd4] ss:$8 sps:$4 sm:$0xff]   ;;  %v919_v25 = vld [vmem:[%s1051_s7 + $0xd0] ss:$8 sps:$4 sm:$0xff]   ;;  %v920_v26 = vld [vmem:[%s1051_s7 + $0xc4] ss:$8 sps:$4 sm:$0xff]  }
  0x2a   : > { %v922_v27 = vld [vmem:[%s1051_s7 + $0xc0] ss:$8 sps:$4 sm:$0xff]   ;;  %v923_v28 = vld [vmem:[%s1051_s7 + $0xb4] ss:$8 sps:$4 sm:$0xff]   ;;  %v925_v29 = vld [vmem:[%s1051_s7 + $0xb0] ss:$8 sps:$4 sm:$0xff]  }
  0x2b   : > { %v926_v30 = vld [vmem:[%s1051_s7 + $0xa4] ss:$8 sps:$4 sm:$0xff]   ;;  %v928_v31 = vld [vmem:[%s1051_s7 + $0xa0] ss:$8 sps:$4 sm:$0xff]   ;;  %v929_v32 = vld [vmem:[%s1051_s7 + $0x94] ss:$8 sps:$4 sm:$0xff]  }
  0x2c   : > { %537 = vmatpush1.bf16.msra.mxu0 %v895_v8  ;;  %v931_v33 = vld [vmem:[%s1051_s7 + $0x90] ss:$8 sps:$4 sm:$0xff]   ;;  %v932_v34 = vld [vmem:[%s1051_s7 + $0x84] ss:$8 sps:$4 sm:$0xff]   ;;  %v934_v35 = vld [vmem:[%s1051_s7 + $0x80] ss:$8 sps:$4 sm:$0xff]  }
  0x2d   : > { %538 = vmatprep.subr.bf16.mxu0 %v896_v9  ;;  %v935_v36 = vld [vmem:[%s235_s8] ss:$8 sps:$4 sm:$0xff]   ;;  %p837_p11 = scmp.ne.s32.totalorder %s968_s14, 8 }
  0x2e   : > { %v324_v37 = vld [vmem:[%s1163_s2] sm:$0xff]  ;;  %v325_v39 = vld [vmem:[%s1163_s2 + $0x8] sm:$0xff]  ;;  %v326_v42 = vld [vmem:[%s1163_s2 + $0x10] sm:$0xff] }
  0x2f   : > { %v327_v45 = vld [vmem:[%s1163_s2 + $0x18] sm:$0xff] }
  0x30   : > { %539 = vmatpush1.bf16.msra.mxu0 %v898_v10 }
  0x31   : > { %540 = vmatprep.subr.bf16.mxu0 %v899_v11 }
  0x34   : > { %541 = vmatpush1.bf16.msra.mxu0 %v901_v12 }
  0x35   : > { %542 = vmatprep.subr.bf16.mxu0 %v902_v13 }
  0x38   : > { %543 = vmatpush1.bf16.msra.mxu0 %v904_v14 }
  0x39   : > { %544 = vmatprep.subr.bf16.mxu0 %v905_v15 }
  0x3c   : > { %545 = vmatpush1.bf16.msra.mxu0 %v907_v17 }
  0x3d   : > { %546 = vmatprep.subr.bf16.mxu0 %v908_v18 }
  0x40   : > { %547 = vmatpush1.bf16.msra.mxu0 %v910_v19 }
  0x41   : > { %548 = vmatprep.subr.bf16.mxu0 %v911_v20 }
  0x44   : > { %549 = vmatpush2.bf16.msra.mxu0 %v913_v21 }
  0x45   : > { %550 = vmatprep.subr.bf16.mxu0 %v914_v22 }
  0x48   : > { %551 = vmatpush2.bf16.msra.mxu0 %v916_v23 }
  0x49   : > { %552 = vmatprep.subr.bf16.mxu0 %v917_v24 }
  0x4c   : > { %553 = vmatpush2.bf16.msra.mxu0 %v919_v25 }
  0x4d   : > { %554 = vmatprep.subr.bf16.mxu0 %v920_v26 }
  0x50   : > { %555 = vmatpush2.bf16.msra.mxu0 %v922_v27 }
  0x51   : > { %556 = vmatprep.subr.bf16.mxu0 %v923_v28 }
  0x54   : > { %557 = vmatpush2.bf16.msra.mxu0 %v925_v29 }
  0x55   : > { %558 = vmatprep.subr.bf16.mxu0 %v926_v30 }
  0x58   : > { %559 = vmatpush2.bf16.msra.mxu0 %v928_v31 }
  0x59   : > { %560 = vmatprep.subr.bf16.mxu0 %v929_v32 }
  0x5c   : > { %561 = vmatpush2.bf16.msra.mxu0 %v931_v33 }
  0x5d   : > { %562 = vmatprep.subr.bf16.mxu0 %v932_v34 }
  0x60   : > { %563 = vmatpush2.bf16.msra.mxu0 %v934_v35 }
  0x63   : > { %565 = vmatmul.mubr.bf16.vlgmr.msra.gmra.mxu0 %v935_v36 }
 0x123   : > { %v566_v38 = vpop.f32.mrf.mxu0 }
 0x124   : > { %v575_v40 = vadd.f32 %v566_v38, %v324_v37 }
 0x125   : > { %v568_v41 = vpop.f32.mrf.mxu0 }
 0x126   : > { %579 = vst [vmem:[%s1163_s2] sm:$0xff] %v575_v40  ;;  %v576_v43 = vadd.f32 %v568_v41, %v325_v39 }
 0x127   : > { %v570_v44 = vpop.f32.mrf.mxu0 }
 0x128   : > { %580 = vst [vmem:[%s1163_s2 + $0x8] sm:$0xff] %v576_v43  ;;  %v577_v46 = vadd.f32 %v570_v44, %v326_v42  ;;  %586 = sbr.rel (%p837_p11) target bundleno = 327 (0x147), region = 74 }
 0x129   : > { %v572_v47 = vpop.f32.mrf.mxu0 }
 0x12a   : > { %581 = vst [vmem:[%s1163_s2 + $0x10] sm:$0xff] %v577_v46  ;;  %v578_v48 = vadd.f32 %v572_v47, %v327_v45 }
 0x12c   : > { %582 = vst [vmem:[%s1163_s2 + $0x18] sm:$0xff] %v578_v48 }
 0x12d   : > { %v587_v49 = vld [vmem:[%s1163_s2] sm:$0xff]  ;;  %v623_v1 = vlaneseq }
 0x12e   : > { %v605_v53 = vmul.f32 %v587_v49, %v587_v49 }
 0x12f   : > { %v588_v51 = vld [vmem:[%s1163_s2 + $0x8] sm:$0xff]  ;;  %v624_v10 = vshrl.u32 %v623_v1, 7 }
 0x130   : > { %v606_v56 = vmul.f32 %v588_v51, %v588_v51 }
 0x131   : > { %v589_v50 = vld [vmem:[%s1163_s2 + $0x10] sm:$0xff]  ;;  %vm626_vm0 = vcmp.eq.s32.totalorder %v624_v10, 1  ;;  %vm625_vm1 = vcmp.eq.s32.totalorder %v624_v10, 0 }
 0x132   : > { %v591_v52 = vadd.f32 %v589_v50, %v587_v49  ;;  %v607_v54 = vmul.f32 %v589_v50, %v589_v50 }
 0x133   : > { %v590_v55 = vld [vmem:[%s1163_s2 + $0x18] sm:$0xff] }
 0x134   : > { %v598_v57 = vadd.f32 %v590_v55, %v588_v51  ;;  %v608_v58 = vmul.f32 %v590_v55, %v590_v55  ;;  %v592_v59 = vrot.slane %v591_v52, 4  ;;  %v609_v60 = vadd.f32 %v607_v54, %v605_v53 }
 0x136   : > { %v599_v61 = vrot.slane %v598_v57, 4  ;;  %v616_v62 = vadd.f32 %v608_v58, %v606_v56  ;;  %v593_v63 = vadd.f32 %v592_v59, %v591_v52  ;;  %v610_v0 = vrot.slane %v609_v60, 4 }
 0x138   : > { %v600_v2 = vadd.f32 %v599_v61, %v598_v57  ;;  %v617_v3 = vrot.slane %v616_v62, 4  ;;  %v594_v4 = vrot.slane %v593_v63, 2  ;;  %v611_v5 = vadd.f32 %v610_v0, %v609_v60 }
 0x13a   : > { %v601_v6 = vrot.slane %v600_v2, 2  ;;  %v618_v7 = vadd.f32 %v617_v3, %v616_v62  ;;  %v595_v8 = vadd.f32 %v594_v4, %v593_v63  ;;  %v612_v9 = vrot.slane %v611_v5, 2 }
 0x13c   : > { %v602_v11 = vadd.f32 %v601_v6, %v600_v2  ;;  %v619_v12 = vrot.slane %v618_v7, 2  ;;  %v596_v13 = vrot.slane %v595_v8, 1  ;;  %v613_v14 = vadd.f32 %v612_v9, %v611_v5 }
 0x13e   : > { %v603_v15 = vrot.slane %v602_v11, 1  ;;  %v620_v16 = vadd.f32 %v619_v12, %v618_v7  ;;  %v614_v17 = vrot.slane %v613_v14, 1  ;;  %v597_v18 = vadd.f32 %v596_v13, %v595_v8 }
 0x140   : > { %v621_v19 = vrot.slane %v620_v16, 1  ;;  %v615_v20 = vadd.f32 %v614_v17, %v613_v14  ;;  %v604_v21 = vadd.f32 %v603_v15, %v602_v11 }
 0x142   : > { %v622_v22 = vadd.f32 %v621_v19, %v620_v16  ;;  %v627_v23 = vsel %vm626_vm0, %v615_v20, 0.0 }
 0x143   : > { %v629_v24 = vsel %vm625_vm1, %v597_v18, %v627_v23 }
 0x144   : > { %v628_v25 = vsel %vm626_vm0, %v622_v22, 0.0  ;;  %631 = vst [vmem:[%s1164_s3] sm:$0xff] %v629_v24 }
 0x145   : > { %v630_v26 = vsel %vm625_vm1, %v604_v21, %v628_v25 }
 0x146   : > { %632 = vst [vmem:[%s1164_s3 + $0x8] sm:$0xff] %v630_v26 }
 0x147 PF: > { %s14_s16 = sadd.s32 1, %s976_s16   ;;  %s1165_s12 = smov %s964_s13 }
 0x148   : > { %p11_p12 = scmp.ge.s32.totalorder %s14_s16, 11   ;;  %s1166_s13 = smov %s1034_s20 }
 0x149   : > { %s1167_s14 = smov %s972_s15  ;;  %s1168_s15 = smov %s1170_s17 }
 0x14a   :  { %13 = sbr.rel (!%p11_p12) target bundleno = 3 (0x3), region = 124 }

// kernel: attribute_cnn_forward.75
= control target key start
LH: loop header
LB: loop body
LE: loop exit
PB: predicated region body
PF: predicated region fallthrough
CT: control target
= control target key end

     0   :  { %v24_v0 = vlaneseq  ;;  %s184_s1 = inlined_call_operand.vmem [shape: f32[1,512], index: 1, kind: input, shape index: {}]   ;;  %s185_s2 = inlined_call_operand.vmem [shape: f32[1,512], index: 2, kind: input, shape index: {}]   ;;  %s186_s0 = inlined_call_operand.vmem [shape: f32[16,512], index: 0, kind: input, shape index: {}]   ;;  %s187_s3 = inlined_call_operand.vmem [shape: bf16[16,512], index: 3, kind: output, shape index: {}]  }
   0x1   :  { %v22_v2 = vld [vmem:[%s184_s1] sm:$0xf]  ;;  %v15_v5 = vld [vmem:[%s186_s0 + $0x8] sm:$0xff]  ;;  %v16_v10 = vld [vmem:[%s186_s0 + $0x10] sm:$0xff] }
   0x2   :  { %v25_v1 = vshrl.u32 %v24_v0, 7  ;;  %v52_v3 = vld [vmem:[%s185_s2] sm:$0xf]  ;;  %v19_v12 = vld [vmem:[%s186_s0 + $0x28] sm:$0xff]  ;;  %v17_v17 = vld [vmem:[%s186_s0 + $0x18] sm:$0xff] }
   0x3   :  { %v14_v4 = vld [vmem:[%s186_s0] sm:$0xff]  ;;  %v20_v18 = vld [vmem:[%s186_s0 + $0x30] sm:$0xff]  ;;  %v21_v19 = vld [vmem:[%s186_s0 + $0x38] sm:$0xff] }
   0x4   :  { %v26_v6 = vsub.s32 0, %v25_v1  ;;  %v30_v7 = vsub.s32 1, %v25_v1  ;;  %v34_v8 = vsub.s32 2, %v25_v1  ;;  %v38_v9 = vsub.s32 3, %v25_v1  ;;  %v18_v11 = vld [vmem:[%s186_s0 + $0x20] sm:$0xff] }
   0x6   :  { %v27_v13 = vrot.slane %v22_v2, %v26_v6  ;;  %v31_v14 = vrot.slane %v22_v2, %v30_v7  ;;  %v57_v15 = vrot.slane %v52_v3, %v26_v6  ;;  %v61_v16 = vrot.slane %v52_v3, %v30_v7 }
   0x7   :  { %v35_v20 = vrot.slane %v22_v2, %v34_v8  ;;  %v39_v21 = vrot.slane %v22_v2, %v38_v9  ;;  %v65_v22 = vrot.slane %v52_v3, %v34_v8  ;;  %v69_v23 = vrot.slane %v52_v3, %v38_v9 }
   0x8   :  { %v44_v24 = vmul.f32 %v27_v13, %v14_v4  ;;  %v45_v25 = vmul.f32 %v31_v14, %v15_v5  ;;  %v48_v26 = vmul.f32 %v27_v13, %v18_v11  ;;  %v49_v27 = vmul.f32 %v31_v14, %v19_v12 }
   0x9   :  { %v46_v28 = vmul.f32 %v35_v20, %v16_v10  ;;  %v47_v29 = vmul.f32 %v39_v21, %v17_v17  ;;  %v50_v30 = vmul.f32 %v35_v20, %v20_v18  ;;  %v51_v31 = vmul.f32 %v39_v21, %v21_v19 }
   0xa   :  { %v74_v32 = vadd.f32 %v57_v15, %v44_v24  ;;  %v75_v33 = vadd.f32 %v61_v16, %v45_v25  ;;  %v78_v34 = vadd.f32 %v57_v15, %v48_v26  ;;  %v79_v35 = vadd.f32 %v61_v16, %v49_v27 }
   0xb   :  { %v76_v36 = vadd.f32 %v65_v22, %v46_v28  ;;  %v77_v37 = vadd.f32 %v69_v23, %v47_v29  ;;  %v80_v38 = vadd.f32 %v65_v22, %v50_v30  ;;  %v81_v39 = vadd.f32 %v69_v23, %v51_v31 }
   0xc   :  { %v118_v40 = vpack.c.bf16 %v75_v33, %v74_v32  ;;  %v120_v41 = vpack.c.bf16 %v79_v35, %v78_v34 }
   0xd   :  { %v119_v42 = vpack.c.bf16 %v77_v37, %v76_v36  ;;  %v121_v43 = vpack.c.bf16 %v81_v39, %v80_v38 }
   0xe   :  { %106 = vst [vmem:[%s187_s3] sm:$0xff] %v118_v40  ;;  %108 = vst [vmem:[%s187_s3 + $0x10] sm:$0xff] %v120_v41 }
   0xf   :  { %107 = vst [vmem:[%s187_s3 + $0x8] sm:$0xff] %v119_v42  ;;  %109 = vst [vmem:[%s187_s3 + $0x18] sm:$0xff] %v121_v43 }

// kernel: attribute_cnn_forward.74
= control target key start
LH: loop header
LB: loop body
LE: loop exit
PB: predicated region body
PF: predicated region fallthrough
CT: control target
= control target key end

     0   :  { %s1123_s12 = smov 0   ;;  %s1125_s13 = smov 0   ;;  %s1321_s0 = inlined_call_operand.vmem [shape: bf16[16,256], index: 0, kind: input, shape index: {}]   ;;  %s1322_s1 = inlined_call_operand.vmem [shape: bf16[256,512], index: 1, kind: input, shape index: {}]   ;;  %s1323_s2 = inlined_call_operand.vmem [shape: f32[16,512], index: 2, kind: output, shape index: {0}]   ;;  %s1324_s3 = inlined_call_operand.vmem [shape: f32[1,8,512], index: 3, kind: output, shape index: {1}]  }
   0x1   :  { %s1127_s14 = smov 0   ;;  %s1129_s15 = smov 0  }
   0x2   :  { %s1131_s16 = smov 0  }
   0x3 LB: > { %s29_s17 = sadd.s32 1, %s1097_s15  ;;  %s917_s18 = sadd.s32 4294967295, %s1101_s16   ;;  %s1101_s16 = sphi %s1131_s16, %s14_s16   ;;  %s1097_s15 = sphi %s1129_s15, %s1329_s15   ;;  %s1093_s14 = sphi %s1127_s14, %s1328_s14   ;;  %s1089_s13 = sphi %s1125_s13, %s1327_s13   ;;  %s1085_s12 = sphi %s1123_s12, %s1326_s12  }
   0x4   : > { %p31_p0 = scmp.ge.s32.totalorder %s29_s17, 2  ;;  %p77_p1 = scmp.ne.s32.totalorder %s1089_s13, %s1085_s12 }
   0x5   : > { %p78_p2 = scmp.eq.s32.totalorder %s1101_s16, 0  ;;  %p109_p4 = scmp.eq.s32.totalorder %s917_s18, 1 }
   0x6   : > { %s1331_s17 = smov (%p31_p0, %s29_s17), 0  ;;  %s70_s20 = sadd.s32 1, %s1089_s13 }
   0x7   : > { %p79_p3 = por %p78_p2, %p77_p1  ;;  %s66_s19 = ssub.s32 %s1097_s15, %s1331_s17 }
   0x8   : > { %p68_p5 = scmp.eq.s32.totalorder %s66_s19, 0  ;;  %p1158_p6 = por %p109_p4, %p77_p1 }
   0x9   : > { %p921_p7 = scmp.ge.s32.totalorder %s1101_s16, 2 }
   0xa   : > { %s1163_s22 = scalar_select %p68_p5, %s1089_s13, %s70_s20  }
   0xb   : > { %174 = sbr.rel (%p921_p7) target bundleno = 36 (0x24), region = 20 }
  0x10   : > { %177 = sbr.rel (!%p79_p3) target bundleno = 36 (0x24), region = 24  ;;  %s179_s23 = sand.u32 (%p79_p3), 1, %s1089_s13  }
  0x11   : > { %s969_s24 = sshll.u32 (%p79_p3), %s1097_s15, 3  ;;  %s922_s25 = sshll.u32 (%p79_p3), %s179_s23, 8 }
  0x12   : > { %s1171_s28 = scalar_lea.vmem (%p79_p3), %s1322_s1, %s969_s24  ;;  %s1176_s29 = scalar_lea.vmem (%p79_p3), [#allocation2], %s922_s25 }
  0x13   : > { %v278_v0 = vld [vmem:[%s1171_s28] sm:$0xff] (%p79_p3)  ;;  %v280_v1 = vld [vmem:[%s1171_s28 + $0x10] sm:$0xff] (%p79_p3) }
  0x14   : > { %v282_v2 = vld [vmem:[%s1171_s28 + $0x20] sm:$0xff] (%p79_p3)  ;;  %279 = vst [vmem:[%s1176_s29] sm:$0xff] (%p79_p3), %v278_v0  ;;  %281 = vst [vmem:[%s1176_s29 + $0x8] sm:$0xff] (%p79_p3), %v280_v1  ;;  %v284_v3 = vld [vmem:[%s1171_s28 + $0x30] sm:$0xff] (%p79_p3) }
  0x15   : > { %283 = vst [vmem:[%s1176_s29 + $0x10] sm:$0xff] %v282_v2  ;;  %v286_v4 = vld [vmem:[%s1171_s28 + $0x40] sm:$0xff]  ;;  %v288_v5 = vld [vmem:[%s1171_s28 + $0x50] sm:$0xff]  ;;  %285 = vst [vmem:[%s1176_s29 + $0x18] sm:$0xff] %v284_v3 }
  0x16   : > { %287 = vst [vmem:[%s1176_s29 + $0x20] sm:$0xff] %v286_v4  ;;  %289 = vst [vmem:[%s1176_s29 + $0x28] sm:$0xff] %v288_v5  ;;  %v290_v6 = vld [vmem:[%s1171_s28 + $0x60] sm:$0xff]  ;;  %v292_v7 = vld [vmem:[%s1171_s28 + $0x70] sm:$0xff] }
  0x17   : > { %v294_v8 = vld [vmem:[%s1171_s28 + $0x80] sm:$0xff]  ;;  %291 = vst [vmem:[%s1176_s29 + $0x30] sm:$0xff] %v290_v6  ;;  %293 = vst [vmem:[%s1176_s29 + $0x38] sm:$0xff] %v292_v7  ;;  %v296_v9 = vld [vmem:[%s1171_s28 + $0x90] sm:$0xff] }
  0x18   : > { %295 = vst [vmem:[%s1176_s29 + $0x40] sm:$0xff] %v294_v8  ;;  %v298_v10 = vld [vmem:[%s1171_s28 + $0xa0] sm:$0xff]  ;;  %v300_v11 = vld [vmem:[%s1171_s28 + $0xb0] sm:$0xff]  ;;  %297 = vst [vmem:[%s1176_s29 + $0x48] sm:$0xff] %v296_v9 }
  0x19   : > { %299 = vst [vmem:[%s1176_s29 + $0x50] sm:$0xff] %v298_v10  ;;  %301 = vst [vmem:[%s1176_s29 + $0x58] sm:$0xff] %v300_v11  ;;  %v302_v12 = vld [vmem:[%s1171_s28 + $0xc0] sm:$0xff]  ;;  %v304_v13 = vld [vmem:[%s1171_s28 + $0xd0] sm:$0xff] }
  0x1a   : > { %v306_v14 = vld [vmem:[%s1171_s28 + $0xe0] sm:$0xff]  ;;  %303 = vst [vmem:[%s1176_s29 + $0x60] sm:$0xff] %v302_v12  ;;  %305 = vst [vmem:[%s1176_s29 + $0x68] sm:$0xff] %v304_v13  ;;  %v308_v15 = vld [vmem:[%s1171_s28 + $0xf0] sm:$0xff] }
  0x1b   : > { %307 = vst [vmem:[%s1176_s29 + $0x70] sm:$0xff] %v306_v14  ;;  %v310_v16 = vld [vmem:[%s1171_s28 + $0x100] sm:$0xff]  ;;  %v312_v17 = vld [vmem:[%s1171_s28 + $0x110] sm:$0xff]  ;;  %309 = vst [vmem:[%s1176_s29 + $0x78] sm:$0xff] %v308_v15 }
  0x1c   : > { %311 = vst [vmem:[%s1176_s29 + $0x80] sm:$0xff] %v310_v16  ;;  %313 = vst [vmem:[%s1176_s29 + $0x88] sm:$0xff] %v312_v17  ;;  %v314_v18 = vld [vmem:[%s1171_s28 + $0x120] sm:$0xff]  ;;  %v316_v19 = vld [vmem:[%s1171_s28 + $0x130] sm:$0xff] }
  0x1d   : > { %v318_v20 = vld [vmem:[%s1171_s28 + $0x140] sm:$0xff]  ;;  %315 = vst [vmem:[%s1176_s29 + $0x90] sm:$0xff] %v314_v18  ;;  %317 = vst [vmem:[%s1176_s29 + $0x98] sm:$0xff] %v316_v19  ;;  %v320_v21 = vld [vmem:[%s1171_s28 + $0x150] sm:$0xff] }
  0x1e   : > { %319 = vst [vmem:[%s1176_s29 + $0xa0] sm:$0xff] %v318_v20  ;;  %v322_v22 = vld [vmem:[%s1171_s28 + $0x160] sm:$0xff]  ;;  %v324_v23 = vld [vmem:[%s1171_s28 + $0x170] sm:$0xff]  ;;  %321 = vst [vmem:[%s1176_s29 + $0xa8] sm:$0xff] %v320_v21 }
  0x1f   : > { %323 = vst [vmem:[%s1176_s29 + $0xb0] sm:$0xff] %v322_v22  ;;  %325 = vst [vmem:[%s1176_s29 + $0xb8] sm:$0xff] %v324_v23  ;;  %v326_v24 = vld [vmem:[%s1171_s28 + $0x180] sm:$0xff]  ;;  %v328_v25 = vld [vmem:[%s1171_s28 + $0x190] sm:$0xff] }
  0x20   : > { %v330_v26 = vld [vmem:[%s1171_s28 + $0x1a0] sm:$0xff]  ;;  %327 = vst [vmem:[%s1176_s29 + $0xc0] sm:$0xff] %v326_v24  ;;  %329 = vst [vmem:[%s1176_s29 + $0xc8] sm:$0xff] %v328_v25  ;;  %v332_v27 = vld [vmem:[%s1171_s28 + $0x1b0] sm:$0xff] }
  0x21   : > { %331 = vst [vmem:[%s1176_s29 + $0xd0] sm:$0xff] %v330_v26  ;;  %v334_v28 = vld [vmem:[%s1171_s28 + $0x1c0] sm:$0xff]  ;;  %v336_v29 = vld [vmem:[%s1171_s28 + $0x1d0] sm:$0xff]  ;;  %333 = vst [vmem:[%s1176_s29 + $0xd8] sm:$0xff] %v332_v27 }
  0x22   : > { %335 = vst [vmem:[%s1176_s29 + $0xe0] sm:$0xff] %v334_v28  ;;  %337 = vst [vmem:[%s1176_s29 + $0xe8] sm:$0xff] %v336_v29  ;;  %v338_v30 = vld [vmem:[%s1171_s28 + $0x1e0] sm:$0xff]  ;;  %v340_v31 = vld [vmem:[%s1171_s28 + $0x1f0] sm:$0xff] }
  0x23   : > { %339 = vst [vmem:[%s1176_s29 + $0xf0] sm:$0xff] %v338_v30  ;;  %341 = vst [vmem:[%s1176_s29 + $0xf8] sm:$0xff] %v340_v31 }
  0x24 PF: > { %p925_p8 = scmp.ge.s32.totalorder %s1101_s16, 1  ;;  %p346_p9 = scmp.lt.s32.totalorder %s1101_s16, 3 }
  0x26   : > { %p347_p10 = pnand %p925_p8, %p346_p9 }
  0x27   : > { %s353_s30 = sand.u32 (!%p347_p10), 1, %s1085_s12   ;;  %s928_s18 = sshll.u32 (!%p347_p10), %s1093_s14, 1 }
  0x28   : > { %350 = sbr.rel (%p347_p10) target bundleno = 328 (0x148), region = 62  ;;  %s926_s4 = sshll.u32 (!%p347_p10), %s353_s30, 8 }
  0x29   : > { %s1247_s7 = scalar_lea.vmem (!%p347_p10), [#allocation2], %s926_s4  ;;  %s927_s10 = sshll.u32 (!%p347_p10), %s353_s30, 5 }
  0x2a   : > { %s1286_s11 = scalar_lea.vmem (!%p347_p10), [#allocation3], %s927_s10  ;;  %p413_p11 = scmp.lt.s32.totalorder (!%p347_p10), %s928_s18, 3 }
  0x2d   : > { %v1062_v32 = vld [vmem:[%s1321_s0 + $0x4] ss:$8 sps:$4 sm:$0xff]   ;;  %v1012_v33 = vld [vmem:[%s1247_s7 + $0x74] ss:$8 sps:$4 sm:$0xff]   ;;  %v1014_v34 = vld [vmem:[%s1247_s7 + $0x70] ss:$8 sps:$4 sm:$0xff]   ;;  %v726_v18 = vlaneseq }
  0x2e   : > { %668 = vmatprep.mubr.bf16.mxu0 %v1062_v32  ;;  %636 = vmatprep.subr.bf16.mxu0 %v1012_v33  ;;  %v1015_v35 = vld [vmem:[%s1247_s7 + $0x64] ss:$8 sps:$4 sm:$0xff]   ;;  %v1017_v36 = vld [vmem:[%s1247_s7 + $0x60] ss:$8 sps:$4 sm:$0xff]   ;;  %v1018_v37 = vld [vmem:[%s1247_s7 + $0x54] ss:$8 sps:$4 sm:$0xff]  }
  0x2f   : > { %637 = vmatpush1.bf16.msra.mxu0 %v1014_v34  ;;  %v1020_v38 = vld [vmem:[%s1247_s7 + $0x50] ss:$8 sps:$4 sm:$0xff]   ;;  %v1021_v39 = vld [vmem:[%s1247_s7 + $0x44] ss:$8 sps:$4 sm:$0xff]   ;;  %v1023_v40 = vld [vmem:[%s1247_s7 + $0x40] ss:$8 sps:$4 sm:$0xff]  }
  0x30   : > { %638 = vmatprep.subr.bf16.mxu0 %v1015_v35  ;;  %v1024_v41 = vld [vmem:[%s1247_s7 + $0x34] ss:$8 sps:$4 sm:$0xff]   ;;  %v1026_v42 = vld [vmem:[%s1247_s7 + $0x30] ss:$8 sps:$4 sm:$0xff]   ;;  %v1027_v43 = vld [vmem:[%s1247_s7 + $0x24] ss:$8 sps:$4 sm:$0xff]  }
  0x31   : > { %v1029_v44 = vld [vmem:[%s1247_s7 + $0x20] ss:$8 sps:$4 sm:$0xff]   ;;  %v1030_v45 = vld [vmem:[%s1247_s7 + $0x14] ss:$8 sps:$4 sm:$0xff]   ;;  %v1032_v46 = vld [vmem:[%s1247_s7 + $0x10] ss:$8 sps:$4 sm:$0xff]  }
  0x32   : > { %v1033_v47 = vld [vmem:[%s1247_s7 + $0x4] ss:$8 sps:$4 sm:$0xff]   ;;  %v1035_v48 = vld [vmem:[%s1247_s7] ss:$8 sps:$4 sm:$0xff]   ;;  %v1036_v49 = vld [vmem:[%s1247_s7 + $0xf4] ss:$8 sps:$4 sm:$0xff]  }
  0x33   : > { %639 = vmatpush1.bf16.msra.mxu0 %v1017_v36  ;;  %v1038_v50 = vld [vmem:[%s1247_s7 + $0xf0] ss:$8 sps:$4 sm:$0xff]   ;;  %v1039_v51 = vld [vmem:[%s1247_s7 + $0xe4] ss:$8 sps:$4 sm:$0xff]   ;;  %v1041_v52 = vld [vmem:[%s1247_s7 + $0xe0] ss:$8 sps:$4 sm:$0xff]  }
  0x34   : > { %640 = vmatprep.subr.bf16.mxu0 %v1018_v37  ;;  %v1042_v53 = vld [vmem:[%s1247_s7 + $0xd4] ss:$8 sps:$4 sm:$0xff]   ;;  %v1044_v54 = vld [vmem:[%s1247_s7 + $0xd0] ss:$8 sps:$4 sm:$0xff]   ;;  %v1045_v55 = vld [vmem:[%s1247_s7 + $0xc4] ss:$8 sps:$4 sm:$0xff]  }
  0x35   : > { %v1047_v56 = vld [vmem:[%s1247_s7 + $0xc0] ss:$8 sps:$4 sm:$0xff]   ;;  %v1048_v57 = vld [vmem:[%s1247_s7 + $0xb4] ss:$8 sps:$4 sm:$0xff]   ;;  %v1050_v58 = vld [vmem:[%s1247_s7 + $0xb0] ss:$8 sps:$4 sm:$0xff]  }
  0x36   : > { %v1051_v59 = vld [vmem:[%s1247_s7 + $0xa4] ss:$8 sps:$4 sm:$0xff]   ;;  %v1053_v60 = vld [vmem:[%s1247_s7 + $0xa0] ss:$8 sps:$4 sm:$0xff]   ;;  %v1054_v61 = vld [vmem:[%s1247_s7 + $0x94] ss:$8 sps:$4 sm:$0xff]  }
  0x37   : > { %641 = vmatpush1.bf16.msra.mxu0 %v1020_v38  ;;  %v1056_v62 = vld [vmem:[%s1247_s7 + $0x90] ss:$8 sps:$4 sm:$0xff]   ;;  %v1057_v63 = vld [vmem:[%s1247_s7 + $0x84] ss:$8 sps:$4 sm:$0xff]   ;;  %v1059_v0 = vld [vmem:[%s1247_s7 + $0x80] ss:$8 sps:$4 sm:$0xff]  }
  0x38   : > { %642 = vmatprep.subr.bf16.mxu0 %v1021_v39  ;;  %v1060_v1 = vld [vmem:[%s1321_s0] ss:$8 sps:$4 sm:$0xff]   ;;  %s1333_s18 = smov (!%p413_p11, %s928_s18), 3  ;;  %v727_v27 = vshrl.u32 %v726_v18, 7  ;;  %s970_s24 = sshll.u32 (%p1158_p6), %s1093_s14, 4 }
  0x39   : > { %s929_s12 = sshll.u32 %s1333_s18, 3  ;;  %s757_s27 = scalar_lea.vmem (%p1158_p6), %s1323_s2, %s970_s24 }
  0x3a   : > { %vm729_vm0 = vcmp.eq.s32.totalorder %v727_v27, 1  ;;  %vm728_vm1 = vcmp.eq.s32.totalorder %v727_v27, 0  ;;  %s418_s23 = scalar_lea.vmem %s1324_s3, %s929_s12 }
  0x3b   : > { %643 = vmatpush1.bf16.msra.mxu0 %v1023_v40 }
  0x3c   : > { %644 = vmatprep.subr.bf16.mxu0 %v1024_v41 }
  0x3f   : > { %645 = vmatpush1.bf16.msra.mxu0 %v1026_v42 }
  0x40   : > { %646 = vmatprep.subr.bf16.mxu0 %v1027_v43 }
  0x43   : > { %647 = vmatpush1.bf16.msra.mxu0 %v1029_v44 }
  0x44   : > { %648 = vmatprep.subr.bf16.mxu0 %v1030_v45 }
  0x47   : > { %649 = vmatpush1.bf16.msra.mxu0 %v1032_v46 }
  0x48   : > { %650 = vmatprep.subr.bf16.mxu0 %v1033_v47 }
  0x4b   : > { %651 = vmatpush1.bf16.msra.mxu0 %v1035_v48 }
  0x4c   : > { %652 = vmatprep.subr.bf16.mxu0 %v1036_v49 }
  0x4f   : > { %653 = vmatpush2.bf16.msra.mxu0 %v1038_v50 }
  0x50   : > { %654 = vmatprep.subr.bf16.mxu0 %v1039_v51 }
  0x53   : > { %655 = vmatpush2.bf16.msra.mxu0 %v1041_v52 }
  0x54   : > { %656 = vmatprep.subr.bf16.mxu0 %v1042_v53 }
  0x57   : > { %657 = vmatpush2.bf16.msra.mxu0 %v1044_v54 }
  0x58   : > { %658 = vmatprep.subr.bf16.mxu0 %v1045_v55 }
  0x5b   : > { %659 = vmatpush2.bf16.msra.mxu0 %v1047_v56 }
  0x5c   : > { %660 = vmatprep.subr.bf16.mxu0 %v1048_v57 }
  0x5f   : > { %661 = vmatpush2.bf16.msra.mxu0 %v1050_v58 }
  0x60   : > { %662 = vmatprep.subr.bf16.mxu0 %v1051_v59 }
  0x63   : > { %663 = vmatpush2.bf16.msra.mxu0 %v1053_v60 }
  0x64   : > { %664 = vmatprep.subr.bf16.mxu0 %v1054_v61 }
  0x67   : > { %665 = vmatpush2.bf16.msra.mxu0 %v1056_v62 }
  0x68   : > { %666 = vmatprep.subr.bf16.mxu0 %v1057_v63 }
  0x6b   : > { %667 = vmatpush2.bf16.msra.mxu0 %v1059_v0 }
  0x6e   : > { %669 = vmatmul.mubr.bf16.vlgmr.msra.gmra.mxu0 %v1060_v1 }
 0x12e   : > { %v670_v2 = vpop.f32.mrf.mxu0 }
 0x12f   : > { %683 = vst [vmem:[%s1286_s11] sm:$0xff] %v670_v2  ;;  %v708_v6 = vmul.f32 %v670_v2, %v670_v2 }
 0x130   : > { %v672_v3 = vpop.f32.mrf.mxu0 }
 0x131   : > { %684 = vst [vmem:[%s1286_s11 + $0x8] sm:$0xff] %v672_v3  ;;  %v709_v9 = vmul.f32 %v672_v3, %v672_v3 }
 0x132   : > { %v674_v4 = vpop.f32.mrf.mxu0 }
 0x133   : > { %685 = vst [vmem:[%s1286_s11 + $0x10] sm:$0xff] %v674_v4  ;;  %v694_v7 = vadd.f32 %v674_v4, %v670_v2  ;;  %v710_v8 = vmul.f32 %v674_v4, %v674_v4 }
 0x134   : > { %v676_v5 = vpop.f32.mrf.mxu0 }
 0x135   : > { %v695_v10 = vrot.slane %v694_v7, 4  ;;  %v712_v11 = vadd.f32 %v710_v8, %v708_v6  ;;  %686 = vst [vmem:[%s1286_s11 + $0x18] sm:$0xff] %v676_v5  ;;  %v701_v12 = vadd.f32 %v676_v5, %v672_v3  ;;  %v711_v13 = vmul.f32 %v676_v5, %v676_v5 }
 0x136   : > { %v770_v44 = vld [vmem:[%s1286_s11] sm:$0xff] (%p1158_p6) }
 0x137   : > { %v696_v14 = vadd.f32 %v695_v10, %v694_v7  ;;  %v713_v15 = vrot.slane %v712_v11, 4  ;;  %v702_v16 = vrot.slane %v701_v12, 4  ;;  %v719_v17 = vadd.f32 %v711_v13, %v709_v9  ;;  %771 = vst [vmem:[%s757_s27] sm:$0xff] (%p1158_p6), %v770_v44 }
 0x138   : > { %v772_v45 = vld [vmem:[%s1286_s11 + $0x8] sm:$0xff] (%p1158_p6) }
 0x139   : > { %v697_v19 = vrot.slane %v696_v14, 2  ;;  %v714_v20 = vadd.f32 %v713_v15, %v712_v11  ;;  %v703_v21 = vadd.f32 %v702_v16, %v701_v12  ;;  %v720_v22 = vrot.slane %v719_v17, 4  ;;  %773 = vst [vmem:[%s757_s27 + $0x8] sm:$0xff] (%p1158_p6), %v772_v45 }
 0x13a   : > { %v774_v46 = vld [vmem:[%s1286_s11 + $0x10] sm:$0xff] (%p1158_p6) }
 0x13b   : > { %v698_v23 = vadd.f32 %v697_v19, %v696_v14  ;;  %v715_v24 = vrot.slane %v714_v20, 2  ;;  %v704_v25 = vrot.slane %v703_v21, 2  ;;  %v721_v26 = vadd.f32 %v720_v22, %v719_v17  ;;  %775 = vst [vmem:[%s757_s27 + $0x20] sm:$0xff] (%p1158_p6), %v774_v46 }
 0x13c   : > { %v776_v47 = vld [vmem:[%s1286_s11 + $0x18] sm:$0xff] (%p1158_p6) }
 0x13d   : > { %v716_v28 = vadd.f32 %v715_v24, %v714_v20  ;;  %v705_v29 = vadd.f32 %v704_v25, %v703_v21  ;;  %v722_v30 = vrot.slane %v721_v26, 2  ;;  %v699_v31 = vrot.slane %v698_v23, 1  ;;  %777 = vst [vmem:[%s757_s27 + $0x28] sm:$0xff] (%p1158_p6), %v776_v47 }
 0x13f   : > { %v717_v32 = vrot.slane %v716_v28, 1  ;;  %v723_v33 = vadd.f32 %v722_v30, %v721_v26  ;;  %v706_v34 = vrot.slane %v705_v29, 1  ;;  %v700_v37 = vadd.f32 %v699_v31, %v698_v23 }
 0x141   : > { %v718_v35 = vadd.f32 %v717_v32, %v716_v28  ;;  %v724_v36 = vrot.slane %v723_v33, 1  ;;  %v707_v41 = vadd.f32 %v706_v34, %v705_v29 }
 0x143   : > { %v730_v38 = vsel %vm729_vm0, %v718_v35, 0.0  ;;  %v725_v39 = vadd.f32 %v724_v36, %v723_v33  ;;  %751 = sbr.rel (!%p1158_p6) target bundleno = 328 (0x148), region = 78 }
 0x144   : > { %v732_v40 = vsel %vm728_vm1, %v700_v37, %v730_v38 }
 0x145   : > { %734 = vst [vmem:[%s418_s23] sm:$0xff] %v732_v40  ;;  %v731_v42 = vsel %vm729_vm0, %v725_v39, 0.0 }
 0x146   : > { %v733_v43 = vsel %vm728_vm1, %v707_v41, %v731_v42 }
 0x147   : > { %735 = vst [vmem:[%s418_s23 + $0x8] sm:$0xff] %v733_v43 }
 0x148 PF: > { %s14_s16 = sadd.s32 1, %s1101_s16   ;;  %s1326_s12 = smov %s1089_s13 }
 0x149   : > { %p11_p12 = scmp.ge.s32.totalorder %s14_s16, 4   ;;  %s1327_s13 = smov %s1163_s22 }
 0x14a   : > { %s1328_s14 = smov %s1097_s15  ;;  %s1329_s15 = smov %s1331_s17 }
 0x14b   :  { %13 = sbr.rel (!%p11_p12) target bundleno = 3 (0x3), region = 147 }

// kernel: attribute_cnn_forward.72
= control target key start
LH: loop header
LB: loop body
LE: loop exit
PB: predicated region body
PF: predicated region fallthrough
CT: control target
= control target key end

     0   :  { %v24_v0 = vlaneseq  ;;  %s192_s1 = inlined_call_operand.vmem [shape: f32[1,512], index: 1, kind: input, shape index: {}]   ;;  %s193_s2 = inlined_call_operand.vmem [shape: f32[1,512], index: 2, kind: input, shape index: {}]   ;;  %s194_s0 = inlined_call_operand.vmem [shape: f32[16,512], index: 0, kind: input, shape index: {}]   ;;  %s195_s3 = inlined_call_operand.vmem [shape: bf16[16,512], index: 3, kind: output, shape index: {}]  }
   0x1   :  { %v22_v2 = vld [vmem:[%s192_s1] sm:$0xf]  ;;  %v15_v5 = vld [vmem:[%s194_s0 + $0x8] sm:$0xff]  ;;  %v16_v10 = vld [vmem:[%s194_s0 + $0x10] sm:$0xff] }
   0x2   :  { %v25_v1 = vshrl.u32 %v24_v0, 7  ;;  %v52_v3 = vld [vmem:[%s193_s2] sm:$0xf]  ;;  %v19_v12 = vld [vmem:[%s194_s0 + $0x28] sm:$0xff]  ;;  %v17_v17 = vld [vmem:[%s194_s0 + $0x18] sm:$0xff] }
   0x3   :  { %v14_v4 = vld [vmem:[%s194_s0] sm:$0xff]  ;;  %v20_v18 = vld [vmem:[%s194_s0 + $0x30] sm:$0xff]  ;;  %v21_v19 = vld [vmem:[%s194_s0 + $0x38] sm:$0xff] }
   0x4   :  { %v26_v6 = vsub.s32 0, %v25_v1  ;;  %v30_v7 = vsub.s32 1, %v25_v1  ;;  %v34_v8 = vsub.s32 2, %v25_v1  ;;  %v38_v9 = vsub.s32 3, %v25_v1  ;;  %v18_v11 = vld [vmem:[%s194_s0 + $0x20] sm:$0xff] }
   0x6   :  { %v27_v13 = vrot.slane %v22_v2, %v26_v6  ;;  %v31_v14 = vrot.slane %v22_v2, %v30_v7  ;;  %v57_v15 = vrot.slane %v52_v3, %v26_v6  ;;  %v61_v16 = vrot.slane %v52_v3, %v30_v7 }
   0x7   :  { %v35_v20 = vrot.slane %v22_v2, %v34_v8  ;;  %v39_v21 = vrot.slane %v22_v2, %v38_v9  ;;  %v65_v22 = vrot.slane %v52_v3, %v34_v8  ;;  %v69_v23 = vrot.slane %v52_v3, %v38_v9 }
   0x8   :  { %v44_v24 = vmul.f32 %v27_v13, %v14_v4  ;;  %v45_v25 = vmul.f32 %v31_v14, %v15_v5  ;;  %v48_v26 = vmul.f32 %v27_v13, %v18_v11  ;;  %v49_v27 = vmul.f32 %v31_v14, %v19_v12 }
   0x9   :  { %v46_v28 = vmul.f32 %v35_v20, %v16_v10  ;;  %v47_v29 = vmul.f32 %v39_v21, %v17_v17  ;;  %v50_v30 = vmul.f32 %v35_v20, %v20_v18  ;;  %v51_v31 = vmul.f32 %v39_v21, %v21_v19 }
   0xa   :  { %v74_v32 = vadd.f32 %v57_v15, %v44_v24  ;;  %v75_v33 = vadd.f32 %v61_v16, %v45_v25  ;;  %v78_v34 = vadd.f32 %v57_v15, %v48_v26  ;;  %v79_v35 = vadd.f32 %v61_v16, %v49_v27 }
   0xb   :  { %v76_v36 = vadd.f32 %v65_v22, %v46_v28  ;;  %v77_v37 = vadd.f32 %v69_v23, %v47_v29  ;;  %v80_v38 = vadd.f32 %v65_v22, %v50_v30  ;;  %v81_v39 = vadd.f32 %v69_v23, %v51_v31 }
   0xc   :  { %v82_v40 = vmax.f32 %v74_v32, 0.0  ;;  %v83_v41 = vmax.f32 %v75_v33, 0.0  ;;  %v86_v42 = vmax.f32 %v78_v34, 0.0  ;;  %v87_v43 = vmax.f32 %v79_v35, 0.0 }
   0xd   :  { %v84_v44 = vmax.f32 %v76_v36, 0.0  ;;  %v85_v45 = vmax.f32 %v77_v37, 0.0  ;;  %v88_v46 = vmax.f32 %v80_v38, 0.0  ;;  %v89_v47 = vmax.f32 %v81_v39, 0.0 }
   0xe   :  { %v126_v48 = vpack.c.bf16 %v83_v41, %v82_v40  ;;  %v128_v49 = vpack.c.bf16 %v87_v43, %v86_v42 }
   0xf   :  { %v127_v50 = vpack.c.bf16 %v85_v45, %v84_v44  ;;  %v129_v51 = vpack.c.bf16 %v89_v47, %v88_v46 }
  0x10   :  { %114 = vst [vmem:[%s195_s3] sm:$0xff] %v126_v48  ;;  %116 = vst [vmem:[%s195_s3 + $0x10] sm:$0xff] %v128_v49 }
  0x11   :  { %115 = vst [vmem:[%s195_s3 + $0x8] sm:$0xff] %v127_v50  ;;  %117 = vst [vmem:[%s195_s3 + $0x18] sm:$0xff] %v129_v51 }

// kernel: attribute_cnn_forward.71
= control target key start
LH: loop header
LB: loop body
LE: loop exit
PB: predicated region body
PF: predicated region fallthrough
CT: control target
= control target key end

     0   :  { %s1258_s12 = smov 0   ;;  %s1260_s13 = smov 0   ;;  %s1557_s0 = inlined_call_operand.vmem [shape: bf16[16,2304], index: 0, kind: input, shape index: {}]   ;;  %s1558_s1 = inlined_call_operand.vmem [shape: bf16[2304,512], index: 1, kind: input, shape index: {}]   ;;  %s1559_s2 = inlined_call_operand.vmem [shape: f32[16,512], index: 2, kind: output, shape index: {0}]   ;;  %s1560_s3 = inlined_call_operand.vmem [shape: f32[1,8,512], index: 3, kind: output, shape index: {1}]  }
   0x1   :  { %s1262_s14 = smov 0   ;;  %s1264_s15 = smov 0  }
   0x2   :  { %s1266_s16 = smov 0   ;;  %s1268_s17 = smov 0  }
   0x3   :  { %s1270_s18 = smov 0   ;;  %s1272_s19 = smov 0  }
   0x4   :  { %s1274_s20 = smov 0   ;;  %s1276_s21 = smov 0  }
   0x5   :  { %s1278_s22 = smov 0  }
   0x6 LB: > { %s947_s23 = sadd.s32 4294967295, %s1235_s22   ;;  %s26_s24 = sadd.s32 1, %s1227_s20  ;;  %s1235_s22 = sphi %s1278_s22, %s14_s22   ;;  %s1231_s21 = sphi %s1276_s21, %s1581_s21   ;;  %s1227_s20 = sphi %s1274_s20, %s1580_s20   ;;  %s1223_s19 = sphi %s1272_s19, %s1579_s19   ;;  %s1219_s18 = sphi %s1270_s18, %s1578_s18   ;;  %s1215_s17 = sphi %s1268_s17, %s1577_s17   ;;  %s1211_s16 = sphi %s1266_s16, %s1576_s16   ;;  %s1207_s15 = sphi %s1264_s15, %s1575_s15   ;;  %s1203_s14 = sphi %s1262_s14, %s1574_s14   ;;  %s1199_s13 = sphi %s1260_s13, %s1573_s13   ;;  %s1195_s12 = sphi %s1258_s12, %s1572_s12  }
   0x7   : > { %p27_p0 = scmp.ge.s32.totalorder %s26_s24, 9  ;;  %s29_s25 = sadd.s32 1, %s1231_s21 }
   0x8   : > { %s42_s26 = sadd.s32 1, %s1215_s17  ;;  %p49_p1 = scmp.ne.s32.totalorder %s1215_s17, %s1211_s16 }
   0x9   : > { %s1583_s24 = smov (%p27_p0, %s26_s24), 0  ;;  %s1585_s25 = smov (!%p27_p0, %s29_s25), %s1231_s21 }
   0xa   : > { %1563 = sst [smem:[#allocation5_spill]] %s1583_s24  ;;  %s38_s27 = ssub.s32 %s1227_s20, %s1583_s24 }
   0xb   : > { %p50_p2 = scmp.eq.s32.totalorder %s1235_s22, 0  ;;  %p31_p3 = scmp.ge.s32.totalorder %s1585_s25, 2 }
   0xc   : > { %p40_p4 = scmp.eq.s32.totalorder %s38_s27, 0  ;;  %s70_s29 = sadd.s32 1, %s1207_s15 }
   0xd   : > { %p1325_p5 = por %p50_p2, %p49_p1  ;;  %s1587_s25 = smov (%p31_p3, %s1585_s25), 0 }
   0xe   : > { %1565 = sst [smem:[#allocation6_spill]] %s1587_s25  ;;  %s66_s4 = ssub.s32 %s1231_s21, %s1587_s25 }
   0xf   : > { %s1333_s30 = scalar_select %p40_p4, %s1215_s17, %s42_s26  }
  0x10   : > { %p77_p6 = scmp.ne.s32.totalorder %s1207_s15, %s1203_s14  ;;  %s67_s5 = sor.u32 %s66_s4, %s38_s27 }
  0x11   : > { %1566 = sst [smem:[#allocation7_spill]] %s1333_s30  ;;  %p96_p7 = scmp.eq.s32.totalorder %s66_s4, 0 }
  0x12   : > { %p68_p8 = scmp.eq.s32.totalorder %s67_s5, 0  ;;  %p1339_p9 = por %p77_p6, %p50_p2 }
  0x13   : > { %s98_s7 = sadd.s32 1, %s1199_s13  ;;  %p108_p10 = scmp.ne.s32.totalorder %s1199_s13, %s1195_s12 }
  0x14   : > { %s1347_s8 = scalar_select %p68_p8, %s1207_s15, %s70_s29  }
  0x15   : > { %s1350_s9 = scalar_select %p96_p7, %s1199_s13, %s98_s7  }
  0x16   : > { %p109_p11 = scmp.eq.s32.totalorder %s947_s23, 17  ;;  %p950_p13 = scmp.ge.s32.totalorder %s1235_s22, 18 }
  0x18   : > { %p1352_p12 = por %p109_p11, %p108_p10  ;;  %159 = sbr.rel (%p950_p13) target bundleno = 57 (0x39), region = 16 }
  0x1d   : > { %162 = sbr.rel (!%p1325_p5) target bundleno = 34 (0x22), region = 20  ;;  %s164_s11 = sand.u32 (%p1325_p5), 1, %s1215_s17  }
  0x1e   : > { %s1006_s26 = sshll.u32 (%p1325_p5), %s1227_s20, 3  ;;  %s951_s27 = sshll.u32 (%p1325_p5), %s164_s11, 4 }
  0x1f   : > { %s172_s5 = scalar_lea.vmem (%p1325_p5), %s1557_s0, %s1006_s26  ;;  %s166_s23 = scalar_lea.vmem (%p1325_p5), [#allocation2], %s951_s27 }
  0x20   : > { %v203_v0 = vld [vmem:[%s172_s5] sm:$0xff] (%p1325_p5)  ;;  %v205_v1 = vld [vmem:[%s172_s5 + $0x48] sm:$0xff] (%p1325_p5) }
  0x21   : > { %204 = vst [vmem:[%s166_s23] sm:$0xff] (%p1325_p5), %v203_v0  ;;  %206 = vst [vmem:[%s166_s23 + $0x8] sm:$0xff] (%p1325_p5), %v205_v1 }
  0x22 PF: > { %212 = sbr.rel (!%p1339_p9) target bundleno = 57 (0x39), region = 58  ;;  %s214_s28 = sand.u32 (%p1339_p9), 1, %s1207_s15  }
  0x23   : > { %s956_s7 = sshll.u32 (%p1339_p9), %s1231_s21, 1  ;;  %s954_s25 = sshll.u32 (%p1339_p9), %s214_s28, 8 }
  0x24   : > { %s1007_s11 = sshll.u32 (%p1339_p9), %s1227_s20, 7  ;;  %s1377_s6 = scalar_lea.vmem (%p1339_p9), [#allocation3], %s954_s25 }
  0x25   : > { %s220_s24 = sadd.s32 (%p1339_p9), %s1007_s11, %s956_s7 }
  0x26   : > { %s958_s30 = sshll.u32 (%p1339_p9), %s220_s24, 2 }
  0x27   : > { %s1372_s4 = scalar_lea.vmem %s1558_s1, %s958_s30 }
  0x28   : > { %v313_v2 = vld [vmem:[%s1372_s4] sm:$0xff]  ;;  %v315_v3 = vld [vmem:[%s1372_s4 + $0x10] sm:$0xff] }
  0x29   : > { %v317_v4 = vld [vmem:[%s1372_s4 + $0x20] sm:$0xff]  ;;  %314 = vst [vmem:[%s1377_s6] sm:$0xff] %v313_v2  ;;  %316 = vst [vmem:[%s1377_s6 + $0x8] sm:$0xff] %v315_v3  ;;  %v319_v5 = vld [vmem:[%s1372_s4 + $0x30] sm:$0xff] }
  0x2a   : > { %318 = vst [vmem:[%s1377_s6 + $0x10] sm:$0xff] %v317_v4  ;;  %v321_v6 = vld [vmem:[%s1372_s4 + $0x40] sm:$0xff]  ;;  %v323_v7 = vld [vmem:[%s1372_s4 + $0x50] sm:$0xff]  ;;  %320 = vst [vmem:[%s1377_s6 + $0x18] sm:$0xff] %v319_v5 }
  0x2b   : > { %322 = vst [vmem:[%s1377_s6 + $0x20] sm:$0xff] %v321_v6  ;;  %324 = vst [vmem:[%s1377_s6 + $0x28] sm:$0xff] %v323_v7  ;;  %v325_v8 = vld [vmem:[%s1372_s4 + $0x60] sm:$0xff]  ;;  %v327_v9 = vld [vmem:[%s1372_s4 + $0x70] sm:$0xff] }
  0x2c   : > { %v329_v10 = vld [vmem:[%s1372_s4 + $0x80] sm:$0xff]  ;;  %326 = vst [vmem:[%s1377_s6 + $0x30] sm:$0xff] %v325_v8  ;;  %328 = vst [vmem:[%s1377_s6 + $0x38] sm:$0xff] %v327_v9  ;;  %v331_v11 = vld [vmem:[%s1372_s4 + $0x90] sm:$0xff] }
  0x2d   : > { %330 = vst [vmem:[%s1377_s6 + $0x40] sm:$0xff] %v329_v10  ;;  %v333_v12 = vld [vmem:[%s1372_s4 + $0xa0] sm:$0xff]  ;;  %v335_v13 = vld [vmem:[%s1372_s4 + $0xb0] sm:$0xff]  ;;  %332 = vst [vmem:[%s1377_s6 + $0x48] sm:$0xff] %v331_v11 }
  0x2e   : > { %334 = vst [vmem:[%s1377_s6 + $0x50] sm:$0xff] %v333_v12  ;;  %336 = vst [vmem:[%s1377_s6 + $0x58] sm:$0xff] %v335_v13  ;;  %v337_v14 = vld [vmem:[%s1372_s4 + $0xc0] sm:$0xff]  ;;  %v339_v15 = vld [vmem:[%s1372_s4 + $0xd0] sm:$0xff] }
  0x2f   : > { %v341_v16 = vld [vmem:[%s1372_s4 + $0xe0] sm:$0xff]  ;;  %338 = vst [vmem:[%s1377_s6 + $0x60] sm:$0xff] %v337_v14  ;;  %340 = vst [vmem:[%s1377_s6 + $0x68] sm:$0xff] %v339_v15  ;;  %v343_v17 = vld [vmem:[%s1372_s4 + $0xf0] sm:$0xff] }
  0x30   : > { %342 = vst [vmem:[%s1377_s6 + $0x70] sm:$0xff] %v341_v16  ;;  %v345_v18 = vld [vmem:[%s1372_s4 + $0x100] sm:$0xff]  ;;  %v347_v19 = vld [vmem:[%s1372_s4 + $0x110] sm:$0xff]  ;;  %344 = vst [vmem:[%s1377_s6 + $0x78] sm:$0xff] %v343_v17 }
  0x31   : > { %346 = vst [vmem:[%s1377_s6 + $0x80] sm:$0xff] %v345_v18  ;;  %348 = vst [vmem:[%s1377_s6 + $0x88] sm:$0xff] %v347_v19  ;;  %v349_v20 = vld [vmem:[%s1372_s4 + $0x120] sm:$0xff]  ;;  %v351_v21 = vld [vmem:[%s1372_s4 + $0x130] sm:$0xff] }
  0x32   : > { %v353_v22 = vld [vmem:[%s1372_s4 + $0x140] sm:$0xff]  ;;  %350 = vst [vmem:[%s1377_s6 + $0x90] sm:$0xff] %v349_v20  ;;  %352 = vst [vmem:[%s1377_s6 + $0x98] sm:$0xff] %v351_v21  ;;  %v355_v23 = vld [vmem:[%s1372_s4 + $0x150] sm:$0xff] }
  0x33   : > { %354 = vst [vmem:[%s1377_s6 + $0xa0] sm:$0xff] %v353_v22  ;;  %v357_v24 = vld [vmem:[%s1372_s4 + $0x160] sm:$0xff]  ;;  %v359_v25 = vld [vmem:[%s1372_s4 + $0x170] sm:$0xff]  ;;  %356 = vst [vmem:[%s1377_s6 + $0xa8] sm:$0xff] %v355_v23 }
  0x34   : > { %358 = vst [vmem:[%s1377_s6 + $0xb0] sm:$0xff] %v357_v24  ;;  %360 = vst [vmem:[%s1377_s6 + $0xb8] sm:$0xff] %v359_v25  ;;  %v361_v26 = vld [vmem:[%s1372_s4 + $0x180] sm:$0xff]  ;;  %v363_v27 = vld [vmem:[%s1372_s4 + $0x190] sm:$0xff] }
  0x35   : > { %v365_v28 = vld [vmem:[%s1372_s4 + $0x1a0] sm:$0xff]  ;;  %362 = vst [vmem:[%s1377_s6 + $0xc0] sm:$0xff] %v361_v26  ;;  %364 = vst [vmem:[%s1377_s6 + $0xc8] sm:$0xff] %v363_v27  ;;  %v367_v29 = vld [vmem:[%s1372_s4 + $0x1b0] sm:$0xff] }
  0x36   : > { %366 = vst [vmem:[%s1377_s6 + $0xd0] sm:$0xff] %v365_v28  ;;  %v369_v30 = vld [vmem:[%s1372_s4 + $0x1c0] sm:$0xff]  ;;  %v371_v31 = vld [vmem:[%s1372_s4 + $0x1d0] sm:$0xff]  ;;  %368 = vst [vmem:[%s1377_s6 + $0xd8] sm:$0xff] %v367_v29 }
  0x37   : > { %370 = vst [vmem:[%s1377_s6 + $0xe0] sm:$0xff] %v369_v30  ;;  %372 = vst [vmem:[%s1377_s6 + $0xe8] sm:$0xff] %v371_v31  ;;  %v373_v32 = vld [vmem:[%s1372_s4 + $0x1e0] sm:$0xff]  ;;  %v375_v33 = vld [vmem:[%s1372_s4 + $0x1f0] sm:$0xff] }
  0x38   : > { %374 = vst [vmem:[%s1377_s6 + $0xf0] sm:$0xff] %v373_v32  ;;  %376 = vst [vmem:[%s1377_s6 + $0xf8] sm:$0xff] %v375_v33 }
  0x39 PF: > { %p959_p0 = scmp.ge.s32.totalorder %s1235_s22, 1  ;;  %p381_p1 = scmp.lt.s32.totalorder %s1235_s22, 19 }
  0x3b   : > { %p382_p2 = pnand %p959_p0, %p381_p1 }
  0x3c   : > { %s388_s24 = sand.u32 (!%p382_p2), 1, %s1211_s16   ;;  %s395_s25 = sand.u32 (!%p382_p2), 1, %s1203_s14  }
  0x3d   : > { %385 = sbr.rel (%p382_p2) target bundleno = 377 (0x179), region = 96  ;;  %s1444_s30 = sshll.u32 (!%p382_p2), %s388_s24, 4 }
  0x3e   : > { %s961_s27 = sshll.u32 (!%p382_p2), %s395_s25, 8  ;;  %s416_s5 = sand.u32 (!%p382_p2), 1, %s1195_s12  }
  0x3f   : > { %s963_s23 = sshll.u32 (!%p382_p2), %s1223_s19, 1  ;;  %s962_s28 = sshll.u32 (!%p382_p2), %s416_s5, 5 }
  0x40   : > { %p439_p3 = scmp.lt.s32.totalorder (!%p382_p2), %s963_s23, 3  ;;  %s390_s4 = scalar_lea.vmem (!%p382_p2), [#allocation2], %s1444_s30 }
  0x41   : > { %s1454_s6 = scalar_lea.vmem (!%p382_p2), [#allocation3], %s961_s27  ;;  %s1456_s16 = scalar_lea.vmem (!%p382_p2), [#allocation4], %s962_s28 }
  0x42   : > { %s1589_s23 = smov (!%p439_p3, %s963_s23), 3  ;;  %p965_p4 = scmp.ne.s32.totalorder %s1219_s18, 0 }
  0x43   : > { %s964_s7 = sshll.u32 %s1589_s23, 3 }
  0x44   : > { %s1451_s26 = scalar_lea.vmem %s1560_s3, %s964_s7  ;;  %449 = sbr.rel (%p965_p4) target bundleno = 76 (0x4c), region = 108 }
  0x49   : > { %v1237_v34 = vmov 0.0  }
  0x4a   : > { %450 = vst [vmem:[%s1456_s16] sm:$0xff] %v1237_v34  ;;  %451 = vst [vmem:[%s1456_s16 + $0x8] sm:$0xff] %v1237_v34 }
  0x4b   : > { %452 = vst [vmem:[%s1456_s16 + $0x10] sm:$0xff] %v1237_v34  ;;  %453 = vst [vmem:[%s1456_s16 + $0x18] sm:$0xff] %v1237_v34 }
  0x4c PF: > { %v1098_v35 = vld [vmem:[%s1454_s6 + $0x74] ss:$8 sps:$4 sm:$0xff]   ;;  %v1100_v36 = vld [vmem:[%s1454_s6 + $0x70] ss:$8 sps:$4 sm:$0xff]   ;;  %v1101_v37 = vld [vmem:[%s1454_s6 + $0x64] ss:$8 sps:$4 sm:$0xff]  }
  0x4d   : > { %662 = vmatprep.subr.bf16.mxu0 %v1098_v35  ;;  %v1103_v38 = vld [vmem:[%s1454_s6 + $0x60] ss:$8 sps:$4 sm:$0xff]   ;;  %v1104_v39 = vld [vmem:[%s1454_s6 + $0x54] ss:$8 sps:$4 sm:$0xff]   ;;  %v1106_v40 = vld [vmem:[%s1454_s6 + $0x50] ss:$8 sps:$4 sm:$0xff]  }
  0x4e   : > { %663 = vmatpush1.bf16.msra.mxu0 %v1100_v36  ;;  %v1107_v41 = vld [vmem:[%s1454_s6 + $0x44] ss:$8 sps:$4 sm:$0xff]   ;;  %v1109_v42 = vld [vmem:[%s1454_s6 + $0x40] ss:$8 sps:$4 sm:$0xff]   ;;  %v1110_v43 = vld [vmem:[%s1454_s6 + $0x34] ss:$8 sps:$4 sm:$0xff]  }
  0x4f   : > { %664 = vmatprep.subr.bf16.mxu0 %v1101_v37  ;;  %v1112_v44 = vld [vmem:[%s1454_s6 + $0x30] ss:$8 sps:$4 sm:$0xff]   ;;  %v1113_v45 = vld [vmem:[%s1454_s6 + $0x24] ss:$8 sps:$4 sm:$0xff]   ;;  %v1115_v46 = vld [vmem:[%s1454_s6 + $0x20] ss:$8 sps:$4 sm:$0xff]  }
  0x50   : > { %v1116_v47 = vld [vmem:[%s1454_s6 + $0x14] ss:$8 sps:$4 sm:$0xff]   ;;  %v1118_v49 = vld [vmem:[%s1454_s6 + $0x10] ss:$8 sps:$4 sm:$0xff]   ;;  %v1119_v50 = vld [vmem:[%s1454_s6 + $0x4] ss:$8 sps:$4 sm:$0xff]  }
  0x51   : > { %v1148_v48 = vld [vmem:[%s390_s4 + $0x4] ss:$8 sps:$4 sm:$0xff]   ;;  %v1121_v51 = vld [vmem:[%s1454_s6] ss:$8 sps:$4 sm:$0xff]   ;;  %v1124_v53 = vld [vmem:[%s1454_s6 + $0xf0] ss:$8 sps:$4 sm:$0xff]  }
  0x52   : > { %665 = vmatpush1.bf16.msra.mxu0 %v1103_v38  ;;  %694 = vmatprep.mubr.bf16.mxu0 %v1148_v48  ;;  %v1122_v52 = vld [vmem:[%s1454_s6 + $0xf4] ss:$8 sps:$4 sm:$0xff]   ;;  %v1125_v54 = vld [vmem:[%s1454_s6 + $0xe4] ss:$8 sps:$4 sm:$0xff]   ;;  %v1127_v55 = vld [vmem:[%s1454_s6 + $0xe0] ss:$8 sps:$4 sm:$0xff]  }
  0x53   : > { %666 = vmatprep.subr.bf16.mxu0 %v1104_v39  ;;  %v1128_v56 = vld [vmem:[%s1454_s6 + $0xd4] ss:$8 sps:$4 sm:$0xff]   ;;  %v1130_v57 = vld [vmem:[%s1454_s6 + $0xd0] ss:$8 sps:$4 sm:$0xff]   ;;  %v1131_v58 = vld [vmem:[%s1454_s6 + $0xc4] ss:$8 sps:$4 sm:$0xff]  }
  0x54   : > { %v1133_v59 = vld [vmem:[%s1454_s6 + $0xc0] ss:$8 sps:$4 sm:$0xff]   ;;  %v1134_v60 = vld [vmem:[%s1454_s6 + $0xb4] ss:$8 sps:$4 sm:$0xff]   ;;  %v1136_v61 = vld [vmem:[%s1454_s6 + $0xb0] ss:$8 sps:$4 sm:$0xff]  }
  0x55   : > { %v1137_v62 = vld [vmem:[%s1454_s6 + $0xa4] ss:$8 sps:$4 sm:$0xff]   ;;  %v1139_v63 = vld [vmem:[%s1454_s6 + $0xa0] ss:$8 sps:$4 sm:$0xff]   ;;  %v1140_v0 = vld [vmem:[%s1454_s6 + $0x94] ss:$8 sps:$4 sm:$0xff]  }
  0x56   : > { %667 = vmatpush1.bf16.msra.mxu0 %v1106_v40  ;;  %v1142_v1 = vld [vmem:[%s1454_s6 + $0x90] ss:$8 sps:$4 sm:$0xff]   ;;  %v1143_v2 = vld [vmem:[%s1454_s6 + $0x84] ss:$8 sps:$4 sm:$0xff]   ;;  %v1145_v3 = vld [vmem:[%s1454_s6 + $0x80] ss:$8 sps:$4 sm:$0xff]  }
  0x57   : > { %668 = vmatprep.subr.bf16.mxu0 %v1107_v41  ;;  %v1146_v4 = vld [vmem:[%s390_s4] ss:$8 sps:$4 sm:$0xff]   ;;  %p1000_p5 = scmp.ne.s32.totalorder %s1219_s18, 8 }
  0x58   : > { %v454_v5 = vld [vmem:[%s1456_s16] sm:$0xff]  ;;  %v455_v7 = vld [vmem:[%s1456_s16 + $0x8] sm:$0xff]  ;;  %v456_v10 = vld [vmem:[%s1456_s16 + $0x10] sm:$0xff] }
  0x59   : > { %v457_v13 = vld [vmem:[%s1456_s16 + $0x18] sm:$0xff] }
  0x5a   : > { %669 = vmatpush1.bf16.msra.mxu0 %v1109_v42 }
  0x5b   : > { %670 = vmatprep.subr.bf16.mxu0 %v1110_v43 }
  0x5e   : > { %671 = vmatpush1.bf16.msra.mxu0 %v1112_v44 }
  0x5f   : > { %672 = vmatprep.subr.bf16.mxu0 %v1113_v45 }
  0x62   : > { %673 = vmatpush1.bf16.msra.mxu0 %v1115_v46 }
  0x63   : > { %674 = vmatprep.subr.bf16.mxu0 %v1116_v47 }
  0x66   : > { %675 = vmatpush1.bf16.msra.mxu0 %v1118_v49 }
  0x67   : > { %676 = vmatprep.subr.bf16.mxu0 %v1119_v50 }
  0x6a   : > { %677 = vmatpush1.bf16.msra.mxu0 %v1121_v51 }
  0x6b   : > { %678 = vmatprep.subr.bf16.mxu0 %v1122_v52 }
  0x6e   : > { %679 = vmatpush2.bf16.msra.mxu0 %v1124_v53 }
  0x6f   : > { %680 = vmatprep.subr.bf16.mxu0 %v1125_v54 }
  0x72   : > { %681 = vmatpush2.bf16.msra.mxu0 %v1127_v55 }
  0x73   : > { %682 = vmatprep.subr.bf16.mxu0 %v1128_v56 }
  0x76   : > { %683 = vmatpush2.bf16.msra.mxu0 %v1130_v57 }
  0x77   : > { %684 = vmatprep.subr.bf16.mxu0 %v1131_v58 }
  0x7a   : > { %685 = vmatpush2.bf16.msra.mxu0 %v1133_v59 }
  0x7b   : > { %686 = vmatprep.subr.bf16.mxu0 %v1134_v60 }
  0x7e   : > { %687 = vmatpush2.bf16.msra.mxu0 %v1136_v61 }
  0x7f   : > { %688 = vmatprep.subr.bf16.mxu0 %v1137_v62 }
  0x82   : > { %689 = vmatpush2.bf16.msra.mxu0 %v1139_v63 }
  0x83   : > { %690 = vmatprep.subr.bf16.mxu0 %v1140_v0 }
  0x86   : > { %691 = vmatpush2.bf16.msra.mxu0 %v1142_v1 }
  0x87   : > { %692 = vmatprep.subr.bf16.mxu0 %v1143_v2 }
  0x8a   : > { %693 = vmatpush2.bf16.msra.mxu0 %v1145_v3 }
  0x8d   : > { %695 = vmatmul.mubr.bf16.vlgmr.msra.gmra.mxu0 %v1146_v4 }
 0x14d   : > { %v696_v6 = vpop.f32.mrf.mxu0 }
 0x14e   : > { %v705_v8 = vadd.f32 %v696_v6, %v454_v5 }
 0x14f   : > { %v698_v9 = vpop.f32.mrf.mxu0 }
 0x150   : > { %709 = vst [vmem:[%s1456_s16] sm:$0xff] %v705_v8  ;;  %v706_v11 = vadd.f32 %v698_v9, %v455_v7 }
 0x151   : > { %v700_v12 = vpop.f32.mrf.mxu0 }
 0x152   : > { %710 = vst [vmem:[%s1456_s16 + $0x8] sm:$0xff] %v706_v11  ;;  %v707_v14 = vadd.f32 %v700_v12, %v456_v10  ;;  %716 = sbr.rel (%p1000_p5) target bundleno = 369 (0x171), region = 112 }
 0x153   : > { %v702_v15 = vpop.f32.mrf.mxu0 }
 0x154   : > { %711 = vst [vmem:[%s1456_s16 + $0x10] sm:$0xff] %v707_v14  ;;  %v708_v16 = vadd.f32 %v702_v15, %v457_v13 }
 0x156   : > { %712 = vst [vmem:[%s1456_s16 + $0x18] sm:$0xff] %v708_v16 }
 0x157   : > { %v717_v17 = vld [vmem:[%s1456_s16] sm:$0xff]  ;;  %v753_v33 = vlaneseq }
 0x158   : > { %v735_v21 = vmul.f32 %v717_v17, %v717_v17 }
 0x159   : > { %v718_v19 = vld [vmem:[%s1456_s16 + $0x8] sm:$0xff]  ;;  %v754_v42 = vshrl.u32 %v753_v33, 7 }
 0x15a   : > { %v736_v24 = vmul.f32 %v718_v19, %v718_v19 }
 0x15b   : > { %v719_v18 = vld [vmem:[%s1456_s16 + $0x10] sm:$0xff]  ;;  %vm756_vm0 = vcmp.eq.s32.totalorder %v754_v42, 1  ;;  %vm755_vm1 = vcmp.eq.s32.totalorder %v754_v42, 0 }
 0x15c   : > { %v721_v20 = vadd.f32 %v719_v18, %v717_v17  ;;  %v737_v22 = vmul.f32 %v719_v18, %v719_v18 }
 0x15d   : > { %v720_v23 = vld [vmem:[%s1456_s16 + $0x18] sm:$0xff] }
 0x15e   : > { %v728_v25 = vadd.f32 %v720_v23, %v718_v19  ;;  %v738_v26 = vmul.f32 %v720_v23, %v720_v23  ;;  %v722_v27 = vrot.slane %v721_v20, 4  ;;  %v739_v28 = vadd.f32 %v737_v22, %v735_v21 }
 0x160   : > { %v729_v29 = vrot.slane %v728_v25, 4  ;;  %v746_v30 = vadd.f32 %v738_v26, %v736_v24  ;;  %v723_v31 = vadd.f32 %v722_v27, %v721_v20  ;;  %v740_v32 = vrot.slane %v739_v28, 4 }
 0x162   : > { %v730_v34 = vadd.f32 %v729_v29, %v728_v25  ;;  %v747_v35 = vrot.slane %v746_v30, 4  ;;  %v724_v36 = vrot.slane %v723_v31, 2  ;;  %v741_v37 = vadd.f32 %v740_v32, %v739_v28 }
 0x164   : > { %v731_v38 = vrot.slane %v730_v34, 2  ;;  %v748_v39 = vadd.f32 %v747_v35, %v746_v30  ;;  %v725_v40 = vadd.f32 %v724_v36, %v723_v31  ;;  %v742_v41 = vrot.slane %v741_v37, 2 }
 0x166   : > { %v732_v43 = vadd.f32 %v731_v38, %v730_v34  ;;  %v749_v44 = vrot.slane %v748_v39, 2  ;;  %v726_v45 = vrot.slane %v725_v40, 1  ;;  %v743_v46 = vadd.f32 %v742_v41, %v741_v37 }
 0x168   : > { %v733_v47 = vrot.slane %v732_v43, 1  ;;  %v750_v48 = vadd.f32 %v749_v44, %v748_v39  ;;  %v744_v49 = vrot.slane %v743_v46, 1  ;;  %v727_v50 = vadd.f32 %v726_v45, %v725_v40 }
 0x16a   : > { %v751_v51 = vrot.slane %v750_v48, 1  ;;  %v745_v52 = vadd.f32 %v744_v49, %v743_v46  ;;  %v734_v53 = vadd.f32 %v733_v47, %v732_v43 }
 0x16c   : > { %v752_v54 = vadd.f32 %v751_v51, %v750_v48  ;;  %v757_v55 = vsel %vm756_vm0, %v745_v52, 0.0 }
 0x16d   : > { %v759_v56 = vsel %vm755_vm1, %v727_v50, %v757_v55 }
 0x16e   : > { %v758_v57 = vsel %vm756_vm0, %v752_v54, 0.0  ;;  %761 = vst [vmem:[%s1451_s26] sm:$0xff] %v759_v56 }
 0x16f   : > { %v760_v58 = vsel %vm755_vm1, %v734_v53, %v758_v57 }
 0x170   : > { %762 = vst [vmem:[%s1451_s26 + $0x8] sm:$0xff] %v760_v58 }
 0x171 PF: > { %778 = sbr.rel (!%p1352_p12) target bundleno = 377 (0x179), region = 116  ;;  %s1008_s12 = sshll.u32 (%p1352_p12), %s1223_s19, 4  ;;  %v797_v59 = vld [vmem:[%s1456_s16] sm:$0xff] (%p1352_p12) }
 0x172   : > { %s784_s24 = scalar_lea.vmem (%p1352_p12), %s1559_s2, %s1008_s12 }
 0x173   : > { %v799_v60 = vld [vmem:[%s1456_s16 + $0x8] sm:$0xff] (%p1352_p12)  ;;  %798 = vst [vmem:[%s784_s24] sm:$0xff] (%p1352_p12), %v797_v59 }
 0x174   : > { %800 = vst [vmem:[%s784_s24 + $0x8] sm:$0xff] (%p1352_p12), %v799_v60 }
 0x175   : > { %v801_v61 = vld [vmem:[%s1456_s16 + $0x10] sm:$0xff] (%p1352_p12) }
 0x176   : > { %802 = vst [vmem:[%s784_s24 + $0x20] sm:$0xff] %v801_v61 }
 0x177   : > { %v803_v62 = vld [vmem:[%s1456_s16 + $0x18] sm:$0xff] }
 0x178   : > { %804 = vst [vmem:[%s784_s24 + $0x28] sm:$0xff] %v803_v62 }
 0x179 PF: > { %s14_s22 = sadd.s32 1, %s1235_s22   ;;  %s1569_s19 = sld [smem:[#allocation7_spill]] }
 0x17a   : > { %p11_p6 = scmp.ge.s32.totalorder %s14_s22, 20   ;;  %s1570_s10 = sld [smem:[#allocation5_spill]] }
 0x17b   : > { %s1571_s25 = sld [smem:[#allocation6_spill]]  ;;  %s1572_s12 = smov %s1199_s13 }
 0x17c   : > { %s1573_s13 = smov %s1350_s9  ;;  %s1574_s14 = smov %s1207_s15 }
 0x17d   : > { %s1575_s15 = smov %s1347_s8  ;;  %s1576_s16 = smov %s1215_s17 }
 0x17e   : > { %s1578_s18 = smov %s1227_s20  ;;  %13 = sbr.rel (!%p11_p6) target bundleno = 6 (0x6), region = 190 }
 0x17f   : > { %s1577_s17 = smov %s1569_s19  ;;  %s1579_s19 = smov %s1231_s21 }
 0x180   : > { %s1580_s20 = smov %s1570_s10 }
 0x181   : > { %s1581_s21 = smov %s1571_s25 }

// kernel: attribute_cnn_forward.76
= control target key start
LH: loop header
LB: loop body
LE: loop exit
PB: predicated region body
PF: predicated region fallthrough
CT: control target
= control target key end

     0   :  { %v27_v0 = vlaneseq  ;;  %s232_s0 = inlined_call_operand.vmem [shape: f32[16,512], index: 0, kind: input, shape index: {}]   ;;  %s233_s1 = inlined_call_operand.vmem [shape: f32[1,512], index: 1, kind: input, shape index: {}]   ;;  %s234_s2 = inlined_call_operand.vmem [shape: f32[1,512], index: 2, kind: input, shape index: {}]   ;;  %s235_s3 = inlined_call_operand.vmem [shape: bf16[16,512], index: 3, kind: input, shape index: {}]   ;;  %s236_s4 = inlined_call_operand.vmem [shape: bf16[16,512], index: 4, kind: output, shape index: {}]  }
   0x1   :  { %v85_v2 = vld [vmem:[%s235_s3] sm:$0xff]  ;;  %v86_v8 = vld [vmem:[%s235_s3 + $0x8] sm:$0xff]  ;;  %v87_v14 = vld [vmem:[%s235_s3 + $0x10] sm:$0xff] }
   0x2   :  { %v28_v1 = vshrl.u32 %v27_v0, 7  ;;  %v17_v3 = vld [vmem:[%s232_s0] sm:$0xff]  ;;  %v89_v6 = vunpack.c.l.bf16 %v85_v2  ;;  %v90_v7 = vunpack.c.h.bf16 %v85_v2  ;;  %v18_v9 = vld [vmem:[%s232_s0 + $0x8] sm:$0xff]  ;;  %v19_v15 = vld [vmem:[%s232_s0 + $0x10] sm:$0xff]  ;;  %v91_v16 = vunpack.c.l.bf16 %v86_v8 }
   0x3   :  { %v25_v4 = vld [vmem:[%s233_s1] sm:$0xf]  ;;  %v92_v17 = vunpack.c.h.bf16 %v86_v8  ;;  %v22_v19 = vld [vmem:[%s232_s0 + $0x28] sm:$0xff]  ;;  %v93_v20 = vunpack.c.l.bf16 %v87_v14  ;;  %v94_v21 = vunpack.c.h.bf16 %v87_v14  ;;  %v20_v26 = vld [vmem:[%s232_s0 + $0x18] sm:$0xff] }
   0x4   :  { %v55_v5 = vld [vmem:[%s234_s2] sm:$0xf]  ;;  %v29_v10 = vsub.s32 0, %v28_v1  ;;  %v33_v11 = vsub.s32 1, %v28_v1  ;;  %v37_v12 = vsub.s32 2, %v28_v1  ;;  %v41_v13 = vsub.s32 3, %v28_v1 }
   0x5   :  { %v21_v18 = vld [vmem:[%s232_s0 + $0x20] sm:$0xff]  ;;  %v23_v27 = vld [vmem:[%s232_s0 + $0x30] sm:$0xff]  ;;  %v24_v28 = vld [vmem:[%s232_s0 + $0x38] sm:$0xff] }
   0x6   :  { %v30_v22 = vrot.slane %v25_v4, %v29_v10  ;;  %v34_v23 = vrot.slane %v25_v4, %v33_v11  ;;  %v60_v24 = vrot.slane %v55_v5, %v29_v10  ;;  %v64_v25 = vrot.slane %v55_v5, %v33_v11  ;;  %v88_v45 = vld [vmem:[%s235_s3 + $0x18] sm:$0xff] }
   0x7   :  { %v38_v29 = vrot.slane %v25_v4, %v37_v12  ;;  %v42_v30 = vrot.slane %v25_v4, %v41_v13  ;;  %v68_v31 = vrot.slane %v55_v5, %v37_v12  ;;  %v72_v32 = vrot.slane %v55_v5, %v41_v13 }
   0x8   :  { %v47_v33 = vmul.f32 %v30_v22, %v17_v3  ;;  %v48_v34 = vmul.f32 %v34_v23, %v18_v9  ;;  %v51_v35 = vmul.f32 %v30_v22, %v21_v18  ;;  %v52_v36 = vmul.f32 %v34_v23, %v22_v19 }
   0x9   :  { %v49_v37 = vmul.f32 %v38_v29, %v19_v15  ;;  %v50_v38 = vmul.f32 %v42_v30, %v20_v26  ;;  %v53_v39 = vmul.f32 %v38_v29, %v23_v27  ;;  %v54_v40 = vmul.f32 %v42_v30, %v24_v28 }
   0xa   :  { %v77_v41 = vadd.f32 %v60_v24, %v47_v33  ;;  %v78_v42 = vadd.f32 %v64_v25, %v48_v34  ;;  %v81_v43 = vadd.f32 %v60_v24, %v51_v35  ;;  %v82_v44 = vadd.f32 %v64_v25, %v52_v36 }
   0xb   :  { %v79_v46 = vadd.f32 %v68_v31, %v49_v37  ;;  %v80_v47 = vadd.f32 %v72_v32, %v50_v38  ;;  %v83_v48 = vadd.f32 %v68_v31, %v53_v39  ;;  %v84_v49 = vadd.f32 %v72_v32, %v54_v40 }
   0xc   :  { %v97_v50 = vadd.f32 %v89_v6, %v77_v41  ;;  %v98_v51 = vadd.f32 %v90_v7, %v78_v42  ;;  %v101_v52 = vadd.f32 %v93_v20, %v81_v43  ;;  %v102_v53 = vadd.f32 %v94_v21, %v82_v44 }
   0xd   :  { %v99_v54 = vadd.f32 %v91_v16, %v79_v46  ;;  %v100_v55 = vadd.f32 %v92_v17, %v80_v47  ;;  %v95_v56 = vunpack.c.l.bf16 %v88_v45  ;;  %v96_v57 = vunpack.c.h.bf16 %v88_v45 }
   0xe   :  { %v105_v58 = vmax.f32 %v97_v50, 0.0  ;;  %v106_v59 = vmax.f32 %v98_v51, 0.0  ;;  %v109_v60 = vmax.f32 %v101_v52, 0.0  ;;  %v110_v61 = vmax.f32 %v102_v53, 0.0 }
   0xf   :  { %v107_v62 = vmax.f32 %v99_v54, 0.0  ;;  %v108_v63 = vmax.f32 %v100_v55, 0.0  ;;  %v103_v0 = vadd.f32 %v95_v56, %v83_v48  ;;  %v104_v1 = vadd.f32 %v96_v57, %v84_v49 }
  0x10   :  { %v149_v2 = vpack.c.bf16 %v106_v59, %v105_v58  ;;  %v151_v3 = vpack.c.bf16 %v110_v61, %v109_v60 }
  0x11   :  { %v150_v4 = vpack.c.bf16 %v108_v63, %v107_v62  ;;  %v111_v5 = vmax.f32 %v103_v0, 0.0  ;;  %v112_v6 = vmax.f32 %v104_v1, 0.0 }
  0x12   :  { %137 = vst [vmem:[%s236_s4] sm:$0xff] %v149_v2  ;;  %139 = vst [vmem:[%s236_s4 + $0x10] sm:$0xff] %v151_v3 }
  0x13   :  { %138 = vst [vmem:[%s236_s4 + $0x8] sm:$0xff] %v150_v4  ;;  %v152_v7 = vpack.c.bf16 %v112_v6, %v111_v5 }
  0x15   :  { %140 = vst [vmem:[%s236_s4 + $0x18] sm:$0xff] %v152_v7 }

// kernel: attribute_cnn_forward.73
= control target key start
LH: loop header
LB: loop body
LE: loop exit
PB: predicated region body
PF: predicated region fallthrough
CT: control target
= control target key end

     0   :  { %s2098_s0 = inlined_call_operand.vmem [shape: bf16[16,4608], index: 0, kind: input, shape index: {}]   ;;  %s2099_s1 = inlined_call_operand.vmem [shape: bf16[4608,512], index: 1, kind: input, shape index: {}]   ;;  %s2100_s2 = inlined_call_operand.vmem [shape: f32[16,512], index: 2, kind: output, shape index: {0}]   ;;  %s2101_s3 = inlined_call_operand.vmem [shape: f32[1,8,512], index: 3, kind: output, shape index: {1}]  }
   0x1   :  { %2104 = sst [smem:[#allocation7_spill]] %s2098_s0 }
   0x2   :  { %2105 = sst [smem:[#allocation8_spill]] %s2099_s1 }
   0x3   :  { %s1704_s12 = smov 0   ;;  %s1706_s13 = smov 0  }
   0x4   :  { %s1708_s14 = smov 0   ;;  %s1710_s15 = smov 0  }
   0x5   :  { %s1712_s16 = smov 0   ;;  %s1714_s17 = smov 0  }
   0x6   :  { %s1716_s18 = smov 0   ;;  %s1718_s19 = smov 0  }
   0x7   :  { %s1720_s20 = smov 0   ;;  %s1722_s21 = smov 0  }
   0x8   :  { %s1724_s22 = smov 0  }
   0x9 LB: > { %s1308_s23 = sadd.s32 4294967295, %s1681_s22   ;;  %s26_s24 = sadd.s32 1, %s1673_s20  ;;  %s1681_s22 = sphi %s1724_s22, %s14_s22   ;;  %s1677_s21 = sphi %s1722_s21, %s2124_s21   ;;  %s1673_s20 = sphi %s1720_s20, %s2123_s20   ;;  %s1669_s19 = sphi %s1718_s19, %s2122_s19   ;;  %s1665_s18 = sphi %s1716_s18, %s2121_s18   ;;  %s1661_s17 = sphi %s1714_s17, %s2120_s17   ;;  %s1657_s16 = sphi %s1712_s16, %s2119_s16   ;;  %s1653_s15 = sphi %s1710_s15, %s2118_s15   ;;  %s1649_s14 = sphi %s1708_s14, %s2117_s14   ;;  %s1645_s13 = sphi %s1706_s13, %s2116_s13   ;;  %s1641_s12 = sphi %s1704_s12, %s2115_s12  }
   0xa   : > { %p27_p0 = scmp.ge.s32.totalorder %s26_s24, 9  ;;  %s29_s25 = sadd.s32 1, %s1677_s21 }
   0xb   : > { %s42_s26 = sadd.s32 1, %s1661_s17  ;;  %p49_p1 = scmp.ne.s32.totalorder %s1661_s17, %s1657_s16 }
   0xc   : > { %s2126_s24 = smov (%p27_p0, %s26_s24), 0  ;;  %s2128_s25 = smov (!%p27_p0, %s29_s25), %s1677_s21 }
   0xd   : > { %2106 = sst [smem:[#allocation5_spill]] %s2126_s24  ;;  %s38_s27 = ssub.s32 %s1673_s20, %s2126_s24 }
   0xe   : > { %p50_p2 = scmp.eq.s32.totalorder %s1681_s22, 0  ;;  %p31_p3 = scmp.ge.s32.totalorder %s2128_s25, 2 }
   0xf   : > { %p40_p4 = scmp.eq.s32.totalorder %s38_s27, 0  ;;  %s70_s29 = sadd.s32 1, %s1653_s15 }
  0x10   : > { %p1771_p5 = por %p50_p2, %p49_p1  ;;  %s2130_s25 = smov (%p31_p3, %s2128_s25), 0 }
  0x11   : > { %2108 = sst [smem:[#allocation6_spill]] %s2130_s25  ;;  %s66_s4 = ssub.s32 %s1677_s21, %s2130_s25 }
  0x12   : > { %s1779_s30 = scalar_select %p40_p4, %s1661_s17, %s42_s26  }
  0x13   : > { %p77_p6 = scmp.ne.s32.totalorder %s1653_s15, %s1649_s14  ;;  %s67_s5 = sor.u32 %s66_s4, %s38_s27 }
  0x14   : > { %p96_p7 = scmp.eq.s32.totalorder %s66_s4, 0  ;;  %p68_p8 = scmp.eq.s32.totalorder %s67_s5, 0 }
  0x15   : > { %p1785_p9 = por %p77_p6, %p50_p2  ;;  %s98_s7 = sadd.s32 1, %s1645_s13 }
  0x16   : > { %p108_p10 = scmp.ne.s32.totalorder %s1645_s13, %s1641_s12  ;;  %p109_p11 = scmp.eq.s32.totalorder %s1308_s23, 17 }
  0x17   : > { %s1793_s8 = scalar_select %p68_p8, %s1653_s15, %s70_s29  }
  0x18   : > { %s1796_s9 = scalar_select %p96_p7, %s1645_s13, %s98_s7  }
  0x19   : > { %p1798_p12 = por %p109_p11, %p108_p10  ;;  %p1311_p13 = scmp.ge.s32.totalorder %s1681_s22, 18 }
  0x1b   : > { %159 = sbr.rel (%p1311_p13) target bundleno = 86 (0x56), region = 16 }
  0x20   : > { %162 = sbr.rel (!%p1771_p5) target bundleno = 44 (0x2c), region = 20  ;;  %s164_s11 = sand.u32 (%p1771_p5), 1, %s1661_s17  }
  0x21   : > { %s1401_s26 = sshll.u32 (%p1771_p5), %s1673_s20, 4  ;;  %s1312_s27 = sshll.u32 (%p1771_p5), %s164_s11, 5 }
  0x22   : > { %s2111_s0 = sld [smem:[#allocation7_spill]] (%p1771_p5)  ;;  %s166_s23 = scalar_lea.vmem (%p1771_p5), [#allocation2], %s1312_s27 }
  0x28   : > { %s172_s5 = scalar_lea.vmem %s2111_s0, %s1401_s26 }
  0x29   : > { %v185_v0 = vld [vmem:[%s172_s5] sm:$0xff]  ;;  %v187_v1 = vld [vmem:[%s172_s5 + $0x8] sm:$0xff]  ;;  %v189_v2 = vld [vmem:[%s172_s5 + $0x90] sm:$0xff] }
  0x2a   : > { %186 = vst [vmem:[%s166_s23] sm:$0xff] %v185_v0  ;;  %188 = vst [vmem:[%s166_s23 + $0x8] sm:$0xff] %v187_v1  ;;  %v191_v3 = vld [vmem:[%s172_s5 + $0x98] sm:$0xff] }
  0x2b   : > { %190 = vst [vmem:[%s166_s23 + $0x10] sm:$0xff] %v189_v2  ;;  %192 = vst [vmem:[%s166_s23 + $0x18] sm:$0xff] %v191_v3 }
  0x2c PF: > { %198 = sbr.rel (!%p1785_p9) target bundleno = 86 (0x56), region = 43  ;;  %s200_s28 = sand.u32 (%p1785_p9), 1, %s1653_s15  }
  0x2d   : > { %s1317_s7 = sshll.u32 (%p1785_p9), %s1677_s21, 1  ;;  %s1315_s11 = sshll.u32 (%p1785_p9), %s200_s28, 9 }
  0x2e   : > { %s1402_s26 = sshll.u32 (%p1785_p9), %s1673_s20, 8  ;;  %s2112_s1 = sld [smem:[#allocation8_spill]] (%p1785_p9) }
  0x2f   : > { %s206_s29 = sadd.s32 (%p1785_p9), %s1402_s26, %s1317_s7  ;;  %s1823_s6 = scalar_lea.vmem (%p1785_p9), [#allocation3], %s1315_s11 }
  0x30   : > { %s1319_s4 = sshll.u32 (%p1785_p9), %s206_s29, 2 }
  0x34   : > { %s1818_s25 = scalar_lea.vmem %s2112_s1, %s1319_s4 }
  0x35   : > { %v363_v4 = vld [vmem:[%s1818_s25] sm:$0xff]  ;;  %v365_v5 = vld [vmem:[%s1818_s25 + $0x10] sm:$0xff] }
  0x36   : > { %v367_v6 = vld [vmem:[%s1818_s25 + $0x20] sm:$0xff]  ;;  %364 = vst [vmem:[%s1823_s6] sm:$0xff] %v363_v4  ;;  %366 = vst [vmem:[%s1823_s6 + $0x8] sm:$0xff] %v365_v5  ;;  %v369_v7 = vld [vmem:[%s1818_s25 + $0x30] sm:$0xff] }
  0x37   : > { %368 = vst [vmem:[%s1823_s6 + $0x10] sm:$0xff] %v367_v6  ;;  %v371_v8 = vld [vmem:[%s1818_s25 + $0x40] sm:$0xff]  ;;  %v373_v9 = vld [vmem:[%s1818_s25 + $0x50] sm:$0xff]  ;;  %370 = vst [vmem:[%s1823_s6 + $0x18] sm:$0xff] %v369_v7 }
  0x38   : > { %372 = vst [vmem:[%s1823_s6 + $0x20] sm:$0xff] %v371_v8  ;;  %374 = vst [vmem:[%s1823_s6 + $0x28] sm:$0xff] %v373_v9  ;;  %v375_v10 = vld [vmem:[%s1818_s25 + $0x60] sm:$0xff]  ;;  %v377_v11 = vld [vmem:[%s1818_s25 + $0x70] sm:$0xff] }
  0x39   : > { %v379_v12 = vld [vmem:[%s1818_s25 + $0x80] sm:$0xff]  ;;  %376 = vst [vmem:[%s1823_s6 + $0x30] sm:$0xff] %v375_v10  ;;  %378 = vst [vmem:[%s1823_s6 + $0x38] sm:$0xff] %v377_v11  ;;  %v381_v13 = vld [vmem:[%s1818_s25 + $0x90] sm:$0xff] }
  0x3a   : > { %380 = vst [vmem:[%s1823_s6 + $0x40] sm:$0xff] %v379_v12  ;;  %v383_v14 = vld [vmem:[%s1818_s25 + $0xa0] sm:$0xff]  ;;  %v385_v15 = vld [vmem:[%s1818_s25 + $0xb0] sm:$0xff]  ;;  %382 = vst [vmem:[%s1823_s6 + $0x48] sm:$0xff] %v381_v13 }
  0x3b   : > { %384 = vst [vmem:[%s1823_s6 + $0x50] sm:$0xff] %v383_v14  ;;  %386 = vst [vmem:[%s1823_s6 + $0x58] sm:$0xff] %v385_v15  ;;  %v387_v16 = vld [vmem:[%s1818_s25 + $0xc0] sm:$0xff]  ;;  %v389_v17 = vld [vmem:[%s1818_s25 + $0xd0] sm:$0xff] }
  0x3c   : > { %v391_v18 = vld [vmem:[%s1818_s25 + $0xe0] sm:$0xff]  ;;  %388 = vst [vmem:[%s1823_s6 + $0x60] sm:$0xff] %v387_v16  ;;  %390 = vst [vmem:[%s1823_s6 + $0x68] sm:$0xff] %v389_v17  ;;  %v393_v19 = vld [vmem:[%s1818_s25 + $0xf0] sm:$0xff] }
  0x3d   : > { %392 = vst [vmem:[%s1823_s6 + $0x70] sm:$0xff] %v391_v18  ;;  %v395_v20 = vld [vmem:[%s1818_s25 + $0x100] sm:$0xff]  ;;  %v397_v21 = vld [vmem:[%s1818_s25 + $0x110] sm:$0xff]  ;;  %394 = vst [vmem:[%s1823_s6 + $0x78] sm:$0xff] %v393_v19 }
  0x3e   : > { %396 = vst [vmem:[%s1823_s6 + $0x80] sm:$0xff] %v395_v20  ;;  %398 = vst [vmem:[%s1823_s6 + $0x88] sm:$0xff] %v397_v21  ;;  %v399_v22 = vld [vmem:[%s1818_s25 + $0x120] sm:$0xff]  ;;  %v401_v23 = vld [vmem:[%s1818_s25 + $0x130] sm:$0xff] }
  0x3f   : > { %v403_v24 = vld [vmem:[%s1818_s25 + $0x140] sm:$0xff]  ;;  %400 = vst [vmem:[%s1823_s6 + $0x90] sm:$0xff] %v399_v22  ;;  %402 = vst [vmem:[%s1823_s6 + $0x98] sm:$0xff] %v401_v23  ;;  %v405_v25 = vld [vmem:[%s1818_s25 + $0x150] sm:$0xff] }
  0x40   : > { %404 = vst [vmem:[%s1823_s6 + $0xa0] sm:$0xff] %v403_v24  ;;  %v407_v26 = vld [vmem:[%s1818_s25 + $0x160] sm:$0xff]  ;;  %v409_v27 = vld [vmem:[%s1818_s25 + $0x170] sm:$0xff]  ;;  %406 = vst [vmem:[%s1823_s6 + $0xa8] sm:$0xff] %v405_v25 }
  0x41   : > { %408 = vst [vmem:[%s1823_s6 + $0xb0] sm:$0xff] %v407_v26  ;;  %410 = vst [vmem:[%s1823_s6 + $0xb8] sm:$0xff] %v409_v27  ;;  %v411_v28 = vld [vmem:[%s1818_s25 + $0x180] sm:$0xff]  ;;  %v413_v29 = vld [vmem:[%s1818_s25 + $0x190] sm:$0xff] }
  0x42   : > { %v415_v30 = vld [vmem:[%s1818_s25 + $0x1a0] sm:$0xff]  ;;  %412 = vst [vmem:[%s1823_s6 + $0xc0] sm:$0xff] %v411_v28  ;;  %414 = vst [vmem:[%s1823_s6 + $0xc8] sm:$0xff] %v413_v29  ;;  %v417_v31 = vld [vmem:[%s1818_s25 + $0x1b0] sm:$0xff] }
  0x43   : > { %416 = vst [vmem:[%s1823_s6 + $0xd0] sm:$0xff] %v415_v30  ;;  %v419_v32 = vld [vmem:[%s1818_s25 + $0x1c0] sm:$0xff]  ;;  %v421_v33 = vld [vmem:[%s1818_s25 + $0x1d0] sm:$0xff]  ;;  %418 = vst [vmem:[%s1823_s6 + $0xd8] sm:$0xff] %v417_v31 }
  0x44   : > { %420 = vst [vmem:[%s1823_s6 + $0xe0] sm:$0xff] %v419_v32  ;;  %422 = vst [vmem:[%s1823_s6 + $0xe8] sm:$0xff] %v421_v33  ;;  %v423_v34 = vld [vmem:[%s1818_s25 + $0x1e0] sm:$0xff]  ;;  %v425_v35 = vld [vmem:[%s1818_s25 + $0x1f0] sm:$0xff] }
  0x45   : > { %v427_v36 = vld [vmem:[%s1818_s25 + $0x200] sm:$0xff]  ;;  %424 = vst [vmem:[%s1823_s6 + $0xf0] sm:$0xff] %v423_v34  ;;  %426 = vst [vmem:[%s1823_s6 + $0xf8] sm:$0xff] %v425_v35  ;;  %v429_v37 = vld [vmem:[%s1818_s25 + $0x210] sm:$0xff] }
  0x46   : > { %428 = vst [vmem:[%s1823_s6 + $0x100] sm:$0xff] %v427_v36  ;;  %v431_v38 = vld [vmem:[%s1818_s25 + $0x220] sm:$0xff]  ;;  %v433_v39 = vld [vmem:[%s1818_s25 + $0x230] sm:$0xff]  ;;  %430 = vst [vmem:[%s1823_s6 + $0x108] sm:$0xff] %v429_v37 }
  0x47   : > { %432 = vst [vmem:[%s1823_s6 + $0x110] sm:$0xff] %v431_v38  ;;  %434 = vst [vmem:[%s1823_s6 + $0x118] sm:$0xff] %v433_v39  ;;  %v435_v40 = vld [vmem:[%s1818_s25 + $0x240] sm:$0xff]  ;;  %v437_v41 = vld [vmem:[%s1818_s25 + $0x250] sm:$0xff] }
  0x48   : > { %v439_v42 = vld [vmem:[%s1818_s25 + $0x260] sm:$0xff]  ;;  %436 = vst [vmem:[%s1823_s6 + $0x120] sm:$0xff] %v435_v40  ;;  %438 = vst [vmem:[%s1823_s6 + $0x128] sm:$0xff] %v437_v41  ;;  %v441_v43 = vld [vmem:[%s1818_s25 + $0x270] sm:$0xff] }
  0x49   : > { %440 = vst [vmem:[%s1823_s6 + $0x130] sm:$0xff] %v439_v42  ;;  %v443_v44 = vld [vmem:[%s1818_s25 + $0x280] sm:$0xff]  ;;  %v445_v45 = vld [vmem:[%s1818_s25 + $0x290] sm:$0xff]  ;;  %442 = vst [vmem:[%s1823_s6 + $0x138] sm:$0xff] %v441_v43 }
  0x4a   : > { %444 = vst [vmem:[%s1823_s6 + $0x140] sm:$0xff] %v443_v44  ;;  %446 = vst [vmem:[%s1823_s6 + $0x148] sm:$0xff] %v445_v45  ;;  %v447_v46 = vld [vmem:[%s1818_s25 + $0x2a0] sm:$0xff]  ;;  %v449_v47 = vld [vmem:[%s1818_s25 + $0x2b0] sm:$0xff] }
  0x4b   : > { %v451_v48 = vld [vmem:[%s1818_s25 + $0x2c0] sm:$0xff]  ;;  %448 = vst [vmem:[%s1823_s6 + $0x150] sm:$0xff] %v447_v46  ;;  %450 = vst [vmem:[%s1823_s6 + $0x158] sm:$0xff] %v449_v47  ;;  %v453_v49 = vld [vmem:[%s1818_s25 + $0x2d0] sm:$0xff] }
  0x4c   : > { %452 = vst [vmem:[%s1823_s6 + $0x160] sm:$0xff] %v451_v48  ;;  %v455_v50 = vld [vmem:[%s1818_s25 + $0x2e0] sm:$0xff]  ;;  %v457_v51 = vld [vmem:[%s1818_s25 + $0x2f0] sm:$0xff]  ;;  %454 = vst [vmem:[%s1823_s6 + $0x168] sm:$0xff] %v453_v49 }
  0x4d   : > { %456 = vst [vmem:[%s1823_s6 + $0x170] sm:$0xff] %v455_v50  ;;  %458 = vst [vmem:[%s1823_s6 + $0x178] sm:$0xff] %v457_v51  ;;  %v459_v52 = vld [vmem:[%s1818_s25 + $0x300] sm:$0xff]  ;;  %v461_v53 = vld [vmem:[%s1818_s25 + $0x310] sm:$0xff] }
  0x4e   : > { %v463_v54 = vld [vmem:[%s1818_s25 + $0x320] sm:$0xff]  ;;  %460 = vst [vmem:[%s1823_s6 + $0x180] sm:$0xff] %v459_v52  ;;  %462 = vst [vmem:[%s1823_s6 + $0x188] sm:$0xff] %v461_v53  ;;  %v465_v55 = vld [vmem:[%s1818_s25 + $0x330] sm:$0xff] }
  0x4f   : > { %464 = vst [vmem:[%s1823_s6 + $0x190] sm:$0xff] %v463_v54  ;;  %v467_v56 = vld [vmem:[%s1818_s25 + $0x340] sm:$0xff]  ;;  %v469_v57 = vld [vmem:[%s1818_s25 + $0x350] sm:$0xff]  ;;  %466 = vst [vmem:[%s1823_s6 + $0x198] sm:$0xff] %v465_v55 }
  0x50   : > { %468 = vst [vmem:[%s1823_s6 + $0x1a0] sm:$0xff] %v467_v56  ;;  %470 = vst [vmem:[%s1823_s6 + $0x1a8] sm:$0xff] %v469_v57  ;;  %v471_v58 = vld [vmem:[%s1818_s25 + $0x360] sm:$0xff]  ;;  %v473_v59 = vld [vmem:[%s1818_s25 + $0x370] sm:$0xff] }
  0x51   : > { %v475_v60 = vld [vmem:[%s1818_s25 + $0x380] sm:$0xff]  ;;  %472 = vst [vmem:[%s1823_s6 + $0x1b0] sm:$0xff] %v471_v58  ;;  %474 = vst [vmem:[%s1823_s6 + $0x1b8] sm:$0xff] %v473_v59  ;;  %v477_v61 = vld [vmem:[%s1818_s25 + $0x390] sm:$0xff] }
  0x52   : > { %476 = vst [vmem:[%s1823_s6 + $0x1c0] sm:$0xff] %v475_v60  ;;  %v479_v62 = vld [vmem:[%s1818_s25 + $0x3a0] sm:$0xff]  ;;  %v481_v63 = vld [vmem:[%s1818_s25 + $0x3b0] sm:$0xff]  ;;  %478 = vst [vmem:[%s1823_s6 + $0x1c8] sm:$0xff] %v477_v61 }
  0x53   : > { %480 = vst [vmem:[%s1823_s6 + $0x1d0] sm:$0xff] %v479_v62  ;;  %482 = vst [vmem:[%s1823_s6 + $0x1d8] sm:$0xff] %v481_v63  ;;  %v483_v0 = vld [vmem:[%s1818_s25 + $0x3c0] sm:$0xff]  ;;  %v485_v1 = vld [vmem:[%s1818_s25 + $0x3d0] sm:$0xff] }
  0x54   : > { %v487_v2 = vld [vmem:[%s1818_s25 + $0x3e0] sm:$0xff]  ;;  %484 = vst [vmem:[%s1823_s6 + $0x1e0] sm:$0xff] %v483_v0  ;;  %486 = vst [vmem:[%s1823_s6 + $0x1e8] sm:$0xff] %v485_v1  ;;  %v489_v3 = vld [vmem:[%s1818_s25 + $0x3f0] sm:$0xff] }
  0x55   : > { %488 = vst [vmem:[%s1823_s6 + $0x1f0] sm:$0xff] %v487_v2  ;;  %490 = vst [vmem:[%s1823_s6 + $0x1f8] sm:$0xff] %v489_v3 }
  0x56 PF: > { %p1320_p0 = scmp.ge.s32.totalorder %s1681_s22, 1  ;;  %p495_p1 = scmp.lt.s32.totalorder %s1681_s22, 19 }
  0x58   : > { %p496_p2 = pnand %p1320_p0, %p495_p1 }
  0x59   : > { %s502_s0 = sand.u32 (!%p496_p2), 1, %s1657_s16   ;;  %s509_s5 = sand.u32 (!%p496_p2), 1, %s1649_s14  }
  0x5a   : > { %499 = sbr.rel (%p496_p2) target bundleno = 409 (0x199), region = 81  ;;  %s1321_s23 = sshll.u32 (!%p496_p2), %s502_s0, 5 }
  0x5b   : > { %s1322_s28 = sshll.u32 (!%p496_p2), %s509_s5, 9  ;;  %s530_s7 = sand.u32 (!%p496_p2), 1, %s1641_s12  }
  0x5c   : > { %s1324_s11 = sshll.u32 (!%p496_p2), %s1669_s19, 1  ;;  %s1323_s25 = sshll.u32 (!%p496_p2), %s530_s7, 5 }
  0x5d   : > { %p553_p3 = scmp.lt.s32.totalorder (!%p496_p2), %s1324_s11, 3  ;;  %s1961_s6 = scalar_lea.vmem (!%p496_p2), [#allocation2], %s1321_s23 }
  0x5e   : > { %s1963_s1 = scalar_lea.vmem (!%p496_p2), [#allocation3], %s1322_s28  ;;  %s1965_s24 = scalar_lea.vmem (!%p496_p2), [#allocation4], %s1323_s25 }
  0x5f   : > { %s2132_s11 = smov (!%p553_p3, %s1324_s11), 3  ;;  %p1326_p4 = scmp.ne.s32.totalorder %s1665_s18, 0 }
  0x60   : > { %s1325_s26 = sshll.u32 %s2132_s11, 3 }
  0x61   : > { %s1959_s27 = scalar_lea.vmem %s2101_s3, %s1325_s26  ;;  %563 = sbr.rel (%p1326_p4) target bundleno = 105 (0x69), region = 93 }
  0x66   : > { %v1683_v4 = vmov 0.0  }
  0x67   : > { %564 = vst [vmem:[%s1965_s24] sm:$0xff] %v1683_v4  ;;  %565 = vst [vmem:[%s1965_s24 + $0x8] sm:$0xff] %v1683_v4 }
  0x68   : > { %566 = vst [vmem:[%s1965_s24 + $0x10] sm:$0xff] %v1683_v4  ;;  %567 = vst [vmem:[%s1965_s24 + $0x18] sm:$0xff] %v1683_v4 }
  0x69 PF: > { %v1493_v5 = vld [vmem:[%s1963_s1 + $0x74] ss:$8 sps:$4 sm:$0xff]   ;;  %v1497_v7 = vld [vmem:[%s1963_s1 + $0x70] ss:$8 sps:$4 sm:$0xff]   ;;  %v1499_v9 = vld [vmem:[%s1963_s1 + $0x64] ss:$8 sps:$4 sm:$0xff]  }
  0x6a   : > { %v1495_v6 = vld [vmem:[%s1963_s1 + $0x174] ss:$8 sps:$4 sm:$0xff]   ;;  %980 = vmatprep.subr.bf16.mxu0 %v1493_v5  ;;  %v1498_v8 = vld [vmem:[%s1963_s1 + $0x170] ss:$8 sps:$4 sm:$0xff]   ;;  %v1501_v10 = vld [vmem:[%s1963_s1 + $0x164] ss:$8 sps:$4 sm:$0xff]  }
  0x6b   : > { %1023 = vmatprep.subr.bf16.mxu1 %v1495_v6  ;;  %981 = vmatpush1.bf16.msra.mxu0 %v1497_v7  ;;  %v1503_v11 = vld [vmem:[%s1963_s1 + $0x60] ss:$8 sps:$4 sm:$0xff]   ;;  %v1505_v13 = vld [vmem:[%s1963_s1 + $0x54] ss:$8 sps:$4 sm:$0xff]   ;;  %v1509_v15 = vld [vmem:[%s1963_s1 + $0x50] ss:$8 sps:$4 sm:$0xff]  }
  0x6c   : > { %1024 = vmatpush1.bf16.msra.mxu1 %v1498_v8  ;;  %982 = vmatprep.subr.bf16.mxu0 %v1499_v9  ;;  %v1504_v12 = vld [vmem:[%s1963_s1 + $0x160] ss:$8 sps:$4 sm:$0xff]   ;;  %v1507_v14 = vld [vmem:[%s1963_s1 + $0x154] ss:$8 sps:$4 sm:$0xff]   ;;  %v1510_v16 = vld [vmem:[%s1963_s1 + $0x150] ss:$8 sps:$4 sm:$0xff]  }
  0x6d   : > { %1025 = vmatprep.subr.bf16.mxu1 %v1501_v10  ;;  %v1511_v17 = vld [vmem:[%s1963_s1 + $0x44] ss:$8 sps:$4 sm:$0xff]   ;;  %v1515_v19 = vld [vmem:[%s1963_s1 + $0x40] ss:$8 sps:$4 sm:$0xff]   ;;  %v1517_v21 = vld [vmem:[%s1963_s1 + $0x34] ss:$8 sps:$4 sm:$0xff]  }
  0x6e   : > { %v1513_v18 = vld [vmem:[%s1963_s1 + $0x144] ss:$8 sps:$4 sm:$0xff]   ;;  %v1516_v20 = vld [vmem:[%s1963_s1 + $0x140] ss:$8 sps:$4 sm:$0xff]   ;;  %v1519_v22 = vld [vmem:[%s1963_s1 + $0x134] ss:$8 sps:$4 sm:$0xff]  }
  0x6f   : > { %983 = vmatpush1.bf16.msra.mxu0 %v1503_v11  ;;  %v1521_v23 = vld [vmem:[%s1963_s1 + $0x30] ss:$8 sps:$4 sm:$0xff]   ;;  %v1523_v25 = vld [vmem:[%s1963_s1 + $0x24] ss:$8 sps:$4 sm:$0xff]   ;;  %v1527_v27 = vld [vmem:[%s1963_s1 + $0x20] ss:$8 sps:$4 sm:$0xff]  }
  0x70   : > { %1026 = vmatpush1.bf16.msra.mxu1 %v1504_v12  ;;  %984 = vmatprep.subr.bf16.mxu0 %v1505_v13  ;;  %v1522_v24 = vld [vmem:[%s1963_s1 + $0x130] ss:$8 sps:$4 sm:$0xff]   ;;  %v1525_v26 = vld [vmem:[%s1963_s1 + $0x124] ss:$8 sps:$4 sm:$0xff]   ;;  %v1528_v28 = vld [vmem:[%s1963_s1 + $0x120] ss:$8 sps:$4 sm:$0xff]  }
  0x71   : > { %1027 = vmatprep.subr.bf16.mxu1 %v1507_v14  ;;  %v1529_v29 = vld [vmem:[%s1963_s1 + $0x14] ss:$8 sps:$4 sm:$0xff]   ;;  %v1533_v31 = vld [vmem:[%s1963_s1 + $0x10] ss:$8 sps:$4 sm:$0xff]   ;;  %v1535_v33 = vld [vmem:[%s1963_s1 + $0x4] ss:$8 sps:$4 sm:$0xff]  }
  0x72   : > { %v1531_v30 = vld [vmem:[%s1963_s1 + $0x114] ss:$8 sps:$4 sm:$0xff]   ;;  %v1534_v32 = vld [vmem:[%s1963_s1 + $0x110] ss:$8 sps:$4 sm:$0xff]   ;;  %v1537_v34 = vld [vmem:[%s1963_s1 + $0x104] ss:$8 sps:$4 sm:$0xff]  }
  0x73   : > { %985 = vmatpush1.bf16.msra.mxu0 %v1509_v15  ;;  %v1539_v35 = vld [vmem:[%s1963_s1] ss:$8 sps:$4 sm:$0xff]   ;;  %v1541_v37 = vld [vmem:[%s1963_s1 + $0xf4] ss:$8 sps:$4 sm:$0xff]   ;;  %v1545_v39 = vld [vmem:[%s1963_s1 + $0xf0] ss:$8 sps:$4 sm:$0xff]  }
  0x74   : > { %1028 = vmatpush1.bf16.msra.mxu1 %v1510_v16  ;;  %986 = vmatprep.subr.bf16.mxu0 %v1511_v17  ;;  %v1540_v36 = vld [vmem:[%s1963_s1 + $0x100] ss:$8 sps:$4 sm:$0xff]   ;;  %v1543_v38 = vld [vmem:[%s1963_s1 + $0x1f4] ss:$8 sps:$4 sm:$0xff]   ;;  %v1546_v40 = vld [vmem:[%s1963_s1 + $0x1f0] ss:$8 sps:$4 sm:$0xff]  }
  0x75   : > { %1029 = vmatprep.subr.bf16.mxu1 %v1513_v18  ;;  %v1547_v41 = vld [vmem:[%s1963_s1 + $0xe4] ss:$8 sps:$4 sm:$0xff]   ;;  %v1551_v43 = vld [vmem:[%s1963_s1 + $0xe0] ss:$8 sps:$4 sm:$0xff]   ;;  %v1553_v45 = vld [vmem:[%s1963_s1 + $0xd4] ss:$8 sps:$4 sm:$0xff]  }
  0x76   : > { %v1549_v42 = vld [vmem:[%s1963_s1 + $0x1e4] ss:$8 sps:$4 sm:$0xff]   ;;  %v1552_v44 = vld [vmem:[%s1963_s1 + $0x1e0] ss:$8 sps:$4 sm:$0xff]   ;;  %v1555_v46 = vld [vmem:[%s1963_s1 + $0x1d4] ss:$8 sps:$4 sm:$0xff]  }
  0x77   : > { %987 = vmatpush1.bf16.msra.mxu0 %v1515_v19  ;;  %v1557_v47 = vld [vmem:[%s1963_s1 + $0xd0] ss:$8 sps:$4 sm:$0xff]   ;;  %v1559_v49 = vld [vmem:[%s1963_s1 + $0xc4] ss:$8 sps:$4 sm:$0xff]   ;;  %v1563_v51 = vld [vmem:[%s1963_s1 + $0xc0] ss:$8 sps:$4 sm:$0xff]  }
  0x78   : > { %1030 = vmatpush1.bf16.msra.mxu1 %v1516_v20  ;;  %988 = vmatprep.subr.bf16.mxu0 %v1517_v21  ;;  %v1558_v48 = vld [vmem:[%s1963_s1 + $0x1d0] ss:$8 sps:$4 sm:$0xff]   ;;  %v1561_v50 = vld [vmem:[%s1963_s1 + $0x1c4] ss:$8 sps:$4 sm:$0xff]   ;;  %v1564_v53 = vld [vmem:[%s1963_s1 + $0x1c0] ss:$8 sps:$4 sm:$0xff]  }
  0x79   : > { %1031 = vmatprep.subr.bf16.mxu1 %v1519_v22  ;;  %v1591_v52 = vld [vmem:[%s1961_s6 + $0x4] ss:$16 sps:$4 sm:$0xff]   ;;  %v1594_v56 = vld [vmem:[%s1961_s6 + $0xc] ss:$16 sps:$4 sm:$0xff]   ;;  %v1569_v57 = vld [vmem:[%s1963_s1 + $0xb0] ss:$8 sps:$4 sm:$0xff]  }
  0x7a   : > { %v1565_v54 = vld [vmem:[%s1963_s1 + $0xb4] ss:$8 sps:$4 sm:$0xff]   ;;  %1012 = vmatprep.mubr.bf16.mxu0 %v1591_v52  ;;  %1055 = vmatprep.mubr.bf16.mxu1 %v1594_v56  ;;  %v1570_v58 = vld [vmem:[%s1963_s1 + $0x1b0] ss:$8 sps:$4 sm:$0xff]   ;;  %v1571_v59 = vld [vmem:[%s1963_s1 + $0xa4] ss:$8 sps:$4 sm:$0xff]  }
  0x7b   : > { %989 = vmatpush1.bf16.msra.mxu0 %v1521_v23  ;;  %v1567_v55 = vld [vmem:[%s1963_s1 + $0x1b4] ss:$8 sps:$4 sm:$0xff]   ;;  %v1573_v60 = vld [vmem:[%s1963_s1 + $0x1a4] ss:$8 sps:$4 sm:$0xff]   ;;  %v1575_v61 = vld [vmem:[%s1963_s1 + $0xa0] ss:$8 sps:$4 sm:$0xff]  }
  0x7c   : > { %1032 = vmatpush1.bf16.msra.mxu1 %v1522_v24  ;;  %990 = vmatprep.subr.bf16.mxu0 %v1523_v25  ;;  %v1576_v62 = vld [vmem:[%s1963_s1 + $0x1a0] ss:$8 sps:$4 sm:$0xff]   ;;  %v1577_v63 = vld [vmem:[%s1963_s1 + $0x94] ss:$8 sps:$4 sm:$0xff]   ;;  %v1581_v1 = vld [vmem:[%s1963_s1 + $0x90] ss:$8 sps:$4 sm:$0xff]  }
  0x7d   : > { %1033 = vmatprep.subr.bf16.mxu1 %v1525_v26  ;;  %v1579_v0 = vld [vmem:[%s1963_s1 + $0x194] ss:$8 sps:$4 sm:$0xff]   ;;  %v1582_v2 = vld [vmem:[%s1963_s1 + $0x190] ss:$8 sps:$4 sm:$0xff]   ;;  %v1583_v3 = vld [vmem:[%s1963_s1 + $0x84] ss:$8 sps:$4 sm:$0xff]  }
  0x7e   : > { %v1585_v4 = vld [vmem:[%s1963_s1 + $0x184] ss:$8 sps:$4 sm:$0xff]   ;;  %v1587_v5 = vld [vmem:[%s1963_s1 + $0x80] ss:$8 sps:$4 sm:$0xff]   ;;  %v570_v19 = vld [vmem:[%s1965_s24 + $0x10] sm:$0xff]  ;;  %p1395_p5 = scmp.ne.s32.totalorder %s1665_s18, 8 }
  0x7f   : > { %991 = vmatpush1.bf16.msra.mxu0 %v1527_v27  ;;  %v1588_v6 = vld [vmem:[%s1963_s1 + $0x180] ss:$8 sps:$4 sm:$0xff]   ;;  %v571_v24 = vld [vmem:[%s1965_s24 + $0x18] sm:$0xff] }
  0x80   : > { %1034 = vmatpush1.bf16.msra.mxu1 %v1528_v28  ;;  %992 = vmatprep.subr.bf16.mxu0 %v1529_v29  ;;  %v1589_v7 = vld [vmem:[%s1961_s6] ss:$16 sps:$4 sm:$0xff]   ;;  %v1592_v8 = vld [vmem:[%s1961_s6 + $0x8] ss:$16 sps:$4 sm:$0xff]  }
  0x81   : > { %1035 = vmatprep.subr.bf16.mxu1 %v1531_v30  ;;  %v568_v10 = vld [vmem:[%s1965_s24] sm:$0xff]  ;;  %v569_v14 = vld [vmem:[%s1965_s24 + $0x8] sm:$0xff] }
  0x83   : > { %993 = vmatpush1.bf16.msra.mxu0 %v1533_v31 }
  0x84   : > { %1036 = vmatpush1.bf16.msra.mxu1 %v1534_v32  ;;  %994 = vmatprep.subr.bf16.mxu0 %v1535_v33 }
  0x85   : > { %1037 = vmatprep.subr.bf16.mxu1 %v1537_v34 }
  0x87   : > { %995 = vmatpush1.bf16.msra.mxu0 %v1539_v35 }
  0x88   : > { %1038 = vmatpush1.bf16.msra.mxu1 %v1540_v36  ;;  %996 = vmatprep.subr.bf16.mxu0 %v1541_v37 }
  0x89   : > { %1039 = vmatprep.subr.bf16.mxu1 %v1543_v38 }
  0x8b   : > { %997 = vmatpush2.bf16.msra.mxu0 %v1545_v39 }
  0x8c   : > { %1040 = vmatpush2.bf16.msra.mxu1 %v1546_v40  ;;  %998 = vmatprep.subr.bf16.mxu0 %v1547_v41 }
  0x8d   : > { %1041 = vmatprep.subr.bf16.mxu1 %v1549_v42 }
  0x8f   : > { %999 = vmatpush2.bf16.msra.mxu0 %v1551_v43 }
  0x90   : > { %1042 = vmatpush2.bf16.msra.mxu1 %v1552_v44  ;;  %1000 = vmatprep.subr.bf16.mxu0 %v1553_v45 }
  0x91   : > { %1043 = vmatprep.subr.bf16.mxu1 %v1555_v46 }
  0x93   : > { %1001 = vmatpush2.bf16.msra.mxu0 %v1557_v47 }
  0x94   : > { %1044 = vmatpush2.bf16.msra.mxu1 %v1558_v48  ;;  %1002 = vmatprep.subr.bf16.mxu0 %v1559_v49 }
  0x95   : > { %1045 = vmatprep.subr.bf16.mxu1 %v1561_v50 }
  0x97   : > { %1003 = vmatpush2.bf16.msra.mxu0 %v1563_v51 }
  0x98   : > { %1046 = vmatpush2.bf16.msra.mxu1 %v1564_v53  ;;  %1004 = vmatprep.subr.bf16.mxu0 %v1565_v54 }
  0x99   : > { %1047 = vmatprep.subr.bf16.mxu1 %v1567_v55 }
  0x9b   : > { %1005 = vmatpush2.bf16.msra.mxu0 %v1569_v57 }
  0x9c   : > { %1048 = vmatpush2.bf16.msra.mxu1 %v1570_v58  ;;  %1006 = vmatprep.subr.bf16.mxu0 %v1571_v59 }
  0x9d   : > { %1049 = vmatprep.subr.bf16.mxu1 %v1573_v60 }
  0x9f   : > { %1007 = vmatpush2.bf16.msra.mxu0 %v1575_v61 }
  0xa0   : > { %1050 = vmatpush2.bf16.msra.mxu1 %v1576_v62  ;;  %1008 = vmatprep.subr.bf16.mxu0 %v1577_v63 }
  0xa1   : > { %1051 = vmatprep.subr.bf16.mxu1 %v1579_v0 }
  0xa3   : > { %1009 = vmatpush2.bf16.msra.mxu0 %v1581_v1 }
  0xa4   : > { %1052 = vmatpush2.bf16.msra.mxu1 %v1582_v2  ;;  %1010 = vmatprep.subr.bf16.mxu0 %v1583_v3 }
  0xa5   : > { %1053 = vmatprep.subr.bf16.mxu1 %v1585_v4 }
  0xa7   : > { %1011 = vmatpush2.bf16.msra.mxu0 %v1587_v5 }
  0xa8   : > { %1054 = vmatpush2.bf16.msra.mxu1 %v1588_v6 }
  0xaa   : > { %1013 = vmatmul.mubr.bf16.vlgmr.msra.gmra.mxu0 %v1589_v7 }
  0xab   : > { %1056 = vmatmul.mubr.bf16.vlgmr.msra.gmra.mxu1 %v1592_v8 }
 0x16a   : > { %v1014_v9 = vpop.f32.mrf.mxu0 }
 0x16b   : > { %v1057_v11 = vpop.f32.mrf.mxu1 }
 0x16c   : > { %v1058_v12 = vadd.f32 %v1057_v11, %v1014_v9  ;;  %v1016_v13 = vpop.f32.mrf.mxu0 }
 0x16d   : > { %v1059_v15 = vpop.f32.mrf.mxu1 }
 0x16e   : > { %v1066_v16 = vadd.f32 %v1058_v12, %v568_v10  ;;  %v1060_v17 = vadd.f32 %v1059_v15, %v1016_v13  ;;  %v1018_v18 = vpop.f32.mrf.mxu0 }
 0x16f   : > { %v1061_v20 = vpop.f32.mrf.mxu1 }
 0x170   : > { %1070 = vst [vmem:[%s1965_s24] sm:$0xff] %v1066_v16  ;;  %v1067_v21 = vadd.f32 %v1060_v17, %v569_v14  ;;  %v1062_v22 = vadd.f32 %v1061_v20, %v1018_v18  ;;  %v1020_v23 = vpop.f32.mrf.mxu0 }
 0x171   : > { %v1063_v25 = vpop.f32.mrf.mxu1 }
 0x172   : > { %1071 = vst [vmem:[%s1965_s24 + $0x8] sm:$0xff] %v1067_v21  ;;  %v1068_v26 = vadd.f32 %v1062_v22, %v570_v19  ;;  %v1064_v27 = vadd.f32 %v1063_v25, %v1020_v23  ;;  %1077 = sbr.rel (%p1395_p5) target bundleno = 401 (0x191), region = 97 }
 0x174   : > { %1072 = vst [vmem:[%s1965_s24 + $0x10] sm:$0xff] %v1068_v26  ;;  %v1069_v28 = vadd.f32 %v1064_v27, %v571_v24 }
 0x176   : > { %1073 = vst [vmem:[%s1965_s24 + $0x18] sm:$0xff] %v1069_v28 }
 0x177   : > { %v1078_v29 = vld [vmem:[%s1965_s24] sm:$0xff]  ;;  %v1114_v45 = vlaneseq }
 0x178   : > { %v1096_v33 = vmul.f32 %v1078_v29, %v1078_v29 }
 0x179   : > { %v1079_v31 = vld [vmem:[%s1965_s24 + $0x8] sm:$0xff]  ;;  %v1115_v54 = vshrl.u32 %v1114_v45, 7 }
 0x17a   : > { %v1097_v36 = vmul.f32 %v1079_v31, %v1079_v31 }
 0x17b   : > { %v1080_v30 = vld [vmem:[%s1965_s24 + $0x10] sm:$0xff]  ;;  %vm1117_vm0 = vcmp.eq.s32.totalorder %v1115_v54, 1  ;;  %vm1116_vm1 = vcmp.eq.s32.totalorder %v1115_v54, 0 }
 0x17c   : > { %v1082_v32 = vadd.f32 %v1080_v30, %v1078_v29  ;;  %v1098_v34 = vmul.f32 %v1080_v30, %v1080_v30 }
 0x17d   : > { %v1081_v35 = vld [vmem:[%s1965_s24 + $0x18] sm:$0xff] }
 0x17e   : > { %v1089_v37 = vadd.f32 %v1081_v35, %v1079_v31  ;;  %v1099_v38 = vmul.f32 %v1081_v35, %v1081_v35  ;;  %v1083_v39 = vrot.slane %v1082_v32, 4  ;;  %v1100_v40 = vadd.f32 %v1098_v34, %v1096_v33 }
 0x180   : > { %v1090_v41 = vrot.slane %v1089_v37, 4  ;;  %v1107_v42 = vadd.f32 %v1099_v38, %v1097_v36  ;;  %v1084_v43 = vadd.f32 %v1083_v39, %v1082_v32  ;;  %v1101_v44 = vrot.slane %v1100_v40, 4 }
 0x182   : > { %v1091_v46 = vadd.f32 %v1090_v41, %v1089_v37  ;;  %v1108_v47 = vrot.slane %v1107_v42, 4  ;;  %v1085_v48 = vrot.slane %v1084_v43, 2  ;;  %v1102_v49 = vadd.f32 %v1101_v44, %v1100_v40 }
 0x184   : > { %v1092_v50 = vrot.slane %v1091_v46, 2  ;;  %v1109_v51 = vadd.f32 %v1108_v47, %v1107_v42  ;;  %v1086_v52 = vadd.f32 %v1085_v48, %v1084_v43  ;;  %v1103_v53 = vrot.slane %v1102_v49, 2 }
 0x186   : > { %v1093_v55 = vadd.f32 %v1092_v50, %v1091_v46  ;;  %v1110_v56 = vrot.slane %v1109_v51, 2  ;;  %v1087_v57 = vrot.slane %v1086_v52, 1  ;;  %v1104_v58 = vadd.f32 %v1103_v53, %v1102_v49 }
 0x188   : > { %v1094_v59 = vrot.slane %v1093_v55, 1  ;;  %v1111_v60 = vadd.f32 %v1110_v56, %v1109_v51  ;;  %v1105_v61 = vrot.slane %v1104_v58, 1  ;;  %v1088_v62 = vadd.f32 %v1087_v57, %v1086_v52 }
 0x18a   : > { %v1112_v63 = vrot.slane %v1111_v60, 1  ;;  %v1106_v0 = vadd.f32 %v1105_v61, %v1104_v58  ;;  %v1095_v1 = vadd.f32 %v1094_v59, %v1093_v55 }
 0x18c   : > { %v1113_v2 = vadd.f32 %v1112_v63, %v1111_v60  ;;  %v1118_v3 = vsel %vm1117_vm0, %v1106_v0, 0.0 }
 0x18d   : > { %v1120_v4 = vsel %vm1116_vm1, %v1088_v62, %v1118_v3 }
 0x18e   : > { %v1119_v5 = vsel %vm1117_vm0, %v1113_v2, 0.0  ;;  %1122 = vst [vmem:[%s1959_s27] sm:$0xff] %v1120_v4 }
 0x18f   : > { %v1121_v6 = vsel %vm1116_vm1, %v1095_v1, %v1119_v5 }
 0x190   : > { %1123 = vst [vmem:[%s1959_s27 + $0x8] sm:$0xff] %v1121_v6 }
 0x191 PF: > { %1139 = sbr.rel (!%p1798_p12) target bundleno = 409 (0x199), region = 101  ;;  %s1403_s1 = sshll.u32 (%p1798_p12), %s1669_s19, 4  ;;  %v1158_v7 = vld [vmem:[%s1965_s24] sm:$0xff] (%p1798_p12) }
 0x192   : > { %s1145_s16 = scalar_lea.vmem (%p1798_p12), %s2100_s2, %s1403_s1 }
 0x193   : > { %v1160_v8 = vld [vmem:[%s1965_s24 + $0x8] sm:$0xff] (%p1798_p12)  ;;  %1159 = vst [vmem:[%s1145_s16] sm:$0xff] (%p1798_p12), %v1158_v7 }
 0x194   : > { %1161 = vst [vmem:[%s1145_s16 + $0x8] sm:$0xff] (%p1798_p12), %v1160_v8 }
 0x195   : > { %v1162_v9 = vld [vmem:[%s1965_s24 + $0x10] sm:$0xff] (%p1798_p12) }
 0x196   : > { %1163 = vst [vmem:[%s1145_s16 + $0x20] sm:$0xff] %v1162_v9 }
 0x197   : > { %v1164_v10 = vld [vmem:[%s1965_s24 + $0x18] sm:$0xff] }
 0x198   : > { %1165 = vst [vmem:[%s1145_s16 + $0x28] sm:$0xff] %v1164_v10 }
 0x199 PF: > { %s14_s22 = sadd.s32 1, %s1681_s22   ;;  %s2113_s10 = sld [smem:[#allocation5_spill]] }
 0x19a   : > { %p11_p6 = scmp.ge.s32.totalorder %s14_s22, 20   ;;  %s2114_s0 = sld [smem:[#allocation6_spill]] }
 0x19b   : > { %s2115_s12 = smov %s1645_s13  ;;  %s2116_s13 = smov %s1796_s9 }
 0x19c   : > { %s2117_s14 = smov %s1653_s15  ;;  %s2118_s15 = smov %s1793_s8 }
 0x19d   : > { %s2119_s16 = smov %s1661_s17  ;;  %s2120_s17 = smov %s1779_s30 }
 0x19e   : > { %s2121_s18 = smov %s1673_s20  ;;  %s2122_s19 = smov %s1677_s21 }
 0x19f   : > { %s2123_s20 = smov %s2113_s10  ;;  %13 = sbr.rel (!%p11_p6) target bundleno = 9 (0x9), region = 175 }
 0x1a0   : > { %s2124_s21 = smov %s2114_s0 }

// kernel: attribute_cnn_forward.81
= control target key start
LH: loop header
LB: loop body
LE: loop exit
PB: predicated region body
PF: predicated region fallthrough
CT: control target
= control target key end

     0   :  { %s666_s1 = inlined_call_operand.vmem [shape: bf16[512,128], index: 1, kind: input, shape index: {}]   ;;  %s667_s0 = inlined_call_operand.vmem [shape: bf16[16,512], index: 0, kind: input, shape index: {}]   ;;  %s668_s2 = inlined_call_operand.vmem [shape: f32[1,128], index: 2, kind: input, shape index: {}]   ;;  %s669_s3 = inlined_call_operand.vmem [shape: f32[16,128], index: 3, kind: output, shape index: {}]  }
   0x1   :  { %v491_v0 = vld [vmem:[%s666_s1 + $0x78] sm:$0xff]   ;;  %v495_v4 = vld [vmem:[%s666_s1 + $0x70] sm:$0xff]   ;;  %v499_v8 = vld [vmem:[%s666_s1 + $0x68] sm:$0xff]  }
   0x2   :  { %v492_v1 = vld [vmem:[%s666_s1 + $0xf8] sm:$0xff]   ;;  %446 = vmatprep.subr.bf16.mxu0 %v491_v0  ;;  %v496_v5 = vld [vmem:[%s666_s1 + $0xf0] sm:$0xff]   ;;  %v500_v9 = vld [vmem:[%s666_s1 + $0xe8] sm:$0xff]  }
   0x3   :  { %v493_v2 = vld [vmem:[%s666_s1 + $0x38] sm:$0xff]   ;;  %468 = vmatprep.subr.bf16.mxu1 %v492_v1  ;;  %v497_v6 = vld [vmem:[%s666_s1 + $0x30] sm:$0xff]   ;;  %v501_v10 = vld [vmem:[%s666_s1 + $0x28] sm:$0xff]  }
   0x4   :  { %v494_v3 = vld [vmem:[%s666_s1 + $0xb8] sm:$0xff]   ;;  %447 = vmatpush3.bf16.msra.mxu0 %v493_v2  ;;  %v498_v7 = vld [vmem:[%s666_s1 + $0xb0] sm:$0xff]   ;;  %v502_v11 = vld [vmem:[%s666_s1 + $0xa8] sm:$0xff]  }
   0x5   :  { %469 = vmatpush3.bf16.msra.mxu1 %v494_v3  ;;  %448 = vmatprep.subr.bf16.mxu0 %v495_v4  ;;  %v503_v12 = vld [vmem:[%s666_s1 + $0x60] sm:$0xff]   ;;  %v507_v16 = vld [vmem:[%s666_s1 + $0x58] sm:$0xff]   ;;  %v511_v20 = vld [vmem:[%s666_s1 + $0x50] sm:$0xff]  }
   0x6   :  { %470 = vmatprep.subr.bf16.mxu1 %v496_v5  ;;  %v504_v13 = vld [vmem:[%s666_s1 + $0xe0] sm:$0xff]   ;;  %v508_v17 = vld [vmem:[%s666_s1 + $0xd8] sm:$0xff]   ;;  %v512_v21 = vld [vmem:[%s666_s1 + $0xd0] sm:$0xff]  }
   0x7   :  { %v505_v14 = vld [vmem:[%s666_s1 + $0x20] sm:$0xff]   ;;  %v509_v18 = vld [vmem:[%s666_s1 + $0x18] sm:$0xff]   ;;  %v513_v22 = vld [vmem:[%s666_s1 + $0x10] sm:$0xff]  }
   0x8   :  { %449 = vmatpush3.bf16.msra.mxu0 %v497_v6  ;;  %v506_v15 = vld [vmem:[%s666_s1 + $0xa0] sm:$0xff]   ;;  %v510_v19 = vld [vmem:[%s666_s1 + $0x98] sm:$0xff]   ;;  %v514_v23 = vld [vmem:[%s666_s1 + $0x90] sm:$0xff]  }
   0x9   :  { %471 = vmatpush3.bf16.msra.mxu1 %v498_v7  ;;  %450 = vmatprep.subr.bf16.mxu0 %v499_v8  ;;  %v515_v24 = vld [vmem:[%s666_s1 + $0x48] sm:$0xff]   ;;  %v519_v28 = vld [vmem:[%s666_s1 + $0x40] sm:$0xff]  }
   0xa   :  { %472 = vmatprep.subr.bf16.mxu1 %v500_v9  ;;  %v516_v25 = vld [vmem:[%s666_s1 + $0xc8] sm:$0xff]   ;;  %v520_v29 = vld [vmem:[%s666_s1 + $0xc0] sm:$0xff]  }
   0xb   :  { %v517_v26 = vld [vmem:[%s666_s1 + $0x8] sm:$0xff]   ;;  %v521_v30 = vld [vmem:[%s666_s1] sm:$0xff]  }
   0xc   :  { %451 = vmatpush3.bf16.msra.mxu0 %v501_v10  ;;  %v518_v27 = vld [vmem:[%s666_s1 + $0x88] sm:$0xff]   ;;  %v522_v31 = vld [vmem:[%s666_s1 + $0x80] sm:$0xff]  }
   0xd   :  { %473 = vmatpush3.bf16.msra.mxu1 %v502_v11  ;;  %452 = vmatprep.subr.bf16.mxu0 %v503_v12  ;;  %v523_v32 = vld [vmem:[%s667_s0] ss:$16 sps:$4 sm:$0xff]   ;;  %v525_v33 = vld [vmem:[%s667_s0 + $0x4] ss:$16 sps:$4 sm:$0xff]   ;;  %v526_v34 = vld [vmem:[%s667_s0 + $0x8] ss:$16 sps:$4 sm:$0xff]  }
   0xe   :  { %474 = vmatprep.subr.bf16.mxu1 %v504_v13  ;;  %v528_v35 = vld [vmem:[%s667_s0 + $0xc] ss:$16 sps:$4 sm:$0xff]   ;;  %335 = vmatprep.mubr.bf16.mxu0 %v525_v33  ;;  %v445_v46 = vld [vmem:[%s668_s2] ss:$0 sm:$0xff] }
   0xf   :  { %376 = vmatprep.mubr.bf16.mxu1 %v528_v35 }
  0x10   :  { %453 = vmatpush3.bf16.msra.mxu0 %v505_v14 }
  0x11   :  { %475 = vmatpush3.bf16.msra.mxu1 %v506_v15  ;;  %454 = vmatprep.subr.bf16.mxu0 %v507_v16 }
  0x12   :  { %476 = vmatprep.subr.bf16.mxu1 %v508_v17 }
  0x14   :  { %455 = vmatpush3.bf16.msra.mxu0 %v509_v18 }
  0x15   :  { %477 = vmatpush3.bf16.msra.mxu1 %v510_v19  ;;  %456 = vmatprep.subr.bf16.mxu0 %v511_v20 }
  0x16   :  { %478 = vmatprep.subr.bf16.mxu1 %v512_v21 }
  0x18   :  { %457 = vmatpush3.bf16.msra.mxu0 %v513_v22 }
  0x19   :  { %479 = vmatpush3.bf16.msra.mxu1 %v514_v23  ;;  %458 = vmatprep.subr.bf16.mxu0 %v515_v24 }
  0x1a   :  { %480 = vmatprep.subr.bf16.mxu1 %v516_v25 }
  0x1c   :  { %459 = vmatpush3.bf16.msra.mxu0 %v517_v26 }
  0x1d   :  { %481 = vmatpush3.bf16.msra.mxu1 %v518_v27  ;;  %460 = vmatprep.subr.bf16.mxu0 %v519_v28 }
  0x1e   :  { %482 = vmatprep.subr.bf16.mxu1 %v520_v29 }
  0x20   :  { %461 = vmatpush3.bf16.msra.mxu0 %v521_v30 }
  0x21   :  { %483 = vmatpush3.bf16.msra.mxu1 %v522_v31 }
  0x23   :  { %336 = vmatmul.mubr.bf16.vlgmr.msra.gmra.mxu0 %v523_v32 }
  0x24   :  { %377 = vmatmul.mubr.bf16.vlgmr.msra.gmra.mxu1 %v526_v34 }
  0xe3   :  { %v462_v36 = vpop.f32.mrf.mxu0 }
  0xe4   :  { %v484_v37 = vpop.f32.mrf.mxu1 }
  0xe5   :  { %v463_v38 = vpop.f32.mrf.mxu0 }
  0xe6   :  { %v464_v39 = vadd.f32 %v463_v38, %v462_v36  ;;  %v485_v40 = vpop.f32.mrf.mxu1 }
  0xe7   :  { %v486_v41 = vadd.f32 %v485_v40, %v484_v37  ;;  %v465_v42 = vpop.f32.mrf.mxu0 }
  0xe8   :  { %v487_v43 = vpop.f32.mrf.mxu1 }
  0xe9   :  { %v379_v44 = vadd.f32 %v486_v41, %v464_v39  ;;  %v466_v45 = vpop.f32.mrf.mxu0 }
  0xea   :  { %v467_v47 = vadd.f32 %v466_v45, %v465_v42  ;;  %v488_v48 = vpop.f32.mrf.mxu1 }
  0xeb   :  { %v489_v49 = vadd.f32 %v488_v48, %v487_v43  ;;  %v401_v50 = vadd.f32 %v445_v46, %v379_v44 }
  0xed   :  { %v382_v51 = vadd.f32 %v489_v49, %v467_v47  ;;  %403 = vst [vmem:[%s669_s3] sm:$0xff] %v401_v50 }
  0xef   :  { %v402_v52 = vadd.f32 %v445_v46, %v382_v51 }
  0xf1   :  { %404 = vst [vmem:[%s669_s3 + $0x8] sm:$0xff] %v402_v52 }

</bundles_post_ra>
